<compile_context>
chip_gen: v6e
topology: v6e:2x2x1
jax: 0.10.0
libtpu: 0.0.40
codegen_flags: <defaults>
</compile_context>

<pallas_src>
import functools

import numpy as np

import jax
import jax.numpy as jnp
from jax.experimental import pallas as pl
from jax.experimental.pallas import tpu as pltpu

_VMEM_LIMIT = 32 * 1024 * 1024  # safe on v5e/v6e/v7x; actual use is ~8 MiB


def _round_up(x, m):
    return ((x + m - 1) // m) * m


# --------------------------------------------------------------------------- #
# Fused forward kernel: conv1 -> conv2 -> conv3 -> fc1 -> fc2 for ONE image.
#
# Layout conventions (see prepare_params for the matching weight permutations):
#   z    : (11, 11, 256)  space-to-depth(8) input: z[u,v,(r*8+c)*4+ch] =
#          x[ch, 8u+r, 8v+c]   (x zero-padded 84 -> 88; pad hits zero weights)
#   h1   : (100, 128)     h1[p*10+q, (a*2+b)*32+co] = conv1_out[2p+a, 2q+b, co]
#          (conv1 output already in space-to-depth(2) layout)
#   h2   : (81, 64)       h2[i*9+j, c] = conv2_out[i, j, c]
#   h3   : (49, 64)       h3[i*7+j, c] = conv3_out[i, j, c]
#   flat : (1, 3136)      row-major flatten of h3 (fc1 rows pre-permuted)
# --------------------------------------------------------------------------- #
def _dqn_fused_kernel(z_ref, w1_ref, b1_ref, w2_ref, b2_ref, w3_ref, b3_ref,
                      fw1_ref, fb1_ref, fw2_ref, fb2_ref, o_ref,
                      col1, h1, col2, h2, col3, h3, flat):
    # conv1: 8x8 stride-4 over 84x84x4 == 2x2 stride-1 over the s2d(8) input.
    for p in range(10):
        for u in range(2):
            for v in range(2):
                col1[p * 10:(p + 1) * 10,
                     (u * 2 + v) * 256:(u * 2 + v + 1) * 256] = (
                         z_ref[0, p + u, v:v + 10, :])
    a1 = jnp.dot(col1[...], w1_ref[...], preferred_element_type=jnp.float32)
    h1[...] = jnp.maximum(a1 + b1_ref[...], 0.0).astype(h1.dtype)

    # conv2: 4x4 stride-2 over 20x20x32 == 2x2 stride-1 over h1's s2d(2) layout.
    for i in range(9):
        for u in range(2):
            for v in range(2):
                src = (i + u) * 10 + v
                col2[i * 9:(i + 1) * 9,
                     (u * 2 + v) * 128:(u * 2 + v + 1) * 128] = h1[src:src + 9, :]
    a2 = jnp.dot(col2[...], w2_ref[...], preferred_element_type=jnp.float32)
    h2[...] = jnp.maximum(a2 + b2_ref[...], 0.0).astype(h2.dtype)

    # conv3: 3x3 stride-1 over 9x9x64.
    for i in range(7):
        for ki in range(3):
            for kj in range(3):
                src = (i + ki) * 9 + kj
                col3[i * 7:(i + 1) * 7,
                     (ki * 3 + kj) * 64:(ki * 3 + kj + 1) * 64] = h2[src:src + 7, :]
    a3 = jnp.dot(col3[...], w3_ref[...], preferred_element_type=jnp.float32)
    h3[...] = jnp.maximum(a3 + b3_ref[...], 0.0).astype(h3.dtype)

    # flatten (49, 64) -> (1, 3136) row by row (cheap lane-window stores; avoids
    # a sublane->lane reshape of the value).
    for r in range(49):
        flat[0:1, r * 64:(r + 1) * 64] = h3[r:r + 1, :]

    # fc1 (+ReLU) and fc2; the hidden vector never leaves vregs.
    g = jnp.dot(flat[...], fw1_ref[...], preferred_element_type=jnp.float32)
    g = jnp.maximum(g + fb1_ref[...], 0.0).astype(jnp.bfloat16)
    q = jnp.dot(g, fw2_ref[...], preferred_element_type=jnp.float32) + fb2_ref[...]
    o_ref[0] = q


# ------------------------------ host-side glue ----------------------------- #
def _space_to_depth8(x):
    """(B, 4, 84, 84) f32 -> (B, 11, 11, 256) bf16 with
    z[b, u, v, (r*8+c)*4+ch] = x[b, ch, 8u+r, 8v+c] (zero padded 84 -> 88)."""
    B, C, H, W = x.shape
    assert (C, H, W) == (4, 84, 84), "kernel is specialized to 4x84x84 inputs"
    xp = jnp.pad(x, ((0, 0), (0, 0), (0, 4), (0, 4)))      # (B, 4, 88, 88)
    xp = xp.reshape(B, 4, 11, 8, 11, 8)                    # b, ch, u, r, v, c
    z = jnp.transpose(xp, (0, 2, 4, 3, 5, 1))              # b, u, v, r, c, ch
    return z.reshape(B, 11, 11, 256).astype(jnp.bfloat16)


def network_forward(params, x, *, num_actions):
    """Pallas equivalent of Network.forward(x) = net(x / 255). x: (B,4,84,84)."""
    B = x.shape[0]
    z = _space_to_depth8(x)
    n2 = params["f2w"].shape[1]

    out = pl.pallas_call(
        _dqn_fused_kernel,
        out_shape=jax.ShapeDtypeStruct((B, 1, n2), jnp.float32),
        grid=(B,),
        in_specs=[
            pl.BlockSpec((1, 11, 11, 256), lambda b: (b, 0, 0, 0)),
            pl.BlockSpec((1024, 128), lambda b: (0, 0)),
            pl.BlockSpec((1, 128), lambda b: (0, 0)),
            pl.BlockSpec((512, 64), lambda b: (0, 0)),
            pl.BlockSpec((1, 64), lambda b: (0, 0)),
            pl.BlockSpec((576, 64), lambda b: (0, 0)),
            pl.BlockSpec((1, 64), lambda b: (0, 0)),
            pl.BlockSpec((3136, 512), lambda b: (0, 0)),
            pl.BlockSpec((1, 512), lambda b: (0, 0)),
            pl.BlockSpec((512, n2), lambda b: (0, 0)),
            pl.BlockSpec((1, n2), lambda b: (0, 0)),
        ],
        out_specs=pl.BlockSpec((1, 1, n2), lambda b: (b, 0, 0)),
        scratch_shapes=[
            pltpu.VMEM((100, 1024), jnp.bfloat16),   # col1 (conv1 im2col)
            pltpu.VMEM((100, 128), jnp.bfloat16),    # h1 (s2d(2) layout)
            pltpu.VMEM((81, 512), jnp.bfloat16),     # col2
            pltpu.VMEM((81, 64), jnp.bfloat16),      # h2
            pltpu.VMEM((49, 576), jnp.bfloat16),     # col3
            pltpu.VMEM((49, 64), jnp.bfloat16),      # h3
            pltpu.VMEM((1, 3136), jnp.bfloat16),     # flattened conv features
        ],
        compiler_params=pltpu.CompilerParams(
            dimension_semantics=("parallel",),
            vmem_limit_bytes=_VMEM_LIMIT),
    )(z, params["c1w"], params["c1b"], params["c2w"], params["c2b"],
      params["c3w"], params["c3b"], params["f1w"], params["f1b"],
      params["f2w"], params["f2b"])
    return out[:, 0, :num_actions]


# ------------------------------- parameters -------------------------------- #
def init_params(key, in_ch=4, num_actions=6):
    """Torch-layout parameters with PyTorch's default U(-1/sqrt(fan_in), .) init."""
    def uinit(k, shape, fan_in):
        bound = 1.0 / (fan_in ** 0.5)
        return jax.random.uniform(k, shape, jnp.float32, -bound, bound)

    ks = jax.random.split(key, 10)
    n_flatten = 64 * 7 * 7  # 3136 for 84x84 inputs, as in the module
    return {
        "c1w": uinit(ks[0], (32, in_ch, 8, 8), in_ch * 8 * 8),
        "c1b": uinit(ks[1], (32,), in_ch * 8 * 8),
        "c2w": uinit(ks[2], (64, 32, 4, 4), 32 * 4 * 4),
        "c2b": uinit(ks[3], (64,), 32 * 4 * 4),
        "c3w": uinit(ks[4], (64, 64, 3, 3), 64 * 3 * 3),
        "c3b": uinit(ks[5], (64,), 64 * 3 * 3),
        "f1w": uinit(ks[6], (512, n_flatten), n_flatten),   # torch (out, in)
        "f1b": uinit(ks[7], (512,), n_flatten),
        "f2w": uinit(ks[8], (num_actions, 512), 512),
        "f2b": uinit(ks[9], (num_actions,), 512),
    }


def prepare_params(p):
    """One-time host-side repack of torch-layout params into the kernel's matmul
    layouts (bf16 weights, f32 biases); folds the 1/255 input scale into conv1."""
    c1w = np.asarray(p["c1w"], np.float32)   # (32, 4, 8, 8)  (Cout, Cin, KH, KW)
    c1b = np.asarray(p["c1b"], np.float32)
    c2w = np.asarray(p["c2w"], np.float32)   # (64, 32, 4, 4)
    c2b = np.asarray(p["c2b"], np.float32)
    c3w = np.asarray(p["c3w"], np.float32)   # (64, 64, 3, 3)
    c3b = np.asarray(p["c3b"], np.float32)
    f1w = np.asarray(p["f1w"], np.float32)   # (512, 3136)
    f1b = np.asarray(p["f1b"], np.float32)
    f2w = np.asarray(p["f2w"], np.float32)   # (na, 512)
    f2b = np.asarray(p["f2b"], np.float32)

    # conv1 as one (1024, 128) matmul over the space-to-depth(8) input, producing
    # the 4 output phases (a, b) as 32-channel groups (= s2d(2) of conv1 output).
    w1 = np.zeros((1024, 128), np.float32)
    for a in range(2):
        for b in range(2):
            for ki in range(8):
                u, r = divmod(4 * a + ki, 8)
                for kj in range(8):
                    v, c = divmod(4 * b + kj, 8)
                    row = (u * 2 + v) * 256 + (r * 8 + c) * 4
                    col = (a * 2 + b) * 32
                    w1[row:row + 4, col:col + 32] = c1w[:, :, ki, kj].T / 255.0
    b1 = np.tile(c1b, 4)                                     # (128,)

    # conv2: 4x4 stride-2 == 2x2 stride-1 over the s2d(2) layout of conv1's out.
    w2 = np.transpose(c2w, (2, 3, 1, 0))          # (ki, kj, cin, cout)
    w2 = w2.reshape(2, 2, 2, 2, 32, 64)           # (A, a, B, b, cin, cout)
    w2 = np.transpose(w2, (0, 2, 1, 3, 4, 5))     # (A, B, a, b, cin, cout)
    w2 = w2.reshape(512, 64)

    # conv3: plain 3x3 stride-1 im2col weight, feature order (ki, kj, cin).
    w3 = np.transpose(c3w, (2, 3, 1, 0)).reshape(576, 64)

    # fc1: permute rows from torch's NCHW flatten (c*49 + i*7 + j) to the
    # kernel's flatten ((i*7 + j)*64 + c).
    fw1 = np.transpose(f1w.reshape(512, 64, 7, 7), (2, 3, 1, 0)).reshape(3136, 512)

    # fc2: transpose and pad the action dim to a 128-lane multiple.
    na = f2w.shape[0]
    n2 = _round_up(na, 128)
    fw2 = np.zeros((512, n2), np.float32)
    fw2[:, :na] = f2w.T
    fb2 = np.zeros((n2,), np.float32)
    fb2[:na] = f2b

    bf = lambda a: jnp.asarray(a, dtype=jnp.bfloat16)
    f32 = lambda a: jnp.asarray(a, dtype=jnp.float32)
    return {
        "c1w": bf(w1), "c1b": f32(b1.reshape(1, 128)),
        "c2w": bf(w2), "c2b": f32(c2b.reshape(1, 64)),
        "c3w": bf(w3), "c3b": f32(c3b.reshape(1, 64)),
        "f1w": bf(fw1), "f1b": f32(f1b.reshape(1, 512)),
        "f2w": bf(fw2), "f2b": f32(fb2.reshape(1, n2)),
    }


# ------------------------------ f32 reference ------------------------------- #
def _reference_forward(raw, x):
    """Pure-XLA float32 reference of Network.forward for correctness checking."""
    dn = ("NCHW", "OIHW", "NCHW")
    prec = jax.lax.Precision.HIGHEST
    h = x.astype(jnp.float32) / 255.0
    h = jax.lax.conv_general_dilated(h, raw["c1w"], (4, 4), "VALID",
                                     dimension_numbers=dn, precision=prec)
    h = jax.nn.relu(h + raw["c1b"][None, :, None, None])
    h = jax.lax.conv_general_dilated(h, raw["c2w"], (2, 2), "VALID",
                                     dimension_numbers=dn, precision=prec)
    h = jax.nn.relu(h + raw["c2b"][None, :, None, None])
    h = jax.lax.conv_general_dilated(h, raw["c3w"], (1, 1), "VALID",
                                     dimension_numbers=dn, precision=prec)
    h = jax.nn.relu(h + raw["c3b"][None, :, None, None])
    h = h.reshape(h.shape[0], -1)                         # NCHW flatten (3136)
    h = jax.nn.relu(jnp.dot(h, raw["f1w"].T, precision=prec) + raw["f1b"])
    return jnp.dot(h, raw["f2w"].T, precision=prec) + raw["f2b"]


if __name__ == "__main__":
    key = jax.random.PRNGKey(0)
    pkey, xkey = jax.random.split(key)

    NUM_ACTIONS = 6          # SpaceInvadersNoFrameskip-v4 action space
    B = 2                    # small batch

    raw_params = init_params(pkey, in_ch=4, num_actions=NUM_ACTIONS)
    params = prepare_params(raw_params)      # one-time host-side prep

    # 4 stacked grayscale 84x84 frames, pixel values in [0, 255)
    x = jax.random.uniform(xkey, (B, 4, 84, 84), jnp.float32, 0.0, 255.0)

    fwd = jax.jit(functools.partial(network_forward, num_actions=NUM_ACTIONS))
    q = fwd(params, x)
    jax.block_until_ready(q)

    assert q.shape == (B, NUM_ACTIONS), q.shape
    assert q.dtype == jnp.float32

    # Loose-tolerance check vs the float32 XLA reference (kernel uses bf16
    # weights/activations with f32 accumulation).
    q_ref = _reference_forward(raw_params, x)
    err = float(jnp.max(jnp.abs(q - q_ref)))
    assert err < 5e-2, f"max abs error vs reference: {err}"
    print("KERNEL_OK")
</pallas_src>

<mosaic_0001>
module attributes {stable_mosaic.version = 11 : i64} {
  func.func @_dqn_fused_kernel(%arg0: i32, %arg1: memref<1x11x11x256xbf16, #tpu.memory_space<vmem>>, %arg2: memref<1024x128xbf16, #tpu.memory_space<vmem>>, %arg3: memref<1x128xf32, #tpu.memory_space<vmem>>, %arg4: memref<512x64xbf16, #tpu.memory_space<vmem>>, %arg5: memref<1x64xf32, #tpu.memory_space<vmem>>, %arg6: memref<576x64xbf16, #tpu.memory_space<vmem>>, %arg7: memref<1x64xf32, #tpu.memory_space<vmem>>, %arg8: memref<3136x512xbf16, #tpu.memory_space<vmem>>, %arg9: memref<1x512xf32, #tpu.memory_space<vmem>>, %arg10: memref<512x128xbf16, #tpu.memory_space<vmem>>, %arg11: memref<1x128xf32, #tpu.memory_space<vmem>>, %arg12: memref<1x1x128xf32, #tpu.memory_space<vmem>>, %arg13: memref<100x1024xbf16, #tpu.memory_space<vmem>>, %arg14: memref<100x128xbf16, #tpu.memory_space<vmem>>, %arg15: memref<81x512xbf16, #tpu.memory_space<vmem>>, %arg16: memref<81x64xbf16, #tpu.memory_space<vmem>>, %arg17: memref<49x576xbf16, #tpu.memory_space<vmem>>, %arg18: memref<49x64xbf16, #tpu.memory_space<vmem>>, %arg19: memref<1x3136xbf16, #tpu.memory_space<vmem>>) attributes {dimension_semantics = [#tpu.dimension_semantics<parallel>], iteration_bounds = array<i64: 2>, scalar_prefetch = 0 : i64, scratch_operands = 7 : i64, tpu.core_type = #tpu.core_type<tc>, window_params = [{transform_indices = @transform_0, window_bounds = array<i64: 1, 11, 11, 256>}, {pipeline_mode = #tpu.pipeline_mode<synchronous>, transform_indices = @transform_1, window_bounds = array<i64: 1024, 128>}, {pipeline_mode = #tpu.pipeline_mode<synchronous>, transform_indices = @transform_2, window_bounds = array<i64: 1, 128>}, {pipeline_mode = #tpu.pipeline_mode<synchronous>, transform_indices = @transform_3, window_bounds = array<i64: 512, 64>}, {pipeline_mode = #tpu.pipeline_mode<synchronous>, transform_indices = @transform_4, window_bounds = array<i64: 1, 64>}, {pipeline_mode = #tpu.pipeline_mode<synchronous>, transform_indices = @transform_5, window_bounds = array<i64: 576, 64>}, {pipeline_mode = #tpu.pipeline_mode<synchronous>, transform_indices = @transform_6, window_bounds = array<i64: 1, 64>}, {pipeline_mode = #tpu.pipeline_mode<synchronous>, transform_indices = @transform_7, window_bounds = array<i64: 3136, 512>}, {pipeline_mode = #tpu.pipeline_mode<synchronous>, transform_indices = @transform_8, window_bounds = array<i64: 1, 512>}, {pipeline_mode = #tpu.pipeline_mode<synchronous>, transform_indices = @transform_9, window_bounds = array<i64: 512, 128>}, {pipeline_mode = #tpu.pipeline_mode<synchronous>, transform_indices = @transform_10, window_bounds = array<i64: 1, 128>}, {transform_indices = @transform_11, window_bounds = array<i64: 1, 1, 128>}]} {
    %c0 = arith.constant 0 : index
    %c0_0 = arith.constant 0 : index
    %c0_1 = arith.constant 0 : index
    %c0_2 = arith.constant 0 : index
    %0 = vector.load %arg1[%c0, %c0_0, %c0_1, %c0_2] : memref<1x11x11x256xbf16, #tpu.memory_space<vmem>>, vector<1x1x10x256xbf16>
    %1 = vector.shape_cast %0 : vector<1x1x10x256xbf16> to vector<10x256xbf16>
    %c0_3 = arith.constant 0 : index
    %c0_4 = arith.constant 0 : index
    %2 = vector.load %arg13[%c0_3, %c0_4] : memref<100x1024xbf16, #tpu.memory_space<vmem>>, vector<10x256xbf16>
    tpu.vector_store %arg13[%c0_3, %c0_4], %1 {strides = array<i32>} : memref<100x1024xbf16, #tpu.memory_space<vmem>>, vector<10x256xbf16>,
    %c0_5 = arith.constant 0 : index
    %c0_6 = arith.constant 0 : index
    %c1 = arith.constant 1 : index
    %c0_7 = arith.constant 0 : index
    %3 = vector.load %arg1[%c0_5, %c0_6, %c1, %c0_7] : memref<1x11x11x256xbf16, #tpu.memory_space<vmem>>, vector<1x1x10x256xbf16>
    %4 = vector.shape_cast %3 : vector<1x1x10x256xbf16> to vector<10x256xbf16>
    %c0_8 = arith.constant 0 : index
    %c256 = arith.constant 256 : index
    %5 = vector.load %arg13[%c0_8, %c256] : memref<100x1024xbf16, #tpu.memory_space<vmem>>, vector<10x256xbf16>
    tpu.vector_store %arg13[%c0_8, %c256], %4 {strides = array<i32>} : memref<100x1024xbf16, #tpu.memory_space<vmem>>, vector<10x256xbf16>,
    %c0_9 = arith.constant 0 : index
    %c1_10 = arith.constant 1 : index
    %c0_11 = arith.constant 0 : index
    %c0_12 = arith.constant 0 : index
    %6 = vector.load %arg1[%c0_9, %c1_10, %c0_11, %c0_12] : memref<1x11x11x256xbf16, #tpu.memory_space<vmem>>, vector<1x1x10x256xbf16>
    %7 = vector.shape_cast %6 : vector<1x1x10x256xbf16> to vector<10x256xbf16>
    %c0_13 = arith.constant 0 : index
    %c512 = arith.constant 512 : index
    %8 = vector.load %arg13[%c0_13, %c512] : memref<100x1024xbf16, #tpu.memory_space<vmem>>, vector<10x256xbf16>
    tpu.vector_store %arg13[%c0_13, %c512], %7 {strides = array<i32>} : memref<100x1024xbf16, #tpu.memory_space<vmem>>, vector<10x256xbf16>,
    %c0_14 = arith.constant 0 : index
    %c1_15 = arith.constant 1 : index
    %c1_16 = arith.constant 1 : index
    %c0_17 = arith.constant 0 : index
    %9 = vector.load %arg1[%c0_14, %c1_15, %c1_16, %c0_17] : memref<1x11x11x256xbf16, #tpu.memory_space<vmem>>, vector<1x1x10x256xbf16>
    %10 = vector.shape_cast %9 : vector<1x1x10x256xbf16> to vector<10x256xbf16>
    %c0_18 = arith.constant 0 : index
    %c768 = arith.constant 768 : index
    %11 = vector.load %arg13[%c0_18, %c768] : memref<100x1024xbf16, #tpu.memory_space<vmem>>, vector<10x256xbf16>
    tpu.vector_store %arg13[%c0_18, %c768], %10 {strides = array<i32>} : memref<100x1024xbf16, #tpu.memory_space<vmem>>, vector<10x256xbf16>,
    %c0_19 = arith.constant 0 : index
    %c1_20 = arith.constant 1 : index
    %c0_21 = arith.constant 0 : index
    %c0_22 = arith.constant 0 : index
    %12 = vector.load %arg1[%c0_19, %c1_20, %c0_21, %c0_22] : memref<1x11x11x256xbf16, #tpu.memory_space<vmem>>, vector<1x1x10x256xbf16>
    %13 = vector.shape_cast %12 : vector<1x1x10x256xbf16> to vector<10x256xbf16>
    %c10 = arith.constant 10 : index
    %c0_23 = arith.constant 0 : index
    %14 = vector.load %arg13[%c10, %c0_23] : memref<100x1024xbf16, #tpu.memory_space<vmem>>, vector<10x256xbf16>
    tpu.vector_store %arg13[%c10, %c0_23], %13 {strides = array<i32>} : memref<100x1024xbf16, #tpu.memory_space<vmem>>, vector<10x256xbf16>,
    %c0_24 = arith.constant 0 : index
    %c1_25 = arith.constant 1 : index
    %c1_26 = arith.constant 1 : index
    %c0_27 = arith.constant 0 : index
    %15 = vector.load %arg1[%c0_24, %c1_25, %c1_26, %c0_27] : memref<1x11x11x256xbf16, #tpu.memory_space<vmem>>, vector<1x1x10x256xbf16>
    %16 = vector.shape_cast %15 : vector<1x1x10x256xbf16> to vector<10x256xbf16>
    %c10_28 = arith.constant 10 : index
    %c256_29 = arith.constant 256 : index
    %17 = vector.load %arg13[%c10_28, %c256_29] : memref<100x1024xbf16, #tpu.memory_space<vmem>>, vector<10x256xbf16>
    tpu.vector_store %arg13[%c10_28, %c256_29], %16 {strides = array<i32>} : memref<100x1024xbf16, #tpu.memory_space<vmem>>, vector<10x256xbf16>,
    %c0_30 = arith.constant 0 : index
    %c2 = arith.constant 2 : index
    %c0_31 = arith.constant 0 : index
    %c0_32 = arith.constant 0 : index
    %18 = vector.load %arg1[%c0_30, %c2, %c0_31, %c0_32] : memref<1x11x11x256xbf16, #tpu.memory_space<vmem>>, vector<1x1x10x256xbf16>
    %19 = vector.shape_cast %18 : vector<1x1x10x256xbf16> to vector<10x256xbf16>
    %c10_33 = arith.constant 10 : index
    %c512_34 = arith.constant 512 : index
    %20 = vector.load %arg13[%c10_33, %c512_34] : memref<100x1024xbf16, #tpu.memory_space<vmem>>, vector<10x256xbf16>
    tpu.vector_store %arg13[%c10_33, %c512_34], %19 {strides = array<i32>} : memref<100x1024xbf16, #tpu.memory_space<vmem>>, vector<10x256xbf16>,
    %c0_35 = arith.constant 0 : index
    %c2_36 = arith.constant 2 : index
    %c1_37 = arith.constant 1 : index
    %c0_38 = arith.constant 0 : index
    %21 = vector.load %arg1[%c0_35, %c2_36, %c1_37, %c0_38] : memref<1x11x11x256xbf16, #tpu.memory_space<vmem>>, vector<1x1x10x256xbf16>
    %22 = vector.shape_cast %21 : vector<1x1x10x256xbf16> to vector<10x256xbf16>
    %c10_39 = arith.constant 10 : index
    %c768_40 = arith.constant 768 : index
    %23 = vector.load %arg13[%c10_39, %c768_40] : memref<100x1024xbf16, #tpu.memory_space<vmem>>, vector<10x256xbf16>
    tpu.vector_store %arg13[%c10_39, %c768_40], %22 {strides = array<i32>} : memref<100x1024xbf16, #tpu.memory_space<vmem>>, vector<10x256xbf16>,
    %c0_41 = arith.constant 0 : index
    %c2_42 = arith.constant 2 : index
    %c0_43 = arith.constant 0 : index
    %c0_44 = arith.constant 0 : index
    %24 = vector.load %arg1[%c0_41, %c2_42, %c0_43, %c0_44] : memref<1x11x11x256xbf16, #tpu.memory_space<vmem>>, vector<1x1x10x256xbf16>
    %25 = vector.shape_cast %24 : vector<1x1x10x256xbf16> to vector<10x256xbf16>
    %c20 = arith.constant 20 : index
    %c0_45 = arith.constant 0 : index
    %26 = vector.load %arg13[%c20, %c0_45] : memref<100x1024xbf16, #tpu.memory_space<vmem>>, vector<10x256xbf16>
    tpu.vector_store %arg13[%c20, %c0_45], %25 {strides = array<i32>} : memref<100x1024xbf16, #tpu.memory_space<vmem>>, vector<10x256xbf16>,
    %c0_46 = arith.constant 0 : index
    %c2_47 = arith.constant 2 : index
    %c1_48 = arith.constant 1 : index
    %c0_49 = arith.constant 0 : index
    %27 = vector.load %arg1[%c0_46, %c2_47, %c1_48, %c0_49] : memref<1x11x11x256xbf16, #tpu.memory_space<vmem>>, vector<1x1x10x256xbf16>
    %28 = vector.shape_cast %27 : vector<1x1x10x256xbf16> to vector<10x256xbf16>
    %c20_50 = arith.constant 20 : index
    %c256_51 = arith.constant 256 : index
    %29 = vector.load %arg13[%c20_50, %c256_51] : memref<100x1024xbf16, #tpu.memory_space<vmem>>, vector<10x256xbf16>
    tpu.vector_store %arg13[%c20_50, %c256_51], %28 {strides = array<i32>} : memref<100x1024xbf16, #tpu.memory_space<vmem>>, vector<10x256xbf16>,
    %c0_52 = arith.constant 0 : index
    %c3 = arith.constant 3 : index
    %c0_53 = arith.constant 0 : index
    %c0_54 = arith.constant 0 : index
    %30 = vector.load %arg1[%c0_52, %c3, %c0_53, %c0_54] : memref<1x11x11x256xbf16, #tpu.memory_space<vmem>>, vector<1x1x10x256xbf16>
    %31 = vector.shape_cast %30 : vector<1x1x10x256xbf16> to vector<10x256xbf16>
    %c20_55 = arith.constant 20 : index
    %c512_56 = arith.constant 512 : index
    %32 = vector.load %arg13[%c20_55, %c512_56] : memref<100x1024xbf16, #tpu.memory_space<vmem>>, vector<10x256xbf16>
    tpu.vector_store %arg13[%c20_55, %c512_56], %31 {strides = array<i32>} : memref<100x1024xbf16, #tpu.memory_space<vmem>>, vector<10x256xbf16>,
    %c0_57 = arith.constant 0 : index
    %c3_58 = arith.constant 3 : index
    %c1_59 = arith.constant 1 : index
    %c0_60 = arith.constant 0 : index
    %33 = vector.load %arg1[%c0_57, %c3_58, %c1_59, %c0_60] : memref<1x11x11x256xbf16, #tpu.memory_space<vmem>>, vector<1x1x10x256xbf16>
    %34 = vector.shape_cast %33 : vector<1x1x10x256xbf16> to vector<10x256xbf16>
    %c20_61 = arith.constant 20 : index
    %c768_62 = arith.constant 768 : index
    %35 = vector.load %arg13[%c20_61, %c768_62] : memref<100x1024xbf16, #tpu.memory_space<vmem>>, vector<10x256xbf16>
    tpu.vector_store %arg13[%c20_61, %c768_62], %34 {strides = array<i32>} : memref<100x1024xbf16, #tpu.memory_space<vmem>>, vector<10x256xbf16>,
    %c0_63 = arith.constant 0 : index
    %c3_64 = arith.constant 3 : index
    %c0_65 = arith.constant 0 : index
    %c0_66 = arith.constant 0 : index
    %36 = vector.load %arg1[%c0_63, %c3_64, %c0_65, %c0_66] : memref<1x11x11x256xbf16, #tpu.memory_space<vmem>>, vector<1x1x10x256xbf16>
    %37 = vector.shape_cast %36 : vector<1x1x10x256xbf16> to vector<10x256xbf16>
    %c30 = arith.constant 30 : index
    %c0_67 = arith.constant 0 : index
    %38 = vector.load %arg13[%c30, %c0_67] : memref<100x1024xbf16, #tpu.memory_space<vmem>>, vector<10x256xbf16>
    tpu.vector_store %arg13[%c30, %c0_67], %37 {strides = array<i32>} : memref<100x1024xbf16, #tpu.memory_space<vmem>>, vector<10x256xbf16>,
    %c0_68 = arith.constant 0 : index
    %c3_69 = arith.constant 3 : index
    %c1_70 = arith.constant 1 : index
    %c0_71 = arith.constant 0 : index
    %39 = vector.load %arg1[%c0_68, %c3_69, %c1_70, %c0_71] : memref<1x11x11x256xbf16, #tpu.memory_space<vmem>>, vector<1x1x10x256xbf16>
    %40 = vector.shape_cast %39 : vector<1x1x10x256xbf16> to vector<10x256xbf16>
    %c30_72 = arith.constant 30 : index
    %c256_73 = arith.constant 256 : index
    %41 = vector.load %arg13[%c30_72, %c256_73] : memref<100x1024xbf16, #tpu.memory_space<vmem>>, vector<10x256xbf16>
    tpu.vector_store %arg13[%c30_72, %c256_73], %40 {strides = array<i32>} : memref<100x1024xbf16, #tpu.memory_space<vmem>>, vector<10x256xbf16>,
    %c0_74 = arith.constant 0 : index
    %c4 = arith.constant 4 : index
    %c0_75 = arith.constant 0 : index
    %c0_76 = arith.constant 0 : index
    %42 = vector.load %arg1[%c0_74, %c4, %c0_75, %c0_76] : memref<1x11x11x256xbf16, #tpu.memory_space<vmem>>, vector<1x1x10x256xbf16>
    %43 = vector.shape_cast %42 : vector<1x1x10x256xbf16> to vector<10x256xbf16>
    %c30_77 = arith.constant 30 : index
    %c512_78 = arith.constant 512 : index
    %44 = vector.load %arg13[%c30_77, %c512_78] : memref<100x1024xbf16, #tpu.memory_space<vmem>>, vector<10x256xbf16>
    tpu.vector_store %arg13[%c30_77, %c512_78], %43 {strides = array<i32>} : memref<100x1024xbf16, #tpu.memory_space<vmem>>, vector<10x256xbf16>,
    %c0_79 = arith.constant 0 : index
    %c4_80 = arith.constant 4 : index
    %c1_81 = arith.constant 1 : index
    %c0_82 = arith.constant 0 : index
    %45 = vector.load %arg1[%c0_79, %c4_80, %c1_81, %c0_82] : memref<1x11x11x256xbf16, #tpu.memory_space<vmem>>, vector<1x1x10x256xbf16>
    %46 = vector.shape_cast %45 : vector<1x1x10x256xbf16> to vector<10x256xbf16>
    %c30_83 = arith.constant 30 : index
    %c768_84 = arith.constant 768 : index
    %47 = vector.load %arg13[%c30_83, %c768_84] : memref<100x1024xbf16, #tpu.memory_space<vmem>>, vector<10x256xbf16>
    tpu.vector_store %arg13[%c30_83, %c768_84], %46 {strides = array<i32>} : memref<100x1024xbf16, #tpu.memory_space<vmem>>, vector<10x256xbf16>,
    %c0_85 = arith.constant 0 : index
    %c4_86 = arith.constant 4 : index
    %c0_87 = arith.constant 0 : index
    %c0_88 = arith.constant 0 : index
    %48 = vector.load %arg1[%c0_85, %c4_86, %c0_87, %c0_88] : memref<1x11x11x256xbf16, #tpu.memory_space<vmem>>, vector<1x1x10x256xbf16>
    %49 = vector.shape_cast %48 : vector<1x1x10x256xbf16> to vector<10x256xbf16>
    %c40 = arith.constant 40 : index
    %c0_89 = arith.constant 0 : index
    %50 = vector.load %arg13[%c40, %c0_89] : memref<100x1024xbf16, #tpu.memory_space<vmem>>, vector<10x256xbf16>
    tpu.vector_store %arg13[%c40, %c0_89], %49 {strides = array<i32>} : memref<100x1024xbf16, #tpu.memory_space<vmem>>, vector<10x256xbf16>,
    %c0_90 = arith.constant 0 : index
    %c4_91 = arith.constant 4 : index
    %c1_92 = arith.constant 1 : index
    %c0_93 = arith.constant 0 : index
    %51 = vector.load %arg1[%c0_90, %c4_91, %c1_92, %c0_93] : memref<1x11x11x256xbf16, #tpu.memory_space<vmem>>, vector<1x1x10x256xbf16>
    %52 = vector.shape_cast %51 : vector<1x1x10x256xbf16> to vector<10x256xbf16>
    %c40_94 = arith.constant 40 : index
    %c256_95 = arith.constant 256 : index
    %53 = vector.load %arg13[%c40_94, %c256_95] : memref<100x1024xbf16, #tpu.memory_space<vmem>>, vector<10x256xbf16>
    tpu.vector_store %arg13[%c40_94, %c256_95], %52 {strides = array<i32>} : memref<100x1024xbf16, #tpu.memory_space<vmem>>, vector<10x256xbf16>,
    %c0_96 = arith.constant 0 : index
    %c5 = arith.constant 5 : index
    %c0_97 = arith.constant 0 : index
    %c0_98 = arith.constant 0 : index
    %54 = vector.load %arg1[%c0_96, %c5, %c0_97, %c0_98] : memref<1x11x11x256xbf16, #tpu.memory_space<vmem>>, vector<1x1x10x256xbf16>
    %55 = vector.shape_cast %54 : vector<1x1x10x256xbf16> to vector<10x256xbf16>
    %c40_99 = arith.constant 40 : index
    %c512_100 = arith.constant 512 : index
    %56 = vector.load %arg13[%c40_99, %c512_100] : memref<100x1024xbf16, #tpu.memory_space<vmem>>, vector<10x256xbf16>
    tpu.vector_store %arg13[%c40_99, %c512_100], %55 {strides = array<i32>} : memref<100x1024xbf16, #tpu.memory_space<vmem>>, vector<10x256xbf16>,
    %c0_101 = arith.constant 0 : index
    %c5_102 = arith.constant 5 : index
    %c1_103 = arith.constant 1 : index
    %c0_104 = arith.constant 0 : index
    %57 = vector.load %arg1[%c0_101, %c5_102, %c1_103, %c0_104] : memref<1x11x11x256xbf16, #tpu.memory_space<vmem>>, vector<1x1x10x256xbf16>
    %58 = vector.shape_cast %57 : vector<1x1x10x256xbf16> to vector<10x256xbf16>
    %c40_105 = arith.constant 40 : index
    %c768_106 = arith.constant 768 : index
    %59 = vector.load %arg13[%c40_105, %c768_106] : memref<100x1024xbf16, #tpu.memory_space<vmem>>, vector<10x256xbf16>
    tpu.vector_store %arg13[%c40_105, %c768_106], %58 {strides = array<i32>} : memref<100x1024xbf16, #tpu.memory_space<vmem>>, vector<10x256xbf16>,
    %c0_107 = arith.constant 0 : index
    %c5_108 = arith.constant 5 : index
    %c0_109 = arith.constant 0 : index
    %c0_110 = arith.constant 0 : index
    %60 = vector.load %arg1[%c0_107, %c5_108, %c0_109, %c0_110] : memref<1x11x11x256xbf16, #tpu.memory_space<vmem>>, vector<1x1x10x256xbf16>
    %61 = vector.shape_cast %60 : vector<1x1x10x256xbf16> to vector<10x256xbf16>
    %c50 = arith.constant 50 : index
    %c0_111 = arith.constant 0 : index
    %62 = vector.load %arg13[%c50, %c0_111] : memref<100x1024xbf16, #tpu.memory_space<vmem>>, vector<10x256xbf16>
    tpu.vector_store %arg13[%c50, %c0_111], %61 {strides = array<i32>} : memref<100x1024xbf16, #tpu.memory_space<vmem>>, vector<10x256xbf16>,
    %c0_112 = arith.constant 0 : index
    %c5_113 = arith.constant 5 : index
    %c1_114 = arith.constant 1 : index
    %c0_115 = arith.constant 0 : index
    %63 = vector.load %arg1[%c0_112, %c5_113, %c1_114, %c0_115] : memref<1x11x11x256xbf16, #tpu.memory_space<vmem>>, vector<1x1x10x256xbf16>
    %64 = vector.shape_cast %63 : vector<1x1x10x256xbf16> to vector<10x256xbf16>
    %c50_116 = arith.constant 50 : index
    %c256_117 = arith.constant 256 : index
    %65 = vector.load %arg13[%c50_116, %c256_117] : memref<100x1024xbf16, #tpu.memory_space<vmem>>, vector<10x256xbf16>
    tpu.vector_store %arg13[%c50_116, %c256_117], %64 {strides = array<i32>} : memref<100x1024xbf16, #tpu.memory_space<vmem>>, vector<10x256xbf16>,
    %c0_118 = arith.constant 0 : index
    %c6 = arith.constant 6 : index
    %c0_119 = arith.constant 0 : index
    %c0_120 = arith.constant 0 : index
    %66 = vector.load %arg1[%c0_118, %c6, %c0_119, %c0_120] : memref<1x11x11x256xbf16, #tpu.memory_space<vmem>>, vector<1x1x10x256xbf16>
    %67 = vector.shape_cast %66 : vector<1x1x10x256xbf16> to vector<10x256xbf16>
    %c50_121 = arith.constant 50 : index
    %c512_122 = arith.constant 512 : index
    %68 = vector.load %arg13[%c50_121, %c512_122] : memref<100x1024xbf16, #tpu.memory_space<vmem>>, vector<10x256xbf16>
    tpu.vector_store %arg13[%c50_121, %c512_122], %67 {strides = array<i32>} : memref<100x1024xbf16, #tpu.memory_space<vmem>>, vector<10x256xbf16>,
    %c0_123 = arith.constant 0 : index
    %c6_124 = arith.constant 6 : index
    %c1_125 = arith.constant 1 : index
    %c0_126 = arith.constant 0 : index
    %69 = vector.load %arg1[%c0_123, %c6_124, %c1_125, %c0_126] : memref<1x11x11x256xbf16, #tpu.memory_space<vmem>>, vector<1x1x10x256xbf16>
    %70 = vector.shape_cast %69 : vector<1x1x10x256xbf16> to vector<10x256xbf16>
    %c50_127 = arith.constant 50 : index
    %c768_128 = arith.constant 768 : index
    %71 = vector.load %arg13[%c50_127, %c768_128] : memref<100x1024xbf16, #tpu.memory_space<vmem>>, vector<10x256xbf16>
    tpu.vector_store %arg13[%c50_127, %c768_128], %70 {strides = array<i32>} : memref<100x1024xbf16, #tpu.memory_space<vmem>>, vector<10x256xbf16>,
    %c0_129 = arith.constant 0 : index
    %c6_130 = arith.constant 6 : index
    %c0_131 = arith.constant 0 : index
    %c0_132 = arith.constant 0 : index
    %72 = vector.load %arg1[%c0_129, %c6_130, %c0_131, %c0_132] : memref<1x11x11x256xbf16, #tpu.memory_space<vmem>>, vector<1x1x10x256xbf16>
    %73 = vector.shape_cast %72 : vector<1x1x10x256xbf16> to vector<10x256xbf16>
    %c60 = arith.constant 60 : index
    %c0_133 = arith.constant 0 : index
    %74 = vector.load %arg13[%c60, %c0_133] : memref<100x1024xbf16, #tpu.memory_space<vmem>>, vector<10x256xbf16>
    tpu.vector_store %arg13[%c60, %c0_133], %73 {strides = array<i32>} : memref<100x1024xbf16, #tpu.memory_space<vmem>>, vector<10x256xbf16>,
    %c0_134 = arith.constant 0 : index
    %c6_135 = arith.constant 6 : index
    %c1_136 = arith.constant 1 : index
    %c0_137 = arith.constant 0 : index
    %75 = vector.load %arg1[%c0_134, %c6_135, %c1_136, %c0_137] : memref<1x11x11x256xbf16, #tpu.memory_space<vmem>>, vector<1x1x10x256xbf16>
    %76 = vector.shape_cast %75 : vector<1x1x10x256xbf16> to vector<10x256xbf16>
    %c60_138 = arith.constant 60 : index
    %c256_139 = arith.constant 256 : index
    %77 = vector.load %arg13[%c60_138, %c256_139] : memref<100x1024xbf16, #tpu.memory_space<vmem>>, vector<10x256xbf16>
    tpu.vector_store %arg13[%c60_138, %c256_139], %76 {strides = array<i32>} : memref<100x1024xbf16, #tpu.memory_space<vmem>>, vector<10x256xbf16>,
    %c0_140 = arith.constant 0 : index
    %c7 = arith.constant 7 : index
    %c0_141 = arith.constant 0 : index
    %c0_142 = arith.constant 0 : index
    %78 = vector.load %arg1[%c0_140, %c7, %c0_141, %c0_142] : memref<1x11x11x256xbf16, #tpu.memory_space<vmem>>, vector<1x1x10x256xbf16>
    %79 = vector.shape_cast %78 : vector<1x1x10x256xbf16> to vector<10x256xbf16>
    %c60_143 = arith.constant 60 : index
    %c512_144 = arith.constant 512 : index
    %80 = vector.load %arg13[%c60_143, %c512_144] : memref<100x1024xbf16, #tpu.memory_space<vmem>>, vector<10x256xbf16>
    tpu.vector_store %arg13[%c60_143, %c512_144], %79 {strides = array<i32>} : memref<100x1024xbf16, #tpu.memory_space<vmem>>, vector<10x256xbf16>,
    %c0_145 = arith.constant 0 : index
    %c7_146 = arith.constant 7 : index
    %c1_147 = arith.constant 1 : index
    %c0_148 = arith.constant 0 : index
    %81 = vector.load %arg1[%c0_145, %c7_146, %c1_147, %c0_148] : memref<1x11x11x256xbf16, #tpu.memory_space<vmem>>, vector<1x1x10x256xbf16>
    %82 = vector.shape_cast %81 : vector<1x1x10x256xbf16> to vector<10x256xbf16>
    %c60_149 = arith.constant 60 : index
    %c768_150 = arith.constant 768 : index
    %83 = vector.load %arg13[%c60_149, %c768_150] : memref<100x1024xbf16, #tpu.memory_space<vmem>>, vector<10x256xbf16>
    tpu.vector_store %arg13[%c60_149, %c768_150], %82 {strides = array<i32>} : memref<100x1024xbf16, #tpu.memory_space<vmem>>, vector<10x256xbf16>,
    %c0_151 = arith.constant 0 : index
    %c7_152 = arith.constant 7 : index
    %c0_153 = arith.constant 0 : index
    %c0_154 = arith.constant 0 : index
    %84 = vector.load %arg1[%c0_151, %c7_152, %c0_153, %c0_154] : memref<1x11x11x256xbf16, #tpu.memory_space<vmem>>, vector<1x1x10x256xbf16>
    %85 = vector.shape_cast %84 : vector<1x1x10x256xbf16> to vector<10x256xbf16>
    %c70 = arith.constant 70 : index
    %c0_155 = arith.constant 0 : index
    %86 = vector.load %arg13[%c70, %c0_155] : memref<100x1024xbf16, #tpu.memory_space<vmem>>, vector<10x256xbf16>
    tpu.vector_store %arg13[%c70, %c0_155], %85 {strides = array<i32>} : memref<100x1024xbf16, #tpu.memory_space<vmem>>, vector<10x256xbf16>,
    %c0_156 = arith.constant 0 : index
    %c7_157 = arith.constant 7 : index
    %c1_158 = arith.constant 1 : index
    %c0_159 = arith.constant 0 : index
    %87 = vector.load %arg1[%c0_156, %c7_157, %c1_158, %c0_159] : memref<1x11x11x256xbf16, #tpu.memory_space<vmem>>, vector<1x1x10x256xbf16>
    %88 = vector.shape_cast %87 : vector<1x1x10x256xbf16> to vector<10x256xbf16>
    %c70_160 = arith.constant 70 : index
    %c256_161 = arith.constant 256 : index
    %89 = vector.load %arg13[%c70_160, %c256_161] : memref<100x1024xbf16, #tpu.memory_space<vmem>>, vector<10x256xbf16>
    tpu.vector_store %arg13[%c70_160, %c256_161], %88 {strides = array<i32>} : memref<100x1024xbf16, #tpu.memory_space<vmem>>, vector<10x256xbf16>,
    %c0_162 = arith.constant 0 : index
    %c8 = arith.constant 8 : index
    %c0_163 = arith.constant 0 : index
    %c0_164 = arith.constant 0 : index
    %90 = vector.load %arg1[%c0_162, %c8, %c0_163, %c0_164] : memref<1x11x11x256xbf16, #tpu.memory_space<vmem>>, vector<1x1x10x256xbf16>
    %91 = vector.shape_cast %90 : vector<1x1x10x256xbf16> to vector<10x256xbf16>
    %c70_165 = arith.constant 70 : index
    %c512_166 = arith.constant 512 : index
    %92 = vector.load %arg13[%c70_165, %c512_166] : memref<100x1024xbf16, #tpu.memory_space<vmem>>, vector<10x256xbf16>
    tpu.vector_store %arg13[%c70_165, %c512_166], %91 {strides = array<i32>} : memref<100x1024xbf16, #tpu.memory_space<vmem>>, vector<10x256xbf16>,
    %c0_167 = arith.constant 0 : index
    %c8_168 = arith.constant 8 : index
    %c1_169 = arith.constant 1 : index
    %c0_170 = arith.constant 0 : index
    %93 = vector.load %arg1[%c0_167, %c8_168, %c1_169, %c0_170] : memref<1x11x11x256xbf16, #tpu.memory_space<vmem>>, vector<1x1x10x256xbf16>
    %94 = vector.shape_cast %93 : vector<1x1x10x256xbf16> to vector<10x256xbf16>
    %c70_171 = arith.constant 70 : index
    %c768_172 = arith.constant 768 : index
    %95 = vector.load %arg13[%c70_171, %c768_172] : memref<100x1024xbf16, #tpu.memory_space<vmem>>, vector<10x256xbf16>
    tpu.vector_store %arg13[%c70_171, %c768_172], %94 {strides = array<i32>} : memref<100x1024xbf16, #tpu.memory_space<vmem>>, vector<10x256xbf16>,
    %c0_173 = arith.constant 0 : index
    %c8_174 = arith.constant 8 : index
    %c0_175 = arith.constant 0 : index
    %c0_176 = arith.constant 0 : index
    %96 = vector.load %arg1[%c0_173, %c8_174, %c0_175, %c0_176] : memref<1x11x11x256xbf16, #tpu.memory_space<vmem>>, vector<1x1x10x256xbf16>
    %97 = vector.shape_cast %96 : vector<1x1x10x256xbf16> to vector<10x256xbf16>
    %c80 = arith.constant 80 : index
    %c0_177 = arith.constant 0 : index
    %98 = vector.load %arg13[%c80, %c0_177] : memref<100x1024xbf16, #tpu.memory_space<vmem>>, vector<10x256xbf16>
    tpu.vector_store %arg13[%c80, %c0_177], %97 {strides = array<i32>} : memref<100x1024xbf16, #tpu.memory_space<vmem>>, vector<10x256xbf16>,
    %c0_178 = arith.constant 0 : index
    %c8_179 = arith.constant 8 : index
    %c1_180 = arith.constant 1 : index
    %c0_181 = arith.constant 0 : index
    %99 = vector.load %arg1[%c0_178, %c8_179, %c1_180, %c0_181] : memref<1x11x11x256xbf16, #tpu.memory_space<vmem>>, vector<1x1x10x256xbf16>
    %100 = vector.shape_cast %99 : vector<1x1x10x256xbf16> to vector<10x256xbf16>
    %c80_182 = arith.constant 80 : index
    %c256_183 = arith.constant 256 : index
    %101 = vector.load %arg13[%c80_182, %c256_183] : memref<100x1024xbf16, #tpu.memory_space<vmem>>, vector<10x256xbf16>
    tpu.vector_store %arg13[%c80_182, %c256_183], %100 {strides = array<i32>} : memref<100x1024xbf16, #tpu.memory_space<vmem>>, vector<10x256xbf16>,
    %c0_184 = arith.constant 0 : index
    %c9 = arith.constant 9 : index
    %c0_185 = arith.constant 0 : index
    %c0_186 = arith.constant 0 : index
    %102 = vector.load %arg1[%c0_184, %c9, %c0_185, %c0_186] : memref<1x11x11x256xbf16, #tpu.memory_space<vmem>>, vector<1x1x10x256xbf16>
    %103 = vector.shape_cast %102 : vector<1x1x10x256xbf16> to vector<10x256xbf16>
    %c80_187 = arith.constant 80 : index
    %c512_188 = arith.constant 512 : index
    %104 = vector.load %arg13[%c80_187, %c512_188] : memref<100x1024xbf16, #tpu.memory_space<vmem>>, vector<10x256xbf16>
    tpu.vector_store %arg13[%c80_187, %c512_188], %103 {strides = array<i32>} : memref<100x1024xbf16, #tpu.memory_space<vmem>>, vector<10x256xbf16>,
    %c0_189 = arith.constant 0 : index
    %c9_190 = arith.constant 9 : index
    %c1_191 = arith.constant 1 : index
    %c0_192 = arith.constant 0 : index
    %105 = vector.load %arg1[%c0_189, %c9_190, %c1_191, %c0_192] : memref<1x11x11x256xbf16, #tpu.memory_space<vmem>>, vector<1x1x10x256xbf16>
    %106 = vector.shape_cast %105 : vector<1x1x10x256xbf16> to vector<10x256xbf16>
    %c80_193 = arith.constant 80 : index
    %c768_194 = arith.constant 768 : index
    %107 = vector.load %arg13[%c80_193, %c768_194] : memref<100x1024xbf16, #tpu.memory_space<vmem>>, vector<10x256xbf16>
    tpu.vector_store %arg13[%c80_193, %c768_194], %106 {strides = array<i32>} : memref<100x1024xbf16, #tpu.memory_space<vmem>>, vector<10x256xbf16>,
    %c0_195 = arith.constant 0 : index
    %c9_196 = arith.constant 9 : index
    %c0_197 = arith.constant 0 : index
    %c0_198 = arith.constant 0 : index
    %108 = vector.load %arg1[%c0_195, %c9_196, %c0_197, %c0_198] : memref<1x11x11x256xbf16, #tpu.memory_space<vmem>>, vector<1x1x10x256xbf16>
    %109 = vector.shape_cast %108 : vector<1x1x10x256xbf16> to vector<10x256xbf16>
    %c90 = arith.constant 90 : index
    %c0_199 = arith.constant 0 : index
    %110 = vector.load %arg13[%c90, %c0_199] : memref<100x1024xbf16, #tpu.memory_space<vmem>>, vector<10x256xbf16>
    tpu.vector_store %arg13[%c90, %c0_199], %109 {strides = array<i32>} : memref<100x1024xbf16, #tpu.memory_space<vmem>>, vector<10x256xbf16>,
    %c0_200 = arith.constant 0 : index
    %c9_201 = arith.constant 9 : index
    %c1_202 = arith.constant 1 : index
    %c0_203 = arith.constant 0 : index
    %111 = vector.load %arg1[%c0_200, %c9_201, %c1_202, %c0_203] : memref<1x11x11x256xbf16, #tpu.memory_space<vmem>>, vector<1x1x10x256xbf16>
    %112 = vector.shape_cast %111 : vector<1x1x10x256xbf16> to vector<10x256xbf16>
    %c90_204 = arith.constant 90 : index
    %c256_205 = arith.constant 256 : index
    %113 = vector.load %arg13[%c90_204, %c256_205] : memref<100x1024xbf16, #tpu.memory_space<vmem>>, vector<10x256xbf16>
    tpu.vector_store %arg13[%c90_204, %c256_205], %112 {strides = array<i32>} : memref<100x1024xbf16, #tpu.memory_space<vmem>>, vector<10x256xbf16>,
    %c0_206 = arith.constant 0 : index
    %c10_207 = arith.constant 10 : index
    %c0_208 = arith.constant 0 : index
    %c0_209 = arith.constant 0 : index
    %114 = vector.load %arg1[%c0_206, %c10_207, %c0_208, %c0_209] : memref<1x11x11x256xbf16, #tpu.memory_space<vmem>>, vector<1x1x10x256xbf16>
    %115 = vector.shape_cast %114 : vector<1x1x10x256xbf16> to vector<10x256xbf16>
    %c90_210 = arith.constant 90 : index
    %c512_211 = arith.constant 512 : index
    %116 = vector.load %arg13[%c90_210, %c512_211] : memref<100x1024xbf16, #tpu.memory_space<vmem>>, vector<10x256xbf16>
    tpu.vector_store %arg13[%c90_210, %c512_211], %115 {strides = array<i32>} : memref<100x1024xbf16, #tpu.memory_space<vmem>>, vector<10x256xbf16>,
    %c0_212 = arith.constant 0 : index
    %c10_213 = arith.constant 10 : index
    %c1_214 = arith.constant 1 : index
    %c0_215 = arith.constant 0 : index
    %117 = vector.load %arg1[%c0_212, %c10_213, %c1_214, %c0_215] : memref<1x11x11x256xbf16, #tpu.memory_space<vmem>>, vector<1x1x10x256xbf16>
    %118 = vector.shape_cast %117 : vector<1x1x10x256xbf16> to vector<10x256xbf16>
    %c90_216 = arith.constant 90 : index
    %c768_217 = arith.constant 768 : index
    %119 = vector.load %arg13[%c90_216, %c768_217] : memref<100x1024xbf16, #tpu.memory_space<vmem>>, vector<10x256xbf16>
    tpu.vector_store %arg13[%c90_216, %c768_217], %118 {strides = array<i32>} : memref<100x1024xbf16, #tpu.memory_space<vmem>>, vector<10x256xbf16>,
    %c0_218 = arith.constant 0 : index
    %c0_219 = arith.constant 0 : index
    %120 = vector.load %arg13[%c0_218, %c0_219] : memref<100x1024xbf16, #tpu.memory_space<vmem>>, vector<100x1024xbf16>
    %c0_220 = arith.constant 0 : index
    %c0_221 = arith.constant 0 : index
    %121 = vector.load %arg2[%c0_220, %c0_221] : memref<1024x128xbf16, #tpu.memory_space<vmem>>, vector<1024x128xbf16>
    %cst = arith.constant dense<0.000000e+00> : vector<100x128xf32>
    %122 = tpu.matmul %120, %121, %cst {dimension_numbers = #tpu.dot_dimension_numbers<[1], [0], [0], [1], [0, 0, 1, 1], [], []>} : vector<100x1024xbf16>, vector<1024x128xbf16>, vector<100x128xf32> -> vector<100x128xf32>
    %c0_222 = arith.constant 0 : index
    %c0_223 = arith.constant 0 : index
    %123 = vector.load %arg3[%c0_222, %c0_223] : memref<1x128xf32, #tpu.memory_space<vmem>>, vector<1x128xf32>
    %124 = vector.broadcast %123 : vector<1x128xf32> to vector<100x128xf32>
    %125 = arith.addf %122, %124 : vector<100x128xf32>
    %cst_224 = arith.constant 0.000000e+00 : f32
    %126 = vector.broadcast %cst_224 : f32 to vector<100x128xf32>
    %127 = arith.maximumf %125, %126 : vector<100x128xf32>
    %128 = arith.truncf %127 : vector<100x128xf32> to vector<100x128xbf16>
    %c0_225 = arith.constant 0 : index
    %c0_226 = arith.constant 0 : index
    %129 = vector.load %arg14[%c0_225, %c0_226] : memref<100x128xbf16, #tpu.memory_space<vmem>>, vector<100x128xbf16>
    tpu.vector_store %arg14[%c0_225, %c0_226], %128 {strides = array<i32>} : memref<100x128xbf16, #tpu.memory_space<vmem>>, vector<100x128xbf16>,
    %c0_227 = arith.constant 0 : index
    %c0_228 = arith.constant 0 : index
    %130 = vector.load %arg14[%c0_227, %c0_228] : memref<100x128xbf16, #tpu.memory_space<vmem>>, vector<9x128xbf16>
    %c0_229 = arith.constant 0 : index
    %c0_230 = arith.constant 0 : index
    %131 = vector.load %arg15[%c0_229, %c0_230] : memref<81x512xbf16, #tpu.memory_space<vmem>>, vector<9x128xbf16>
    tpu.vector_store %arg15[%c0_229, %c0_230], %130 {strides = array<i32>} : memref<81x512xbf16, #tpu.memory_space<vmem>>, vector<9x128xbf16>,
    %c1_231 = arith.constant 1 : index
    %c0_232 = arith.constant 0 : index
    %132 = vector.load %arg14[%c1_231, %c0_232] : memref<100x128xbf16, #tpu.memory_space<vmem>>, vector<9x128xbf16>
    %c0_233 = arith.constant 0 : index
    %c128 = arith.constant 128 : index
    %133 = vector.load %arg15[%c0_233, %c128] : memref<81x512xbf16, #tpu.memory_space<vmem>>, vector<9x128xbf16>
    tpu.vector_store %arg15[%c0_233, %c128], %132 {strides = array<i32>} : memref<81x512xbf16, #tpu.memory_space<vmem>>, vector<9x128xbf16>,
    %c10_234 = arith.constant 10 : index
    %c0_235 = arith.constant 0 : index
    %134 = vector.load %arg14[%c10_234, %c0_235] : memref<100x128xbf16, #tpu.memory_space<vmem>>, vector<9x128xbf16>
    %c0_236 = arith.constant 0 : index
    %c256_237 = arith.constant 256 : index
    %135 = vector.load %arg15[%c0_236, %c256_237] : memref<81x512xbf16, #tpu.memory_space<vmem>>, vector<9x128xbf16>
    tpu.vector_store %arg15[%c0_236, %c256_237], %134 {strides = array<i32>} : memref<81x512xbf16, #tpu.memory_space<vmem>>, vector<9x128xbf16>,
    %c11 = arith.constant 11 : index
    %c0_238 = arith.constant 0 : index
    %136 = vector.load %arg14[%c11, %c0_238] : memref<100x128xbf16, #tpu.memory_space<vmem>>, vector<9x128xbf16>
    %c0_239 = arith.constant 0 : index
    %c384 = arith.constant 384 : index
    %137 = vector.load %arg15[%c0_239, %c384] : memref<81x512xbf16, #tpu.memory_space<vmem>>, vector<9x128xbf16>
    tpu.vector_store %arg15[%c0_239, %c384], %136 {strides = array<i32>} : memref<81x512xbf16, #tpu.memory_space<vmem>>, vector<9x128xbf16>,
    %c10_240 = arith.constant 10 : index
    %c0_241 = arith.constant 0 : index
    %138 = vector.load %arg14[%c10_240, %c0_241] : memref<100x128xbf16, #tpu.memory_space<vmem>>, vector<9x128xbf16>
    %c9_242 = arith.constant 9 : index
    %c0_243 = arith.constant 0 : index
    %139 = vector.load %arg15[%c9_242, %c0_243] : memref<81x512xbf16, #tpu.memory_space<vmem>>, vector<9x128xbf16>
    tpu.vector_store %arg15[%c9_242, %c0_243], %138 {strides = array<i32>} : memref<81x512xbf16, #tpu.memory_space<vmem>>, vector<9x128xbf16>,
    %c11_244 = arith.constant 11 : index
    %c0_245 = arith.constant 0 : index
    %140 = vector.load %arg14[%c11_244, %c0_245] : memref<100x128xbf16, #tpu.memory_space<vmem>>, vector<9x128xbf16>
    %c9_246 = arith.constant 9 : index
    %c128_247 = arith.constant 128 : index
    %141 = vector.load %arg15[%c9_246, %c128_247] : memref<81x512xbf16, #tpu.memory_space<vmem>>, vector<9x128xbf16>
    tpu.vector_store %arg15[%c9_246, %c128_247], %140 {strides = array<i32>} : memref<81x512xbf16, #tpu.memory_space<vmem>>, vector<9x128xbf16>,
    %c20_248 = arith.constant 20 : index
    %c0_249 = arith.constant 0 : index
    %142 = vector.load %arg14[%c20_248, %c0_249] : memref<100x128xbf16, #tpu.memory_space<vmem>>, vector<9x128xbf16>
    %c9_250 = arith.constant 9 : index
    %c256_251 = arith.constant 256 : index
    %143 = vector.load %arg15[%c9_250, %c256_251] : memref<81x512xbf16, #tpu.memory_space<vmem>>, vector<9x128xbf16>
    tpu.vector_store %arg15[%c9_250, %c256_251], %142 {strides = array<i32>} : memref<81x512xbf16, #tpu.memory_space<vmem>>, vector<9x128xbf16>,
    %c21 = arith.constant 21 : index
    %c0_252 = arith.constant 0 : index
    %144 = vector.load %arg14[%c21, %c0_252] : memref<100x128xbf16, #tpu.memory_space<vmem>>, vector<9x128xbf16>
    %c9_253 = arith.constant 9 : index
    %c384_254 = arith.constant 384 : index
    %145 = vector.load %arg15[%c9_253, %c384_254] : memref<81x512xbf16, #tpu.memory_space<vmem>>, vector<9x128xbf16>
    tpu.vector_store %arg15[%c9_253, %c384_254], %144 {strides = array<i32>} : memref<81x512xbf16, #tpu.memory_space<vmem>>, vector<9x128xbf16>,
    %c20_255 = arith.constant 20 : index
    %c0_256 = arith.constant 0 : index
    %146 = vector.load %arg14[%c20_255, %c0_256] : memref<100x128xbf16, #tpu.memory_space<vmem>>, vector<9x128xbf16>
    %c18 = arith.constant 18 : index
    %c0_257 = arith.constant 0 : index
    %147 = vector.load %arg15[%c18, %c0_257] : memref<81x512xbf16, #tpu.memory_space<vmem>>, vector<9x128xbf16>
    tpu.vector_store %arg15[%c18, %c0_257], %146 {strides = array<i32>} : memref<81x512xbf16, #tpu.memory_space<vmem>>, vector<9x128xbf16>,
    %c21_258 = arith.constant 21 : index
    %c0_259 = arith.constant 0 : index
    %148 = vector.load %arg14[%c21_258, %c0_259] : memref<100x128xbf16, #tpu.memory_space<vmem>>, vector<9x128xbf16>
    %c18_260 = arith.constant 18 : index
    %c128_261 = arith.constant 128 : index
    %149 = vector.load %arg15[%c18_260, %c128_261] : memref<81x512xbf16, #tpu.memory_space<vmem>>, vector<9x128xbf16>
    tpu.vector_store %arg15[%c18_260, %c128_261], %148 {strides = array<i32>} : memref<81x512xbf16, #tpu.memory_space<vmem>>, vector<9x128xbf16>,
    %c30_262 = arith.constant 30 : index
    %c0_263 = arith.constant 0 : index
    %150 = vector.load %arg14[%c30_262, %c0_263] : memref<100x128xbf16, #tpu.memory_space<vmem>>, vector<9x128xbf16>
    %c18_264 = arith.constant 18 : index
    %c256_265 = arith.constant 256 : index
    %151 = vector.load %arg15[%c18_264, %c256_265] : memref<81x512xbf16, #tpu.memory_space<vmem>>, vector<9x128xbf16>
    tpu.vector_store %arg15[%c18_264, %c256_265], %150 {strides = array<i32>} : memref<81x512xbf16, #tpu.memory_space<vmem>>, vector<9x128xbf16>,
    %c31 = arith.constant 31 : index
    %c0_266 = arith.constant 0 : index
    %152 = vector.load %arg14[%c31, %c0_266] : memref<100x128xbf16, #tpu.memory_space<vmem>>, vector<9x128xbf16>
    %c18_267 = arith.constant 18 : index
    %c384_268 = arith.constant 384 : index
    %153 = vector.load %arg15[%c18_267, %c384_268] : memref<81x512xbf16, #tpu.memory_space<vmem>>, vector<9x128xbf16>
    tpu.vector_store %arg15[%c18_267, %c384_268], %152 {strides = array<i32>} : memref<81x512xbf16, #tpu.memory_space<vmem>>, vector<9x128xbf16>,
    %c30_269 = arith.constant 30 : index
    %c0_270 = arith.constant 0 : index
    %154 = vector.load %arg14[%c30_269, %c0_270] : memref<100x128xbf16, #tpu.memory_space<vmem>>, vector<9x128xbf16>
    %c27 = arith.constant 27 : index
    %c0_271 = arith.constant 0 : index
    %155 = vector.load %arg15[%c27, %c0_271] : memref<81x512xbf16, #tpu.memory_space<vmem>>, vector<9x128xbf16>
    tpu.vector_store %arg15[%c27, %c0_271], %154 {strides = array<i32>} : memref<81x512xbf16, #tpu.memory_space<vmem>>, vector<9x128xbf16>,
    %c31_272 = arith.constant 31 : index
    %c0_273 = arith.constant 0 : index
    %156 = vector.load %arg14[%c31_272, %c0_273] : memref<100x128xbf16, #tpu.memory_space<vmem>>, vector<9x128xbf16>
    %c27_274 = arith.constant 27 : index
    %c128_275 = arith.constant 128 : index
    %157 = vector.load %arg15[%c27_274, %c128_275] : memref<81x512xbf16, #tpu.memory_space<vmem>>, vector<9x128xbf16>
    tpu.vector_store %arg15[%c27_274, %c128_275], %156 {strides = array<i32>} : memref<81x512xbf16, #tpu.memory_space<vmem>>, vector<9x128xbf16>,
    %c40_276 = arith.constant 40 : index
    %c0_277 = arith.constant 0 : index
    %158 = vector.load %arg14[%c40_276, %c0_277] : memref<100x128xbf16, #tpu.memory_space<vmem>>, vector<9x128xbf16>
    %c27_278 = arith.constant 27 : index
    %c256_279 = arith.constant 256 : index
    %159 = vector.load %arg15[%c27_278, %c256_279] : memref<81x512xbf16, #tpu.memory_space<vmem>>, vector<9x128xbf16>
    tpu.vector_store %arg15[%c27_278, %c256_279], %158 {strides = array<i32>} : memref<81x512xbf16, #tpu.memory_space<vmem>>, vector<9x128xbf16>,
    %c41 = arith.constant 41 : index
    %c0_280 = arith.constant 0 : index
    %160 = vector.load %arg14[%c41, %c0_280] : memref<100x128xbf16, #tpu.memory_space<vmem>>, vector<9x128xbf16>
    %c27_281 = arith.constant 27 : index
    %c384_282 = arith.constant 384 : index
    %161 = vector.load %arg15[%c27_281, %c384_282] : memref<81x512xbf16, #tpu.memory_space<vmem>>, vector<9x128xbf16>
    tpu.vector_store %arg15[%c27_281, %c384_282], %160 {strides = array<i32>} : memref<81x512xbf16, #tpu.memory_space<vmem>>, vector<9x128xbf16>,
    %c40_283 = arith.constant 40 : index
    %c0_284 = arith.constant 0 : index
    %162 = vector.load %arg14[%c40_283, %c0_284] : memref<100x128xbf16, #tpu.memory_space<vmem>>, vector<9x128xbf16>
    %c36 = arith.constant 36 : index
    %c0_285 = arith.constant 0 : index
    %163 = vector.load %arg15[%c36, %c0_285] : memref<81x512xbf16, #tpu.memory_space<vmem>>, vector<9x128xbf16>
    tpu.vector_store %arg15[%c36, %c0_285], %162 {strides = array<i32>} : memref<81x512xbf16, #tpu.memory_space<vmem>>, vector<9x128xbf16>,
    %c41_286 = arith.constant 41 : index
    %c0_287 = arith.constant 0 : index
    %164 = vector.load %arg14[%c41_286, %c0_287] : memref<100x128xbf16, #tpu.memory_space<vmem>>, vector<9x128xbf16>
    %c36_288 = arith.constant 36 : index
    %c128_289 = arith.constant 128 : index
    %165 = vector.load %arg15[%c36_288, %c128_289] : memref<81x512xbf16, #tpu.memory_space<vmem>>, vector<9x128xbf16>
    tpu.vector_store %arg15[%c36_288, %c128_289], %164 {strides = array<i32>} : memref<81x512xbf16, #tpu.memory_space<vmem>>, vector<9x128xbf16>,
    %c50_290 = arith.constant 50 : index
    %c0_291 = arith.constant 0 : index
    %166 = vector.load %arg14[%c50_290, %c0_291] : memref<100x128xbf16, #tpu.memory_space<vmem>>, vector<9x128xbf16>
    %c36_292 = arith.constant 36 : index
    %c256_293 = arith.constant 256 : index
    %167 = vector.load %arg15[%c36_292, %c256_293] : memref<81x512xbf16, #tpu.memory_space<vmem>>, vector<9x128xbf16>
    tpu.vector_store %arg15[%c36_292, %c256_293], %166 {strides = array<i32>} : memref<81x512xbf16, #tpu.memory_space<vmem>>, vector<9x128xbf16>,
    %c51 = arith.constant 51 : index
    %c0_294 = arith.constant 0 : index
    %168 = vector.load %arg14[%c51, %c0_294] : memref<100x128xbf16, #tpu.memory_space<vmem>>, vector<9x128xbf16>
    %c36_295 = arith.constant 36 : index
    %c384_296 = arith.constant 384 : index
    %169 = vector.load %arg15[%c36_295, %c384_296] : memref<81x512xbf16, #tpu.memory_space<vmem>>, vector<9x128xbf16>
    tpu.vector_store %arg15[%c36_295, %c384_296], %168 {strides = array<i32>} : memref<81x512xbf16, #tpu.memory_space<vmem>>, vector<9x128xbf16>,
    %c50_297 = arith.constant 50 : index
    %c0_298 = arith.constant 0 : index
    %170 = vector.load %arg14[%c50_297, %c0_298] : memref<100x128xbf16, #tpu.memory_space<vmem>>, vector<9x128xbf16>
    %c45 = arith.constant 45 : index
    %c0_299 = arith.constant 0 : index
    %171 = vector.load %arg15[%c45, %c0_299] : memref<81x512xbf16, #tpu.memory_space<vmem>>, vector<9x128xbf16>
    tpu.vector_store %arg15[%c45, %c0_299], %170 {strides = array<i32>} : memref<81x512xbf16, #tpu.memory_space<vmem>>, vector<9x128xbf16>,
    %c51_300 = arith.constant 51 : index
    %c0_301 = arith.constant 0 : index
    %172 = vector.load %arg14[%c51_300, %c0_301] : memref<100x128xbf16, #tpu.memory_space<vmem>>, vector<9x128xbf16>
    %c45_302 = arith.constant 45 : index
    %c128_303 = arith.constant 128 : index
    %173 = vector.load %arg15[%c45_302, %c128_303] : memref<81x512xbf16, #tpu.memory_space<vmem>>, vector<9x128xbf16>
    tpu.vector_store %arg15[%c45_302, %c128_303], %172 {strides = array<i32>} : memref<81x512xbf16, #tpu.memory_space<vmem>>, vector<9x128xbf16>,
    %c60_304 = arith.constant 60 : index
    %c0_305 = arith.constant 0 : index
    %174 = vector.load %arg14[%c60_304, %c0_305] : memref<100x128xbf16, #tpu.memory_space<vmem>>, vector<9x128xbf16>
    %c45_306 = arith.constant 45 : index
    %c256_307 = arith.constant 256 : index
    %175 = vector.load %arg15[%c45_306, %c256_307] : memref<81x512xbf16, #tpu.memory_space<vmem>>, vector<9x128xbf16>
    tpu.vector_store %arg15[%c45_306, %c256_307], %174 {strides = array<i32>} : memref<81x512xbf16, #tpu.memory_space<vmem>>, vector<9x128xbf16>,
    %c61 = arith.constant 61 : index
    %c0_308 = arith.constant 0 : index
    %176 = vector.load %arg14[%c61, %c0_308] : memref<100x128xbf16, #tpu.memory_space<vmem>>, vector<9x128xbf16>
    %c45_309 = arith.constant 45 : index
    %c384_310 = arith.constant 384 : index
    %177 = vector.load %arg15[%c45_309, %c384_310] : memref<81x512xbf16, #tpu.memory_space<vmem>>, vector<9x128xbf16>
    tpu.vector_store %arg15[%c45_309, %c384_310], %176 {strides = array<i32>} : memref<81x512xbf16, #tpu.memory_space<vmem>>, vector<9x128xbf16>,
    %c60_311 = arith.constant 60 : index
    %c0_312 = arith.constant 0 : index
    %178 = vector.load %arg14[%c60_311, %c0_312] : memref<100x128xbf16, #tpu.memory_space<vmem>>, vector<9x128xbf16>
    %c54 = arith.constant 54 : index
    %c0_313 = arith.constant 0 : index
    %179 = vector.load %arg15[%c54, %c0_313] : memref<81x512xbf16, #tpu.memory_space<vmem>>, vector<9x128xbf16>
    tpu.vector_store %arg15[%c54, %c0_313], %178 {strides = array<i32>} : memref<81x512xbf16, #tpu.memory_space<vmem>>, vector<9x128xbf16>,
    %c61_314 = arith.constant 61 : index
    %c0_315 = arith.constant 0 : index
    %180 = vector.load %arg14[%c61_314, %c0_315] : memref<100x128xbf16, #tpu.memory_space<vmem>>, vector<9x128xbf16>
    %c54_316 = arith.constant 54 : index
    %c128_317 = arith.constant 128 : index
    %181 = vector.load %arg15[%c54_316, %c128_317] : memref<81x512xbf16, #tpu.memory_space<vmem>>, vector<9x128xbf16>
    tpu.vector_store %arg15[%c54_316, %c128_317], %180 {strides = array<i32>} : memref<81x512xbf16, #tpu.memory_space<vmem>>, vector<9x128xbf16>,
    %c70_318 = arith.constant 70 : index
    %c0_319 = arith.constant 0 : index
    %182 = vector.load %arg14[%c70_318, %c0_319] : memref<100x128xbf16, #tpu.memory_space<vmem>>, vector<9x128xbf16>
    %c54_320 = arith.constant 54 : index
    %c256_321 = arith.constant 256 : index
    %183 = vector.load %arg15[%c54_320, %c256_321] : memref<81x512xbf16, #tpu.memory_space<vmem>>, vector<9x128xbf16>
    tpu.vector_store %arg15[%c54_320, %c256_321], %182 {strides = array<i32>} : memref<81x512xbf16, #tpu.memory_space<vmem>>, vector<9x128xbf16>,
    %c71 = arith.constant 71 : index
    %c0_322 = arith.constant 0 : index
    %184 = vector.load %arg14[%c71, %c0_322] : memref<100x128xbf16, #tpu.memory_space<vmem>>, vector<9x128xbf16>
    %c54_323 = arith.constant 54 : index
    %c384_324 = arith.constant 384 : index
    %185 = vector.load %arg15[%c54_323, %c384_324] : memref<81x512xbf16, #tpu.memory_space<vmem>>, vector<9x128xbf16>
    tpu.vector_store %arg15[%c54_323, %c384_324], %184 {strides = array<i32>} : memref<81x512xbf16, #tpu.memory_space<vmem>>, vector<9x128xbf16>,
    %c70_325 = arith.constant 70 : index
    %c0_326 = arith.constant 0 : index
    %186 = vector.load %arg14[%c70_325, %c0_326] : memref<100x128xbf16, #tpu.memory_space<vmem>>, vector<9x128xbf16>
    %c63 = arith.constant 63 : index
    %c0_327 = arith.constant 0 : index
    %187 = vector.load %arg15[%c63, %c0_327] : memref<81x512xbf16, #tpu.memory_space<vmem>>, vector<9x128xbf16>
    tpu.vector_store %arg15[%c63, %c0_327], %186 {strides = array<i32>} : memref<81x512xbf16, #tpu.memory_space<vmem>>, vector<9x128xbf16>,
    %c71_328 = arith.constant 71 : index
    %c0_329 = arith.constant 0 : index
    %188 = vector.load %arg14[%c71_328, %c0_329] : memref<100x128xbf16, #tpu.memory_space<vmem>>, vector<9x128xbf16>
    %c63_330 = arith.constant 63 : index
    %c128_331 = arith.constant 128 : index
    %189 = vector.load %arg15[%c63_330, %c128_331] : memref<81x512xbf16, #tpu.memory_space<vmem>>, vector<9x128xbf16>
    tpu.vector_store %arg15[%c63_330, %c128_331], %188 {strides = array<i32>} : memref<81x512xbf16, #tpu.memory_space<vmem>>, vector<9x128xbf16>,
    %c80_332 = arith.constant 80 : index
    %c0_333 = arith.constant 0 : index
    %190 = vector.load %arg14[%c80_332, %c0_333] : memref<100x128xbf16, #tpu.memory_space<vmem>>, vector<9x128xbf16>
    %c63_334 = arith.constant 63 : index
    %c256_335 = arith.constant 256 : index
    %191 = vector.load %arg15[%c63_334, %c256_335] : memref<81x512xbf16, #tpu.memory_space<vmem>>, vector<9x128xbf16>
    tpu.vector_store %arg15[%c63_334, %c256_335], %190 {strides = array<i32>} : memref<81x512xbf16, #tpu.memory_space<vmem>>, vector<9x128xbf16>,
    %c81 = arith.constant 81 : index
    %c0_336 = arith.constant 0 : index
    %192 = vector.load %arg14[%c81, %c0_336] : memref<100x128xbf16, #tpu.memory_space<vmem>>, vector<9x128xbf16>
    %c63_337 = arith.constant 63 : index
    %c384_338 = arith.constant 384 : index
    %193 = vector.load %arg15[%c63_337, %c384_338] : memref<81x512xbf16, #tpu.memory_space<vmem>>, vector<9x128xbf16>
    tpu.vector_store %arg15[%c63_337, %c384_338], %192 {strides = array<i32>} : memref<81x512xbf16, #tpu.memory_space<vmem>>, vector<9x128xbf16>,
    %c80_339 = arith.constant 80 : index
    %c0_340 = arith.constant 0 : index
    %194 = vector.load %arg14[%c80_339, %c0_340] : memref<100x128xbf16, #tpu.memory_space<vmem>>, vector<9x128xbf16>
    %c72 = arith.constant 72 : index
    %c0_341 = arith.constant 0 : index
    %195 = vector.load %arg15[%c72, %c0_341] : memref<81x512xbf16, #tpu.memory_space<vmem>>, vector<9x128xbf16>
    tpu.vector_store %arg15[%c72, %c0_341], %194 {strides = array<i32>} : memref<81x512xbf16, #tpu.memory_space<vmem>>, vector<9x128xbf16>,
    %c81_342 = arith.constant 81 : index
    %c0_343 = arith.constant 0 : index
    %196 = vector.load %arg14[%c81_342, %c0_343] : memref<100x128xbf16, #tpu.memory_space<vmem>>, vector<9x128xbf16>
    %c72_344 = arith.constant 72 : index
    %c128_345 = arith.constant 128 : index
    %197 = vector.load %arg15[%c72_344, %c128_345] : memref<81x512xbf16, #tpu.memory_space<vmem>>, vector<9x128xbf16>
    tpu.vector_store %arg15[%c72_344, %c128_345], %196 {strides = array<i32>} : memref<81x512xbf16, #tpu.memory_space<vmem>>, vector<9x128xbf16>,
    %c90_346 = arith.constant 90 : index
    %c0_347 = arith.constant 0 : index
    %198 = vector.load %arg14[%c90_346, %c0_347] : memref<100x128xbf16, #tpu.memory_space<vmem>>, vector<9x128xbf16>
    %c72_348 = arith.constant 72 : index
    %c256_349 = arith.constant 256 : index
    %199 = vector.load %arg15[%c72_348, %c256_349] : memref<81x512xbf16, #tpu.memory_space<vmem>>, vector<9x128xbf16>
    tpu.vector_store %arg15[%c72_348, %c256_349], %198 {strides = array<i32>} : memref<81x512xbf16, #tpu.memory_space<vmem>>, vector<9x128xbf16>,
    %c91 = arith.constant 91 : index
    %c0_350 = arith.constant 0 : index
    %200 = vector.load %arg14[%c91, %c0_350] : memref<100x128xbf16, #tpu.memory_space<vmem>>, vector<9x128xbf16>
    %c72_351 = arith.constant 72 : index
    %c384_352 = arith.constant 384 : index
    %201 = vector.load %arg15[%c72_351, %c384_352] : memref<81x512xbf16, #tpu.memory_space<vmem>>, vector<9x128xbf16>
    tpu.vector_store %arg15[%c72_351, %c384_352], %200 {strides = array<i32>} : memref<81x512xbf16, #tpu.memory_space<vmem>>, vector<9x128xbf16>,
    %c0_353 = arith.constant 0 : index
    %c0_354 = arith.constant 0 : index
    %202 = vector.load %arg15[%c0_353, %c0_354] : memref<81x512xbf16, #tpu.memory_space<vmem>>, vector<81x512xbf16>
    %c0_355 = arith.constant 0 : index
    %c0_356 = arith.constant 0 : index
    %203 = vector.load %arg4[%c0_355, %c0_356] : memref<512x64xbf16, #tpu.memory_space<vmem>>, vector<512x64xbf16>
    %cst_357 = arith.constant dense<0.000000e+00> : vector<81x64xf32>
    %204 = tpu.matmul %202, %203, %cst_357 {dimension_numbers = #tpu.dot_dimension_numbers<[1], [0], [0], [1], [0, 0, 1, 1], [], []>} : vector<81x512xbf16>, vector<512x64xbf16>, vector<81x64xf32> -> vector<81x64xf32>
    %c0_358 = arith.constant 0 : index
    %c0_359 = arith.constant 0 : index
    %205 = vector.load %arg5[%c0_358, %c0_359] : memref<1x64xf32, #tpu.memory_space<vmem>>, vector<1x64xf32>
    %206 = vector.broadcast %205 : vector<1x64xf32> to vector<81x64xf32>
    %207 = arith.addf %204, %206 : vector<81x64xf32>
    %cst_360 = arith.constant 0.000000e+00 : f32
    %208 = vector.broadcast %cst_360 : f32 to vector<81x64xf32>
    %209 = arith.maximumf %207, %208 : vector<81x64xf32>
    %210 = arith.truncf %209 : vector<81x64xf32> to vector<81x64xbf16>
    %c0_361 = arith.constant 0 : index
    %c0_362 = arith.constant 0 : index
    %211 = vector.load %arg16[%c0_361, %c0_362] : memref<81x64xbf16, #tpu.memory_space<vmem>>, vector<81x64xbf16>
    tpu.vector_store %arg16[%c0_361, %c0_362], %210 {strides = array<i32>} : memref<81x64xbf16, #tpu.memory_space<vmem>>, vector<81x64xbf16>,
    %c0_363 = arith.constant 0 : index
    %c0_364 = arith.constant 0 : index
    %212 = vector.load %arg16[%c0_363, %c0_364] : memref<81x64xbf16, #tpu.memory_space<vmem>>, vector<7x64xbf16>
    %c0_365 = arith.constant 0 : index
    %c0_366 = arith.constant 0 : index
    %213 = vector.load %arg17[%c0_365, %c0_366] : memref<49x576xbf16, #tpu.memory_space<vmem>>, vector<7x64xbf16>
    tpu.vector_store %arg17[%c0_365, %c0_366], %212 {strides = array<i32>} : memref<49x576xbf16, #tpu.memory_space<vmem>>, vector<7x64xbf16>,
    %c1_367 = arith.constant 1 : index
    %c0_368 = arith.constant 0 : index
    %214 = vector.load %arg16[%c1_367, %c0_368] : memref<81x64xbf16, #tpu.memory_space<vmem>>, vector<7x64xbf16>
    %c0_369 = arith.constant 0 : index
    %c64 = arith.constant 64 : index
    %215 = vector.load %arg17[%c0_369, %c64] : memref<49x576xbf16, #tpu.memory_space<vmem>>, vector<7x64xbf16>
    tpu.vector_store %arg17[%c0_369, %c64], %214 {strides = array<i32>} : memref<49x576xbf16, #tpu.memory_space<vmem>>, vector<7x64xbf16>,
    %c2_370 = arith.constant 2 : index
    %c0_371 = arith.constant 0 : index
    %216 = vector.load %arg16[%c2_370, %c0_371] : memref<81x64xbf16, #tpu.memory_space<vmem>>, vector<7x64xbf16>
    %c0_372 = arith.constant 0 : index
    %c128_373 = arith.constant 128 : index
    %217 = vector.load %arg17[%c0_372, %c128_373] : memref<49x576xbf16, #tpu.memory_space<vmem>>, vector<7x64xbf16>
    tpu.vector_store %arg17[%c0_372, %c128_373], %216 {strides = array<i32>} : memref<49x576xbf16, #tpu.memory_space<vmem>>, vector<7x64xbf16>,
    %c9_374 = arith.constant 9 : index
    %c0_375 = arith.constant 0 : index
    %218 = vector.load %arg16[%c9_374, %c0_375] : memref<81x64xbf16, #tpu.memory_space<vmem>>, vector<7x64xbf16>
    %c0_376 = arith.constant 0 : index
    %c192 = arith.constant 192 : index
    %219 = vector.load %arg17[%c0_376, %c192] : memref<49x576xbf16, #tpu.memory_space<vmem>>, vector<7x64xbf16>
    tpu.vector_store %arg17[%c0_376, %c192], %218 {strides = array<i32>} : memref<49x576xbf16, #tpu.memory_space<vmem>>, vector<7x64xbf16>,
    %c10_377 = arith.constant 10 : index
    %c0_378 = arith.constant 0 : index
    %220 = vector.load %arg16[%c10_377, %c0_378] : memref<81x64xbf16, #tpu.memory_space<vmem>>, vector<7x64xbf16>
    %c0_379 = arith.constant 0 : index
    %c256_380 = arith.constant 256 : index
    %221 = vector.load %arg17[%c0_379, %c256_380] : memref<49x576xbf16, #tpu.memory_space<vmem>>, vector<7x64xbf16>
    tpu.vector_store %arg17[%c0_379, %c256_380], %220 {strides = array<i32>} : memref<49x576xbf16, #tpu.memory_space<vmem>>, vector<7x64xbf16>,
    %c11_381 = arith.constant 11 : index
    %c0_382 = arith.constant 0 : index
    %222 = vector.load %arg16[%c11_381, %c0_382] : memref<81x64xbf16, #tpu.memory_space<vmem>>, vector<7x64xbf16>
    %c0_383 = arith.constant 0 : index
    %c320 = arith.constant 320 : index
    %223 = vector.load %arg17[%c0_383, %c320] : memref<49x576xbf16, #tpu.memory_space<vmem>>, vector<7x64xbf16>
    tpu.vector_store %arg17[%c0_383, %c320], %222 {strides = array<i32>} : memref<49x576xbf16, #tpu.memory_space<vmem>>, vector<7x64xbf16>,
    %c18_384 = arith.constant 18 : index
    %c0_385 = arith.constant 0 : index
    %224 = vector.load %arg16[%c18_384, %c0_385] : memref<81x64xbf16, #tpu.memory_space<vmem>>, vector<7x64xbf16>
    %c0_386 = arith.constant 0 : index
    %c384_387 = arith.constant 384 : index
    %225 = vector.load %arg17[%c0_386, %c384_387] : memref<49x576xbf16, #tpu.memory_space<vmem>>, vector<7x64xbf16>
    tpu.vector_store %arg17[%c0_386, %c384_387], %224 {strides = array<i32>} : memref<49x576xbf16, #tpu.memory_space<vmem>>, vector<7x64xbf16>,
    %c19 = arith.constant 19 : index
    %c0_388 = arith.constant 0 : index
    %226 = vector.load %arg16[%c19, %c0_388] : memref<81x64xbf16, #tpu.memory_space<vmem>>, vector<7x64xbf16>
    %c0_389 = arith.constant 0 : index
    %c448 = arith.constant 448 : index
    %227 = vector.load %arg17[%c0_389, %c448] : memref<49x576xbf16, #tpu.memory_space<vmem>>, vector<7x64xbf16>
    tpu.vector_store %arg17[%c0_389, %c448], %226 {strides = array<i32>} : memref<49x576xbf16, #tpu.memory_space<vmem>>, vector<7x64xbf16>,
    %c20_390 = arith.constant 20 : index
    %c0_391 = arith.constant 0 : index
    %228 = vector.load %arg16[%c20_390, %c0_391] : memref<81x64xbf16, #tpu.memory_space<vmem>>, vector<7x64xbf16>
    %c0_392 = arith.constant 0 : index
    %c512_393 = arith.constant 512 : index
    %229 = vector.load %arg17[%c0_392, %c512_393] : memref<49x576xbf16, #tpu.memory_space<vmem>>, vector<7x64xbf16>
    tpu.vector_store %arg17[%c0_392, %c512_393], %228 {strides = array<i32>} : memref<49x576xbf16, #tpu.memory_space<vmem>>, vector<7x64xbf16>,
    %c9_394 = arith.constant 9 : index
    %c0_395 = arith.constant 0 : index
    %230 = vector.load %arg16[%c9_394, %c0_395] : memref<81x64xbf16, #tpu.memory_space<vmem>>, vector<7x64xbf16>
    %c7_396 = arith.constant 7 : index
    %c0_397 = arith.constant 0 : index
    %231 = vector.load %arg17[%c7_396, %c0_397] : memref<49x576xbf16, #tpu.memory_space<vmem>>, vector<7x64xbf16>
    tpu.vector_store %arg17[%c7_396, %c0_397], %230 {strides = array<i32>} : memref<49x576xbf16, #tpu.memory_space<vmem>>, vector<7x64xbf16>,
    %c10_398 = arith.constant 10 : index
    %c0_399 = arith.constant 0 : index
    %232 = vector.load %arg16[%c10_398, %c0_399] : memref<81x64xbf16, #tpu.memory_space<vmem>>, vector<7x64xbf16>
    %c7_400 = arith.constant 7 : index
    %c64_401 = arith.constant 64 : index
    %233 = vector.load %arg17[%c7_400, %c64_401] : memref<49x576xbf16, #tpu.memory_space<vmem>>, vector<7x64xbf16>
    tpu.vector_store %arg17[%c7_400, %c64_401], %232 {strides = array<i32>} : memref<49x576xbf16, #tpu.memory_space<vmem>>, vector<7x64xbf16>,
    %c11_402 = arith.constant 11 : index
    %c0_403 = arith.constant 0 : index
    %234 = vector.load %arg16[%c11_402, %c0_403] : memref<81x64xbf16, #tpu.memory_space<vmem>>, vector<7x64xbf16>
    %c7_404 = arith.constant 7 : index
    %c128_405 = arith.constant 128 : index
    %235 = vector.load %arg17[%c7_404, %c128_405] : memref<49x576xbf16, #tpu.memory_space<vmem>>, vector<7x64xbf16>
    tpu.vector_store %arg17[%c7_404, %c128_405], %234 {strides = array<i32>} : memref<49x576xbf16, #tpu.memory_space<vmem>>, vector<7x64xbf16>,
    %c18_406 = arith.constant 18 : index
    %c0_407 = arith.constant 0 : index
    %236 = vector.load %arg16[%c18_406, %c0_407] : memref<81x64xbf16, #tpu.memory_space<vmem>>, vector<7x64xbf16>
    %c7_408 = arith.constant 7 : index
    %c192_409 = arith.constant 192 : index
    %237 = vector.load %arg17[%c7_408, %c192_409] : memref<49x576xbf16, #tpu.memory_space<vmem>>, vector<7x64xbf16>
    tpu.vector_store %arg17[%c7_408, %c192_409], %236 {strides = array<i32>} : memref<49x576xbf16, #tpu.memory_space<vmem>>, vector<7x64xbf16>,
    %c19_410 = arith.constant 19 : index
    %c0_411 = arith.constant 0 : index
    %238 = vector.load %arg16[%c19_410, %c0_411] : memref<81x64xbf16, #tpu.memory_space<vmem>>, vector<7x64xbf16>
    %c7_412 = arith.constant 7 : index
    %c256_413 = arith.constant 256 : index
    %239 = vector.load %arg17[%c7_412, %c256_413] : memref<49x576xbf16, #tpu.memory_space<vmem>>, vector<7x64xbf16>
    tpu.vector_store %arg17[%c7_412, %c256_413], %238 {strides = array<i32>} : memref<49x576xbf16, #tpu.memory_space<vmem>>, vector<7x64xbf16>,
    %c20_414 = arith.constant 20 : index
    %c0_415 = arith.constant 0 : index
    %240 = vector.load %arg16[%c20_414, %c0_415] : memref<81x64xbf16, #tpu.memory_space<vmem>>, vector<7x64xbf16>
    %c7_416 = arith.constant 7 : index
    %c320_417 = arith.constant 320 : index
    %241 = vector.load %arg17[%c7_416, %c320_417] : memref<49x576xbf16, #tpu.memory_space<vmem>>, vector<7x64xbf16>
    tpu.vector_store %arg17[%c7_416, %c320_417], %240 {strides = array<i32>} : memref<49x576xbf16, #tpu.memory_space<vmem>>, vector<7x64xbf16>,
    %c27_418 = arith.constant 27 : index
    %c0_419 = arith.constant 0 : index
    %242 = vector.load %arg16[%c27_418, %c0_419] : memref<81x64xbf16, #tpu.memory_space<vmem>>, vector<7x64xbf16>
    %c7_420 = arith.constant 7 : index
    %c384_421 = arith.constant 384 : index
    %243 = vector.load %arg17[%c7_420, %c384_421] : memref<49x576xbf16, #tpu.memory_space<vmem>>, vector<7x64xbf16>
    tpu.vector_store %arg17[%c7_420, %c384_421], %242 {strides = array<i32>} : memref<49x576xbf16, #tpu.memory_space<vmem>>, vector<7x64xbf16>,
    %c28 = arith.constant 28 : index
    %c0_422 = arith.constant 0 : index
    %244 = vector.load %arg16[%c28, %c0_422] : memref<81x64xbf16, #tpu.memory_space<vmem>>, vector<7x64xbf16>
    %c7_423 = arith.constant 7 : index
    %c448_424 = arith.constant 448 : index
    %245 = vector.load %arg17[%c7_423, %c448_424] : memref<49x576xbf16, #tpu.memory_space<vmem>>, vector<7x64xbf16>
    tpu.vector_store %arg17[%c7_423, %c448_424], %244 {strides = array<i32>} : memref<49x576xbf16, #tpu.memory_space<vmem>>, vector<7x64xbf16>,
    %c29 = arith.constant 29 : index
    %c0_425 = arith.constant 0 : index
    %246 = vector.load %arg16[%c29, %c0_425] : memref<81x64xbf16, #tpu.memory_space<vmem>>, vector<7x64xbf16>
    %c7_426 = arith.constant 7 : index
    %c512_427 = arith.constant 512 : index
    %247 = vector.load %arg17[%c7_426, %c512_427] : memref<49x576xbf16, #tpu.memory_space<vmem>>, vector<7x64xbf16>
    tpu.vector_store %arg17[%c7_426, %c512_427], %246 {strides = array<i32>} : memref<49x576xbf16, #tpu.memory_space<vmem>>, vector<7x64xbf16>,
    %c18_428 = arith.constant 18 : index
    %c0_429 = arith.constant 0 : index
    %248 = vector.load %arg16[%c18_428, %c0_429] : memref<81x64xbf16, #tpu.memory_space<vmem>>, vector<7x64xbf16>
    %c14 = arith.constant 14 : index
    %c0_430 = arith.constant 0 : index
    %249 = vector.load %arg17[%c14, %c0_430] : memref<49x576xbf16, #tpu.memory_space<vmem>>, vector<7x64xbf16>
    tpu.vector_store %arg17[%c14, %c0_430], %248 {strides = array<i32>} : memref<49x576xbf16, #tpu.memory_space<vmem>>, vector<7x64xbf16>,
    %c19_431 = arith.constant 19 : index
    %c0_432 = arith.constant 0 : index
    %250 = vector.load %arg16[%c19_431, %c0_432] : memref<81x64xbf16, #tpu.memory_space<vmem>>, vector<7x64xbf16>
    %c14_433 = arith.constant 14 : index
    %c64_434 = arith.constant 64 : index
    %251 = vector.load %arg17[%c14_433, %c64_434] : memref<49x576xbf16, #tpu.memory_space<vmem>>, vector<7x64xbf16>
    tpu.vector_store %arg17[%c14_433, %c64_434], %250 {strides = array<i32>} : memref<49x576xbf16, #tpu.memory_space<vmem>>, vector<7x64xbf16>,
    %c20_435 = arith.constant 20 : index
    %c0_436 = arith.constant 0 : index
    %252 = vector.load %arg16[%c20_435, %c0_436] : memref<81x64xbf16, #tpu.memory_space<vmem>>, vector<7x64xbf16>
    %c14_437 = arith.constant 14 : index
    %c128_438 = arith.constant 128 : index
    %253 = vector.load %arg17[%c14_437, %c128_438] : memref<49x576xbf16, #tpu.memory_space<vmem>>, vector<7x64xbf16>
    tpu.vector_store %arg17[%c14_437, %c128_438], %252 {strides = array<i32>} : memref<49x576xbf16, #tpu.memory_space<vmem>>, vector<7x64xbf16>,
    %c27_439 = arith.constant 27 : index
    %c0_440 = arith.constant 0 : index
    %254 = vector.load %arg16[%c27_439, %c0_440] : memref<81x64xbf16, #tpu.memory_space<vmem>>, vector<7x64xbf16>
    %c14_441 = arith.constant 14 : index
    %c192_442 = arith.constant 192 : index
    %255 = vector.load %arg17[%c14_441, %c192_442] : memref<49x576xbf16, #tpu.memory_space<vmem>>, vector<7x64xbf16>
    tpu.vector_store %arg17[%c14_441, %c192_442], %254 {strides = array<i32>} : memref<49x576xbf16, #tpu.memory_space<vmem>>, vector<7x64xbf16>,
    %c28_443 = arith.constant 28 : index
    %c0_444 = arith.constant 0 : index
    %256 = vector.load %arg16[%c28_443, %c0_444] : memref<81x64xbf16, #tpu.memory_space<vmem>>, vector<7x64xbf16>
    %c14_445 = arith.constant 14 : index
    %c256_446 = arith.constant 256 : index
    %257 = vector.load %arg17[%c14_445, %c256_446] : memref<49x576xbf16, #tpu.memory_space<vmem>>, vector<7x64xbf16>
    tpu.vector_store %arg17[%c14_445, %c256_446], %256 {strides = array<i32>} : memref<49x576xbf16, #tpu.memory_space<vmem>>, vector<7x64xbf16>,
    %c29_447 = arith.constant 29 : index
    %c0_448 = arith.constant 0 : index
    %258 = vector.load %arg16[%c29_447, %c0_448] : memref<81x64xbf16, #tpu.memory_space<vmem>>, vector<7x64xbf16>
    %c14_449 = arith.constant 14 : index
    %c320_450 = arith.constant 320 : index
    %259 = vector.load %arg17[%c14_449, %c320_450] : memref<49x576xbf16, #tpu.memory_space<vmem>>, vector<7x64xbf16>
    tpu.vector_store %arg17[%c14_449, %c320_450], %258 {strides = array<i32>} : memref<49x576xbf16, #tpu.memory_space<vmem>>, vector<7x64xbf16>,
    %c36_451 = arith.constant 36 : index
    %c0_452 = arith.constant 0 : index
    %260 = vector.load %arg16[%c36_451, %c0_452] : memref<81x64xbf16, #tpu.memory_space<vmem>>, vector<7x64xbf16>
    %c14_453 = arith.constant 14 : index
    %c384_454 = arith.constant 384 : index
    %261 = vector.load %arg17[%c14_453, %c384_454] : memref<49x576xbf16, #tpu.memory_space<vmem>>, vector<7x64xbf16>
    tpu.vector_store %arg17[%c14_453, %c384_454], %260 {strides = array<i32>} : memref<49x576xbf16, #tpu.memory_space<vmem>>, vector<7x64xbf16>,
    %c37 = arith.constant 37 : index
    %c0_455 = arith.constant 0 : index
    %262 = vector.load %arg16[%c37, %c0_455] : memref<81x64xbf16, #tpu.memory_space<vmem>>, vector<7x64xbf16>
    %c14_456 = arith.constant 14 : index
    %c448_457 = arith.constant 448 : index
    %263 = vector.load %arg17[%c14_456, %c448_457] : memref<49x576xbf16, #tpu.memory_space<vmem>>, vector<7x64xbf16>
    tpu.vector_store %arg17[%c14_456, %c448_457], %262 {strides = array<i32>} : memref<49x576xbf16, #tpu.memory_space<vmem>>, vector<7x64xbf16>,
    %c38 = arith.constant 38 : index
    %c0_458 = arith.constant 0 : index
    %264 = vector.load %arg16[%c38, %c0_458] : memref<81x64xbf16, #tpu.memory_space<vmem>>, vector<7x64xbf16>
    %c14_459 = arith.constant 14 : index
    %c512_460 = arith.constant 512 : index
    %265 = vector.load %arg17[%c14_459, %c512_460] : memref<49x576xbf16, #tpu.memory_space<vmem>>, vector<7x64xbf16>
    tpu.vector_store %arg17[%c14_459, %c512_460], %264 {strides = array<i32>} : memref<49x576xbf16, #tpu.memory_space<vmem>>, vector<7x64xbf16>,
    %c27_461 = arith.constant 27 : index
    %c0_462 = arith.constant 0 : index
    %266 = vector.load %arg16[%c27_461, %c0_462] : memref<81x64xbf16, #tpu.memory_space<vmem>>, vector<7x64xbf16>
    %c21_463 = arith.constant 21 : index
    %c0_464 = arith.constant 0 : index
    %267 = vector.load %arg17[%c21_463, %c0_464] : memref<49x576xbf16, #tpu.memory_space<vmem>>, vector<7x64xbf16>
    tpu.vector_store %arg17[%c21_463, %c0_464], %266 {strides = array<i32>} : memref<49x576xbf16, #tpu.memory_space<vmem>>, vector<7x64xbf16>,
    %c28_465 = arith.constant 28 : index
    %c0_466 = arith.constant 0 : index
    %268 = vector.load %arg16[%c28_465, %c0_466] : memref<81x64xbf16, #tpu.memory_space<vmem>>, vector<7x64xbf16>
    %c21_467 = arith.constant 21 : index
    %c64_468 = arith.constant 64 : index
    %269 = vector.load %arg17[%c21_467, %c64_468] : memref<49x576xbf16, #tpu.memory_space<vmem>>, vector<7x64xbf16>
    tpu.vector_store %arg17[%c21_467, %c64_468], %268 {strides = array<i32>} : memref<49x576xbf16, #tpu.memory_space<vmem>>, vector<7x64xbf16>,
    %c29_469 = arith.constant 29 : index
    %c0_470 = arith.constant 0 : index
    %270 = vector.load %arg16[%c29_469, %c0_470] : memref<81x64xbf16, #tpu.memory_space<vmem>>, vector<7x64xbf16>
    %c21_471 = arith.constant 21 : index
    %c128_472 = arith.constant 128 : index
    %271 = vector.load %arg17[%c21_471, %c128_472] : memref<49x576xbf16, #tpu.memory_space<vmem>>, vector<7x64xbf16>
    tpu.vector_store %arg17[%c21_471, %c128_472], %270 {strides = array<i32>} : memref<49x576xbf16, #tpu.memory_space<vmem>>, vector<7x64xbf16>,
    %c36_473 = arith.constant 36 : index
    %c0_474 = arith.constant 0 : index
    %272 = vector.load %arg16[%c36_473, %c0_474] : memref<81x64xbf16, #tpu.memory_space<vmem>>, vector<7x64xbf16>
    %c21_475 = arith.constant 21 : index
    %c192_476 = arith.constant 192 : index
    %273 = vector.load %arg17[%c21_475, %c192_476] : memref<49x576xbf16, #tpu.memory_space<vmem>>, vector<7x64xbf16>
    tpu.vector_store %arg17[%c21_475, %c192_476], %272 {strides = array<i32>} : memref<49x576xbf16, #tpu.memory_space<vmem>>, vector<7x64xbf16>,
    %c37_477 = arith.constant 37 : index
    %c0_478 = arith.constant 0 : index
    %274 = vector.load %arg16[%c37_477, %c0_478] : memref<81x64xbf16, #tpu.memory_space<vmem>>, vector<7x64xbf16>
    %c21_479 = arith.constant 21 : index
    %c256_480 = arith.constant 256 : index
    %275 = vector.load %arg17[%c21_479, %c256_480] : memref<49x576xbf16, #tpu.memory_space<vmem>>, vector<7x64xbf16>
    tpu.vector_store %arg17[%c21_479, %c256_480], %274 {strides = array<i32>} : memref<49x576xbf16, #tpu.memory_space<vmem>>, vector<7x64xbf16>,
    %c38_481 = arith.constant 38 : index
    %c0_482 = arith.constant 0 : index
    %276 = vector.load %arg16[%c38_481, %c0_482] : memref<81x64xbf16, #tpu.memory_space<vmem>>, vector<7x64xbf16>
    %c21_483 = arith.constant 21 : index
    %c320_484 = arith.constant 320 : index
    %277 = vector.load %arg17[%c21_483, %c320_484] : memref<49x576xbf16, #tpu.memory_space<vmem>>, vector<7x64xbf16>
    tpu.vector_store %arg17[%c21_483, %c320_484], %276 {strides = array<i32>} : memref<49x576xbf16, #tpu.memory_space<vmem>>, vector<7x64xbf16>,
    %c45_485 = arith.constant 45 : index
    %c0_486 = arith.constant 0 : index
    %278 = vector.load %arg16[%c45_485, %c0_486] : memref<81x64xbf16, #tpu.memory_space<vmem>>, vector<7x64xbf16>
    %c21_487 = arith.constant 21 : index
    %c384_488 = arith.constant 384 : index
    %279 = vector.load %arg17[%c21_487, %c384_488] : memref<49x576xbf16, #tpu.memory_space<vmem>>, vector<7x64xbf16>
    tpu.vector_store %arg17[%c21_487, %c384_488], %278 {strides = array<i32>} : memref<49x576xbf16, #tpu.memory_space<vmem>>, vector<7x64xbf16>,
    %c46 = arith.constant 46 : index
    %c0_489 = arith.constant 0 : index
    %280 = vector.load %arg16[%c46, %c0_489] : memref<81x64xbf16, #tpu.memory_space<vmem>>, vector<7x64xbf16>
    %c21_490 = arith.constant 21 : index
    %c448_491 = arith.constant 448 : index
    %281 = vector.load %arg17[%c21_490, %c448_491] : memref<49x576xbf16, #tpu.memory_space<vmem>>, vector<7x64xbf16>
    tpu.vector_store %arg17[%c21_490, %c448_491], %280 {strides = array<i32>} : memref<49x576xbf16, #tpu.memory_space<vmem>>, vector<7x64xbf16>,
    %c47 = arith.constant 47 : index
    %c0_492 = arith.constant 0 : index
    %282 = vector.load %arg16[%c47, %c0_492] : memref<81x64xbf16, #tpu.memory_space<vmem>>, vector<7x64xbf16>
    %c21_493 = arith.constant 21 : index
    %c512_494 = arith.constant 512 : index
    %283 = vector.load %arg17[%c21_493, %c512_494] : memref<49x576xbf16, #tpu.memory_space<vmem>>, vector<7x64xbf16>
    tpu.vector_store %arg17[%c21_493, %c512_494], %282 {strides = array<i32>} : memref<49x576xbf16, #tpu.memory_space<vmem>>, vector<7x64xbf16>,
    %c36_495 = arith.constant 36 : index
    %c0_496 = arith.constant 0 : index
    %284 = vector.load %arg16[%c36_495, %c0_496] : memref<81x64xbf16, #tpu.memory_space<vmem>>, vector<7x64xbf16>
    %c28_497 = arith.constant 28 : index
    %c0_498 = arith.constant 0 : index
    %285 = vector.load %arg17[%c28_497, %c0_498] : memref<49x576xbf16, #tpu.memory_space<vmem>>, vector<7x64xbf16>
    tpu.vector_store %arg17[%c28_497, %c0_498], %284 {strides = array<i32>} : memref<49x576xbf16, #tpu.memory_space<vmem>>, vector<7x64xbf16>,
    %c37_499 = arith.constant 37 : index
    %c0_500 = arith.constant 0 : index
    %286 = vector.load %arg16[%c37_499, %c0_500] : memref<81x64xbf16, #tpu.memory_space<vmem>>, vector<7x64xbf16>
    %c28_501 = arith.constant 28 : index
    %c64_502 = arith.constant 64 : index
    %287 = vector.load %arg17[%c28_501, %c64_502] : memref<49x576xbf16, #tpu.memory_space<vmem>>, vector<7x64xbf16>
    tpu.vector_store %arg17[%c28_501, %c64_502], %286 {strides = array<i32>} : memref<49x576xbf16, #tpu.memory_space<vmem>>, vector<7x64xbf16>,
    %c38_503 = arith.constant 38 : index
    %c0_504 = arith.constant 0 : index
    %288 = vector.load %arg16[%c38_503, %c0_504] : memref<81x64xbf16, #tpu.memory_space<vmem>>, vector<7x64xbf16>
    %c28_505 = arith.constant 28 : index
    %c128_506 = arith.constant 128 : index
    %289 = vector.load %arg17[%c28_505, %c128_506] : memref<49x576xbf16, #tpu.memory_space<vmem>>, vector<7x64xbf16>
    tpu.vector_store %arg17[%c28_505, %c128_506], %288 {strides = array<i32>} : memref<49x576xbf16, #tpu.memory_space<vmem>>, vector<7x64xbf16>,
    %c45_507 = arith.constant 45 : index
    %c0_508 = arith.constant 0 : index
    %290 = vector.load %arg16[%c45_507, %c0_508] : memref<81x64xbf16, #tpu.memory_space<vmem>>, vector<7x64xbf16>
    %c28_509 = arith.constant 28 : index
    %c192_510 = arith.constant 192 : index
    %291 = vector.load %arg17[%c28_509, %c192_510] : memref<49x576xbf16, #tpu.memory_space<vmem>>, vector<7x64xbf16>
    tpu.vector_store %arg17[%c28_509, %c192_510], %290 {strides = array<i32>} : memref<49x576xbf16, #tpu.memory_space<vmem>>, vector<7x64xbf16>,
    %c46_511 = arith.constant 46 : index
    %c0_512 = arith.constant 0 : index
    %292 = vector.load %arg16[%c46_511, %c0_512] : memref<81x64xbf16, #tpu.memory_space<vmem>>, vector<7x64xbf16>
    %c28_513 = arith.constant 28 : index
    %c256_514 = arith.constant 256 : index
    %293 = vector.load %arg17[%c28_513, %c256_514] : memref<49x576xbf16, #tpu.memory_space<vmem>>, vector<7x64xbf16>
    tpu.vector_store %arg17[%c28_513, %c256_514], %292 {strides = array<i32>} : memref<49x576xbf16, #tpu.memory_space<vmem>>, vector<7x64xbf16>,
    %c47_515 = arith.constant 47 : index
    %c0_516 = arith.constant 0 : index
    %294 = vector.load %arg16[%c47_515, %c0_516] : memref<81x64xbf16, #tpu.memory_space<vmem>>, vector<7x64xbf16>
    %c28_517 = arith.constant 28 : index
    %c320_518 = arith.constant 320 : index
    %295 = vector.load %arg17[%c28_517, %c320_518] : memref<49x576xbf16, #tpu.memory_space<vmem>>, vector<7x64xbf16>
    tpu.vector_store %arg17[%c28_517, %c320_518], %294 {strides = array<i32>} : memref<49x576xbf16, #tpu.memory_space<vmem>>, vector<7x64xbf16>,
    %c54_519 = arith.constant 54 : index
    %c0_520 = arith.constant 0 : index
    %296 = vector.load %arg16[%c54_519, %c0_520] : memref<81x64xbf16, #tpu.memory_space<vmem>>, vector<7x64xbf16>
    %c28_521 = arith.constant 28 : index
    %c384_522 = arith.constant 384 : index
    %297 = vector.load %arg17[%c28_521, %c384_522] : memref<49x576xbf16, #tpu.memory_space<vmem>>, vector<7x64xbf16>
    tpu.vector_store %arg17[%c28_521, %c384_522], %296 {strides = array<i32>} : memref<49x576xbf16, #tpu.memory_space<vmem>>, vector<7x64xbf16>,
    %c55 = arith.constant 55 : index
    %c0_523 = arith.constant 0 : index
    %298 = vector.load %arg16[%c55, %c0_523] : memref<81x64xbf16, #tpu.memory_space<vmem>>, vector<7x64xbf16>
    %c28_524 = arith.constant 28 : index
    %c448_525 = arith.constant 448 : index
    %299 = vector.load %arg17[%c28_524, %c448_525] : memref<49x576xbf16, #tpu.memory_space<vmem>>, vector<7x64xbf16>
    tpu.vector_store %arg17[%c28_524, %c448_525], %298 {strides = array<i32>} : memref<49x576xbf16, #tpu.memory_space<vmem>>, vector<7x64xbf16>,
    %c56 = arith.constant 56 : index
    %c0_526 = arith.constant 0 : index
    %300 = vector.load %arg16[%c56, %c0_526] : memref<81x64xbf16, #tpu.memory_space<vmem>>, vector<7x64xbf16>
    %c28_527 = arith.constant 28 : index
    %c512_528 = arith.constant 512 : index
    %301 = vector.load %arg17[%c28_527, %c512_528] : memref<49x576xbf16, #tpu.memory_space<vmem>>, vector<7x64xbf16>
    tpu.vector_store %arg17[%c28_527, %c512_528], %300 {strides = array<i32>} : memref<49x576xbf16, #tpu.memory_space<vmem>>, vector<7x64xbf16>,
    %c45_529 = arith.constant 45 : index
    %c0_530 = arith.constant 0 : index
    %302 = vector.load %arg16[%c45_529, %c0_530] : memref<81x64xbf16, #tpu.memory_space<vmem>>, vector<7x64xbf16>
    %c35 = arith.constant 35 : index
    %c0_531 = arith.constant 0 : index
    %303 = vector.load %arg17[%c35, %c0_531] : memref<49x576xbf16, #tpu.memory_space<vmem>>, vector<7x64xbf16>
    tpu.vector_store %arg17[%c35, %c0_531], %302 {strides = array<i32>} : memref<49x576xbf16, #tpu.memory_space<vmem>>, vector<7x64xbf16>,
    %c46_532 = arith.constant 46 : index
    %c0_533 = arith.constant 0 : index
    %304 = vector.load %arg16[%c46_532, %c0_533] : memref<81x64xbf16, #tpu.memory_space<vmem>>, vector<7x64xbf16>
    %c35_534 = arith.constant 35 : index
    %c64_535 = arith.constant 64 : index
    %305 = vector.load %arg17[%c35_534, %c64_535] : memref<49x576xbf16, #tpu.memory_space<vmem>>, vector<7x64xbf16>
    tpu.vector_store %arg17[%c35_534, %c64_535], %304 {strides = array<i32>} : memref<49x576xbf16, #tpu.memory_space<vmem>>, vector<7x64xbf16>,
    %c47_536 = arith.constant 47 : index
    %c0_537 = arith.constant 0 : index
    %306 = vector.load %arg16[%c47_536, %c0_537] : memref<81x64xbf16, #tpu.memory_space<vmem>>, vector<7x64xbf16>
    %c35_538 = arith.constant 35 : index
    %c128_539 = arith.constant 128 : index
    %307 = vector.load %arg17[%c35_538, %c128_539] : memref<49x576xbf16, #tpu.memory_space<vmem>>, vector<7x64xbf16>
    tpu.vector_store %arg17[%c35_538, %c128_539], %306 {strides = array<i32>} : memref<49x576xbf16, #tpu.memory_space<vmem>>, vector<7x64xbf16>,
    %c54_540 = arith.constant 54 : index
    %c0_541 = arith.constant 0 : index
    %308 = vector.load %arg16[%c54_540, %c0_541] : memref<81x64xbf16, #tpu.memory_space<vmem>>, vector<7x64xbf16>
    %c35_542 = arith.constant 35 : index
    %c192_543 = arith.constant 192 : index
    %309 = vector.load %arg17[%c35_542, %c192_543] : memref<49x576xbf16, #tpu.memory_space<vmem>>, vector<7x64xbf16>
    tpu.vector_store %arg17[%c35_542, %c192_543], %308 {strides = array<i32>} : memref<49x576xbf16, #tpu.memory_space<vmem>>, vector<7x64xbf16>,
    %c55_544 = arith.constant 55 : index
    %c0_545 = arith.constant 0 : index
    %310 = vector.load %arg16[%c55_544, %c0_545] : memref<81x64xbf16, #tpu.memory_space<vmem>>, vector<7x64xbf16>
    %c35_546 = arith.constant 35 : index
    %c256_547 = arith.constant 256 : index
    %311 = vector.load %arg17[%c35_546, %c256_547] : memref<49x576xbf16, #tpu.memory_space<vmem>>, vector<7x64xbf16>
    tpu.vector_store %arg17[%c35_546, %c256_547], %310 {strides = array<i32>} : memref<49x576xbf16, #tpu.memory_space<vmem>>, vector<7x64xbf16>,
    %c56_548 = arith.constant 56 : index
    %c0_549 = arith.constant 0 : index
    %312 = vector.load %arg16[%c56_548, %c0_549] : memref<81x64xbf16, #tpu.memory_space<vmem>>, vector<7x64xbf16>
    %c35_550 = arith.constant 35 : index
    %c320_551 = arith.constant 320 : index
    %313 = vector.load %arg17[%c35_550, %c320_551] : memref<49x576xbf16, #tpu.memory_space<vmem>>, vector<7x64xbf16>
    tpu.vector_store %arg17[%c35_550, %c320_551], %312 {strides = array<i32>} : memref<49x576xbf16, #tpu.memory_space<vmem>>, vector<7x64xbf16>,
    %c63_552 = arith.constant 63 : index
    %c0_553 = arith.constant 0 : index
    %314 = vector.load %arg16[%c63_552, %c0_553] : memref<81x64xbf16, #tpu.memory_space<vmem>>, vector<7x64xbf16>
    %c35_554 = arith.constant 35 : index
    %c384_555 = arith.constant 384 : index
    %315 = vector.load %arg17[%c35_554, %c384_555] : memref<49x576xbf16, #tpu.memory_space<vmem>>, vector<7x64xbf16>
    tpu.vector_store %arg17[%c35_554, %c384_555], %314 {strides = array<i32>} : memref<49x576xbf16, #tpu.memory_space<vmem>>, vector<7x64xbf16>,
    %c64_556 = arith.constant 64 : index
    %c0_557 = arith.constant 0 : index
    %316 = vector.load %arg16[%c64_556, %c0_557] : memref<81x64xbf16, #tpu.memory_space<vmem>>, vector<7x64xbf16>
    %c35_558 = arith.constant 35 : index
    %c448_559 = arith.constant 448 : index
    %317 = vector.load %arg17[%c35_558, %c448_559] : memref<49x576xbf16, #tpu.memory_space<vmem>>, vector<7x64xbf16>
    tpu.vector_store %arg17[%c35_558, %c448_559], %316 {strides = array<i32>} : memref<49x576xbf16, #tpu.memory_space<vmem>>, vector<7x64xbf16>,
    %c65 = arith.constant 65 : index
    %c0_560 = arith.constant 0 : index
    %318 = vector.load %arg16[%c65, %c0_560] : memref<81x64xbf16, #tpu.memory_space<vmem>>, vector<7x64xbf16>
    %c35_561 = arith.constant 35 : index
    %c512_562 = arith.constant 512 : index
    %319 = vector.load %arg17[%c35_561, %c512_562] : memref<49x576xbf16, #tpu.memory_space<vmem>>, vector<7x64xbf16>
    tpu.vector_store %arg17[%c35_561, %c512_562], %318 {strides = array<i32>} : memref<49x576xbf16, #tpu.memory_space<vmem>>, vector<7x64xbf16>,
    %c54_563 = arith.constant 54 : index
    %c0_564 = arith.constant 0 : index
    %320 = vector.load %arg16[%c54_563, %c0_564] : memref<81x64xbf16, #tpu.memory_space<vmem>>, vector<7x64xbf16>
    %c42 = arith.constant 42 : index
    %c0_565 = arith.constant 0 : index
    %321 = vector.load %arg17[%c42, %c0_565] : memref<49x576xbf16, #tpu.memory_space<vmem>>, vector<7x64xbf16>
    tpu.vector_store %arg17[%c42, %c0_565], %320 {strides = array<i32>} : memref<49x576xbf16, #tpu.memory_space<vmem>>, vector<7x64xbf16>,
    %c55_566 = arith.constant 55 : index
    %c0_567 = arith.constant 0 : index
    %322 = vector.load %arg16[%c55_566, %c0_567] : memref<81x64xbf16, #tpu.memory_space<vmem>>, vector<7x64xbf16>
    %c42_568 = arith.constant 42 : index
    %c64_569 = arith.constant 64 : index
    %323 = vector.load %arg17[%c42_568, %c64_569] : memref<49x576xbf16, #tpu.memory_space<vmem>>, vector<7x64xbf16>
    tpu.vector_store %arg17[%c42_568, %c64_569], %322 {strides = array<i32>} : memref<49x576xbf16, #tpu.memory_space<vmem>>, vector<7x64xbf16>,
    %c56_570 = arith.constant 56 : index
    %c0_571 = arith.constant 0 : index
    %324 = vector.load %arg16[%c56_570, %c0_571] : memref<81x64xbf16, #tpu.memory_space<vmem>>, vector<7x64xbf16>
    %c42_572 = arith.constant 42 : index
    %c128_573 = arith.constant 128 : index
    %325 = vector.load %arg17[%c42_572, %c128_573] : memref<49x576xbf16, #tpu.memory_space<vmem>>, vector<7x64xbf16>
    tpu.vector_store %arg17[%c42_572, %c128_573], %324 {strides = array<i32>} : memref<49x576xbf16, #tpu.memory_space<vmem>>, vector<7x64xbf16>,
    %c63_574 = arith.constant 63 : index
    %c0_575 = arith.constant 0 : index
    %326 = vector.load %arg16[%c63_574, %c0_575] : memref<81x64xbf16, #tpu.memory_space<vmem>>, vector<7x64xbf16>
    %c42_576 = arith.constant 42 : index
    %c192_577 = arith.constant 192 : index
    %327 = vector.load %arg17[%c42_576, %c192_577] : memref<49x576xbf16, #tpu.memory_space<vmem>>, vector<7x64xbf16>
    tpu.vector_store %arg17[%c42_576, %c192_577], %326 {strides = array<i32>} : memref<49x576xbf16, #tpu.memory_space<vmem>>, vector<7x64xbf16>,
    %c64_578 = arith.constant 64 : index
    %c0_579 = arith.constant 0 : index
    %328 = vector.load %arg16[%c64_578, %c0_579] : memref<81x64xbf16, #tpu.memory_space<vmem>>, vector<7x64xbf16>
    %c42_580 = arith.constant 42 : index
    %c256_581 = arith.constant 256 : index
    %329 = vector.load %arg17[%c42_580, %c256_581] : memref<49x576xbf16, #tpu.memory_space<vmem>>, vector<7x64xbf16>
    tpu.vector_store %arg17[%c42_580, %c256_581], %328 {strides = array<i32>} : memref<49x576xbf16, #tpu.memory_space<vmem>>, vector<7x64xbf16>,
    %c65_582 = arith.constant 65 : index
    %c0_583 = arith.constant 0 : index
    %330 = vector.load %arg16[%c65_582, %c0_583] : memref<81x64xbf16, #tpu.memory_space<vmem>>, vector<7x64xbf16>
    %c42_584 = arith.constant 42 : index
    %c320_585 = arith.constant 320 : index
    %331 = vector.load %arg17[%c42_584, %c320_585] : memref<49x576xbf16, #tpu.memory_space<vmem>>, vector<7x64xbf16>
    tpu.vector_store %arg17[%c42_584, %c320_585], %330 {strides = array<i32>} : memref<49x576xbf16, #tpu.memory_space<vmem>>, vector<7x64xbf16>,
    %c72_586 = arith.constant 72 : index
    %c0_587 = arith.constant 0 : index
    %332 = vector.load %arg16[%c72_586, %c0_587] : memref<81x64xbf16, #tpu.memory_space<vmem>>, vector<7x64xbf16>
    %c42_588 = arith.constant 42 : index
    %c384_589 = arith.constant 384 : index
    %333 = vector.load %arg17[%c42_588, %c384_589] : memref<49x576xbf16, #tpu.memory_space<vmem>>, vector<7x64xbf16>
    tpu.vector_store %arg17[%c42_588, %c384_589], %332 {strides = array<i32>} : memref<49x576xbf16, #tpu.memory_space<vmem>>, vector<7x64xbf16>,
    %c73 = arith.constant 73 : index
    %c0_590 = arith.constant 0 : index
    %334 = vector.load %arg16[%c73, %c0_590] : memref<81x64xbf16, #tpu.memory_space<vmem>>, vector<7x64xbf16>
    %c42_591 = arith.constant 42 : index
    %c448_592 = arith.constant 448 : index
    %335 = vector.load %arg17[%c42_591, %c448_592] : memref<49x576xbf16, #tpu.memory_space<vmem>>, vector<7x64xbf16>
    tpu.vector_store %arg17[%c42_591, %c448_592], %334 {strides = array<i32>} : memref<49x576xbf16, #tpu.memory_space<vmem>>, vector<7x64xbf16>,
    %c74 = arith.constant 74 : index
    %c0_593 = arith.constant 0 : index
    %336 = vector.load %arg16[%c74, %c0_593] : memref<81x64xbf16, #tpu.memory_space<vmem>>, vector<7x64xbf16>
    %c42_594 = arith.constant 42 : index
    %c512_595 = arith.constant 512 : index
    %337 = vector.load %arg17[%c42_594, %c512_595] : memref<49x576xbf16, #tpu.memory_space<vmem>>, vector<7x64xbf16>
    tpu.vector_store %arg17[%c42_594, %c512_595], %336 {strides = array<i32>} : memref<49x576xbf16, #tpu.memory_space<vmem>>, vector<7x64xbf16>,
    %c0_596 = arith.constant 0 : index
    %c0_597 = arith.constant 0 : index
    %338 = vector.load %arg17[%c0_596, %c0_597] : memref<49x576xbf16, #tpu.memory_space<vmem>>, vector<49x576xbf16>
    %c0_598 = arith.constant 0 : index
    %c0_599 = arith.constant 0 : index
    %339 = vector.load %arg6[%c0_598, %c0_599] : memref<576x64xbf16, #tpu.memory_space<vmem>>, vector<576x64xbf16>
    %cst_600 = arith.constant dense<0.000000e+00> : vector<49x64xf32>
    %340 = tpu.matmul %338, %339, %cst_600 {dimension_numbers = #tpu.dot_dimension_numbers<[1], [0], [0], [1], [0, 0, 1, 1], [], []>} : vector<49x576xbf16>, vector<576x64xbf16>, vector<49x64xf32> -> vector<49x64xf32>
    %c0_601 = arith.constant 0 : index
    %c0_602 = arith.constant 0 : index
    %341 = vector.load %arg7[%c0_601, %c0_602] : memref<1x64xf32, #tpu.memory_space<vmem>>, vector<1x64xf32>
    %342 = vector.broadcast %341 : vector<1x64xf32> to vector<49x64xf32>
    %343 = arith.addf %340, %342 : vector<49x64xf32>
    %cst_603 = arith.constant 0.000000e+00 : f32
    %344 = vector.broadcast %cst_603 : f32 to vector<49x64xf32>
    %345 = arith.maximumf %343, %344 : vector<49x64xf32>
    %346 = arith.truncf %345 : vector<49x64xf32> to vector<49x64xbf16>
    %c0_604 = arith.constant 0 : index
    %c0_605 = arith.constant 0 : index
    %347 = vector.load %arg18[%c0_604, %c0_605] : memref<49x64xbf16, #tpu.memory_space<vmem>>, vector<49x64xbf16>
    tpu.vector_store %arg18[%c0_604, %c0_605], %346 {strides = array<i32>} : memref<49x64xbf16, #tpu.memory_space<vmem>>, vector<49x64xbf16>,
    %c0_606 = arith.constant 0 : index
    %c0_607 = arith.constant 0 : index
    %348 = vector.load %arg18[%c0_606, %c0_607] : memref<49x64xbf16, #tpu.memory_space<vmem>>, vector<1x64xbf16>
    %c0_608 = arith.constant 0 : index
    %c0_609 = arith.constant 0 : index
    %349 = vector.load %arg19[%c0_608, %c0_609] : memref<1x3136xbf16, #tpu.memory_space<vmem>>, vector<1x64xbf16>
    tpu.vector_store %arg19[%c0_608, %c0_609], %348 {strides = array<i32>} : memref<1x3136xbf16, #tpu.memory_space<vmem>>, vector<1x64xbf16>,
    %c1_610 = arith.constant 1 : index
    %c0_611 = arith.constant 0 : index
    %350 = vector.load %arg18[%c1_610, %c0_611] : memref<49x64xbf16, #tpu.memory_space<vmem>>, vector<1x64xbf16>
    %c0_612 = arith.constant 0 : index
    %c64_613 = arith.constant 64 : index
    %351 = vector.load %arg19[%c0_612, %c64_613] : memref<1x3136xbf16, #tpu.memory_space<vmem>>, vector<1x64xbf16>
    tpu.vector_store %arg19[%c0_612, %c64_613], %350 {strides = array<i32>} : memref<1x3136xbf16, #tpu.memory_space<vmem>>, vector<1x64xbf16>,
    %c2_614 = arith.constant 2 : index
    %c0_615 = arith.constant 0 : index
    %352 = vector.load %arg18[%c2_614, %c0_615] : memref<49x64xbf16, #tpu.memory_space<vmem>>, vector<1x64xbf16>
    %c0_616 = arith.constant 0 : index
    %c128_617 = arith.constant 128 : index
    %353 = vector.load %arg19[%c0_616, %c128_617] : memref<1x3136xbf16, #tpu.memory_space<vmem>>, vector<1x64xbf16>
    tpu.vector_store %arg19[%c0_616, %c128_617], %352 {strides = array<i32>} : memref<1x3136xbf16, #tpu.memory_space<vmem>>, vector<1x64xbf16>,
    %c3_618 = arith.constant 3 : index
    %c0_619 = arith.constant 0 : index
    %354 = vector.load %arg18[%c3_618, %c0_619] : memref<49x64xbf16, #tpu.memory_space<vmem>>, vector<1x64xbf16>
    %c0_620 = arith.constant 0 : index
    %c192_621 = arith.constant 192 : index
    %355 = vector.load %arg19[%c0_620, %c192_621] : memref<1x3136xbf16, #tpu.memory_space<vmem>>, vector<1x64xbf16>
    tpu.vector_store %arg19[%c0_620, %c192_621], %354 {strides = array<i32>} : memref<1x3136xbf16, #tpu.memory_space<vmem>>, vector<1x64xbf16>,
    %c4_622 = arith.constant 4 : index
    %c0_623 = arith.constant 0 : index
    %356 = vector.load %arg18[%c4_622, %c0_623] : memref<49x64xbf16, #tpu.memory_space<vmem>>, vector<1x64xbf16>
    %c0_624 = arith.constant 0 : index
    %c256_625 = arith.constant 256 : index
    %357 = vector.load %arg19[%c0_624, %c256_625] : memref<1x3136xbf16, #tpu.memory_space<vmem>>, vector<1x64xbf16>
    tpu.vector_store %arg19[%c0_624, %c256_625], %356 {strides = array<i32>} : memref<1x3136xbf16, #tpu.memory_space<vmem>>, vector<1x64xbf16>,
    %c5_626 = arith.constant 5 : index
    %c0_627 = arith.constant 0 : index
    %358 = vector.load %arg18[%c5_626, %c0_627] : memref<49x64xbf16, #tpu.memory_space<vmem>>, vector<1x64xbf16>
    %c0_628 = arith.constant 0 : index
    %c320_629 = arith.constant 320 : index
    %359 = vector.load %arg19[%c0_628, %c320_629] : memref<1x3136xbf16, #tpu.memory_space<vmem>>, vector<1x64xbf16>
    tpu.vector_store %arg19[%c0_628, %c320_629], %358 {strides = array<i32>} : memref<1x3136xbf16, #tpu.memory_space<vmem>>, vector<1x64xbf16>,
    %c6_630 = arith.constant 6 : index
    %c0_631 = arith.constant 0 : index
    %360 = vector.load %arg18[%c6_630, %c0_631] : memref<49x64xbf16, #tpu.memory_space<vmem>>, vector<1x64xbf16>
    %c0_632 = arith.constant 0 : index
    %c384_633 = arith.constant 384 : index
    %361 = vector.load %arg19[%c0_632, %c384_633] : memref<1x3136xbf16, #tpu.memory_space<vmem>>, vector<1x64xbf16>
    tpu.vector_store %arg19[%c0_632, %c384_633], %360 {strides = array<i32>} : memref<1x3136xbf16, #tpu.memory_space<vmem>>, vector<1x64xbf16>,
    %c7_634 = arith.constant 7 : index
    %c0_635 = arith.constant 0 : index
    %362 = vector.load %arg18[%c7_634, %c0_635] : memref<49x64xbf16, #tpu.memory_space<vmem>>, vector<1x64xbf16>
    %c0_636 = arith.constant 0 : index
    %c448_637 = arith.constant 448 : index
    %363 = vector.load %arg19[%c0_636, %c448_637] : memref<1x3136xbf16, #tpu.memory_space<vmem>>, vector<1x64xbf16>
    tpu.vector_store %arg19[%c0_636, %c448_637], %362 {strides = array<i32>} : memref<1x3136xbf16, #tpu.memory_space<vmem>>, vector<1x64xbf16>,
    %c8_638 = arith.constant 8 : index
    %c0_639 = arith.constant 0 : index
    %364 = vector.load %arg18[%c8_638, %c0_639] : memref<49x64xbf16, #tpu.memory_space<vmem>>, vector<1x64xbf16>
    %c0_640 = arith.constant 0 : index
    %c512_641 = arith.constant 512 : index
    %365 = vector.load %arg19[%c0_640, %c512_641] : memref<1x3136xbf16, #tpu.memory_space<vmem>>, vector<1x64xbf16>
    tpu.vector_store %arg19[%c0_640, %c512_641], %364 {strides = array<i32>} : memref<1x3136xbf16, #tpu.memory_space<vmem>>, vector<1x64xbf16>,
    %c9_642 = arith.constant 9 : index
    %c0_643 = arith.constant 0 : index
    %366 = vector.load %arg18[%c9_642, %c0_643] : memref<49x64xbf16, #tpu.memory_space<vmem>>, vector<1x64xbf16>
    %c0_644 = arith.constant 0 : index
    %c576 = arith.constant 576 : index
    %367 = vector.load %arg19[%c0_644, %c576] : memref<1x3136xbf16, #tpu.memory_space<vmem>>, vector<1x64xbf16>
    tpu.vector_store %arg19[%c0_644, %c576], %366 {strides = array<i32>} : memref<1x3136xbf16, #tpu.memory_space<vmem>>, vector<1x64xbf16>,
    %c10_645 = arith.constant 10 : index
    %c0_646 = arith.constant 0 : index
    %368 = vector.load %arg18[%c10_645, %c0_646] : memref<49x64xbf16, #tpu.memory_space<vmem>>, vector<1x64xbf16>
    %c0_647 = arith.constant 0 : index
    %c640 = arith.constant 640 : index
    %369 = vector.load %arg19[%c0_647, %c640] : memref<1x3136xbf16, #tpu.memory_space<vmem>>, vector<1x64xbf16>
    tpu.vector_store %arg19[%c0_647, %c640], %368 {strides = array<i32>} : memref<1x3136xbf16, #tpu.memory_space<vmem>>, vector<1x64xbf16>,
    %c11_648 = arith.constant 11 : index
    %c0_649 = arith.constant 0 : index
    %370 = vector.load %arg18[%c11_648, %c0_649] : memref<49x64xbf16, #tpu.memory_space<vmem>>, vector<1x64xbf16>
    %c0_650 = arith.constant 0 : index
    %c704 = arith.constant 704 : index
    %371 = vector.load %arg19[%c0_650, %c704] : memref<1x3136xbf16, #tpu.memory_space<vmem>>, vector<1x64xbf16>
    tpu.vector_store %arg19[%c0_650, %c704], %370 {strides = array<i32>} : memref<1x3136xbf16, #tpu.memory_space<vmem>>, vector<1x64xbf16>,
    %c12 = arith.constant 12 : index
    %c0_651 = arith.constant 0 : index
    %372 = vector.load %arg18[%c12, %c0_651] : memref<49x64xbf16, #tpu.memory_space<vmem>>, vector<1x64xbf16>
    %c0_652 = arith.constant 0 : index
    %c768_653 = arith.constant 768 : index
    %373 = vector.load %arg19[%c0_652, %c768_653] : memref<1x3136xbf16, #tpu.memory_space<vmem>>, vector<1x64xbf16>
    tpu.vector_store %arg19[%c0_652, %c768_653], %372 {strides = array<i32>} : memref<1x3136xbf16, #tpu.memory_space<vmem>>, vector<1x64xbf16>,
    %c13 = arith.constant 13 : index
    %c0_654 = arith.constant 0 : index
    %374 = vector.load %arg18[%c13, %c0_654] : memref<49x64xbf16, #tpu.memory_space<vmem>>, vector<1x64xbf16>
    %c0_655 = arith.constant 0 : index
    %c832 = arith.constant 832 : index
    %375 = vector.load %arg19[%c0_655, %c832] : memref<1x3136xbf16, #tpu.memory_space<vmem>>, vector<1x64xbf16>
    tpu.vector_store %arg19[%c0_655, %c832], %374 {strides = array<i32>} : memref<1x3136xbf16, #tpu.memory_space<vmem>>, vector<1x64xbf16>,
    %c14_656 = arith.constant 14 : index
    %c0_657 = arith.constant 0 : index
    %376 = vector.load %arg18[%c14_656, %c0_657] : memref<49x64xbf16, #tpu.memory_space<vmem>>, vector<1x64xbf16>
    %c0_658 = arith.constant 0 : index
    %c896 = arith.constant 896 : index
    %377 = vector.load %arg19[%c0_658, %c896] : memref<1x3136xbf16, #tpu.memory_space<vmem>>, vector<1x64xbf16>
    tpu.vector_store %arg19[%c0_658, %c896], %376 {strides = array<i32>} : memref<1x3136xbf16, #tpu.memory_space<vmem>>, vector<1x64xbf16>,
    %c15 = arith.constant 15 : index
    %c0_659 = arith.constant 0 : index
    %378 = vector.load %arg18[%c15, %c0_659] : memref<49x64xbf16, #tpu.memory_space<vmem>>, vector<1x64xbf16>
    %c0_660 = arith.constant 0 : index
    %c960 = arith.constant 960 : index
    %379 = vector.load %arg19[%c0_660, %c960] : memref<1x3136xbf16, #tpu.memory_space<vmem>>, vector<1x64xbf16>
    tpu.vector_store %arg19[%c0_660, %c960], %378 {strides = array<i32>} : memref<1x3136xbf16, #tpu.memory_space<vmem>>, vector<1x64xbf16>,
    %c16 = arith.constant 16 : index
    %c0_661 = arith.constant 0 : index
    %380 = vector.load %arg18[%c16, %c0_661] : memref<49x64xbf16, #tpu.memory_space<vmem>>, vector<1x64xbf16>
    %c0_662 = arith.constant 0 : index
    %c1024 = arith.constant 1024 : index
    %381 = vector.load %arg19[%c0_662, %c1024] : memref<1x3136xbf16, #tpu.memory_space<vmem>>, vector<1x64xbf16>
    tpu.vector_store %arg19[%c0_662, %c1024], %380 {strides = array<i32>} : memref<1x3136xbf16, #tpu.memory_space<vmem>>, vector<1x64xbf16>,
    %c17 = arith.constant 17 : index
    %c0_663 = arith.constant 0 : index
    %382 = vector.load %arg18[%c17, %c0_663] : memref<49x64xbf16, #tpu.memory_space<vmem>>, vector<1x64xbf16>
    %c0_664 = arith.constant 0 : index
    %c1088 = arith.constant 1088 : index
    %383 = vector.load %arg19[%c0_664, %c1088] : memref<1x3136xbf16, #tpu.memory_space<vmem>>, vector<1x64xbf16>
    tpu.vector_store %arg19[%c0_664, %c1088], %382 {strides = array<i32>} : memref<1x3136xbf16, #tpu.memory_space<vmem>>, vector<1x64xbf16>,
    %c18_665 = arith.constant 18 : index
    %c0_666 = arith.constant 0 : index
    %384 = vector.load %arg18[%c18_665, %c0_666] : memref<49x64xbf16, #tpu.memory_space<vmem>>, vector<1x64xbf16>
    %c0_667 = arith.constant 0 : index
    %c1152 = arith.constant 1152 : index
    %385 = vector.load %arg19[%c0_667, %c1152] : memref<1x3136xbf16, #tpu.memory_space<vmem>>, vector<1x64xbf16>
    tpu.vector_store %arg19[%c0_667, %c1152], %384 {strides = array<i32>} : memref<1x3136xbf16, #tpu.memory_space<vmem>>, vector<1x64xbf16>,
    %c19_668 = arith.constant 19 : index
    %c0_669 = arith.constant 0 : index
    %386 = vector.load %arg18[%c19_668, %c0_669] : memref<49x64xbf16, #tpu.memory_space<vmem>>, vector<1x64xbf16>
    %c0_670 = arith.constant 0 : index
    %c1216 = arith.constant 1216 : index
    %387 = vector.load %arg19[%c0_670, %c1216] : memref<1x3136xbf16, #tpu.memory_space<vmem>>, vector<1x64xbf16>
    tpu.vector_store %arg19[%c0_670, %c1216], %386 {strides = array<i32>} : memref<1x3136xbf16, #tpu.memory_space<vmem>>, vector<1x64xbf16>,
    %c20_671 = arith.constant 20 : index
    %c0_672 = arith.constant 0 : index
    %388 = vector.load %arg18[%c20_671, %c0_672] : memref<49x64xbf16, #tpu.memory_space<vmem>>, vector<1x64xbf16>
    %c0_673 = arith.constant 0 : index
    %c1280 = arith.constant 1280 : index
    %389 = vector.load %arg19[%c0_673, %c1280] : memref<1x3136xbf16, #tpu.memory_space<vmem>>, vector<1x64xbf16>
    tpu.vector_store %arg19[%c0_673, %c1280], %388 {strides = array<i32>} : memref<1x3136xbf16, #tpu.memory_space<vmem>>, vector<1x64xbf16>,
    %c21_674 = arith.constant 21 : index
    %c0_675 = arith.constant 0 : index
    %390 = vector.load %arg18[%c21_674, %c0_675] : memref<49x64xbf16, #tpu.memory_space<vmem>>, vector<1x64xbf16>
    %c0_676 = arith.constant 0 : index
    %c1344 = arith.constant 1344 : index
    %391 = vector.load %arg19[%c0_676, %c1344] : memref<1x3136xbf16, #tpu.memory_space<vmem>>, vector<1x64xbf16>
    tpu.vector_store %arg19[%c0_676, %c1344], %390 {strides = array<i32>} : memref<1x3136xbf16, #tpu.memory_space<vmem>>, vector<1x64xbf16>,
    %c22 = arith.constant 22 : index
    %c0_677 = arith.constant 0 : index
    %392 = vector.load %arg18[%c22, %c0_677] : memref<49x64xbf16, #tpu.memory_space<vmem>>, vector<1x64xbf16>
    %c0_678 = arith.constant 0 : index
    %c1408 = arith.constant 1408 : index
    %393 = vector.load %arg19[%c0_678, %c1408] : memref<1x3136xbf16, #tpu.memory_space<vmem>>, vector<1x64xbf16>
    tpu.vector_store %arg19[%c0_678, %c1408], %392 {strides = array<i32>} : memref<1x3136xbf16, #tpu.memory_space<vmem>>, vector<1x64xbf16>,
    %c23 = arith.constant 23 : index
    %c0_679 = arith.constant 0 : index
    %394 = vector.load %arg18[%c23, %c0_679] : memref<49x64xbf16, #tpu.memory_space<vmem>>, vector<1x64xbf16>
    %c0_680 = arith.constant 0 : index
    %c1472 = arith.constant 1472 : index
    %395 = vector.load %arg19[%c0_680, %c1472] : memref<1x3136xbf16, #tpu.memory_space<vmem>>, vector<1x64xbf16>
    tpu.vector_store %arg19[%c0_680, %c1472], %394 {strides = array<i32>} : memref<1x3136xbf16, #tpu.memory_space<vmem>>, vector<1x64xbf16>,
    %c24 = arith.constant 24 : index
    %c0_681 = arith.constant 0 : index
    %396 = vector.load %arg18[%c24, %c0_681] : memref<49x64xbf16, #tpu.memory_space<vmem>>, vector<1x64xbf16>
    %c0_682 = arith.constant 0 : index
    %c1536 = arith.constant 1536 : index
    %397 = vector.load %arg19[%c0_682, %c1536] : memref<1x3136xbf16, #tpu.memory_space<vmem>>, vector<1x64xbf16>
    tpu.vector_store %arg19[%c0_682, %c1536], %396 {strides = array<i32>} : memref<1x3136xbf16, #tpu.memory_space<vmem>>, vector<1x64xbf16>,
    %c25 = arith.constant 25 : index
    %c0_683 = arith.constant 0 : index
    %398 = vector.load %arg18[%c25, %c0_683] : memref<49x64xbf16, #tpu.memory_space<vmem>>, vector<1x64xbf16>
    %c0_684 = arith.constant 0 : index
    %c1600 = arith.constant 1600 : index
    %399 = vector.load %arg19[%c0_684, %c1600] : memref<1x3136xbf16, #tpu.memory_space<vmem>>, vector<1x64xbf16>
    tpu.vector_store %arg19[%c0_684, %c1600], %398 {strides = array<i32>} : memref<1x3136xbf16, #tpu.memory_space<vmem>>, vector<1x64xbf16>,
    %c26 = arith.constant 26 : index
    %c0_685 = arith.constant 0 : index
    %400 = vector.load %arg18[%c26, %c0_685] : memref<49x64xbf16, #tpu.memory_space<vmem>>, vector<1x64xbf16>
    %c0_686 = arith.constant 0 : index
    %c1664 = arith.constant 1664 : index
    %401 = vector.load %arg19[%c0_686, %c1664] : memref<1x3136xbf16, #tpu.memory_space<vmem>>, vector<1x64xbf16>
    tpu.vector_store %arg19[%c0_686, %c1664], %400 {strides = array<i32>} : memref<1x3136xbf16, #tpu.memory_space<vmem>>, vector<1x64xbf16>,
    %c27_687 = arith.constant 27 : index
    %c0_688 = arith.constant 0 : index
    %402 = vector.load %arg18[%c27_687, %c0_688] : memref<49x64xbf16, #tpu.memory_space<vmem>>, vector<1x64xbf16>
    %c0_689 = arith.constant 0 : index
    %c1728 = arith.constant 1728 : index
    %403 = vector.load %arg19[%c0_689, %c1728] : memref<1x3136xbf16, #tpu.memory_space<vmem>>, vector<1x64xbf16>
    tpu.vector_store %arg19[%c0_689, %c1728], %402 {strides = array<i32>} : memref<1x3136xbf16, #tpu.memory_space<vmem>>, vector<1x64xbf16>,
    %c28_690 = arith.constant 28 : index
    %c0_691 = arith.constant 0 : index
    %404 = vector.load %arg18[%c28_690, %c0_691] : memref<49x64xbf16, #tpu.memory_space<vmem>>, vector<1x64xbf16>
    %c0_692 = arith.constant 0 : index
    %c1792 = arith.constant 1792 : index
    %405 = vector.load %arg19[%c0_692, %c1792] : memref<1x3136xbf16, #tpu.memory_space<vmem>>, vector<1x64xbf16>
    tpu.vector_store %arg19[%c0_692, %c1792], %404 {strides = array<i32>} : memref<1x3136xbf16, #tpu.memory_space<vmem>>, vector<1x64xbf16>,
    %c29_693 = arith.constant 29 : index
    %c0_694 = arith.constant 0 : index
    %406 = vector.load %arg18[%c29_693, %c0_694] : memref<49x64xbf16, #tpu.memory_space<vmem>>, vector<1x64xbf16>
    %c0_695 = arith.constant 0 : index
    %c1856 = arith.constant 1856 : index
    %407 = vector.load %arg19[%c0_695, %c1856] : memref<1x3136xbf16, #tpu.memory_space<vmem>>, vector<1x64xbf16>
    tpu.vector_store %arg19[%c0_695, %c1856], %406 {strides = array<i32>} : memref<1x3136xbf16, #tpu.memory_space<vmem>>, vector<1x64xbf16>,
    %c30_696 = arith.constant 30 : index
    %c0_697 = arith.constant 0 : index
    %408 = vector.load %arg18[%c30_696, %c0_697] : memref<49x64xbf16, #tpu.memory_space<vmem>>, vector<1x64xbf16>
    %c0_698 = arith.constant 0 : index
    %c1920 = arith.constant 1920 : index
    %409 = vector.load %arg19[%c0_698, %c1920] : memref<1x3136xbf16, #tpu.memory_space<vmem>>, vector<1x64xbf16>
    tpu.vector_store %arg19[%c0_698, %c1920], %408 {strides = array<i32>} : memref<1x3136xbf16, #tpu.memory_space<vmem>>, vector<1x64xbf16>,
    %c31_699 = arith.constant 31 : index
    %c0_700 = arith.constant 0 : index
    %410 = vector.load %arg18[%c31_699, %c0_700] : memref<49x64xbf16, #tpu.memory_space<vmem>>, vector<1x64xbf16>
    %c0_701 = arith.constant 0 : index
    %c1984 = arith.constant 1984 : index
    %411 = vector.load %arg19[%c0_701, %c1984] : memref<1x3136xbf16, #tpu.memory_space<vmem>>, vector<1x64xbf16>
    tpu.vector_store %arg19[%c0_701, %c1984], %410 {strides = array<i32>} : memref<1x3136xbf16, #tpu.memory_space<vmem>>, vector<1x64xbf16>,
    %c32 = arith.constant 32 : index
    %c0_702 = arith.constant 0 : index
    %412 = vector.load %arg18[%c32, %c0_702] : memref<49x64xbf16, #tpu.memory_space<vmem>>, vector<1x64xbf16>
    %c0_703 = arith.constant 0 : index
    %c2048 = arith.constant 2048 : index
    %413 = vector.load %arg19[%c0_703, %c2048] : memref<1x3136xbf16, #tpu.memory_space<vmem>>, vector<1x64xbf16>
    tpu.vector_store %arg19[%c0_703, %c2048], %412 {strides = array<i32>} : memref<1x3136xbf16, #tpu.memory_space<vmem>>, vector<1x64xbf16>,
    %c33 = arith.constant 33 : index
    %c0_704 = arith.constant 0 : index
    %414 = vector.load %arg18[%c33, %c0_704] : memref<49x64xbf16, #tpu.memory_space<vmem>>, vector<1x64xbf16>
    %c0_705 = arith.constant 0 : index
    %c2112 = arith.constant 2112 : index
    %415 = vector.load %arg19[%c0_705, %c2112] : memref<1x3136xbf16, #tpu.memory_space<vmem>>, vector<1x64xbf16>
    tpu.vector_store %arg19[%c0_705, %c2112], %414 {strides = array<i32>} : memref<1x3136xbf16, #tpu.memory_space<vmem>>, vector<1x64xbf16>,
    %c34 = arith.constant 34 : index
    %c0_706 = arith.constant 0 : index
    %416 = vector.load %arg18[%c34, %c0_706] : memref<49x64xbf16, #tpu.memory_space<vmem>>, vector<1x64xbf16>
    %c0_707 = arith.constant 0 : index
    %c2176 = arith.constant 2176 : index
    %417 = vector.load %arg19[%c0_707, %c2176] : memref<1x3136xbf16, #tpu.memory_space<vmem>>, vector<1x64xbf16>
    tpu.vector_store %arg19[%c0_707, %c2176], %416 {strides = array<i32>} : memref<1x3136xbf16, #tpu.memory_space<vmem>>, vector<1x64xbf16>,
    %c35_708 = arith.constant 35 : index
    %c0_709 = arith.constant 0 : index
    %418 = vector.load %arg18[%c35_708, %c0_709] : memref<49x64xbf16, #tpu.memory_space<vmem>>, vector<1x64xbf16>
    %c0_710 = arith.constant 0 : index
    %c2240 = arith.constant 2240 : index
    %419 = vector.load %arg19[%c0_710, %c2240] : memref<1x3136xbf16, #tpu.memory_space<vmem>>, vector<1x64xbf16>
    tpu.vector_store %arg19[%c0_710, %c2240], %418 {strides = array<i32>} : memref<1x3136xbf16, #tpu.memory_space<vmem>>, vector<1x64xbf16>,
    %c36_711 = arith.constant 36 : index
    %c0_712 = arith.constant 0 : index
    %420 = vector.load %arg18[%c36_711, %c0_712] : memref<49x64xbf16, #tpu.memory_space<vmem>>, vector<1x64xbf16>
    %c0_713 = arith.constant 0 : index
    %c2304 = arith.constant 2304 : index
    %421 = vector.load %arg19[%c0_713, %c2304] : memref<1x3136xbf16, #tpu.memory_space<vmem>>, vector<1x64xbf16>
    tpu.vector_store %arg19[%c0_713, %c2304], %420 {strides = array<i32>} : memref<1x3136xbf16, #tpu.memory_space<vmem>>, vector<1x64xbf16>,
    %c37_714 = arith.constant 37 : index
    %c0_715 = arith.constant 0 : index
    %422 = vector.load %arg18[%c37_714, %c0_715] : memref<49x64xbf16, #tpu.memory_space<vmem>>, vector<1x64xbf16>
    %c0_716 = arith.constant 0 : index
    %c2368 = arith.constant 2368 : index
    %423 = vector.load %arg19[%c0_716, %c2368] : memref<1x3136xbf16, #tpu.memory_space<vmem>>, vector<1x64xbf16>
    tpu.vector_store %arg19[%c0_716, %c2368], %422 {strides = array<i32>} : memref<1x3136xbf16, #tpu.memory_space<vmem>>, vector<1x64xbf16>,
    %c38_717 = arith.constant 38 : index
    %c0_718 = arith.constant 0 : index
    %424 = vector.load %arg18[%c38_717, %c0_718] : memref<49x64xbf16, #tpu.memory_space<vmem>>, vector<1x64xbf16>
    %c0_719 = arith.constant 0 : index
    %c2432 = arith.constant 2432 : index
    %425 = vector.load %arg19[%c0_719, %c2432] : memref<1x3136xbf16, #tpu.memory_space<vmem>>, vector<1x64xbf16>
    tpu.vector_store %arg19[%c0_719, %c2432], %424 {strides = array<i32>} : memref<1x3136xbf16, #tpu.memory_space<vmem>>, vector<1x64xbf16>,
    %c39 = arith.constant 39 : index
    %c0_720 = arith.constant 0 : index
    %426 = vector.load %arg18[%c39, %c0_720] : memref<49x64xbf16, #tpu.memory_space<vmem>>, vector<1x64xbf16>
    %c0_721 = arith.constant 0 : index
    %c2496 = arith.constant 2496 : index
    %427 = vector.load %arg19[%c0_721, %c2496] : memref<1x3136xbf16, #tpu.memory_space<vmem>>, vector<1x64xbf16>
    tpu.vector_store %arg19[%c0_721, %c2496], %426 {strides = array<i32>} : memref<1x3136xbf16, #tpu.memory_space<vmem>>, vector<1x64xbf16>,
    %c40_722 = arith.constant 40 : index
    %c0_723 = arith.constant 0 : index
    %428 = vector.load %arg18[%c40_722, %c0_723] : memref<49x64xbf16, #tpu.memory_space<vmem>>, vector<1x64xbf16>
    %c0_724 = arith.constant 0 : index
    %c2560 = arith.constant 2560 : index
    %429 = vector.load %arg19[%c0_724, %c2560] : memref<1x3136xbf16, #tpu.memory_space<vmem>>, vector<1x64xbf16>
    tpu.vector_store %arg19[%c0_724, %c2560], %428 {strides = array<i32>} : memref<1x3136xbf16, #tpu.memory_space<vmem>>, vector<1x64xbf16>,
    %c41_725 = arith.constant 41 : index
    %c0_726 = arith.constant 0 : index
    %430 = vector.load %arg18[%c41_725, %c0_726] : memref<49x64xbf16, #tpu.memory_space<vmem>>, vector<1x64xbf16>
    %c0_727 = arith.constant 0 : index
    %c2624 = arith.constant 2624 : index
    %431 = vector.load %arg19[%c0_727, %c2624] : memref<1x3136xbf16, #tpu.memory_space<vmem>>, vector<1x64xbf16>
    tpu.vector_store %arg19[%c0_727, %c2624], %430 {strides = array<i32>} : memref<1x3136xbf16, #tpu.memory_space<vmem>>, vector<1x64xbf16>,
    %c42_728 = arith.constant 42 : index
    %c0_729 = arith.constant 0 : index
    %432 = vector.load %arg18[%c42_728, %c0_729] : memref<49x64xbf16, #tpu.memory_space<vmem>>, vector<1x64xbf16>
    %c0_730 = arith.constant 0 : index
    %c2688 = arith.constant 2688 : index
    %433 = vector.load %arg19[%c0_730, %c2688] : memref<1x3136xbf16, #tpu.memory_space<vmem>>, vector<1x64xbf16>
    tpu.vector_store %arg19[%c0_730, %c2688], %432 {strides = array<i32>} : memref<1x3136xbf16, #tpu.memory_space<vmem>>, vector<1x64xbf16>,
    %c43 = arith.constant 43 : index
    %c0_731 = arith.constant 0 : index
    %434 = vector.load %arg18[%c43, %c0_731] : memref<49x64xbf16, #tpu.memory_space<vmem>>, vector<1x64xbf16>
    %c0_732 = arith.constant 0 : index
    %c2752 = arith.constant 2752 : index
    %435 = vector.load %arg19[%c0_732, %c2752] : memref<1x3136xbf16, #tpu.memory_space<vmem>>, vector<1x64xbf16>
    tpu.vector_store %arg19[%c0_732, %c2752], %434 {strides = array<i32>} : memref<1x3136xbf16, #tpu.memory_space<vmem>>, vector<1x64xbf16>,
    %c44 = arith.constant 44 : index
    %c0_733 = arith.constant 0 : index
    %436 = vector.load %arg18[%c44, %c0_733] : memref<49x64xbf16, #tpu.memory_space<vmem>>, vector<1x64xbf16>
    %c0_734 = arith.constant 0 : index
    %c2816 = arith.constant 2816 : index
    %437 = vector.load %arg19[%c0_734, %c2816] : memref<1x3136xbf16, #tpu.memory_space<vmem>>, vector<1x64xbf16>
    tpu.vector_store %arg19[%c0_734, %c2816], %436 {strides = array<i32>} : memref<1x3136xbf16, #tpu.memory_space<vmem>>, vector<1x64xbf16>,
    %c45_735 = arith.constant 45 : index
    %c0_736 = arith.constant 0 : index
    %438 = vector.load %arg18[%c45_735, %c0_736] : memref<49x64xbf16, #tpu.memory_space<vmem>>, vector<1x64xbf16>
    %c0_737 = arith.constant 0 : index
    %c2880 = arith.constant 2880 : index
    %439 = vector.load %arg19[%c0_737, %c2880] : memref<1x3136xbf16, #tpu.memory_space<vmem>>, vector<1x64xbf16>
    tpu.vector_store %arg19[%c0_737, %c2880], %438 {strides = array<i32>} : memref<1x3136xbf16, #tpu.memory_space<vmem>>, vector<1x64xbf16>,
    %c46_738 = arith.constant 46 : index
    %c0_739 = arith.constant 0 : index
    %440 = vector.load %arg18[%c46_738, %c0_739] : memref<49x64xbf16, #tpu.memory_space<vmem>>, vector<1x64xbf16>
    %c0_740 = arith.constant 0 : index
    %c2944 = arith.constant 2944 : index
    %441 = vector.load %arg19[%c0_740, %c2944] : memref<1x3136xbf16, #tpu.memory_space<vmem>>, vector<1x64xbf16>
    tpu.vector_store %arg19[%c0_740, %c2944], %440 {strides = array<i32>} : memref<1x3136xbf16, #tpu.memory_space<vmem>>, vector<1x64xbf16>,
    %c47_741 = arith.constant 47 : index
    %c0_742 = arith.constant 0 : index
    %442 = vector.load %arg18[%c47_741, %c0_742] : memref<49x64xbf16, #tpu.memory_space<vmem>>, vector<1x64xbf16>
    %c0_743 = arith.constant 0 : index
    %c3008 = arith.constant 3008 : index
    %443 = vector.load %arg19[%c0_743, %c3008] : memref<1x3136xbf16, #tpu.memory_space<vmem>>, vector<1x64xbf16>
    tpu.vector_store %arg19[%c0_743, %c3008], %442 {strides = array<i32>} : memref<1x3136xbf16, #tpu.memory_space<vmem>>, vector<1x64xbf16>,
    %c48 = arith.constant 48 : index
    %c0_744 = arith.constant 0 : index
    %444 = vector.load %arg18[%c48, %c0_744] : memref<49x64xbf16, #tpu.memory_space<vmem>>, vector<1x64xbf16>
    %c0_745 = arith.constant 0 : index
    %c3072 = arith.constant 3072 : index
    %445 = vector.load %arg19[%c0_745, %c3072] : memref<1x3136xbf16, #tpu.memory_space<vmem>>, vector<1x64xbf16>
    tpu.vector_store %arg19[%c0_745, %c3072], %444 {strides = array<i32>} : memref<1x3136xbf16, #tpu.memory_space<vmem>>, vector<1x64xbf16>,
    %c0_746 = arith.constant 0 : index
    %c0_747 = arith.constant 0 : index
    %446 = vector.load %arg19[%c0_746, %c0_747] : memref<1x3136xbf16, #tpu.memory_space<vmem>>, vector<1x3136xbf16>
    %c0_748 = arith.constant 0 : index
    %c0_749 = arith.constant 0 : index
    %447 = vector.load %arg8[%c0_748, %c0_749] : memref<3136x512xbf16, #tpu.memory_space<vmem>>, vector<3136x512xbf16>
    %cst_750 = arith.constant dense<0.000000e+00> : vector<1x512xf32>
    %448 = tpu.matmul %446, %447, %cst_750 {dimension_numbers = #tpu.dot_dimension_numbers<[1], [0], [0], [1], [0, 0, 1, 1], [], []>} : vector<1x3136xbf16>, vector<3136x512xbf16>, vector<1x512xf32> -> vector<1x512xf32>
    %c0_751 = arith.constant 0 : index
    %c0_752 = arith.constant 0 : index
    %449 = vector.load %arg9[%c0_751, %c0_752] : memref<1x512xf32, #tpu.memory_space<vmem>>, vector<1x512xf32>
    %450 = arith.addf %448, %449 : vector<1x512xf32>
    %cst_753 = arith.constant 0.000000e+00 : f32
    %451 = vector.broadcast %cst_753 : f32 to vector<1x512xf32>
    %452 = arith.maximumf %450, %451 : vector<1x512xf32>
    %453 = arith.truncf %452 : vector<1x512xf32> to vector<1x512xbf16>
    %c0_754 = arith.constant 0 : index
    %c0_755 = arith.constant 0 : index
    %454 = vector.load %arg10[%c0_754, %c0_755] : memref<512x128xbf16, #tpu.memory_space<vmem>>, vector<512x128xbf16>
    %cst_756 = arith.constant dense<0.000000e+00> : vector<1x128xf32>
    %455 = tpu.matmul %453, %454, %cst_756 {dimension_numbers = #tpu.dot_dimension_numbers<[1], [0], [0], [1], [0, 0, 1, 1], [], []>} : vector<1x512xbf16>, vector<512x128xbf16>, vector<1x128xf32> -> vector<1x128xf32>
    %c0_757 = arith.constant 0 : index
    %c0_758 = arith.constant 0 : index
    %456 = vector.load %arg11[%c0_757, %c0_758] : memref<1x128xf32, #tpu.memory_space<vmem>>, vector<1x128xf32>
    %457 = arith.addf %455, %456 : vector<1x128xf32>
    %c0_759 = arith.constant 0 : index
    %c0_760 = arith.constant 0 : index
    %c0_761 = arith.constant 0 : index
    %458 = vector.load %arg12[%c0_759, %c0_760, %c0_761] : memref<1x1x128xf32, #tpu.memory_space<vmem>>, vector<1x1x128xf32>
    %459 = vector.shape_cast %458 : vector<1x1x128xf32> to vector<1x128xf32>
    %460 = vector.shape_cast %457 : vector<1x128xf32> to vector<1x1x128xf32>
    tpu.vector_store %arg12[%c0_759, %c0_760, %c0_761], %460 {strides = array<i32>} : memref<1x1x128xf32, #tpu.memory_space<vmem>>, vector<1x1x128xf32>,
    return
  }
  func.func @transform_0(%arg0: i32) -> (i32, i32, i32, i32) {
    %c0_i32 = arith.constant 0 : i32
    %c0_i32_0 = arith.constant 0 : i32
    %c0_i32_1 = arith.constant 0 : i32
    %c0_i32_2 = arith.constant 0 : i32
    return %arg0, %c0_i32, %c0_i32_0, %c0_i32_1 : i32, i32, i32, i32
  }
  func.func @transform_1(%arg0: i32) -> (i32, i32) {
    %c0_i32 = arith.constant 0 : i32
    %c0_i32_0 = arith.constant 0 : i32
    %c0_i32_1 = arith.constant 0 : i32
    return %c0_i32, %c0_i32_0 : i32, i32
  }
  func.func @transform_2(%arg0: i32) -> (i32, i32) {
    %c0_i32 = arith.constant 0 : i32
    %c0_i32_0 = arith.constant 0 : i32
    %c0_i32_1 = arith.constant 0 : i32
    return %c0_i32, %c0_i32_0 : i32, i32
  }
  func.func @transform_3(%arg0: i32) -> (i32, i32) {
    %c0_i32 = arith.constant 0 : i32
    %c0_i32_0 = arith.constant 0 : i32
    %c0_i32_1 = arith.constant 0 : i32
    return %c0_i32, %c0_i32_0 : i32, i32
  }
  func.func @transform_4(%arg0: i32) -> (i32, i32) {
    %c0_i32 = arith.constant 0 : i32
    %c0_i32_0 = arith.constant 0 : i32
    %c0_i32_1 = arith.constant 0 : i32
    return %c0_i32, %c0_i32_0 : i32, i32
  }
  func.func @transform_5(%arg0: i32) -> (i32, i32) {
    %c0_i32 = arith.constant 0 : i32
    %c0_i32_0 = arith.constant 0 : i32
    %c0_i32_1 = arith.constant 0 : i32
    return %c0_i32, %c0_i32_0 : i32, i32
  }
  func.func @transform_6(%arg0: i32) -> (i32, i32) {
    %c0_i32 = arith.constant 0 : i32
    %c0_i32_0 = arith.constant 0 : i32
    %c0_i32_1 = arith.constant 0 : i32
    return %c0_i32, %c0_i32_0 : i32, i32
  }
  func.func @transform_7(%arg0: i32) -> (i32, i32) {
    %c0_i32 = arith.constant 0 : i32
    %c0_i32_0 = arith.constant 0 : i32
    %c0_i32_1 = arith.constant 0 : i32
    return %c0_i32, %c0_i32_0 : i32, i32
  }
  func.func @transform_8(%arg0: i32) -> (i32, i32) {
    %c0_i32 = arith.constant 0 : i32
    %c0_i32_0 = arith.constant 0 : i32
    %c0_i32_1 = arith.constant 0 : i32
    return %c0_i32, %c0_i32_0 : i32, i32
  }
  func.func @transform_9(%arg0: i32) -> (i32, i32) {
    %c0_i32 = arith.constant 0 : i32
    %c0_i32_0 = arith.constant 0 : i32
    %c0_i32_1 = arith.constant 0 : i32
    return %c0_i32, %c0_i32_0 : i32, i32
  }
  func.func @transform_10(%arg0: i32) -> (i32, i32) {
    %c0_i32 = arith.constant 0 : i32
    %c0_i32_0 = arith.constant 0 : i32
    %c0_i32_1 = arith.constant 0 : i32
    return %c0_i32, %c0_i32_0 : i32, i32
  }
  func.func @transform_11(%arg0: i32) -> (i32, i32, i32) {
    %c0_i32 = arith.constant 0 : i32
    %c0_i32_0 = arith.constant 0 : i32
    %c0_i32_1 = arith.constant 0 : i32
    return %arg0, %c0_i32, %c0_i32_0 : i32, i32, i32
  }
}

</mosaic_0001>

<bundles_post_ra>
// kernel: network_forward.1
= control target key start
LH: loop header
LB: loop body
LE: loop exit
PB: predicated region body
PF: predicated region fallthrough
CT: control target
= control target key end

     0   :  { %16 = vsyncpa [#allocation10], 0  ;;  %s21634_s0 = inlined_call_operand.vmem [shape: bf16[2,11,11,256], index: 0, kind: input, shape index: {}]   ;;  %s21635_s1 = inlined_call_operand.vmem [shape: bf16[1024,128], index: 1, kind: input, shape index: {}]   ;;  %s21636_s2 = inlined_call_operand.vmem [shape: f32[1,128], index: 2, kind: input, shape index: {}]   ;;  %s21637_s3 = inlined_call_operand.vmem [shape: bf16[512,64], index: 3, kind: input, shape index: {}]   ;;  %s21638_s4 = inlined_call_operand.vmem [shape: f32[1,64], index: 4, kind: input, shape index: {}]   ;;  %s21639_s5 = inlined_call_operand.vmem [shape: bf16[576,64], index: 5, kind: input, shape index: {}]   ;;  %s21640_s6 = inlined_call_operand.vmem [shape: f32[1,64], index: 6, kind: input, shape index: {}]   ;;  %s21641_s7 = inlined_call_operand.vmem [shape: bf16[3136,512], index: 7, kind: input, shape index: {}]   ;;  %s21642_s8 = inlined_call_operand.vmem [shape: f32[1,512], index: 8, kind: input, shape index: {}]   ;;  %s21643_s9 = inlined_call_operand.vmem [shape: bf16[512,128], index: 9, kind: input, shape index: {}]   ;;  %s21644_s10 = inlined_call_operand.vmem [shape: f32[1,128], index: 10, kind: input, shape index: {}]   ;;  %s21645_s11 = inlined_call_operand.hbm [shape: f32[2,1,128], index: 11, kind: output, shape index: {}]  }
   0x1   :  { %18 = vsyncpa [#allocation10 + $0x1], 0  ;;  %s16429_s17 = smov 0   ;;  %s16431_s18 = smov 0  }
   0x2   :  { %s16433_s19 = smov 0   ;;  %s16435_s20 = smov 0  }
   0x3 LB: > { %s16450_s21 = sadd.s32 4294967295, %s16363_s20   ;;  %s13000_s22 = sadd.s32 4294967294, %s16363_s20   ;;  %s16363_s20 = sphi %s16435_s20, %s21922_s20   ;;  %s16359_s19 = sphi %s16433_s19, %s21921_s19   ;;  %s16355_s18 = sphi %s16431_s18, %s21920_s18   ;;  %s16351_s17 = sphi %s16429_s17, %s21919_s17  }
   0x4   : > { %s16454_s23 = sadd.s32 1, %s16363_s20   ;;  %s267_s24 = sadd.s32 1, %s16359_s19 }
   0x5   : > { %s264_s25 = ssub.s32 %s16363_s20, %s16454_s23  ;;  %p277_p0 = scmp.ne.s32.totalorder %s16359_s19, %s16355_s18 }
   0x6   : > { %p265_p1 = scmp.eq.s32.totalorder %s264_s25, 0  ;;  %p278_p2 = scmp.eq.s32.totalorder %s16450_s21, 1 }
   0x7   : > { %p283_p3 = scmp.ne.s32.totalorder %s16355_s18, %s16351_s17  ;;  %p284_p4 = scmp.eq.s32.totalorder %s13000_s22, 1 }
   0x8   : > { %s16465_s26 = scalar_select %p265_p1, %s16359_s19, %s267_s24  }
   0x9   : > { %p16467_p5 = por %p278_p2, %p277_p0  ;;  %p16471_p6 = por %p284_p4, %p283_p3 }
   0xa   : > { %21701 = sst [smem:[#allocation12_spill]] %s16465_s26  ;;  %p13003_p7 = scmp.ge.s32.totalorder %s16363_s20, 1 }
   0xb   : > { %p340_p8 = scmp.lt.s32.totalorder %s16363_s20, 3 }
   0xd   : > { %p341_p9 = pnand %p13003_p7, %p340_p8 }
   0xf   : > { %344 = sbr.rel (%p341_p9) target bundleno = 2363 (0x93b), region = 64 }
  0x14   : > { %v14871_v0 = vld [vmem:[%s21635_s1 + $0x78] sm:$0xff]   ;;  %v14875_v4 = vld [vmem:[%s21635_s1 + $0x70] sm:$0xff]   ;;  %v14879_v8 = vld [vmem:[%s21635_s1 + $0x68] sm:$0xff]   ;;  %p379_p10 = scmp.lt.s32.totalorder %s16450_s21, 1  ;;  %vm451_vm0 = vcmask 1040384   ;;  %vm452_vm1 = vcmask 1044484  }
  0x15   : > { %v14872_v1 = vld [vmem:[%s21635_s1 + $0xf8] sm:$0xff]   ;;  %14334 = vmatprep.subr.bf16.mxu0 %v14871_v0  ;;  %v14876_v5 = vld [vmem:[%s21635_s1 + $0xf0] sm:$0xff]   ;;  %v14880_v9 = vld [vmem:[%s21635_s1 + $0xe8] sm:$0xff]   ;;  %vm21687_vm2 = vsmask.f32 3328  ;;  %vm526_vm4 = vcmask 1041408  }
  0x16   : > { %v14873_v2 = vld [vmem:[%s21635_s1 + $0x38] sm:$0xff]   ;;  %14392 = vmatprep.subr.bf16.mxu1 %v14872_v1  ;;  %v14877_v6 = vld [vmem:[%s21635_s1 + $0x30] sm:$0xff]   ;;  %v14881_v10 = vld [vmem:[%s21635_s1 + $0x28] sm:$0xff]   ;;  %s380_s16 = scalar_select %p379_p10, %s16450_s21, 1  ;;  %vm392_vm3 = vsmask.f32 7440 }
  0x17   : > { %v14874_v3 = vld [vmem:[%s21635_s1 + $0xb8] sm:$0xff]   ;;  %14335 = vmatpush3.bf16.msra.mxu0 %v14873_v2  ;;  %v14878_v7 = vld [vmem:[%s21635_s1 + $0xb0] sm:$0xff]   ;;  %v14882_v11 = vld [vmem:[%s21635_s1 + $0xa8] sm:$0xff]   ;;  %v21704_v49 = vmov 0  ;;  %vm527_vm6 = vcmask 1045508   ;;  %vm21688_vm7 = vcmask 1042432  }
  0x18   : > { %14393 = vmatpush3.bf16.msra.mxu1 %v14874_v3  ;;  %14336 = vmatprep.subr.bf16.mxu0 %v14875_v4  ;;  %v14883_v12 = vld [vmem:[%s21635_s1 + $0x60] sm:$0xff]   ;;  %v14887_v16 = vld [vmem:[%s21635_s1 + $0x58] sm:$0xff]   ;;  %v14891_v20 = vld [vmem:[%s21635_s1 + $0x50] sm:$0xff]   ;;  %s14818_s15 = smul.u32 176, %s380_s16  ;;  %vm606_vm9 = vcmask 1046532   ;;  %s21699_s24 = smov 64  }
  0x19   : > { %14394 = vmatprep.subr.bf16.mxu1 %v14876_v5  ;;  %v14884_v13 = vld [vmem:[%s21635_s1 + $0xe0] sm:$0xff]   ;;  %v14888_v17 = vld [vmem:[%s21635_s1 + $0xd8] sm:$0xff]   ;;  %v14892_v21 = vld [vmem:[%s21635_s1 + $0xd0] sm:$0xff]   ;;  %vm21668_vm11 = vsmask.f32 256  ;;  %s377_s29 = sand.u32 1, %s16355_s18  }
  0x1a   : > { %v14885_v14 = vld [vmem:[%s21635_s1 + $0x20] sm:$0xff]   ;;  %v14889_v18 = vld [vmem:[%s21635_s1 + $0x18] sm:$0xff]   ;;  %v14893_v22 = vld [vmem:[%s21635_s1 + $0x10] sm:$0xff]   ;;  %s16575_s26 = scalar_lea.vmem %s21634_s0, %s14818_s15  ;;  %vm465_vm12 = vsmask.f32 4368  ;;  %s21913_s15 = smov 64  }
  0x1b   : > { %14337 = vmatpush3.bf16.msra.mxu0 %v14877_v6  ;;  %v14886_v15 = vld [vmem:[%s21635_s1 + $0xa0] sm:$0xff]   ;;  %v14890_v19 = vld [vmem:[%s21635_s1 + $0x98] sm:$0xff]   ;;  %v14894_v23 = vld [vmem:[%s21635_s1 + $0x90] sm:$0xff]   ;;  %vm21675_vm13 = vsmask.f32 1280  ;;  %s378_s12 = scalar_lea.vmem [#allocation9], %s377_s29 }
  0x1c   : > { %14395 = vmatpush3.bf16.msra.mxu1 %v14878_v7  ;;  %14338 = vmatprep.subr.bf16.mxu0 %v14879_v8  ;;  %v14895_v24 = vld [vmem:[%s21635_s1 + $0x48] sm:$0xff]   ;;  %v14899_v28 = vld [vmem:[%s21635_s1 + $0x40] sm:$0xff]   ;;  %v16585_v34 = vld [vmem:[%s16575_s26 + $0x10] sm:$0xff]  ;;  %v21709_v7 = vmov 0  ;;  %vm540_vm14 = vsmask.f32 5392 }
  0x1d   : > { %14396 = vmatprep.subr.bf16.mxu1 %v14880_v9  ;;  %v14896_v25 = vld [vmem:[%s21635_s1 + $0xc8] sm:$0xff]   ;;  %v14900_v29 = vld [vmem:[%s21635_s1 + $0xc0] sm:$0xff]   ;;  %v454_v35 = vrot.slane %v16585_v34, 7  ;;  %420 = vst [vmem:[#allocation2 + $0x150] sm:$0xff] %v16585_v34  ;;  %v468_v41 = vshrl.u32 %v16585_v34, 16  ;;  %v471_v43 = vshll.u32 %v16585_v34, 16  ;;  %vm16603_vm5 = vmor %vm451_vm0, %vm452_vm1 }
  0x1e   : > { %v14897_v26 = vld [vmem:[%s21635_s1 + $0x8] sm:$0xff]   ;;  %v14901_v30 = vld [vmem:[%s21635_s1] sm:$0xff]   ;;  %v14903_v44 = vld [vmem:[%s21635_s1 + $0x178] sm:$0xff]   ;;  %v21705_v49 = vsel %vm16603_vm5, 4294967295, %v21704_v49  ;;  %s12933_s22 = scalar_lea.sflag [#allocation10], %s377_s29 }
  0x1f   : > { %14339 = vmatpush3.bf16.msra.mxu0 %v14881_v10  ;;  %v14898_v27 = vld [vmem:[%s21635_s1 + $0x88] sm:$0xff]   ;;  %v14902_v31 = vld [vmem:[%s21635_s1 + $0x80] sm:$0xff]   ;;  %460 = vst [vmem:[#allocation2 + $0xb8] sm:$0xee] %v454_v35  ;;  %v16599_v48 = vrot.slane %v468_v41, 7  ;;  %21706 = vst [vmem:[#allocation13_spill] sm:$0xff] %v21705_v49 }
  0x20   : > { %14397 = vmatpush3.bf16.msra.mxu1 %v14882_v11  ;;  %14340 = vmatprep.subr.bf16.mxu0 %v14883_v12  ;;  %v16581_v32 = vld [vmem:[%s16575_s26] sm:$0xff]  ;;  %v386_v33 = vld [vmem:[%s16575_s26 + $0x8] sm:$0x11]  ;;  %v455_v50 = vrot.slane %v454_v35, 4  ;;  %v14905_v54 = vld [vmem:[%s21635_s1 + $0x1f8] sm:$0xff]  }
  0x21   : > { %14398 = vmatprep.subr.bf16.mxu1 %v14884_v13  ;;  %388 = vst [vmem:[#allocation2 + $0xb8] sm:$0x11] %v386_v33  ;;  %v390_v36 = vld [vmem:[%s16575_s26 + $0x8] sm:$0x33]  ;;  %v395_v37 = vshrl.u32 %v16581_v32, 16  ;;  %v398_v38 = vshll.u32 %v16581_v32, 16  ;;  %v473_v53 = vor.u32 %v471_v43, %v16599_v48  ;;  %vm16615_vm8 = vmor %vm21687_vm2, %vm392_vm3 }
  0x22   : > { %v404_v39 = vshll.u32 %v390_v36, 16  ;;  %v408_v40 = vshrl.u32 %v390_v36, 16  ;;  %v474_v56 = vrot.slane %v16599_v48, 4  ;;  %v13010_v57 = vld [vmem:[%s16575_s26 + $0x18] sm:$0x11]  ;;  %v16622_v61 = vld [vmem:[%s16575_s26 + $0x20] sm:$0xff]  ;;  %vm16639_vm10 = vmor %vm526_vm4, %vm527_vm6 }
  0x23   : > { %14341 = vmatpush3.bf16.msra.mxu0 %v14885_v14  ;;  %v397_v42 = vrot.slane %v395_v37, 4  ;;  %v400_v45 = vrot.slane %v398_v38, 5  ;;  %485 = vst [vmem:[#allocation2 + $0x48] sm:$0xee] %v473_v53  ;;  %v456_v60 = vrot.slane %v13010_v57, 7  ;;  %v529_v63 = vrot.slane %v16622_v61, 6  ;;  %vm16664_vm15 = vmor %vm21688_vm7, %vm606_vm9 }
  0x24   : > { %14399 = vmatpush3.bf16.msra.mxu1 %v14886_v15  ;;  %14342 = vmatprep.subr.bf16.mxu0 %v14887_v16  ;;  %v406_v46 = vrot.slane %v404_v39, 5  ;;  %v410_v47 = vrot.slane %v408_v40, 4  ;;  %v13018_v62 = vld [vmem:[%s16575_s26 + $0x28] sm:$0x11]  ;;  %v16627_v1 = vld [vmem:[%s16575_s26 + $0x30] sm:$0xff]  ;;  %v543_v3 = vshrl.u32 %v16622_v61, 16  ;;  %vm16670_vm1 = vmor %vm21668_vm11, %vm465_vm12 }
  0x25   : > { %14400 = vmatprep.subr.bf16.mxu1 %v14888_v17  ;;  %v401_v51 = vor.u32 %v400_v45, %v397_v42  ;;  %v531_v0 = vrot.slane %v13018_v62, 6  ;;  %v13012_v2 = vld [vmem:[%s16575_s26 + $0x18] sm:$0x33]  ;;  %v457_v6 = vsel %vm16603_vm5, %v455_v50, %v456_v60  ;;  %v21710_v7 = vsel %vm16639_vm10, 4294967295, %v21709_v7  ;;  %v13020_v9 = vld [vmem:[%s16575_s26 + $0x28] sm:$0x33]  ;;  %vm16682_vm3 = vmor %vm21675_vm13, %vm540_vm14 }
  0x26   : > { %v411_v52 = vor.u32 %v410_v47, %v406_v46  ;;  %21711 = vst [vmem:[#allocation14_spill] sm:$0xff] %v21710_v7  ;;  %v608_v8 = vrot.slane %v16627_v1, 5  ;;  %v14904_v12 = vld [vmem:[%s21635_s1 + $0x138] sm:$0xff]   ;;  %461 = vst [vmem:[#allocation2 + $0x108] sm:$0x33] %v457_v6  ;;  %v530_v13 = vrot.slane %v529_v63, 4 }
  0x27   : > { %14343 = vmatpush3.bf16.msra.mxu0 %v14889_v18  ;;  %v402_v58 = vrot.slane %v401_v51, 4  ;;  %535 = vst [vmem:[#allocation2 + $0x108] sm:$0xcc] %v529_v63  ;;  %v476_v15 = vshrl.u32 %v13012_v2, 16  ;;  %v479_v16 = vshll.u32 %v13012_v2, 16  ;;  %v14911_v17 = vld [vmem:[%s21635_s1 + $0x170] sm:$0xff]   ;;  %vm17264_vm14 = vmand %vm451_vm0, %vm21668_vm11 }
  0x28   : > { %14401 = vmatpush3.bf16.msra.mxu1 %v14890_v19  ;;  %14344 = vmatprep.subr.bf16.mxu0 %v14891_v20  ;;  %v412_v59 = vrot.slane %v411_v52, 4  ;;  %v1086_v4 = vld [vmem:[#allocation2 + $0xb8] sm:$0xff]  ;;  %v609_v14 = vrot.slane %v608_v8, 4  ;;  %614 = vst [vmem:[#allocation2 + $0x160] sm:$0x88] %v608_v8  ;;  %v532_v18 = vsel %vm16639_vm10, %v530_v13, %v531_v0  ;;  %v545_v19 = vrot.slane %v543_v3, 6 }
  0x29   : > { %14402 = vmatprep.subr.bf16.mxu1 %v14892_v21  ;;  %v16633_v5 = vsel %vm16615_vm8, %v402_v58, %v406_v46  ;;  %v13082_v10 = vcombine.low %v16581_v32, %v1086_v4  ;;  %v13083_v11 = vcombine.high %v16581_v32, %v1086_v4  ;;  %v546_v20 = vshll.u32 %v16622_v61, 16  ;;  %v14914_v21 = vld [vmem:[%s21635_s1 + $0x130] sm:$0xff]   ;;  %536 = vst [vmem:[#allocation2 + $0x160] sm:$0x77] %v532_v18  ;;  %v14917_v51 = vld [vmem:[%s21635_s1 + $0x168] sm:$0xff]  }
  0x2a   : > { %416 = vst [vmem:[#allocation2 + $0x48] sm:$0x11] %v412_v59  ;;  %v21718_v32 = vmov 0  ;;  %v14915_v46 = vld [vmem:[%s21635_s1 + $0x1f0] sm:$0xff]   ;;  %v13026_v52 = vld [vmem:[%s16575_s26 + $0x38] sm:$0x11] }
  0x2b   : > { %14345 = vmatpush3.bf16.msra.mxu0 %v14893_v22  ;;  %1953 = vmatprep.mubr.bf16.mxu0 %v13083_v11  ;;  %v478_v22 = vrot.slane %v476_v15, 7  ;;  %v21719_v32 = vsel %vm16682_vm3, 4294967295, %v21718_v32  ;;  %v14916_v48 = vld [vmem:[%s21635_s1 + $0x1b0] sm:$0xff]   ;;  %v610_v53 = vrot.slane %v13026_v52, 5  ;;  %vm21692_vm6 = vsmask.f32 2304 }
  0x2c   : > { %14403 = vmatpush3.bf16.msra.mxu1 %v14894_v23  ;;  %14346 = vmatprep.subr.bf16.mxu0 %v14895_v24  ;;  %v552_v23 = vshrl.u32 %v13020_v9, 16  ;;  %v555_v24 = vshll.u32 %v13020_v9, 16  ;;  %21720 = vst [vmem:[#allocation17_spill] sm:$0xff] %v21719_v32  ;;  %vm619_vm9 = vsmask.f32 6416  ;;  %v14918_v9 = vld [vmem:[%s21635_s1 + $0x128] sm:$0xff]  }
  0x2d   : > { %14404 = vmatprep.subr.bf16.mxu1 %v14896_v25  ;;  %v622_v25 = vshrl.u32 %v16627_v1, 16  ;;  %v611_v62 = vsel %vm16664_vm15, %v609_v14, %v610_v53  ;;  %v13036_v2 = vld [vmem:[%s16575_s26 + $0x48] sm:$0x33]  ;;  %vm16723_vm12 = vmor %vm21692_vm6, %vm619_vm9  ;;  %vm21686_vm0 = vcmask 1043456   ;;  %vm2451_vm9 = vsmask.f32 7938 }
  0x2e   : > { %v554_v33 = vrot.slane %v552_v23, 6  ;;  %v557_v35 = vrot.slane %v555_v24, 7  ;;  %v696_v8 = vshll.u32 %v13036_v2, 16  ;;  %v700_v18 = vshrl.u32 %v13036_v2, 16  ;;  %vm17419_vm11 = vmand %vm21686_vm0, %vm2451_vm9 }
  0x2f   : > { %14347 = vmatpush3.bf16.msra.mxu0 %v14897_v26  ;;  %v21712_v26 = vmov 0  ;;  %v624_v36 = vrot.slane %v622_v25, 5  ;;  %vm17510_vm9 = vmand %vm526_vm4, %vm21675_vm13  ;;  %vm2618_vm4 = vcmask 1043457   ;;  %vm21691_vm13 = vsmask.f32 7942 }
  0x30   : > { %14405 = vmatpush3.bf16.msra.mxu1 %v14898_v27  ;;  %14348 = vmatprep.subr.bf16.mxu0 %v14899_v28  ;;  %v21713_v26 = vsel %vm16664_vm15, 4294967295, %v21712_v26  ;;  %v21715_v27 = vmov 0  ;;  %v548_v28 = vrot.slane %v546_v20, 7  ;;  %v558_v45 = vor.u32 %v557_v35, %v554_v33  ;;  %v14907_v57 = vld [vmem:[#allocation2 + $0x10c] ss:$88 sps:$4 sm:$0xff]   ;;  %vm17671_vm0 = vmand %vm2618_vm4, %vm21691_vm13 }
  0x31   : > { %14406 = vmatprep.subr.bf16.mxu1 %v14900_v29  ;;  %21714 = vst [vmem:[#allocation15_spill] sm:$0xff] %v21713_v26  ;;  %v21716_v27 = vsel %vm16670_vm1, 4294967295, %v21715_v27  ;;  %v625_v29 = vshll.u32 %v16627_v1, 16  ;;  %v1087_v37 = vld [vmem:[#allocation2 + $0x48] sm:$0xff]  ;;  %v698_v15 = vrot.slane %v696_v8, 5  ;;  %vm21820_vm2 = vcmask 1043458  }
  0x32   : > { %21717 = vst [vmem:[#allocation16_spill] sm:$0xff] %v21716_v27  ;;  %v549_v38 = vor.u32 %v548_v28, %v545_v19  ;;  %v13084_v40 = vcombine.low %v16633_v5, %v1087_v37  ;;  %v13085_v42 = vcombine.high %v16633_v5, %v1087_v37  ;;  %v14912_v60 = vld [vmem:[#allocation2 + $0x108] ss:$88 sps:$4 sm:$0xff]  }
  0x33   : > { %14349 = vmatpush3.bf16.msra.mxu0 %v14901_v30  ;;  %v14906_v30 = vld [vmem:[%s21635_s1 + $0x1b8] sm:$0xff]   ;;  %v627_v39 = vrot.slane %v625_v29, 6  ;;  %v14921_v28 = vld [vmem:[%s21635_s1 + $0x160] sm:$0xff]   ;;  %v13034_v37 = vld [vmem:[%s16575_s26 + $0x48] sm:$0x11] }
  0x34   : > { %14407 = vmatpush3.bf16.msra.mxu1 %v14902_v31  ;;  %14450 = vmatprep.subr.bf16.mxu0 %v14903_v44  ;;  %v481_v31 = vor.u32 %v479_v16, %v478_v22  ;;  %v550_v47 = vrot.slane %v549_v38, 4  ;;  %562 = vst [vmem:[#allocation2 + $0x110] sm:$0xcc] %v549_v38  ;;  %v14919_v16 = vld [vmem:[%s21635_s1 + $0x1e8] sm:$0xff]   ;;  %v492_v22 = vrot.slane %v16622_v61, 7  ;;  %v16753_v38 = vld [vmem:[%s16575_s26 + $0x50] sm:$0xff] }
  0x35   : > { %14508 = vmatprep.subr.bf16.mxu1 %v14905_v54  ;;  %v628_v50 = vor.u32 %v627_v39, %v624_v36  ;;  %2041 = vmatprep.mubr.bf16.mxu1 %v13085_v42  ;;  %v16707_v54 = vld [vmem:[%s16575_s26 + $0x40] sm:$0xff]  ;;  %v16761_v42 = vrot.slane %v471_v43, 5  ;;  %683 = vst [vmem:[#allocation2] sm:$0x11] %v13034_v37  ;;  %v754_v53 = vshrl.u32 %v16753_v38, 16  ;;  %v14937_v61 = vld [vmem:[%s21635_s1 + $0x1d0] sm:$0xff]  }
  0x36   : > { %1954 = vmatmul.mubr.bf16.vlgmr.msra.gmra.mxu0 %v13082_v10  ;;  %v482_v44 = vsel %vm16670_vm1, %v474_v56, %v481_v31  ;;  %v13028_v56 = vld [vmem:[%s16575_s26 + $0x38] sm:$0x33]  ;;  %v559_v58 = vsel %vm16682_vm3, %v550_v47, %v558_v45  ;;  %v13099_v4 = vcombine.high %v611_v62, %v16707_v54  ;;  %v687_v5 = vshrl.u32 %v16707_v54, 16  ;;  %498 = vst [vmem:[#allocation2 + $0x128] sm:$0xee] %v492_v22  ;;  %v14922_v36 = vld [vmem:[%s21635_s1 + $0x120] sm:$0xff]  }
  0x37   : > { %14451 = vmatpush3.bf16.msra.mxu0 %v14904_v12  ;;  %486 = vst [vmem:[#allocation2 + $0x110] sm:$0x33] %v482_v44  ;;  %2042 = vmatmul.mubr.bf16.vlgmr.msra.gmra.mxu1 %v13084_v40  ;;  %v629_v59 = vrot.slane %v628_v50, 4  ;;  %641 = vst [vmem:[#allocation2 + $0x100] sm:$0x88] %v628_v50  ;;  %v631_v63 = vshrl.u32 %v13028_v56, 16  ;;  %v13098_v24 = vcombine.low %v611_v62, %v16707_v54 }
  0x38   : > { %14452 = vmatprep.subr.bf16.mxu0 %v14911_v17  ;;  %14509 = vmatpush3.bf16.msra.mxu1 %v14906_v30  ;;  %563 = vst [vmem:[#allocation2 + $0x100] sm:$0x77] %v559_v58  ;;  %v634_v0 = vshll.u32 %v13028_v56, 16  ;;  %v690_v6 = vshll.u32 %v16707_v54, 16  ;;  %v689_v13 = vrot.slane %v687_v5, 4  ;;  %v702_v30 = vrot.slane %v700_v18, 4 }
  0x39   : > { %1961 = vmatprep.mubr.bf16.mxu0 %v14907_v57  ;;  %14510 = vmatprep.subr.bf16.mxu1 %v14915_v46  ;;  %v633_v10 = vrot.slane %v631_v63, 5  ;;  %v16757_v40 = vrot.slane %v468_v41, 4  ;;  %v13042_v45 = vld [vmem:[%s16575_s26 + $0x58] sm:$0x11]  ;;  %v743_v46 = vrot.slane %v16753_v38, 7  ;;  %v16768_v47 = vld [vmem:[%s16575_s26 + $0x60] sm:$0xff] }
  0x3a   : > { %v636_v11 = vrot.slane %v634_v0, 6  ;;  %v692_v14 = vrot.slane %v690_v6, 5  ;;  %v703_v39 = vor.u32 %v702_v30, %v698_v15  ;;  %v13044_v50 = vld [vmem:[%s16575_s26 + $0x58] sm:$0x33]  ;;  %v745_v41 = vrot.slane %v13042_v45, 7  ;;  %v14927_v57 = vld [vmem:[%s21635_s1 + $0x1e0] sm:$0xff]  }
  0x3b   : > { %14453 = vmatpush3.bf16.msra.mxu0 %v14914_v21  ;;  %v14920_v21 = vld [vmem:[%s21635_s1 + $0x1a8] sm:$0xff]   ;;  %v812_v52 = vrot.slane %v16768_v47, 6  ;;  %v744_v43 = vrot.slane %v743_v46, 4  ;;  %749 = vst [vmem:[#allocation2] sm:$0xee] %v743_v46  ;;  %v757_v56 = vshll.u32 %v16753_v38, 16 }
  0x3c   : > { %14454 = vmatprep.subr.bf16.mxu0 %v14917_v51  ;;  %14511 = vmatpush3.bf16.msra.mxu1 %v14916_v48  ;;  %v637_v17 = vor.u32 %v636_v11, %v633_v10  ;;  %v693_v19 = vor.u32 %v692_v14, %v689_v13  ;;  %v704_v48 = vrot.slane %v703_v39, 4  ;;  %v14930_v58 = vld [vmem:[%s21635_s1 + $0x1a0] sm:$0xff]   ;;  %v765_v62 = vshll.u32 %v13044_v50, 16  ;;  %v14931_v11 = vld [vmem:[%s21635_s1 + $0x158] sm:$0xff]  }
  0x3d   : > { %14512 = vmatprep.subr.bf16.mxu1 %v14919_v16  ;;  %818 = vst [vmem:[#allocation2 + $0xc8] sm:$0xcc] %v812_v52  ;;  %v823_v63 = vshrl.u32 %v16768_v47, 16  ;;  %v746_v0 = vsel %vm16603_vm5, %v744_v43, %v745_v41  ;;  %v756_v2 = vrot.slane %v754_v53, 7  ;;  %v14932_v13 = vld [vmem:[%s21635_s1 + $0x118] sm:$0xff]   ;;  %v569_v30 = vrot.slane %v16627_v1, 6 }
  0x3e   : > { %1962 = vmatmul.mubr.bf16.gmra.mxu0 %v14912_v60  ;;  %v16740_v23 = vsel %vm16723_vm12, %v629_v59, %v637_v17  ;;  %v694_v35 = vrot.slane %v693_v19, 4  ;;  %v813_v59 = vrot.slane %v812_v52, 4  ;;  %v762_v60 = vshrl.u32 %v13044_v50, 16  ;;  %708 = vst [vmem:[#allocation2 + $0xe0] sm:$0x11] %v704_v48  ;;  %v14933_v18 = vld [vmem:[%s21635_s1 + $0x1d8] sm:$0xff]  }
  0x3f   : > { %1969 = vmatprep.mubr.bf16.mxu0 %v13099_v4  ;;  %14455 = vmatpush3.bf16.msra.mxu0 %v14918_v9  ;;  %v14909_v31 = vld [vmem:[#allocation2 + $0x114] ss:$-16 sps:$4 sm:$0xff]   ;;  %v14913_v33 = vld [vmem:[#allocation2 + $0x110] ss:$-16 sps:$4 sm:$0xff]   ;;  %v826_v4 = vshll.u32 %v16768_v47, 16  ;;  %v825_v10 = vrot.slane %v823_v63, 6  ;;  %v759_v14 = vor.u32 %v757_v56, %v756_v2 }
  0x40   : > { %14513 = vmatpush3.bf16.msra.mxu1 %v14920_v21  ;;  %14456 = vmatprep.subr.bf16.mxu0 %v14921_v28  ;;  %v699_v44 = vsel %vm16615_vm8, %v694_v35, %v698_v15  ;;  %750 = vst [vmem:[#allocation2 + $0xc8] sm:$0x33] %v746_v0  ;;  %v764_v9 = vrot.slane %v762_v60, 7  ;;  %v760_v15 = vrot.slane %v756_v2, 4  ;;  %v16805_v19 = vrot.slane %v543_v3, 7  ;;  %v14934_v43 = vld [vmem:[%s21635_s1 + $0x198] sm:$0xff]  }
  0x41   : > { %2049 = vmatprep.mubr.bf16.mxu1 %v14909_v31  ;;  %v13101_v51 = vcombine.high %v16740_v23, %v699_v44  ;;  %14514 = vmatprep.subr.bf16.mxu1 %v14927_v57  ;;  %v13100_v8 = vcombine.low %v16740_v23, %v699_v44  ;;  %v828_v16 = vrot.slane %v826_v4, 7  ;;  %771 = vst [vmem:[#allocation2 + $0xe0] sm:$0xee] %v759_v14  ;;  %v13050_v23 = vld [vmem:[%s16575_s26 + $0x68] sm:$0x11]  ;;  %v16843_v14 = vrot.slane %v492_v22, 4 }
  0x42   : > { %2050 = vmatmul.mubr.bf16.gmra.mxu1 %v14913_v33  ;;  %v767_v17 = vor.u32 %v765_v62, %v764_v9  ;;  %v13058_v28 = vld [vmem:[%s16575_s26 + $0x78] sm:$0x11]  ;;  %v814_v33 = vrot.slane %v13050_v23, 6  ;;  %575 = vst [vmem:[#allocation2 + $0x90] sm:$0xcc] %v569_v30  ;;  %v508_v60 = vor.u32 %v546_v20, %v16805_v19  ;;  %v431_v20 = vor.u32 %v16761_v42, %v16757_v40 }
  0x43   : > { %14457 = vmatpush3.bf16.msra.mxu0 %v14922_v36  ;;  %2057 = vmatprep.mubr.bf16.mxu1 %v13101_v51  ;;  %v829_v21 = vor.u32 %v828_v16, %v825_v10  ;;  %v887_v3 = vrot.slane %v13058_v28, 5  ;;  %v13052_v36 = vld [vmem:[%s16575_s26 + $0x68] sm:$0x33]  ;;  %v13060_v45 = vld [vmem:[%s16575_s26 + $0x78] sm:$0x33]  ;;  %v14936_v16 = vld [vmem:[%s21635_s1 + $0x110] sm:$0xff]  }
  0x44   : > { %14515 = vmatpush3.bf16.msra.mxu1 %v14930_v58  ;;  %14458 = vmatprep.subr.bf16.mxu0 %v14931_v11  ;;  %v768_v31 = vsel %vm16670_vm1, %v760_v15, %v767_v17  ;;  %v832_v39 = vshrl.u32 %v13052_v36, 16  ;;  %v835_v44 = vshll.u32 %v13052_v36, 16  ;;  %v815_v50 = vsel %vm16639_vm10, %v813_v59, %v814_v33  ;;  %520 = vst [vmem:[#allocation2 + $0x178] sm:$0xee] %v508_v60  ;;  %v14938_v28 = vld [vmem:[%s21635_s1 + $0x190] sm:$0xff]   ;;  %v14939_v60 = vld [vmem:[%s21635_s1 + $0x148] sm:$0xff]  }
  0x45   : > { %14516 = vmatprep.subr.bf16.mxu1 %v14933_v18  ;;  %772 = vst [vmem:[#allocation2 + $0x158] sm:$0x33] %v768_v31  ;;  %v830_v37 = vrot.slane %v829_v21, 4  ;;  %842 = vst [vmem:[#allocation2 + $0x158] sm:$0xcc] %v829_v21  ;;  %v905_v52 = vshrl.u32 %v13060_v45, 16 }
  0x46   : > { %1970 = vmatmul.mubr.bf16.gmra.mxu0 %v13098_v24  ;;  %v16809_v24 = vld [vmem:[%s16575_s26 + $0x70] sm:$0xff]  ;;  %819 = vst [vmem:[#allocation2 + $0x50] sm:$0x77] %v815_v50  ;;  %v834_v58 = vrot.slane %v832_v39, 6  ;;  %v837_v62 = vrot.slane %v835_v44, 7  ;;  %v908_v10 = vshll.u32 %v13060_v45, 16 }
  0x47   : > { %14459 = vmatpush3.bf16.msra.mxu0 %v14932_v13  ;;  %v885_v35 = vrot.slane %v16809_v24, 5  ;;  %v896_v46 = vshrl.u32 %v16809_v24, 16  ;;  %v899_v41 = vshll.u32 %v16809_v24, 16  ;;  %v14923_v48 = vld [vmem:[#allocation2 + $0x4] ss:$200 sps:$4 sm:$0xff]   ;;  %v907_v9 = vrot.slane %v905_v52, 5 }
  0x48   : > { %v14928_v57 = vld [vmem:[#allocation2] ss:$200 sps:$4 sm:$0xff]   ;;  %14517 = vmatpush3.bf16.msra.mxu1 %v14934_v43  ;;  %1977 = vmatprep.mubr.bf16.mxu0 %v14923_v48  ;;  %v838_v11 = vor.u32 %v837_v62, %v834_v58  ;;  %v910_v15 = vrot.slane %v908_v10, 6  ;;  %v16853_v22 = vrot.slane %v431_v20, 4  ;;  %v648_v33 = vrot.slane %v16707_v54, 5  ;;  %v16870_v45 = vld [vmem:[%s16575_s26 + $0x90] sm:$0xff] }
  0x49   : > { %v886_v51 = vrot.slane %v885_v35, 4  ;;  %891 = vst [vmem:[#allocation2 + $0x50] sm:$0x88] %v885_v35  ;;  %v898_v0 = vrot.slane %v896_v46, 5  ;;  %v901_v2 = vrot.slane %v899_v41, 6  ;;  %v16859_v31 = vld [vmem:[%s16575_s26 + $0x80] sm:$0xff]  ;;  %14518 = vmatprep.subr.bf16.mxu1 %v14937_v61 }
  0x4a   : > { %2058 = vmatmul.mubr.bf16.gmra.mxu1 %v13100_v8  ;;  %v14935_v8 = vld [vmem:[%s21635_s1 + $0x150] sm:$0xff]   ;;  %v839_v40 = vsel %vm16682_vm3, %v830_v37, %v838_v11  ;;  %v911_v21 = vor.u32 %v910_v15, %v907_v9  ;;  %v582_v35 = vrot.slane %v622_v25, 6  ;;  %v13066_v44 = vld [vmem:[%s16575_s26 + $0x88] sm:$0x11]  ;;  %v1017_v25 = vrot.slane %v16870_v45, 7 }
  0x4b   : > { %v888_v59 = vsel %vm16664_vm15, %v886_v51, %v887_v3  ;;  %v902_v13 = vor.u32 %v901_v2, %v898_v0  ;;  %14460 = vmatprep.subr.bf16.mxu0 %v14935_v8  ;;  %843 = vst [vmem:[#allocation2 + $0x170] sm:$0x77] %v839_v40  ;;  %v585_v3 = vrot.slane %v625_v29, 7  ;;  %v13068_v50 = vld [vmem:[%s16575_s26 + $0x88] sm:$0x33]  ;;  %v961_v51 = vshrl.u32 %v16859_v31, 16 }
  0x4c   : > { %v14925_v17 = vld [vmem:[#allocation2 + $0xe4] ss:$120 sps:$4 sm:$0xff]   ;;  %v14929_v18 = vld [vmem:[#allocation2 + $0xe0] ss:$120 sps:$4 sm:$0xff]   ;;  %14461 = vmatpush3.bf16.msra.mxu0 %v14936_v16  ;;  %14519 = vmatpush3.bf16.msra.mxu1 %v14938_v28  ;;  %957 = vst [vmem:[#allocation2 + $0x68] sm:$0x11] %v13066_v44 }
  0x4d   : > { %v903_v42 = vrot.slane %v902_v13, 4  ;;  %915 = vst [vmem:[#allocation2 + $0x170] sm:$0x88] %v902_v13  ;;  %2065 = vmatprep.mubr.bf16.mxu1 %v14925_v17  ;;  %v964_v52 = vshll.u32 %v16859_v31, 16  ;;  %v970_v29 = vshll.u32 %v13068_v50, 16  ;;  %v974_v43 = vshrl.u32 %v13068_v50, 16  ;;  %14462 = vmatprep.subr.bf16.mxu0 %v14939_v60 }
  0x4e   : > { %1978 = vmatmul.mubr.bf16.gmra.mxu0 %v14928_v57  ;;  %654 = vst [vmem:[#allocation2 + $0x58] sm:$0x88] %v648_v33  ;;  %v963_v48 = vrot.slane %v961_v51, 4  ;;  %v1028_v57 = vshrl.u32 %v16870_v45, 16  ;;  %v1031_v58 = vshll.u32 %v16870_v45, 16  ;;  %v509_v8 = vrot.slane %v16805_v19, 4 }
  0x4f   : > { %v912_v37 = vsel %vm16723_vm12, %v903_v42, %v911_v21  ;;  %1023 = vst [vmem:[#allocation2 + $0x68] sm:$0xee] %v1017_v25  ;;  %v966_v62 = vrot.slane %v964_v52, 5  ;;  %v972_v0 = vrot.slane %v970_v29, 5  ;;  %v976_v2 = vrot.slane %v974_v43, 4  ;;  %v14940_v10 = vld [vmem:[%s21635_s1 + $0x108] sm:$0xff]  }
  0x50   : > { %v1114_v23 = vld [vmem:[#allocation2 + $0x50] sm:$0xff]  ;;  %v1030_v9 = vrot.slane %v1028_v57, 7  ;;  %v1018_v11 = vrot.slane %v1017_v25, 4  ;;  %v14941_v16 = vld [vmem:[%s21635_s1 + $0x1c8] sm:$0xff]   ;;  %v16901_v17 = vrot.slane %v569_v30, 4  ;;  %14463 = vmatpush3.bf16.msra.mxu0 %v14940_v10  ;;  %v14948_v29 = vld [vmem:[%s21635_s1 + $0x100] sm:$0xff]  }
  0x51   : > { %v13115_v36 = vcombine.high %v1114_v23, %v888_v59  ;;  %v13114_v39 = vcombine.low %v1114_v23, %v888_v59  ;;  %v16885_v59 = vor.u32 %v585_v3, %v582_v35  ;;  %v967_v13 = vor.u32 %v966_v62, %v963_v48  ;;  %v14942_v61 = vld [vmem:[%s21635_s1 + $0x188] sm:$0xff]   ;;  %14520 = vmatprep.subr.bf16.mxu1 %v14941_v16  ;;  %v13074_v35 = vld [vmem:[%s16575_s26 + $0x98] sm:$0x11]  ;;  %v14949_v62 = vld [vmem:[%s21635_s1 + $0x1c0] sm:$0xff]  }
  0x52   : > { %2066 = vmatmul.mubr.bf16.gmra.mxu1 %v14929_v18  ;;  %v977_v15 = vor.u32 %v976_v2, %v972_v0  ;;  %v1033_v42 = vor.u32 %v1031_v58, %v1030_v9  ;;  %v1034_v21 = vrot.slane %v1030_v9, 4  ;;  %v13076_v3 = vld [vmem:[%s16575_s26 + $0x98] sm:$0x33]  ;;  %v1019_v1 = vrot.slane %v13074_v35, 7  ;;  %v14950_v9 = vld [vmem:[%s21635_s1 + $0x180] sm:$0xff]  }
  0x53   : > { %1985 = vmatprep.mubr.bf16.mxu0 %v13115_v36  ;;  %599 = vst [vmem:[#allocation2 + $0x118] sm:$0xcc] %v16885_v59  ;;  %v968_v23 = vrot.slane %v967_v13, 4  ;;  %14521 = vmatpush3.bf16.msra.mxu1 %v14942_v61  ;;  %v1036_v30 = vshrl.u32 %v13076_v3, 16  ;;  %v1039_v36 = vshll.u32 %v13076_v3, 16  ;;  %v661_v43 = vrot.slane %v687_v5, 5 }
  0x54   : > { %v1115_v20 = vld [vmem:[#allocation2 + $0x170] sm:$0xff]  ;;  %v978_v28 = vrot.slane %v977_v15, 4  ;;  %1045 = vst [vmem:[#allocation2 + $0xd0] sm:$0xee] %v1033_v42  ;;  %v1020_v50 = vsel %vm16603_vm5, %v1018_v11, %v1019_v1  ;;  %v13006_v5 = vld [vmem:[%s16575_s26 + $0x18] sm:$0x11]  ;;  %14522 = vmatprep.subr.bf16.mxu1 %v14949_v62 }
  0x55   : > { %v13117_v18 = vcombine.high %v1115_v20, %v912_v37  ;;  %v13116_v40 = vcombine.low %v1115_v20, %v912_v37  ;;  %v14947_v37 = vld [vmem:[%s21635_s1 + $0x140] sm:$0xff]   ;;  %v1038_v25 = vrot.slane %v1036_v30, 7  ;;  %1024 = vst [vmem:[#allocation2 + $0x98] sm:$0x33] %v1020_v50  ;;  %v649_v10 = vrot.slane %v648_v33, 4 }
  0x56   : > { %1986 = vmatmul.mubr.bf16.gmra.mxu0 %v13114_v39  ;;  %v16915_v39 = vsel %vm16615_vm8, %v968_v23, %v972_v0  ;;  %982 = vst [vmem:[#allocation2 + $0xd0] sm:$0x11] %v978_v28  ;;  %v1126_v44 = vld [vmem:[#allocation2 + $0x68] sm:$0xff]  ;;  %14464 = vmatprep.subr.bf16.mxu0 %v14947_v37  ;;  %v664_v0 = vrot.slane %v690_v6, 6  ;;  %421 = vst [vmem:[#allocation2 + $0x128] sm:$0x11] %v13006_v5 }
  0x57   : > { %2073 = vmatprep.mubr.bf16.mxu1 %v13117_v18  ;;  %v13123_v48 = vcombine.high %v16859_v31, %v1126_v44  ;;  %v13122_v60 = vcombine.low %v16859_v31, %v1126_v44  ;;  %v1041_v2 = vor.u32 %v1039_v36, %v1038_v25  ;;  %14465 = vmatpush3.bf16.msra.mxu0 %v14948_v29  ;;  %v13008_v20 = vld [vmem:[%s16575_s26 + $0x18] sm:$0x33]  ;;  %v13014_v11 = vld [vmem:[%s16575_s26 + $0x28] sm:$0x11]  ;;  %v587_v28 = vrot.slane %v16885_v59, 4 }
  0x58   : > { %v13022_v13 = vld [vmem:[%s16575_s26 + $0x38] sm:$0x11]  ;;  %v16940_v15 = vor.u32 %v664_v0, %v661_v43  ;;  %14523 = vmatpush3.bf16.msra.mxu1 %v14950_v9  ;;  %v434_v16 = vshll.u32 %v13008_v20, 16  ;;  %v438_v18 = vshrl.u32 %v13008_v20, 16  ;;  %v13016_v54 = vld [vmem:[%s16575_s26 + $0x28] sm:$0x33] }
  0x59   : > { %1993 = vmatprep.mubr.bf16.mxu0 %v13123_v48  ;;  %v1042_v6 = vsel %vm16670_vm1, %v1034_v21, %v1041_v2  ;;  %v571_v33 = vrot.slane %v13022_v13, 6  ;;  %v511_v42 = vshrl.u32 %v13016_v54, 16  ;;  %v514_v61 = vshll.u32 %v13016_v54, 16  ;;  %v13024_v23 = vld [vmem:[%s16575_s26 + $0x38] sm:$0x33] }
  0x5a   : > { %2074 = vmatmul.mubr.bf16.gmra.mxu1 %v13116_v40  ;;  %v494_v40 = vrot.slane %v13014_v11, 7  ;;  %1046 = vst [vmem:[#allocation2 + $0x148] sm:$0x33] %v1042_v6  ;;  %678 = vst [vmem:[#allocation2 + $0xd8] sm:$0x88] %v16940_v15  ;;  %v436_v3 = vrot.slane %v434_v16, 5 }
  0x5b   : > { %v440_v1 = vrot.slane %v438_v18, 4  ;;  %v589_v30 = vshrl.u32 %v13024_v23, 16  ;;  %v13030_v36 = vld [vmem:[%s16575_s26 + $0x48] sm:$0x11]  ;;  %v572_v59 = vsel %vm16639_vm10, %v16901_v17, %v571_v33  ;;  %v513_v50 = vrot.slane %v511_v42, 7 }
  0x5c   : > { %v495_v21 = vsel %vm16603_vm5, %v16843_v14, %v494_v40  ;;  %v13032_v25 = vld [vmem:[%s16575_s26 + $0x48] sm:$0x33]  ;;  %v1130_v29 = vld [vmem:[#allocation2 + $0x98] sm:$0x33]  ;;  %v16961_v43 = vsel %vm16615_vm8, %v16853_v22, %v436_v3  ;;  %576 = vst [vmem:[#allocation2 + $0x58] sm:$0x77] %v572_v59 }
  0x5d   : > { %v1127_v35 = vld [vmem:[#allocation2 + $0xd0] sm:$0xff]  ;;  %499 = vst [vmem:[#allocation2 + $0x90] sm:$0x33] %v495_v21  ;;  %v441_v14 = vor.u32 %v440_v1, %v436_v3  ;;  %v591_v48 = vrot.slane %v589_v30, 6  ;;  %v13038_v62 = vld [vmem:[%s16575_s26 + $0x58] sm:$0x11]  ;;  %v13130_v0 = vcombine.low %v1130_v29, %v1130_v29  ;;  %v516_v2 = vor.u32 %v514_v61, %v513_v50 }
  0x5e   : > { %1994 = vmatmul.mubr.bf16.gmra.mxu0 %v13122_v60  ;;  %v13125_v37 = vcombine.high %v16915_v39, %v1127_v35  ;;  %v13124_v44 = vcombine.low %v16915_v39, %v1127_v35  ;;  %v592_v60 = vshll.u32 %v13024_v23, 16  ;;  %v13131_v39 = vcombine.high %v1130_v29, %v1130_v29  ;;  %v13040_v5 = vld [vmem:[%s16575_s26 + $0x58] sm:$0x33]  ;;  %713 = vst [vmem:[#allocation2 + $0x188] sm:$0x11] %v13038_v62  ;;  %v16965_v17 = vld [vmem:[#allocation2 + $0x128] sm:$0xff] }
  0x5f   : > { %v650_v9 = vrot.slane %v13030_v36, 5  ;;  %v442_v20 = vrot.slane %v441_v14, 4  ;;  %v668_v13 = vshrl.u32 %v13032_v25, 16  ;;  %v671_v22 = vshll.u32 %v13032_v25, 16  ;;  %v13046_v23 = vld [vmem:[%s16575_s26 + $0x68] sm:$0x11] }
  0x60   : > { %2081 = vmatprep.mubr.bf16.mxu1 %v13125_v37  ;;  %v594_v11 = vrot.slane %v592_v60, 7  ;;  %2001 = vmatprep.mubr.bf16.mxu0 %v13131_v39  ;;  %v13087_v6 = vcombine.high %v16585_v34, %v16965_v17  ;;  %v517_v16 = vsel %vm16670_vm1, %v509_v8, %v516_v2  ;;  %v719_v40 = vrot.slane %v754_v53, 4  ;;  %v13070_v35 = vld [vmem:[%s16575_s26 + $0x98] sm:$0x11]  ;;  %v13048_v30 = vld [vmem:[%s16575_s26 + $0x68] sm:$0x33] }
  0x61   : > { %v16975_v18 = vsel %vm16664_vm15, %v649_v10, %v650_v9  ;;  %v1131_v54 = vld [vmem:[#allocation2 + $0x148] sm:$0x33]  ;;  %446 = vst [vmem:[#allocation2 + $0x178] sm:$0x11] %v442_v20  ;;  %521 = vst [vmem:[#allocation2 + $0x118] sm:$0x33] %v517_v16 }
  0x62   : > { %2082 = vmatmul.mubr.bf16.gmra.mxu1 %v13124_v44  ;;  %v595_v34 = vor.u32 %v594_v11, %v591_v48  ;;  %v666_v19 = vrot.slane %v16940_v15, 4  ;;  %v670_v33 = vrot.slane %v668_v13, 5  ;;  %v673_v42 = vrot.slane %v671_v22, 6  ;;  %987 = vst [vmem:[#allocation2 + $0x30] sm:$0x11] %v13070_v35  ;;  %v16301_v15 = vld [vmem:[#allocation2 + $0x150] sm:$0xff] }
  0x63   : > { %v13133_v61 = vcombine.high %v1131_v54, %v1131_v54  ;;  %v722_v8 = vrot.slane %v757_v56, 5  ;;  %v726_v10 = vshll.u32 %v13040_v5, 16  ;;  %v13132_v3 = vcombine.low %v1131_v54, %v1131_v54  ;;  %v13054_v29 = vld [vmem:[%s16575_s26 + $0x78] sm:$0x11]  ;;  %v13062_v39 = vld [vmem:[%s16575_s26 + $0x88] sm:$0x11] }
  0x64   : > { %v596_v53 = vsel %vm16682_vm3, %v587_v28, %v595_v34  ;;  %v674_v1 = vor.u32 %v673_v42, %v670_v33  ;;  %v778_v21 = vrot.slane %v16768_v47, 7  ;;  %v13086_v36 = vcombine.low %v16301_v15, %v16965_v17  ;;  %v14951_v56 = vld [vmem:[#allocation2 + $0x94] ss:$-56 sps:$4 sm:$0xff]  }
  0x65   : > { %2089 = vmatprep.mubr.bf16.mxu1 %v13133_v61  ;;  %600 = vst [vmem:[#allocation2 + $0xd8] sm:$0x77] %v596_v53  ;;  %v723_v37 = vor.u32 %v722_v8, %v719_v40  ;;  %v728_v44 = vrot.slane %v726_v10, 5  ;;  %v780_v50 = vrot.slane %v13046_v23, 7  ;;  %v849_v25 = vrot.slane %v16809_v24, 6 }
  0x66   : > { %2002 = vmatmul.mubr.bf16.gmra.mxu0 %v13130_v0  ;;  %v16991_v59 = vsel %vm16723_vm12, %v666_v19, %v674_v1  ;;  %v779_v28 = vrot.slane %v778_v21, 4  ;;  %784 = vst [vmem:[#allocation2 + $0x188] sm:$0xee] %v778_v21  ;;  %v730_v48 = vshrl.u32 %v13040_v5, 16  ;;  %v791_v60 = vrot.slane %v823_v63, 7 }
  0x67   : > { %2129 = vmatprep.mubr.bf16.mxu0 %v13087_v6  ;;  %v724_v14 = vrot.slane %v723_v37, 4  ;;  %v797_v62 = vshrl.u32 %v13048_v30, 16  ;;  %v13056_v0 = vld [vmem:[%s16575_s26 + $0x78] sm:$0x33]  ;;  %v850_v9 = vrot.slane %v849_v25, 4  ;;  %v800_v17 = vshll.u32 %v13048_v30, 16 }
  0x68   : > { %v781_v2 = vsel %vm16603_vm5, %v779_v28, %v780_v50  ;;  %855 = vst [vmem:[#allocation2 + $0xb0] sm:$0xcc] %v849_v25  ;;  %v862_v20 = vrot.slane %v896_v46, 6  ;;  %v1089_v11 = vld [vmem:[#allocation2 + $0x178] sm:$0xff]  ;;  %v732_v63 = vrot.slane %v730_v48, 4  ;;  %v794_v22 = vor.u32 %v826_v4, %v791_v60 }
  0x69   : > { %v17003_v13 = vld [vmem:[#allocation2 + $0x118] sm:$0xff]  ;;  %v17007_v5 = vsel %vm16615_vm8, %v724_v14, %v728_v44  ;;  %785 = vst [vmem:[#allocation2 + $0xb0] sm:$0x33] %v781_v2  ;;  %v795_v6 = vrot.slane %v791_v60, 4  ;;  %v13088_v16 = vcombine.low %v16961_v43, %v1089_v11  ;;  %v13089_v40 = vcombine.high %v16961_v43, %v1089_v11  ;;  %v13064_v8 = vld [vmem:[%s16575_s26 + $0x88] sm:$0x33] }
  0x6a   : > { %2090 = vmatmul.mubr.bf16.gmra.mxu1 %v13132_v3  ;;  %v13103_v46 = vcombine.high %v16975_v18, %v16753_v38  ;;  %v733_v54 = vor.u32 %v732_v63, %v728_v44  ;;  %v799_v34 = vrot.slane %v797_v62, 7  ;;  %806 = vst [vmem:[#allocation2 + $0x88] sm:$0xee] %v794_v22  ;;  %v865_v19 = vrot.slane %v899_v41, 7  ;;  %v13072_v24 = vld [vmem:[%s16575_s26 + $0x98] sm:$0x33] }
  0x6b   : > { %v851_v47 = vrot.slane %v13054_v29, 6  ;;  %2217 = vmatprep.mubr.bf16.mxu1 %v13089_v40  ;;  %v922_v33 = vrot.slane %v16859_v31, 5  ;;  %v924_v42 = vrot.slane %v13062_v39, 5  ;;  %v869_v43 = vshrl.u32 %v13056_v0, 16  ;;  %v14953_v41 = vld [vmem:[#allocation2 + $0x90] ss:$-56 sps:$4 sm:$0xff]  }
  0x6c   : > { %v17017_v4 = vld [vmem:[#allocation2 + $0xd8] sm:$0xff]  ;;  %v872_v61 = vshll.u32 %v13056_v0, 16  ;;  %v13102_v23 = vcombine.low %v16975_v18, %v16753_v38  ;;  %v734_v35 = vrot.slane %v733_v54, 4  ;;  %v802_v3 = vor.u32 %v800_v17, %v799_v34  ;;  %v13077_v29 = vld [vmem:[%s16575_s26 + $0xa0] sm:$0xff]  ;;  %v13080_v60 = vld [vmem:[%s16575_s26 + $0xa8] sm:$0x33] }
  0x6d   : > { %v13097_v10 = vcombine.high %v17003_v13, %v17017_v4  ;;  %v866_v53 = vor.u32 %v865_v19, %v862_v20  ;;  %v852_v1 = vsel %vm16639_vm10, %v850_v9, %v851_v47  ;;  %v923_v21 = vrot.slane %v922_v33, 4  ;;  %928 = vst [vmem:[#allocation2 + $0x190] sm:$0x88] %v922_v33 }
  0x6e   : > { %2130 = vmatmul.mubr.bf16.vlgmr.msra.gmra.mxu0 %v13086_v36  ;;  %v871_v30 = vrot.slane %v869_v43, 6  ;;  %738 = vst [vmem:[#allocation2 + $0x88] sm:$0x11] %v734_v35  ;;  %v803_v15 = vsel %vm16670_vm1, %v795_v6, %v802_v3  ;;  %856 = vst [vmem:[#allocation2 + $0x190] sm:$0x77] %v852_v1  ;;  %v874_v36 = vrot.slane %v872_v61, 7  ;;  %v13096_v44 = vcombine.low %v17003_v13, %v17017_v4 }
  0x6f   : > { %2137 = vmatprep.mubr.bf16.mxu0 %v14951_v56  ;;  %v935_v56 = vrot.slane %v961_v51, 5  ;;  %v938_v37 = vrot.slane %v964_v52, 6  ;;  %v13105_v28 = vcombine.high %v16991_v59, %v17007_v5  ;;  %807 = vst [vmem:[#allocation2 + $0x140] sm:$0x33] %v803_v15  ;;  %v867_v50 = vrot.slane %v866_v53, 4 }
  0x70   : > { %879 = vst [vmem:[#allocation2 + $0x140] sm:$0xcc] %v866_v53  ;;  %v17040_v25 = vsel %vm16664_vm15, %v923_v21, %v924_v42  ;;  %v13078_v51 = vld [vmem:[%s16575_s26 + $0xa8] sm:$0x11]  ;;  %v875_v31 = vor.u32 %v874_v36, %v871_v30  ;;  %v942_v52 = vshrl.u32 %v13064_v8, 16  ;;  %v945_v48 = vshll.u32 %v13064_v8, 16 }
  0x71   : > { %v939_v14 = vor.u32 %v938_v37, %v935_v56  ;;  %v1052_v62 = vrot.slane %v13077_v29, 7  ;;  %v993_v39 = vrot.slane %v1028_v57, 4  ;;  %v996_v0 = vrot.slane %v1031_v58, 5  ;;  %v14954_v47 = vld [vmem:[#allocation2 + $0x18c] ss:$-216 sps:$4 sm:$0xff]  }
  0x72   : > { %2218 = vmatmul.mubr.bf16.vlgmr.msra.gmra.mxu1 %v13088_v16  ;;  %v1000_v2 = vshll.u32 %v13072_v24, 16  ;;  %v876_v9 = vsel %vm16682_vm3, %v867_v50, %v875_v31  ;;  %v944_v20 = vrot.slane %v942_v52, 5  ;;  %v947_v11 = vrot.slane %v945_v48, 6  ;;  %v14956_v21 = vld [vmem:[#allocation2 + $0x188] ss:$-216 sps:$4 sm:$0xff]   ;;  %v14964_v48 = vld [vmem:[%s21637_s3 + $0x78] sm:$0xff]  }
  0x73   : > { %2225 = vmatprep.mubr.bf16.mxu1 %v13097_v10  ;;  %v940_v17 = vrot.slane %v939_v14, 4  ;;  %952 = vst [vmem:[#allocation2 + $0x38] sm:$0x88] %v939_v14  ;;  %880 = vst [vmem:[#allocation2 + $0x38] sm:$0x77] %v876_v9  ;;  %v1053_v13 = vrot.slane %v1052_v62, 4  ;;  %v997_v63 = vor.u32 %v996_v0, %v993_v39  ;;  %v13104_v1 = vcombine.low %v16991_v59, %v17007_v5 }
  0x74   : > { %1058 = vst [vmem:[#allocation2 + $0x30] sm:$0xee] %v1052_v62  ;;  %v1002_v22 = vrot.slane %v1000_v2, 5  ;;  %v1004_v6 = vshrl.u32 %v13072_v24, 16  ;;  %v948_v16 = vor.u32 %v947_v11, %v944_v20  ;;  %v1063_v57 = vshrl.u32 %v13077_v29, 16  ;;  %14566 = vmatprep.subr.bf16.mxu0 %v14964_v48  ;;  %v14969_v62 = vld [vmem:[%s21637_s3 + $0x30] sm:$0xff]  }
  0x75   : > { %v1066_v40 = vshll.u32 %v13077_v29, 16  ;;  %v1054_v54 = vrot.slane %v13078_v51, 7  ;;  %v998_v58 = vrot.slane %v997_v63, 4  ;;  %v1074_v19 = vshll.u32 %v13080_v60, 16  ;;  %v1116_v53 = vld [vmem:[#allocation2 + $0x190] sm:$0xff]  ;;  %v14966_v39 = vld [vmem:[%s21637_s3 + $0xf8] sm:$0xff]  }
  0x76   : > { %2138 = vmatmul.mubr.bf16.gmra.mxu0 %v14953_v41  ;;  %v1006_v34 = vrot.slane %v1004_v6, 4  ;;  %v949_v4 = vsel %vm16723_vm12, %v940_v17, %v948_v16  ;;  %v1065_v33 = vrot.slane %v1063_v57, 7  ;;  %v13119_v15 = vcombine.high %v1116_v53, %v17040_v25  ;;  %v14967_v0 = vld [vmem:[%s21637_s3 + $0xb8] sm:$0xff]   ;;  %14618 = vmatprep.subr.bf16.mxu1 %v14966_v39  ;;  %v14970_v2 = vld [vmem:[%s21637_s3 + $0xf0] sm:$0xff]   ;;  %v14972_v9 = vld [vmem:[%s21637_s3 + $0x68] sm:$0xff]  }
  0x77   : > { %2145 = vmatprep.mubr.bf16.mxu0 %v13103_v46  ;;  %v1071_v46 = vshrl.u32 %v13080_v60, 16  ;;  %v1003_v42 = vsel %vm16615_vm8, %v998_v58, %v1002_v22  ;;  %v1055_v61 = vsel %vm16603_vm5, %v1053_v13, %v1054_v54  ;;  %v14957_v41 = vld [vmem:[#allocation2 + $0x8c] ss:$184 sps:$4 sm:$0xff]   ;;  %v14959_v18 = vld [vmem:[#allocation2 + $0x88] ss:$184 sps:$4 sm:$0xff]   ;;  %v13118_v56 = vcombine.low %v1116_v53, %v17040_v25  ;;  %v14968_v60 = vld [vmem:[%s21637_s3 + $0x70] sm:$0xff]   ;;  %14619 = vmatpush3.bf16.msra.mxu1 %v14967_v0 }
  0x78   : > { %v1007_v43 = vor.u32 %v1006_v34, %v1002_v22  ;;  %v1068_v10 = vor.u32 %v1066_v40, %v1065_v33  ;;  %v1069_v35 = vrot.slane %v1065_v33, 4  ;;  %1059 = vst [vmem:[#allocation2 + $0xe8] sm:$0x33] %v1055_v61  ;;  %14620 = vmatprep.subr.bf16.mxu1 %v14970_v2  ;;  %v14973_v17 = vld [vmem:[%s21637_s3 + $0x28] sm:$0xff]   ;;  %v14976_v20 = vld [vmem:[%s21637_s3 + $0x60] sm:$0xff]   ;;  %v14971_v13 = vld [vmem:[%s21637_s3 + $0xb0] sm:$0xff]  }
  0x79   : > { %v1073_v8 = vrot.slane %v1071_v46, 7  ;;  %v14977_v11 = vld [vmem:[%s21637_s3 + $0x20] sm:$0xff]   ;;  %v14974_v63 = vld [vmem:[%s21637_s3 + $0xe8] sm:$0xff]   ;;  %v14980_v57 = vld [vmem:[%s21637_s3 + $0x58] sm:$0xff]  }
  0x7a   : > { %2226 = vmatmul.mubr.bf16.gmra.mxu1 %v13096_v44  ;;  %v1008_v3 = vrot.slane %v1007_v43, 4  ;;  %1080 = vst [vmem:[#allocation2 + $0x80] sm:$0xee] %v1068_v10  ;;  %v1117_v38 = vld [vmem:[#allocation2 + $0x38] sm:$0xff]  ;;  %v14975_v22 = vld [vmem:[%s21637_s3 + $0xa8] sm:$0xff]   ;;  %v14978_v6 = vld [vmem:[%s21637_s3 + $0xe0] sm:$0xff]  }
  0x7b   : > { %2233 = vmatprep.mubr.bf16.mxu1 %v13105_v28  ;;  %v1076_v24 = vor.u32 %v1074_v19, %v1073_v8  ;;  %v13121_v36 = vcombine.high %v1117_v38, %v949_v4  ;;  %v13120_v44 = vcombine.low %v1117_v38, %v949_v4  ;;  %14621 = vmatpush3.bf16.msra.mxu1 %v14971_v13  ;;  %v14979_v16 = vld [vmem:[%s21637_s3 + $0xa0] sm:$0xff]   ;;  %v14981_v40 = vld [vmem:[%s21637_s3 + $0x18] sm:$0xff]   ;;  %v14984_v54 = vld [vmem:[%s21637_s3 + $0x50] sm:$0xff]  }
  0x7c   : > { %1012 = vst [vmem:[#allocation2 + $0x80] sm:$0x11] %v1008_v3  ;;  %14622 = vmatprep.subr.bf16.mxu1 %v14974_v63  ;;  %v14985_v58 = vld [vmem:[%s21637_s3 + $0x10] sm:$0xff]   ;;  %v14987_v19 = vld [vmem:[%s21637_s3 + $0x48] sm:$0xff]   ;;  %v14982_v33 = vld [vmem:[%s21637_s3 + $0xd8] sm:$0xff]  }
  0x7d   : > { %v1077_v30 = vsel %vm16670_vm1, %v1069_v35, %v1076_v24  ;;  %v14990_v61 = vld [vmem:[%s21637_s3 + $0x40] sm:$0xff]   ;;  %v14986_v35 = vld [vmem:[%s21637_s3 + $0xd0] sm:$0xff]  }
  0x7e   : > { %2146 = vmatmul.mubr.bf16.gmra.mxu0 %v13102_v23  ;;  %1081 = vst [vmem:[#allocation2 + $0x70] sm:$0x33] %v1077_v30  ;;  %v1128_v23 = vld [vmem:[#allocation2 + $0x30] sm:$0xff]  ;;  %v14991_v10 = vld [vmem:[%s21637_s3] sm:$0xff]  }
  0x7f   : > { %2153 = vmatprep.mubr.bf16.mxu0 %v14954_v47  ;;  %v13127_v59 = vcombine.high %v16870_v45, %v1128_v23  ;;  %v1132_v37 = vld [vmem:[#allocation2 + $0xe8] sm:$0x33]  ;;  %v13126_v50 = vcombine.low %v16870_v45, %v1128_v23  ;;  %v14965_v45 = vld [vmem:[%s21637_s3 + $0x38] sm:$0xff]   ;;  %14623 = vmatpush3.bf16.msra.mxu1 %v14975_v22  ;;  %v14988_v24 = vld [vmem:[%s21637_s3 + $0x90] sm:$0xff]  }
  0x80   : > { %v13135_v29 = vcombine.high %v1132_v37, %v1132_v37  ;;  %v13134_v14 = vcombine.low %v1132_v37, %v1132_v37  ;;  %14567 = vmatpush3.bf16.msra.mxu0 %v14965_v45  ;;  %14624 = vmatprep.subr.bf16.mxu1 %v14978_v6  ;;  %v14989_v47 = vld [vmem:[%s21637_s3 + $0x8] sm:$0xff]   ;;  %v17215_v45 = vld [vmem:[%s21636_s2] ss:$0 sm:$0xff] }
  0x81   : > { %14568 = vmatprep.subr.bf16.mxu0 %v14968_v60 }
  0x82   : > { %2234 = vmatmul.mubr.bf16.gmra.mxu1 %v13104_v1 }
  0x83   : > { %2241 = vmatprep.mubr.bf16.mxu1 %v14957_v41  ;;  %v1129_v5 = vld [vmem:[#allocation2 + $0x80] sm:$0xff]  ;;  %14625 = vmatpush3.bf16.msra.mxu1 %v14979_v16 }
  0x84   : > { %v13129_v28 = vcombine.high %v1003_v42, %v1129_v5  ;;  %v13128_v31 = vcombine.low %v1003_v42, %v1129_v5  ;;  %14569 = vmatpush3.bf16.msra.mxu0 %v14969_v62  ;;  %v14983_v42 = vld [vmem:[%s21637_s3 + $0x98] sm:$0xff]   ;;  %14626 = vmatprep.subr.bf16.mxu1 %v14982_v33 }
  0x85   : > { %v1133_v51 = vld [vmem:[#allocation2 + $0x70] sm:$0x33]  ;;  %14570 = vmatprep.subr.bf16.mxu0 %v14972_v9 }
  0x86   : > { %2154 = vmatmul.mubr.bf16.gmra.mxu0 %v14956_v21  ;;  %v13137_v25 = vcombine.high %v1133_v51, %v1133_v51  ;;  %v13136_v52 = vcombine.low %v1133_v51, %v1133_v51  ;;  %v14992_v21 = vld [vmem:[%s21637_s3 + $0xc8] sm:$0xff]  }
  0x87   : > { %2161 = vmatprep.mubr.bf16.mxu0 %v13119_v15  ;;  %14627 = vmatpush3.bf16.msra.mxu1 %v14983_v42 }
  0x88   : > { %14571 = vmatpush3.bf16.msra.mxu0 %v14973_v17  ;;  %14628 = vmatprep.subr.bf16.mxu1 %v14986_v35 }
  0x89   : > { %14572 = vmatprep.subr.bf16.mxu0 %v14976_v20 }
  0x8a   : > { %2242 = vmatmul.mubr.bf16.gmra.mxu1 %v14959_v18 }
  0x8b   : > { %2249 = vmatprep.mubr.bf16.mxu1 %v13121_v36  ;;  %14629 = vmatpush3.bf16.msra.mxu1 %v14988_v24 }
  0x8c   : > { %14573 = vmatpush3.bf16.msra.mxu0 %v14977_v11  ;;  %14630 = vmatprep.subr.bf16.mxu1 %v14992_v21 }
  0x8d   : > { %14574 = vmatprep.subr.bf16.mxu0 %v14980_v57 }
  0x8e   : > { %2162 = vmatmul.mubr.bf16.gmra.mxu0 %v13118_v56 }
  0x8f   : > { %2169 = vmatprep.mubr.bf16.mxu0 %v13127_v59 }
  0x90   : > { %14575 = vmatpush3.bf16.msra.mxu0 %v14981_v40 }
  0x91   : > { %14576 = vmatprep.subr.bf16.mxu0 %v14984_v54 }
  0x92   : > { %2250 = vmatmul.mubr.bf16.gmra.mxu1 %v13120_v44 }
  0x93   : > { %2257 = vmatprep.mubr.bf16.mxu1 %v13129_v28 }
  0x94   : > { %14577 = vmatpush3.bf16.msra.mxu0 %v14985_v58 }
  0x95   : > { %14578 = vmatprep.subr.bf16.mxu0 %v14987_v19 }
  0x96   : > { %2170 = vmatmul.mubr.bf16.gmra.mxu0 %v13126_v50 }
  0x97   : > { %2177 = vmatprep.mubr.bf16.mxu0 %v13135_v29  ;;  %v14996_v29 = vld [vmem:[%s21637_s3 + $0x88] sm:$0xff]  }
  0x98   : > { %14579 = vmatpush3.bf16.msra.mxu0 %v14989_v47  ;;  %14631 = vmatpush3.bf16.msra.mxu1 %v14996_v29 }
  0x99   : > { %14580 = vmatprep.subr.bf16.mxu0 %v14990_v61 }
  0x9a   : > { %2258 = vmatmul.mubr.bf16.gmra.mxu1 %v13128_v31 }
  0x9b   : > { %2265 = vmatprep.mubr.bf16.mxu1 %v13137_v25  ;;  %v14997_v25 = vld [vmem:[%s21637_s3 + $0xc0] sm:$0xff]  }
  0x9c   : > { %14581 = vmatpush3.bf16.msra.mxu0 %v14991_v10  ;;  %14632 = vmatprep.subr.bf16.mxu1 %v14997_v25 }
  0x9e   : > { %2178 = vmatmul.mubr.bf16.gmra.mxu0 %v13134_v14  ;;  %v14998_v14 = vld [vmem:[%s21637_s3 + $0x80] sm:$0xff]  }
  0x9f   : > { %14633 = vmatpush3.bf16.msra.mxu1 %v14998_v14 }
  0xa2   : > { %2266 = vmatmul.mubr.bf16.gmra.mxu1 %v13136_v52 }
  0xf6   : > { %v17128_v34 = vpop.f32.mrf.mxu0 }
  0xf7   : > { %v17151_v8 = vpop.f32.mrf.mxu1 }
  0xf8   : > { %v17130_v46 = vpop.f32.mrf.mxu0 }
  0xf9   : > { %v17159_v3 = vpop.f32.mrf.mxu1 }
  0xfa   : > { %v17138_v4 = vpop.f32.mrf.mxu0 }
  0xfb   : > { %v17166_v53 = vpop.f32.mrf.mxu1 }
  0xfc   : > { %v17146_v43 = vpop.f32.mrf.mxu0 }
  0xfd   : > { %v17173_v30 = vpop.f32.mrf.mxu1 }
  0xfe   : > { %v17164_v41 = vpop.f32.mrf.mxu0 }
 0x100   : > { %v17168_v1 = vpop.f32.mrf.mxu0 }
 0x102   : > { %v17175_v15 = vpop.f32.mrf.mxu0  ;;  %v17179_v18 = vpop.f32.mrf.mxu1 }
 0x104   : > { %v17177_v38 = vpop.f32.mrf.mxu0  ;;  %v17183_v36 = vpop.f32.mrf.mxu1 }
 0x106   : > { %v17181_v23 = vpop.f32.mrf.mxu0  ;;  %v17187_v59 = vpop.f32.mrf.mxu1 }
 0x108   : > { %v17185_v56 = vpop.f32.mrf.mxu0  ;;  %v17189_v5 = vpop.f32.mrf.mxu1 }
 0x10a   : > { %v17191_v37 = vpop.f32.mrf.mxu0  ;;  %v17193_v44 = vpop.f32.mrf.mxu1 }
 0x10c   : > { %v17195_v28 = vpop.f32.mrf.mxu1  ;;  %v17197_v50 = vpop.f32.mrf.mxu0 }
 0x10e   : > { %v17202_v51 = vpop.f32.mrf.mxu1  ;;  %v14368_v31 = vpop.f32.mrf.mxu0 }
 0x110   : > { %v17210_v52 = vpop.f32.mrf.mxu1  ;;  %v14369_v48 = vpop.f32.mrf.mxu0 }
 0x111   : > { %v14370_v60 = vadd.f32 %v14369_v48, %v14368_v31 }
 0x112   : > { %v14371_v62 = vpop.f32.mrf.mxu0  ;;  %v14426_v39 = vpop.f32.mrf.mxu1 }
 0x113   : > { %v1980_v0 = vadd.f32 %v14370_v60, %v17215_v45 }
 0x114   : > { %v14372_v2 = vpop.f32.mrf.mxu0  ;;  %v14427_v9 = vpop.f32.mrf.mxu1 }
 0x115   : > { %v14373_v17 = vadd.f32 %v14372_v2, %v14371_v62  ;;  %v14428_v20 = vadd.f32 %v14427_v9, %v14426_v39 }
 0x116   : > { %v14374_v11 = vpop.f32.mrf.mxu0  ;;  %v14429_v13 = vpop.f32.mrf.mxu1 }
 0x117   : > { %v17218_v63 = vadd.f32 %v14428_v20, %v1980_v0  ;;  %v1983_v22 = vadd.f32 %v14373_v17, %v17215_v45 }
 0x118   : > { %v14375_v6 = vpop.f32.mrf.mxu0  ;;  %v14430_v16 = vpop.f32.mrf.mxu1 }
 0x119   : > { %v14376_v57 = vadd.f32 %v14375_v6, %v14374_v11  ;;  %v14431_v40 = vadd.f32 %v14430_v16, %v14429_v13 }
 0x11a   : > { %v14377_v54 = vpop.f32.mrf.mxu0  ;;  %v14432_v19 = vpop.f32.mrf.mxu1 }
 0x11b   : > { %v17221_v58 = vadd.f32 %v14431_v40, %v1983_v22  ;;  %v1988_v33 = vadd.f32 %v14376_v57, %v17215_v45 }
 0x11c   : > { %v14378_v47 = vpop.f32.mrf.mxu0  ;;  %v14433_v61 = vpop.f32.mrf.mxu1 }
 0x11d   : > { %v14379_v42 = vadd.f32 %v14378_v47, %v14377_v54  ;;  %v14434_v10 = vadd.f32 %v14433_v61, %v14432_v19 }
 0x11e   : > { %v14435_v35 = vpop.f32.mrf.mxu1  ;;  %v14380_v29 = vpop.f32.mrf.mxu0 }
 0x11f   : > { %v17224_v24 = vadd.f32 %v14434_v10, %v1988_v33  ;;  %v1991_v21 = vadd.f32 %v14379_v42, %v17215_v45  ;;  %v14352_v42 = vadd.f32 %v17130_v46, %v17128_v34  ;;  %v14410_v34 = vadd.f32 %v17159_v3, %v17151_v8 }
 0x120   : > { %v14436_v31 = vpop.f32.mrf.mxu1  ;;  %v14381_v14 = vpop.f32.mrf.mxu0 }
 0x121   : > { %v14437_v25 = vadd.f32 %v14436_v31, %v14435_v35  ;;  %v14382_v48 = vadd.f32 %v14381_v14, %v14380_v29  ;;  %v14355_v29 = vadd.f32 %v17146_v43, %v17138_v4  ;;  %v14413_v4 = vadd.f32 %v17173_v30, %v17166_v53 }
 0x122   : > { %v14383_v62 = vpop.f32.mrf.mxu0  ;;  %v14438_v39 = vpop.f32.mrf.mxu1  ;;  %v14358_v43 = vadd.f32 %v17168_v1, %v17164_v41  ;;  %v14416_v41 = vadd.f32 %v17183_v36, %v17179_v18  ;;  %v14367_v36 = vadd.f32 %v17197_v50, %v17191_v37  ;;  %v14422_v37 = vadd.f32 %v17195_v28, %v17193_v44 }
 0x123   : > { %v17227_v60 = vadd.f32 %v14437_v25, %v1991_v21  ;;  %v1996_v2 = vadd.f32 %v14382_v48, %v17215_v45  ;;  %v1956_v48 = vadd.f32 %v14352_v42, %v17215_v45  ;;  %v1959_v46 = vadd.f32 %v14355_v29, %v17215_v45 }
 0x124   : > { %v14384_v0 = vpop.f32.mrf.mxu0  ;;  %v14439_v17 = vpop.f32.mrf.mxu1  ;;  %v1975_v50 = vadd.f32 %v14367_v36, %v17215_v45 }
 0x125   : > { %v14385_v9 = vadd.f32 %v14384_v0, %v14383_v62  ;;  %v14440_v11 = vadd.f32 %v14439_v17, %v14438_v39 }
 0x126   : > { %v14386_v20 = vpop.f32.mrf.mxu0  ;;  %v14441_v13 = vpop.f32.mrf.mxu1 }
 0x127   : > { %v17230_v6 = vadd.f32 %v14440_v11, %v1996_v2  ;;  %v1999_v16 = vadd.f32 %v14385_v9, %v17215_v45 }
 0x128   : > { %v14387_v22 = vpop.f32.mrf.mxu0  ;;  %v14442_v40 = vpop.f32.mrf.mxu1 }
 0x129   : > { %v14388_v57 = vadd.f32 %v14387_v22, %v14386_v20  ;;  %v14443_v19 = vadd.f32 %v14442_v40, %v14441_v13  ;;  %v2044_v20 = vadd.f32 %v14410_v34, %v1956_v48  ;;  %v14361_v13 = vadd.f32 %v17177_v38, %v17175_v15 }
 0x12a   : > { %v14389_v54 = vpop.f32.mrf.mxu0  ;;  %v14444_v47 = vpop.f32.mrf.mxu1 }
 0x12b   : > { %v17235_v61 = vadd.f32 %v14443_v19, %v1999_v16  ;;  %v2004_v10 = vadd.f32 %v14388_v57, %v17215_v45  ;;  %v2047_v57 = vadd.f32 %v14413_v4, %v1959_v46  ;;  %v1964_v54 = vadd.f32 %v14358_v43, %v17215_v45 }
 0x12c   : > { %v14390_v33 = vpop.f32.mrf.mxu0  ;;  %v14445_v35 = vpop.f32.mrf.mxu1  ;;  %v21723_v46 = vmov 0 }
 0x12d   : > { %v14446_v31 = vadd.f32 %v14445_v35, %v14444_v47  ;;  %v1967_v33 = vadd.f32 %v14361_v13, %v17215_v45  ;;  %v2052_v35 = vadd.f32 %v14416_v41, %v1964_v54  ;;  %v21724_v46 = vsel %vm17264_vm14, 4294967295, %v21723_v46 }
 0x12e   : > { %v14466_v21 = vpop.f32.mrf.mxu0  ;;  %v14447_v25 = vpop.f32.mrf.mxu1  ;;  %21725 = vst [vmem:[#allocation18_spill] sm:$0xff] %v21724_v46 }
 0x12f   : > { %v17241_v62 = vadd.f32 %v14446_v31, %v2004_v10  ;;  %v14364_v25 = vadd.f32 %v17185_v56, %v17181_v23 }
 0x130   : > { %v14467_v14 = vpop.f32.mrf.mxu0  ;;  %v14448_v39 = vpop.f32.mrf.mxu1 }
 0x131   : > { %v14468_v2 = vadd.f32 %v14467_v14, %v14466_v21  ;;  %v14419_v21 = vadd.f32 %v17189_v5, %v17187_v59  ;;  %v1972_v56 = vadd.f32 %v14364_v25, %v17215_v45 }
 0x132   : > { %v14469_v0 = vpop.f32.mrf.mxu0  ;;  %v14524_v9 = vpop.f32.mrf.mxu1 }
 0x133   : > { %v2132_v8 = vadd.f32 %v14468_v2, %v2044_v20  ;;  %v2055_v39 = vadd.f32 %v14419_v21, %v1967_v33 }
 0x134   : > { %v14470_v17 = vpop.f32.mrf.mxu0  ;;  %v14525_v22 = vpop.f32.mrf.mxu1 }
 0x135   : > { %v14471_v11 = vadd.f32 %v14470_v17, %v14469_v0  ;;  %v14526_v19 = vadd.f32 %v14525_v22, %v14524_v9 }
 0x136   : > { %v14472_v16 = vpop.f32.mrf.mxu0  ;;  %v14527_v3 = vpop.f32.mrf.mxu1 }
 0x137   : > { %v2135_v47 = vadd.f32 %v14471_v11, %v2047_v57  ;;  %v2220_v1 = vadd.f32 %v14526_v19, %v2132_v8  ;;  %v2060_v57 = vadd.f32 %v14422_v37, %v1972_v56  ;;  %v14425_v8 = vadd.f32 %v17210_v52, %v17202_v51 }
 0x138   : > { %v14473_v40 = vpop.f32.mrf.mxu0  ;;  %v14528_v53 = vpop.f32.mrf.mxu1 }
 0x139   : > { %v14529_v42 = vadd.f32 %v14528_v53, %v14527_v3  ;;  %v14474_v15 = vadd.f32 %v14473_v40, %v14472_v16  ;;  %v2273_v0 = vmax.f32 %v2220_v1, 0.0  ;;  %v2356_v3 = vld [vmem:[#allocation4 + $0x10] sm:$0x1]  ;;  %v2063_v53 = vadd.f32 %v14425_v8, %v1975_v50 }
 0x13a   : > { %v14475_v30 = vpop.f32.mrf.mxu0  ;;  %v14530_v38 = vpop.f32.mrf.mxu1 }
 0x13b   : > { %v2223_v29 = vadd.f32 %v14529_v42, %v2135_v47  ;;  %v2140_v18 = vadd.f32 %v14474_v15, %v2052_v35 }
 0x13c   : > { %v14476_v10 = vpop.f32.mrf.mxu0  ;;  %v14531_v14 = vpop.f32.mrf.mxu1 }
 0x13d   : > { %v14477_v31 = vadd.f32 %v14476_v10, %v14475_v30  ;;  %v2274_v34 = vmax.f32 %v2223_v29, 0.0  ;;  %v14532_v9 = vadd.f32 %v14531_v14, %v14530_v38 }
 0x13e   : > { %v14478_v48 = vpop.f32.mrf.mxu0  ;;  %v14533_v59 = vpop.f32.mrf.mxu1 }
 0x13f   : > { %v14302_v2 = vpack.c.bf16 %v2274_v34, %v2273_v0  ;;  %v2143_v23 = vadd.f32 %v14477_v31, %v2055_v39  ;;  %v2228_v4 = vadd.f32 %v14532_v9, %v2140_v18 }
 0x140   : > { %v14479_v5 = vpop.f32.mrf.mxu0  ;;  %v14534_v17 = vpop.f32.mrf.mxu1 }
 0x141   : > { %14303 = vst [vmem:[#allocation3] sm:$0xff] %v14302_v2   ;;  %v14535_v43 = vadd.f32 %v14534_v17, %v14533_v59  ;;  %v14480_v13 = vadd.f32 %v14479_v5, %v14478_v48  ;;  %v2275_v47 = vmax.f32 %v2228_v4, 0.0  ;;  %v2382_v17 = vld [vmem:[#allocation4 + $0x14] sm:$0x1] }
 0x142   : > { %v14481_v20 = vpop.f32.mrf.mxu0  ;;  %v14536_v11 = vpop.f32.mrf.mxu1 }
 0x143   : > { %v2231_v16 = vadd.f32 %v14535_v43, %v2143_v23  ;;  %v2148_v30 = vadd.f32 %v14480_v13, %v2060_v57 }
 0x144   : > { %v14482_v22 = vpop.f32.mrf.mxu0  ;;  %v14537_v40 = vpop.f32.mrf.mxu1 }
 0x145   : > { %v14483_v54 = vadd.f32 %v14482_v22, %v14481_v20  ;;  %v2276_v33 = vmax.f32 %v2231_v16, 0.0  ;;  %v14538_v38 = vadd.f32 %v14537_v40, %v14536_v11 }
 0x146   : > { %v14484_v19 = vpop.f32.mrf.mxu0  ;;  %v14539_v41 = vpop.f32.mrf.mxu1 }
 0x147   : > { %v14307_v28 = vpack.c.bf16 %v2276_v33, %v2275_v47  ;;  %v2151_v10 = vadd.f32 %v14483_v54, %v2063_v53  ;;  %v2236_v34 = vadd.f32 %v14538_v38, %v2148_v30 }
 0x148   : > { %v14485_v44 = vpop.f32.mrf.mxu0  ;;  %v2353_v1 = vld [vmem:[#allocation3 + $0x4] sm:$0x1]  ;;  %v2359_v42 = vld [vmem:[#allocation3] sm:$0xf]  ;;  %v14540_v35 = vpop.f32.mrf.mxu1  ;;  %v17276_v25 = vld [vmem:[#allocation3 + $0x4] sm:$0xe] }
 0x149   : > { %v14486_v45 = vadd.f32 %v14485_v44, %v14484_v19  ;;  %v2360_v15 = vld [vmem:[#allocation3 + $0x4] sm:$0x1]  ;;  %v2357_v51 = vsel %vm17264_vm14, %v2353_v1, %v2356_v3  ;;  %v2362_v52 = vshrl.u32 %v2359_v42, 16  ;;  %v2365_v29 = vshll.u32 %v2359_v42, 16  ;;  %14329 = vst [vmem:[#allocation3 + $0x8] sm:$0xff] %v14307_v28  }
 0x14a   : > { %v14487_v21 = vpop.f32.mrf.mxu0  ;;  %v2371_v31 = vshll.u32 %v2360_v15, 16  ;;  %v2375_v14 = vshrl.u32 %v2360_v15, 16  ;;  %v2400_v39 = vld [vmem:[#allocation3 + $0x4] sm:$0xe]  ;;  %2358 = vst [vmem:[#allocation4 + $0x10] sm:$0x1] %v2357_v51  ;;  %v14541_v18 = vadd.f32 %v14540_v35, %v14539_v41  ;;  %v14542_v36 = vpop.f32.mrf.mxu1 }
 0x14b   : > { %v2427_v0 = vld [vmem:[#allocation3 + $0x4] sm:$0xe]  ;;  %v17279_v5 = vrot.slane %v2362_v52, 4  ;;  %v17281_v2 = vrot.slane %v2365_v29, 5  ;;  %v2403_v9 = vshrl.u32 %v2400_v39, 16  ;;  %v2156_v56 = vadd.f32 %v14486_v45, %v17218_v63 }
 0x14c   : > { %v14488_v59 = vpop.f32.mrf.mxu0  ;;  %v17283_v23 = vld [vmem:[#allocation3 + $0x4] sm:$0xe]  ;;  %v17286_v20 = vrot.slane %v2371_v31, 5  ;;  %v2406_v4 = vshll.u32 %v2400_v39, 16  ;;  %v2430_v43 = vshrl.u32 %v2427_v0, 16  ;;  %v2433_v37 = vshll.u32 %v2427_v0, 16  ;;  %v14543_v50 = vpop.f32.mrf.mxu1 }
 0x14d   : > { %v2352_v13 = vld [vmem:[#allocation3] sm:$0xf]  ;;  %v17288_v22 = vrot.slane %v2403_v9, 5  ;;  %v2239_v57 = vadd.f32 %v14541_v18, %v2151_v10  ;;  %v14544_v8 = vadd.f32 %v14543_v50, %v14542_v36  ;;  %v2277_v54 = vmax.f32 %v2236_v34, 0.0 }
 0x14e   : > { %v14490_v11 = vpop.f32.mrf.mxu0  ;;  %2354 = vst [vmem:[#allocation4] sm:$0xf] %v2352_v13  ;;  %v2432_v3 = vrot.slane %v2430_v43, 4  ;;  %v2435_v40 = vrot.slane %v2433_v37, 5  ;;  %v17291_v63 = vpop.f32.mrf.mxu1  ;;  %v17293_v47 = vrot.slane %v2406_v4, 6  ;;  %v14489_v30 = vadd.f32 %v14488_v59, %v14487_v21 }
 0x14f   : > { %21726 = vst [vmem:[#allocation19_spill] sm:$0xff] %v17288_v22  ;;  %v2278_v33 = vmax.f32 %v2239_v57, 0.0  ;;  %v17295_v53 = vadd.f32 %v14544_v8, %v2156_v56  ;;  %v2383_v10 = vsel %vm17264_vm14, %v2375_v14, %v2382_v17 }
 0x150   : > { %v14491_v19 = vpop.f32.mrf.mxu0  ;;  %21727 = vst [vmem:[#allocation20_spill] sm:$0xff] %v17293_v47  ;;  %v2436_v41 = vor.u32 %v2435_v40, %v2432_v3  ;;  %v17297_v44 = vld [vmem:[#allocation3 + $0x8] sm:$0x3]  ;;  %v14546_v1 = vpop.f32.mrf.mxu1  ;;  %2384 = vst [vmem:[#allocation4 + $0x14] sm:$0x1] %v2383_v10 }
 0x151   : > { %v2401_v28 = vld [vmem:[#allocation3 + $0x8] sm:$0x3]  ;;  %v17301_v42 = vadd.f32 %v14491_v19, %v14490_v11  ;;  %v21646_v35 = vrot.slane %v17297_v44, 5  ;;  %v2472_v34 = vld [vmem:[#allocation3 + $0x8] sm:$0xc]  ;;  %v14312_v18 = vpack.c.bf16 %v2278_v33, %v2277_v54  ;;  %v2159_v33 = vadd.f32 %v14489_v30, %v17221_v58 }
 0x152   : > { %v17299_v45 = vld [vmem:[#allocation3 + $0x8] sm:$0x3]  ;;  %v17303_v15 = vpop.f32.mrf.mxu0  ;;  %v2412_v21 = vshrl.u32 %v2401_v28, 16  ;;  %v2415_v51 = vshll.u32 %v2401_v28, 16  ;;  %v17313_v31 = vrot.slane %v2436_v41, 4  ;;  %v17317_v36 = vpop.f32.mrf.mxu1  ;;  %v2475_v43 = vshrl.u32 %v2472_v34, 16 }
 0x153   : > { %21728 = vst [vmem:[#allocation21_spill] sm:$0xff] %v17299_v45  ;;  %v2439_v52 = vshll.u32 %v17299_v45, 16  ;;  %v17311_v29 = vld [vmem:[#allocation3 + $0x8] sm:$0x3]  ;;  %v17323_v59 = vrot.slane %v21646_v35, 4  ;;  %v2478_v37 = vshll.u32 %v2472_v34, 16  ;;  %v14547_v3 = vadd.f32 %v14546_v1, %v17291_v63 }
 0x154   : > { %v17319_v14 = vpop.f32.mrf.mxu0  ;;  %v17325_v9 = vrot.slane %v2412_v21, 5  ;;  %v17327_v56 = vrot.slane %v2415_v51, 6  ;;  %v2473_v4 = vld [vmem:[#allocation3 + $0xc] sm:$0x7]  ;;  %v17331_v13 = vld [vmem:[#allocation3 + $0x8] sm:$0xc]  ;;  %v14549_v57 = vpop.f32.mrf.mxu1 }
 0x155   : > { %v17329_v17 = vrot.slane %v2439_v52, 5  ;;  %v2484_v50 = vshrl.u32 %v2473_v4, 16  ;;  %v2487_v11 = vshll.u32 %v2473_v4, 16  ;;  %21729 = vst [vmem:[#allocation22_spill] sm:$0xff] %v17331_v13  ;;  %14330 = vst [vmem:[#allocation3 + $0x10] sm:$0xff] %v14312_v18   ;;  %v2477_v28 = vrot.slane %v2475_v43, 5 }
 0x156   : > { %v17333_v8 = vpop.f32.mrf.mxu0  ;;  %v17336_v40 = vld [vmem:[#allocation3 + $0xc] sm:$0x7]  ;;  %v17339_v19 = vld [vmem:[#allocation3 + $0x8] sm:$0xc]  ;;  %v2480_v10 = vrot.slane %v2478_v37, 6  ;;  %v17346_v34 = vpop.f32.mrf.mxu1  ;;  %v2247_v32 = vadd.f32 %v14547_v3, %v2159_v33 }
 0x157   : > { %21730 = vst [vmem:[#allocation23_spill] sm:$0xff] %v17336_v40  ;;  %v2486_v21 = vrot.slane %v2484_v50, 5  ;;  %v2489_v51 = vrot.slane %v2487_v11, 6  ;;  %v17344_v52 = vld [vmem:[#allocation3 + $0xc] sm:$0x7] }
 0x158   : > { %v17348_v18 = vpop.f32.mrf.mxu0  ;;  %v21650_v54 = vrot.slane %v17344_v52, 5  ;;  %v2530_v58 = vld [vmem:[#allocation3 + $0x8] sm:$0xc]  ;;  %v2481_v41 = vor.u32 %v2480_v10, %v2477_v28  ;;  %v2531_v43 = vld [vmem:[#allocation3 + $0xc] sm:$0x7]  ;;  %v17357_v48 = vpop.f32.mrf.mxu1  ;;  %v2280_v3 = vmax.f32 %v2247_v32, 0.0 }
 0x159   : > { %v2533_v37 = vshrl.u32 %v2530_v58, 16  ;;  %v2536_v50 = vshll.u32 %v2530_v58, 16  ;;  %v17354_v11 = vld [vmem:[#allocation3 + $0xc] sm:$0x8]  ;;  %v2542_v39 = vshrl.u32 %v2531_v43, 16  ;;  %v2545_v16 = vshll.u32 %v2531_v43, 16 }
 0x15a   : > { %21731 = vst [vmem:[#allocation24_spill] sm:$0xff] %v17354_v11  ;;  %v17359_v35 = vpop.f32.mrf.mxu0  ;;  %v17363_v4 = vrot.slane %v21650_v54, 4  ;;  %v2572_v10 = vld [vmem:[#allocation3 + $0xc] sm:$0x8]  ;;  %v17366_v58 = vrot.slane %v2481_v41, 4  ;;  %v17372_v30 = vpop.f32.mrf.mxu1  ;;  %v17380_v28 = vor.u32 %v2489_v51, %v2486_v21  ;;  %v14550_v11 = vadd.f32 %v14549_v57, %v17317_v36 }
 0x15b   : > { %v17368_v0 = vrot.slane %v2533_v37, 5  ;;  %v17370_v63 = vrot.slane %v2536_v50, 6  ;;  %v2575_v1 = vshrl.u32 %v2572_v10, 16  ;;  %v2595_v38 = vld [vmem:[#allocation3 + $0xc] sm:$0x8]  ;;  %v17376_v45 = vrot.slane %v2542_v39, 5 }
 0x15c   : > { %21732 = vst [vmem:[#allocation25_spill] sm:$0xff] %v17363_v4  ;;  %v17374_v27 = vpop.f32.mrf.mxu0  ;;  %v17378_v54 = vrot.slane %v2545_v16, 6  ;;  %v2598_v43 = vshrl.u32 %v2595_v38, 16  ;;  %v2601_v49 = vshll.u32 %v2595_v38, 16  ;;  %v17382_v41 = vld [vmem:[#allocation3 + $0xc] sm:$0x8]  ;;  %v2164_v10 = vadd.f32 %v17301_v42, %v17224_v24  ;;  %v14555_v22 = vpop.f32.mrf.mxu1 }
 0x15d   : > { %21733 = vst [vmem:[#allocation26_spill] sm:$0xff] %v17368_v0  ;;  %21734 = vst [vmem:[#allocation27_spill] sm:$0xff] %v17370_v63  ;;  %v17384_v37 = vld [vmem:[#allocation3 + $0x10] sm:$0xf]  ;;  %v17394_v24 = vrot.slane %v2575_v1, 10 }
 0x15e   : > { %21735 = vst [vmem:[#allocation28_spill] sm:$0xff] %v17376_v45  ;;  %21736 = vst [vmem:[#allocation29_spill] sm:$0xff] %v17378_v54  ;;  %v2573_v50 = vld [vmem:[#allocation3 + $0x10] sm:$0xf]  ;;  %v17389_v39 = vpop.f32.mrf.mxu0  ;;  %v2600_v16 = vrot.slane %v2598_v43, 5  ;;  %v2603_v47 = vrot.slane %v2601_v49, 6  ;;  %v14557_v33 = vpop.f32.mrf.mxu1 }
 0x15f   : > { %21737 = vst [vmem:[#allocation30_spill] sm:$0xff] %v17382_v41  ;;  %21738 = vst [vmem:[#allocation31_spill] sm:$0xff] %v17384_v37  ;;  %v21665_v38 = vrot.slane %v17384_v37, 6  ;;  %v2580_v21 = vshrl.u32 %v2573_v50, 16  ;;  %v2596_v51 = vld [vmem:[#allocation3 + $0x10] sm:$0xf] }
 0x160   : > { %v2583_v54 = vshll.u32 %v2573_v50, 16  ;;  %v2607_v45 = vshrl.u32 %v2596_v51, 16  ;;  %v2610_v63 = vshll.u32 %v2596_v51, 16  ;;  %v17392_v0 = vld [vmem:[#allocation3 + $0x10] sm:$0xf]  ;;  %v14503_v7 = vpop.f32.mrf.mxu0  ;;  %21739 = vst [vmem:[#allocation32_spill] sm:$0xff] %v17394_v24  ;;  %v2604_v42 = vor.u32 %v2603_v47, %v2600_v16  ;;  %v14558_v32 = vpop.f32.mrf.mxu1 }
 0x161   : > { %v17399_v49 = vrot.slane %v21665_v38, 4  ;;  %v2640_v57 = vld [vmem:[#allocation3 + $0x14] sm:$0xf]  ;;  %v17401_v43 = vrot.slane %v2580_v21, 6  ;;  %v21743_v16 = vmax.f32 %v17295_v53, 0.0 }
 0x162   : > { %v2609_v50 = vrot.slane %v2607_v45, 5  ;;  %v2612_v13 = vrot.slane %v2610_v63, 6  ;;  %v2643_v51 = vshrl.u32 %v2640_v57, 16  ;;  %v17403_v40 = vld [vmem:[#allocation3 + $0x14] sm:$0xf]  ;;  %v14505_v4 = vpop.f32.mrf.mxu0  ;;  %v2646_v24 = vshll.u32 %v2640_v57, 16 }
 0x163   : > { %21740 = vst [vmem:[#allocation33_spill] sm:$0xff] %v17399_v49  ;;  %21741 = vst [vmem:[#allocation34_spill] sm:$0xff] %v17401_v43  ;;  %v21670_v47 = vrot.slane %v17403_v40, 7  ;;  %v14317_v36 = vpack.c.bf16 %v2280_v3, %v21743_v16  ;;  %v17409_v38 = vrot.slane %v2604_v42, 4  ;;  %v17411_v49 = vrot.slane %v2583_v54, 7  ;;  %v14560_v43 = vpop.f32.mrf.mxu1 }
 0x164   : > { %21742 = vst [vmem:[#allocation35_spill] sm:$0xff] %v17403_v40  ;;  %v2691_v21 = vld [vmem:[#allocation3 + $0x14] sm:$0xf]  ;;  %v2252_v45 = vadd.f32 %v14550_v11, %v2164_v10  ;;  %v14495_v63 = vadd.f32 %v17319_v14, %v17303_v15  ;;  %v14506_v37 = vpop.f32.mrf.mxu0  ;;  %v17415_v4 = vor.u32 %v2612_v13, %v2609_v50  ;;  %v2645_v1 = vrot.slane %v2643_v51, 6  ;;  %v2468_v11 = vld [vmem:[#allocation4 + $0x14] sm:$0xf] }
 0x165   : > { %v2648_v57 = vrot.slane %v2646_v24, 7  ;;  %v2694_v41 = vshrl.u32 %v2691_v21, 16  ;;  %14331 = vst [vmem:[#allocation3 + $0x18] sm:$0xff] %v14317_v36   ;;  %v17425_v54 = vrot.slane %v21670_v47, 4  ;;  %v14553_v14 = vadd.f32 %v17357_v48, %v17346_v34  ;;  %v14561_v37 = vpop.f32.mrf.mxu1  ;;  %v2453_v36 = vld [vmem:[#allocation4 + $0x10] sm:$0xf] }
 0x166   : > { %v2167_v15 = vadd.f32 %v14495_v63, %v17227_v60  ;;  %v14498_v13 = vadd.f32 %v17348_v18, %v17333_v8  ;;  %v2697_v3 = vshll.u32 %v2691_v21, 16  ;;  %v2281_v24 = vmax.f32 %v2252_v45, 0.0  ;;  %v2397_v50 = vld [vmem:[#allocation4 + $0x18] sm:$0x1] }
 0x167   : > { %v17432_v10 = vrot.slane %v2694_v41, 6  ;;  %v14556_v42 = vadd.f32 %v14555_v22, %v17372_v30  ;;  %v14501_v60 = vadd.f32 %v17374_v27, %v17359_v35  ;;  %v14559_v48 = vadd.f32 %v14558_v32, %v14557_v33  ;;  %v14563_v34 = vpop.f32.mrf.mxu1 }
 0x168   : > { %v2255_v51 = vadd.f32 %v14553_v14, %v2167_v15  ;;  %v2172_v16 = vadd.f32 %v14498_v13, %v17230_v6  ;;  %v21746_v8 = vor.u32 %v17281_v2, %v17279_v5  ;;  %v2442_v41 = vsel %vm16615_vm8, %v17313_v31, %v17329_v17  ;;  %v2424_v2 = vld [vmem:[#allocation4 + $0x1c] sm:$0x1] }
 0x169   : > { %v21747_v22 = vrot.slane %v17311_v29, 5  ;;  %v21748_v30 = vrot.slane %v17283_v23, 9  ;;  %v14504_v27 = vadd.f32 %v14503_v7, %v17389_v39  ;;  %v2175_v32 = vadd.f32 %v14501_v60, %v17235_v61  ;;  %v14564_v21 = vpop.f32.mrf.mxu1 }
 0x16a   : > { %v2369_v18 = vrot.slane %v21746_v8, 4  ;;  %v2282_v35 = vmax.f32 %v2255_v51, 0.0  ;;  %v2260_v33 = vadd.f32 %v14556_v42, %v2172_v16  ;;  %v2454_v5 = vsel %vm17419_vm11, %v2442_v41, %v2453_v36 }
 0x16b   : > { %v2464_v6 = vsel %vm16664_vm15, %v21748_v30, %v21747_v22  ;;  %2455 = vst [vmem:[#allocation4 + $0x10] sm:$0xf] %v2454_v5  ;;  %v2180_v45 = vadd.f32 %v14504_v27, %v17241_v62  ;;  %v14562_v7 = vadd.f32 %v14561_v37, %v14560_v43  ;;  %v17461_v39 = vor.u32 %v2648_v57, %v2645_v1  ;;  %v2527_v5 = vld [vmem:[#allocation4 + $0x30] sm:$0x3] }
 0x16c   : > { %v2374_v31 = vsel %vm16615_vm8, %v2369_v18, %v17286_v20  ;;  %v2469_v23 = vsel %vm17419_vm11, %v2464_v6, %v2468_v11  ;;  %v2641_v63 = vld [vmem:[#allocation3 + $0x18] sm:$0x1]  ;;  %v14322_v14 = vpack.c.bf16 %v2282_v35, %v2281_v24  ;;  %v21749_v13 = vrot.slane %v17297_v44, 5  ;;  %v17480_v36 = vld [vmem:[#allocation3 + $0x1c] sm:$0x3] }
 0x16d   : > { %v17463_v61 = vld [vmem:[#allocation3 + $0x18] sm:$0x1]  ;;  %2381 = vst [vmem:[#allocation4 + $0x4] sm:$0xf] %v2374_v31  ;;  %2470 = vst [vmem:[#allocation4 + $0x14] sm:$0xf] %v2469_v23  ;;  %v2398_v62 = vsel %vm17264_vm14, %v17323_v59, %v2397_v50  ;;  %v2263_v24 = vadd.f32 %v14559_v48, %v2175_v32  ;;  %v17486_v50 = vadd.f32 %v14562_v7, %v2180_v45 }
 0x16e   : > { %v17465_v15 = vld [vmem:[#allocation3 + $0x18] sm:$0x1]  ;;  %v21750_v20 = vrot.slane %v17276_v25, 9  ;;  %v17476_v43 = vrot.slane %v2697_v3, 7  ;;  %v2652_v1 = vshll.u32 %v2641_v63, 16  ;;  %14332 = vst [vmem:[#allocation3 + $0x20] sm:$0xff] %v14322_v14  }
 0x16f   : > { %v2692_v37 = vld [vmem:[#allocation3 + $0x18] sm:$0x1]  ;;  %2399 = vst [vmem:[#allocation4 + $0x18] sm:$0x1] %v2398_v62  ;;  %v2283_v51 = vmax.f32 %v2260_v33, 0.0  ;;  %v21751_v48 = vrot.slane %v17325_v9, 4 }
 0x170   : > { %v2392_v11 = vsel %vm16664_vm15, %v21750_v20, %v21749_v13  ;;  %v2703_v42 = vshrl.u32 %v2692_v37, 16  ;;  %v2706_v25 = vshll.u32 %v2692_v37, 16  ;;  %v17482_v16 = vrot.slane %v2652_v1, 7  ;;  %v17484_v59 = vld [vmem:[#allocation3 + $0x18] sm:$0xe] }
 0x171   : > { %2396 = vst [vmem:[#allocation4 + $0x8] sm:$0xf] %v2392_v11  ;;  %v2732_v3 = vld [vmem:[#allocation3 + $0x1c] sm:$0x3]  ;;  %v2425_v34 = vsel %vm17264_vm14, %v21751_v48, %v2424_v2  ;;  %v2755_v30 = vld [vmem:[#allocation3 + $0x18] sm:$0xe] }
 0x172   : > { %v17494_v8 = vrot.slane %v2703_v42, 6  ;;  %v17496_v18 = vrot.slane %v2706_v25, 7  ;;  %v2742_v22 = vshrl.u32 %v2732_v3, 16  ;;  %2426 = vst [vmem:[#allocation4 + $0x1c] sm:$0x1] %v2425_v34  ;;  %v2745_v6 = vshll.u32 %v2732_v3, 16 }
 0x173   : > { %v2756_v27 = vld [vmem:[#allocation3 + $0x1c] sm:$0x3]  ;;  %v2758_v35 = vshrl.u32 %v2755_v30, 16  ;;  %v2761_v33 = vshll.u32 %v2755_v30, 16  ;;  %v2284_v32 = vmax.f32 %v2263_v24, 0.0  ;;  %v2285_v41 = vmax.f32 %v17486_v50, 0.0 }
 0x174   : > { %v2744_v21 = vrot.slane %v2742_v22, 7  ;;  %v2767_v31 = vshrl.u32 %v2756_v27, 16  ;;  %v2770_v23 = vshll.u32 %v2756_v27, 16  ;;  %v17499_v45 = vld [vmem:[#allocation3 + $0x18] sm:$0xe]  ;;  %v21756_v27 = vrot.slane %v17344_v52, 5 }
 0x175   : > { %21752 = vst [vmem:[#allocation36_spill] sm:$0xff] %v17499_v45  ;;  %v2760_v7 = vrot.slane %v2758_v35, 6  ;;  %v2763_v63 = vrot.slane %v2761_v33, 7  ;;  %v17505_v14 = vld [vmem:[#allocation3 + $0x1c] sm:$0x3]  ;;  %v21669_v13 = vrot.slane %v17499_v45, 7  ;;  %v14327_v20 = vpack.c.bf16 %v2284_v32, %v2283_v51 }
 0x176   : > { %v17517_v37 = vor.u32 %v2745_v6, %v2744_v21  ;;  %v17519_v24 = vrot.slane %v2767_v31, 6  ;;  %v17521_v42 = vld [vmem:[#allocation3 + $0x1c] sm:$0xc]  ;;  %v17525_v51 = vrot.slane %v2770_v23, 7  ;;  %v2799_v6 = vld [vmem:[#allocation3 + $0x20] sm:$0x7] }
 0x177   : > { %21755 = vst [vmem:[#allocation37_spill] sm:$0xff] %v17521_v42  ;;  %v17523_v25 = vor.u32 %v2763_v63, %v2760_v7  ;;  %v2801_v48 = vshrl.u32 %v17521_v42, 16  ;;  %14333 = vst [vmem:[#allocation3 + $0x28] sm:$0xff] %v14327_v20   ;;  %v17531_v34 = vrot.slane %v21669_v13, 4  ;;  %v17534_v30 = vld [vmem:[#allocation3 + $0x1c] sm:$0xc] }
 0x178   : > { %v21757_v35 = vrot.slane %v17339_v19, 9  ;;  %v21758_v32 = vld [vmem:[#allocation25_spill] sm:$0xff]  ;;  %v2809_v23 = vshrl.u32 %v2799_v6, 16  ;;  %v17547_v7 = vld [vmem:[#allocation3 + $0x20] sm:$0x7]  ;;  %v21760_v63 = vld [vmem:[#allocation23_spill] sm:$0xff] }
 0x179   : > { %v2528_v21 = vsel %vm17510_vm9, %v21758_v32, %v2527_v5  ;;  %v17545_v31 = vrot.slane %v2801_v48, 7  ;;  %21759 = vst [vmem:[#allocation25_spill] sm:$0xff] %v17547_v7  ;;  %v21761_v20 = vrot.slane %v21760_v63, 6  ;;  %v21762_v13 = vld [vmem:[#allocation22_spill] sm:$0xff]  ;;  %v2812_v48 = vshll.u32 %v2799_v6, 16  ;;  %v21770_v5 = vld [vmem:[#allocation20_spill] sm:$0xff] }
 0x17a   : > { %v2521_v33 = vsel %vm16664_vm15, %v21757_v35, %v21756_v27  ;;  %v21763_v22 = vrot.slane %v21762_v13, 10  ;;  %2529 = vst [vmem:[#allocation4 + $0x30] sm:$0x3] %v2528_v21  ;;  %v21765_v19 = vld [vmem:[#allocation26_spill] sm:$0xff]  ;;  %v21766_v27 = vld [vmem:[#allocation27_spill] sm:$0xff]  ;;  %v2811_v44 = vrot.slane %v2809_v23, 7  ;;  %v14280_v6 = vpack.c.bf16 %v2285_v41, %v2285_v41 }
 0x17b   : > { %2525 = vst [vmem:[#allocation4 + $0x20] sm:$0xe] %v2521_v33  ;;  %v2844_v3 = vld [vmem:[#allocation3 + $0x20] sm:$0x7]  ;;  %v17562_v1 = vld [vmem:[#allocation3 + $0x20] sm:$0x8]  ;;  %v21806_v53 = vor.u32 %v21766_v27, %v21765_v19 }
 0x17c   : > { %v17555_v52 = vsel %vm16639_vm10, %v21763_v22, %v21761_v20  ;;  %v2854_v62 = vshrl.u32 %v2844_v3, 16  ;;  %v2857_v13 = vshll.u32 %v2844_v3, 16  ;;  %v21767_v22 = vld [vmem:[#allocation28_spill] sm:$0xff]  ;;  %v21768_v20 = vld [vmem:[#allocation29_spill] sm:$0xff]  ;;  %v2874_v21 = vld [vmem:[#allocation3 + $0x24] sm:$0xf]  ;;  %v17586_v46 = vor.u32 %v2812_v48, %v2811_v44 }
 0x17d   : > { %v17566_v33 = vor.u32 %v21768_v20, %v21767_v22  ;;  %v17569_v2 = vld [vmem:[#allocation3 + $0x20] sm:$0x8]  ;;  %v2881_v23 = vshll.u32 %v2874_v21, 16  ;;  %v2885_v45 = vshrl.u32 %v2874_v21, 16  ;;  %v2897_v22 = vld [vmem:[#allocation3 + $0x24] sm:$0xf] }
 0x17e   : > { %21769 = vst [vmem:[#allocation23_spill] sm:$0xff] %v17569_v2  ;;  %v21771_v32 = vld [vmem:[#allocation19_spill] sm:$0xff]  ;;  %v2856_v3 = vrot.slane %v2854_v62, 7  ;;  %v21773_v20 = vrot.slane %v17392_v0, 6  ;;  %v21774_v42 = vld [vmem:[#allocation30_spill] sm:$0xff]  ;;  %v2492_v27 = vrot.slane %v17380_v28, 4 }
 0x17f   : > { %v21772_v57 = vor.u32 %v21770_v5, %v21771_v32  ;;  %v21775_v35 = vrot.slane %v21774_v42, 10  ;;  %v2906_v5 = vshrl.u32 %v2897_v22, 16  ;;  %v2909_v32 = vshll.u32 %v2897_v22, 16  ;;  %2351 = vst [vmem:[#allocation3 + $0x30] sm:$0x3] %v14280_v6 }
 0x180   : > { %v17589_v62 = vor.u32 %v2857_v13, %v2856_v3  ;;  %v17591_v21 = vrot.slane %v2881_v23, 5  ;;  %v2887_v50 = vrot.slane %v2885_v45, 4  ;;  %v2928_v26 = vld [vmem:[#allocation3 + $0x28] sm:$0xf]  ;;  %v2929_v42 = vld [vmem:[#allocation3 + $0x2c] sm:$0x1] }
 0x181   : > { %v2410_v60 = vrot.slane %v21772_v57, 4  ;;  %v17584_v41 = vsel %vm16639_vm10, %v21775_v35, %v21773_v20  ;;  %v2901_v57 = vshrl.u32 %v17569_v2, 16  ;;  %v21777_v35 = vor.u32 %v17327_v56, %v17325_v9  ;;  %v17600_v2 = vld [vmem:[#allocation3 + $0x28] sm:$0xf]  ;;  %v17603_v45 = vld [vmem:[#allocation3 + $0x2c] sm:$0x1] }
 0x182   : > { %21776 = vst [vmem:[#allocation22_spill] sm:$0xff] %v17589_v62  ;;  %v2908_v20 = vrot.slane %v2906_v5, 7  ;;  %v2931_v22 = vshll.u32 %v2928_v26, 16  ;;  %v2934_v6 = vshrl.u32 %v2928_v26, 16  ;;  %21779 = vst [vmem:[#allocation26_spill] sm:$0xff] %v17600_v2  ;;  %v2888_v13 = vor.u32 %v2887_v50, %v17591_v21  ;;  %v21781_v62 = vld [vmem:[#allocation31_spill] sm:$0xff] }
 0x183   : > { %v2419_v44 = vsel %vm16723_vm12, %v2410_v60, %v21777_v35  ;;  %v17598_v48 = vrot.slane %v2901_v57, 11  ;;  %v2940_v3 = vshll.u32 %v2929_v42, 16  ;;  %21780 = vst [vmem:[#allocation27_spill] sm:$0xff] %v17603_v45  ;;  %v21782_v9 = vrot.slane %v21781_v62, 6  ;;  %v21783_v56 = vld [vmem:[#allocation24_spill] sm:$0xff] }
 0x184   : > { %2423 = vst [vmem:[#allocation4 + $0xc] sm:$0xf] %v2419_v44  ;;  %v21784_v7 = vrot.slane %v21783_v56, 10  ;;  %v2569_v57 = vld [vmem:[#allocation4 + $0x38] sm:$0x3]  ;;  %v17612_v5 = vor.u32 %v2909_v32, %v2908_v20  ;;  %v17614_v26 = vrot.slane %v2931_v22, 5 }
 0x185   : > { %21778 = vst [vmem:[#allocation14_spill] sm:$0xff] %v17598_v48  ;;  %v2936_v35 = vrot.slane %v2934_v6, 4  ;;  %v2970_v42 = vld [vmem:[#allocation3 + $0x28] sm:$0xf]  ;;  %v17617_v44 = vrot.slane %v2888_v13, 4  ;;  %v17619_v23 = vrot.slane %v2940_v3, 5 }
 0x186   : > { %v2564_v60 = vsel %vm16639_vm10, %v21784_v7, %v21782_v9  ;;  %21785 = vst [vmem:[#allocation28_spill] sm:$0xff] %v17614_v26  ;;  %v21787_v62 = vrot.slane %v17600_v2, 5  ;;  %v17625_v40 = vld [vmem:[#allocation3 + $0x2c] sm:$0x1]  ;;  %v2973_v7 = vshrl.u32 %v2970_v42, 16  ;;  %v2976_v20 = vshll.u32 %v2970_v42, 16 }
 0x187   : > { %2568 = vst [vmem:[#allocation4 + $0x28] sm:$0xe] %v2564_v60  ;;  %21786 = vst [vmem:[#allocation29_spill] sm:$0xff] %v17619_v23  ;;  %v2937_v32 = vor.u32 %v2936_v35, %v17614_v26  ;;  %v2982_v22 = vshll.u32 %v17625_v40, 16  ;;  %v17630_v9 = vld [vmem:[#allocation3 + $0x2c] sm:$0xe] }
 0x188   : > { %v17623_v56 = vrot.slane %v21787_v62, 4  ;;  %21789 = vst [vmem:[#allocation19_spill] sm:$0xff] %v17625_v40  ;;  %21790 = vst [vmem:[#allocation30_spill] sm:$0xff] %v17630_v9  ;;  %v2975_v13 = vrot.slane %v2973_v7, 4  ;;  %v3011_v60 = vld [vmem:[#allocation3 + $0x2c] sm:$0xe] }
 0x189   : > { %v14993_v50 = vld [vmem:[#allocation4] ss:$16 sps:$4 sm:$0xff]   ;;  %v17640_v35 = vrot.slane %v2937_v32, 4  ;;  %v2978_v42 = vrot.slane %v2976_v20, 5  ;;  %v17642_v26 = vrot.slane %v2982_v22, 5  ;;  %v3014_v6 = vshrl.u32 %v3011_v60, 16 }
 0x18a   : > { %21788 = vst [vmem:[#allocation20_spill] sm:$0xff] %v17623_v56  ;;  %v21791_v2 = vld [vmem:[#allocation33_spill] sm:$0xff]  ;;  %v21792_v56 = vld [vmem:[#allocation34_spill] sm:$0xff]  ;;  %v3017_v7 = vshll.u32 %v3011_v60, 16  ;;  %v17644_v3 = vld [vmem:[#allocation3 + $0x30] sm:$0x3] }
 0x18b   : > { %v2570_v62 = vsel %vm17510_vm9, %v21791_v2, %v2569_v57  ;;  %v17638_v45 = vor.u32 %v17411_v49, %v21792_v56  ;;  %21793 = vst [vmem:[#allocation31_spill] sm:$0xff] %v17640_v35  ;;  %v14995_v40 = vld [vmem:[#allocation4 + $0x4] ss:$16 sps:$4 sm:$0xff]   ;;  %21794 = vst [vmem:[#allocation24_spill] sm:$0xff] %v17644_v3  ;;  %v3012_v9 = vld [vmem:[#allocation3 + $0x30] sm:$0x3]  ;;  %v17652_v49 = vor.u32 %v17476_v43, %v17432_v10 }
 0x18c   : > { %2571 = vst [vmem:[#allocation4 + $0x38] sm:$0x3] %v2570_v62  ;;  %v21795_v23 = vld [vmem:[#allocation32_spill] sm:$0xff]  ;;  %v21797_v57 = vrot.slane %v17463_v61, 7  ;;  %v2979_v20 = vor.u32 %v2978_v42, %v2975_v13  ;;  %v3016_v22 = vrot.slane %v3014_v6, 5  ;;  %3469 = vmatprep.mubr.bf16.mxu0 %v14995_v40  ;;  %v21689_v60 = vrot.slane %v17644_v3, 5 }
 0x18d   : > { %v2587_v2 = vsel %vm16682_vm3, %v21795_v23, %v17638_v45  ;;  %v3023_v62 = vshrl.u32 %v3012_v9, 16  ;;  %v2495_v35 = vld [vmem:[#allocation4 + $0x18] sm:$0xf]  ;;  %v3019_v23 = vrot.slane %v3017_v7, 6  ;;  %3470 = vmatmul.mubr.bf16.vlgmr.msra.gmra.mxu0 %v14993_v50  ;;  %v3026_v10 = vshll.u32 %v3012_v9, 16  ;;  %v21800_v6 = vld [vmem:[#allocation21_spill] sm:$0xff] }
 0x18e   : > { %v2669_v32 = vsel %vm16603_vm5, %v17425_v54, %v21797_v57  ;;  %2591 = vst [vmem:[#allocation4 + $0x2c] sm:$0xe] %v2587_v2  ;;  %v21799_v61 = vsel %vm16723_vm12, %v17366_v58, %v17380_v28  ;;  %v2510_v43 = vld [vmem:[#allocation4 + $0x1c] sm:$0xf]  ;;  %v21801_v40 = vshrl.u32 %v21800_v6, 16  ;;  %v17676_v58 = vrot.slane %v2979_v20, 4 }
 0x18f   : > { %2675 = vst [vmem:[#allocation4 + $0x4c] sm:$0x3] %v2669_v32  ;;  %v2496_v54 = vsel %vm17419_vm11, %v21799_v61, %v2495_v35  ;;  %v2554_v42 = vld [vmem:[#allocation4 + $0x34] sm:$0x3]  ;;  %2713 = vst [vmem:[#allocation4 + $0x44] sm:$0xc] %v17652_v49  ;;  %v2511_v7 = vsel %vm17419_vm11, %v17555_v52, %v2510_v43  ;;  %v3020_v61 = vor.u32 %v3019_v23, %v3016_v22 }
 0x190   : > { %v2445_v13 = vrot.slane %v21801_v40, 4  ;;  %v2676_v50 = vld [vmem:[#allocation3 + $0x14] sm:$0xf]  ;;  %v17680_v9 = vrot.slane %v21689_v60, 4  ;;  %v17682_v35 = vrot.slane %v3023_v62, 5  ;;  %v17689_v6 = vrot.slane %v3026_v10, 6 }
 0x191   : > { %2497 = vst [vmem:[#allocation4 + $0x18] sm:$0xf] %v2496_v54  ;;  %v2621_v57 = vld [vmem:[#allocation4 + $0x30] sm:$0xe]  ;;  %v17687_v32 = vld [vmem:[#allocation3 + $0x18] sm:$0xe]  ;;  %v21807_v22 = vsel %vm16723_vm12, %v17409_v38, %v17415_v4 }
 0x192   : > { %21804 = vst [vmem:[#allocation33_spill] sm:$0xff] %v17680_v9  ;;  %2512 = vst [vmem:[#allocation4 + $0x1c] sm:$0xf] %v2511_v7  ;;  %v2446_v20 = vor.u32 %v2445_v13, %v17329_v17  ;;  %v21805_v40 = vrot.slane %v17311_v29, 5  ;;  %v2592_v9 = vld [vmem:[#allocation4 + $0x3c] sm:$0x3]  ;;  %v2622_v29 = vsel %vm17671_vm0, %v21807_v22, %v2621_v57  ;;  %v3029_v10 = vor.u32 %v17689_v6, %v17682_v35 }
 0x193   : > { %v2823_v62 = vld [vmem:[#allocation3 + $0x20] sm:$0x7]  ;;  %v2867_v3 = vld [vmem:[#allocation3 + $0x20] sm:$0x8]  ;;  %v3031_v54 = vrot.slane %v17682_v35, 4  ;;  %v2540_v52 = vrot.slane %v21806_v53, 4 }
 0x194   : > { %v2465_v60 = vrot.slane %v21805_v40, 4  ;;  %v2550_v43 = vrot.slane %v17566_v33, 4  ;;  %2827 = vst [vmem:[#allocation4 + $0x6c] sm:$0x7] %v2823_v62  ;;  %2869 = vst [vmem:[#allocation4 + $0x68] sm:$0x8] %v2867_v3 }
 0x195   : > { %v2923_v17 = vld [vmem:[#allocation3 + $0x24] sm:$0xf]  ;;  %v17706_v23 = vrot.slane %v3020_v61, 4  ;;  %v2447_v19 = vrot.slane %v2446_v20, 4  ;;  %2623 = vst [vmem:[#allocation4 + $0x30] sm:$0xe] %v2622_v29  ;;  %v2549_v3 = vsel %vm16723_vm12, %v2540_v52, %v17566_v33 }
 0x196   : > { %2471 = vst [vmem:[#allocation4 + $0x24] sm:$0x1] %v2465_v60  ;;  %v2658_v13 = vld [vmem:[#allocation4 + $0x38] sm:$0xe]  ;;  %vm21808_vm11 = vcmask 1042432   ;;  %v2555_v7 = vsel %vm17510_vm9, %v2550_v43, %v2554_v42  ;;  %v21811_v60 = vrot.slane %v21760_v63, 6 }
 0x197   : > { %vm17713_vm4 = vmand %vm21808_vm11, %vm21692_vm6  ;;  %2927 = vst [vmem:[#allocation4 + $0x84] sm:$0xf] %v2923_v17  ;;  %v2588_v28 = vrot.slane %v17638_v45, 4  ;;  %v2714_v61 = vld [vmem:[#allocation4 + $0x54] sm:$0x7]  ;;  %v2659_v40 = vsel %vm17671_vm0, %v17461_v39, %v2658_v13  ;;  %v2615_v33 = vrot.slane %v17415_v4, 4 }
 0x198   : > { %v2507_v57 = vrot.slane %v21811_v60, 4  ;;  %v2964_v20 = vld [vmem:[#allocation3 + $0x28] sm:$0xf]  ;;  %2456 = vst [vmem:[#allocation4 + $0x20] sm:$0x1] %v2447_v19  ;;  %v21812_v62 = vrot.slane %v17392_v0, 6 }
 0x199   : > { %2553 = vst [vmem:[#allocation4 + $0x24] sm:$0xe] %v2549_v3  ;;  %2556 = vst [vmem:[#allocation4 + $0x34] sm:$0x3] %v2555_v7  ;;  %v2680_v53 = vrot.slane %v2676_v50, 6  ;;  %v2593_v45 = vsel %vm17510_vm9, %v2588_v28, %v2592_v9  ;;  %v2701_v43 = vrot.slane %v17652_v49, 4  ;;  %v21818_v3 = vor.u32 %v17496_v18, %v17494_v8 }
 0x19a   : > { %2498 = vst [vmem:[#allocation4 + $0x28] sm:$0x1] %v2492_v27  ;;  %v2633_v42 = vrot.slane %v21812_v62, 4  ;;  %v2688_v63 = vld [vmem:[#allocation4 + $0x50] sm:$0x7]  ;;  %v2650_v22 = vrot.slane %v17461_v39, 4  ;;  %v2773_v28 = vor.u32 %v17525_v51, %v17519_v24 }
 0x19b   : > { %2966 = vst [vmem:[#allocation4 + $0x90] sm:$0xf] %v2964_v20  ;;  %v17731_v52 = vld [vmem:[#allocation3 + $0x1c] sm:$0xc]  ;;  %2513 = vst [vmem:[#allocation4 + $0x2c] sm:$0x1] %v2507_v57  ;;  %v2710_v7 = vsel %vm16682_vm3, %v2701_v43, %v21818_v3 }
 0x19c   : > { %2660 = vst [vmem:[#allocation4 + $0x38] sm:$0xe] %v2659_v40  ;;  %v2721_v29 = vrot.slane %v17687_v32, 7  ;;  %v2728_v4 = vld [vmem:[#allocation4 + $0x58] sm:$0x7]  ;;  %v2681_v0 = vrot.slane %v2680_v53, 4  ;;  %v2655_v60 = vsel %vm16682_vm3, %v2650_v22, %v17482_v16  ;;  %v2715_v20 = vsel %vm17713_vm4, %v2710_v7, %v2714_v61 }
 0x19d   : > { %v2868_v17 = vld [vmem:[#allocation3 + $0x24] sm:$0xf]  ;;  %2594 = vst [vmem:[#allocation4 + $0x3c] sm:$0x3] %v2593_v45  ;;  %2624 = vst [vmem:[#allocation4 + $0x40] sm:$0x3] %v2615_v33 }
 0x19e   : > { %2639 = vst [vmem:[#allocation4 + $0x44] sm:$0x3] %v2633_v42  ;;  %2686 = vst [vmem:[#allocation4 + $0x40] sm:$0xc] %v2680_v53  ;;  %v21813_v50 = vshrl.u32 %v17484_v59, 16  ;;  %v2737_v11 = vshll.u32 %v17484_v59, 16 }
 0x19f   : > { %v2752_v9 = vld [vmem:[#allocation4 + $0x5c] sm:$0x7]  ;;  %v2765_v27 = vrot.slane %v17523_v25, 4  ;;  %vm21814_vm9 = vsmask.f32 3328  ;;  %vm21815_vm11 = vcmask 1043456  }
 0x1a0   : > { %v2736_v19 = vrot.slane %v21813_v50, 7  ;;  %vm17744_vm13 = vmand %vm21815_vm11, %vm21814_vm9  ;;  %v2870_v49 = vld [vmem:[#allocation4 + $0x78] sm:$0xf]  ;;  %v15001_v13 = vld [vmem:[#allocation4 + $0xc] ss:$16 sps:$4 sm:$0xff]   ;;  %v2722_v57 = vrot.slane %v2721_v29, 4 }
 0x1a1   : > { %v14999_v32 = vld [vmem:[#allocation4 + $0x8] ss:$16 sps:$4 sm:$0xff]   ;;  %vm21819_vm6 = vsmask.f32 7946  ;;  %2727 = vst [vmem:[#allocation4 + $0x48] sm:$0xc] %v2721_v29  ;;  %3549 = vmatprep.mubr.bf16.mxu1 %v15001_v13  ;;  %v2774_v24 = vsel %vm16682_vm3, %v2765_v27, %v2773_v28 }
 0x1a2   : > { %vm17755_vm7 = vmand %vm21820_vm2, %vm21819_vm6  ;;  %v21823_v8 = vrot.slane %v17465_v15, 6  ;;  %2661 = vst [vmem:[#allocation4 + $0x48] sm:$0x3] %v2655_v60  ;;  %v2739_v40 = vor.u32 %v2737_v11, %v2736_v19  ;;  %v2740_v33 = vrot.slane %v2736_v19, 4  ;;  %v2893_v62 = vld [vmem:[#allocation4 + $0x7c] sm:$0xf]  ;;  %3550 = vmatmul.mubr.bf16.vlgmr.msra.gmra.mxu1 %v14999_v32  ;;  %v2871_v11 = vsel %vm17744_vm13, %v2868_v17, %v2870_v49 }
 0x1a3   : > { %2716 = vst [vmem:[#allocation4 + $0x54] sm:$0x7] %v2715_v20  ;;  %v21824_v42 = vrot.slane %v17480_v36, 7  ;;  %v21825_v51 = vrot.slane %v17505_v14, 7  ;;  %vm21826_vm2 = vsmask.f32 7950  ;;  %v2894_v60 = vsel %vm17744_vm13, %v17617_v44, %v2893_v62 }
 0x1a4   : > { %v2683_v18 = vsel %vm16639_vm10, %v2681_v0, %v21823_v8  ;;  %vm21827_vm6 = vcmask 1043459   ;;  %v2748_v45 = vsel %vm16670_vm1, %v2740_v33, %v17517_v37  ;;  %2751 = vst [vmem:[#allocation4 + $0x4c] sm:$0xc] %v2739_v40  ;;  %2783 = vst [vmem:[#allocation4 + $0x60] sm:$0x7] %v2774_v24  ;;  %v2832_v14 = vrot.slane %v17731_v52, 7 }
 0x1a5   : > { %v2689_v16 = vsel %vm17713_vm4, %v2683_v18, %v2688_v63  ;;  %v2724_v15 = vsel %vm16603_vm5, %v2722_v57, %v21824_v42  ;;  %v2791_v61 = vsel %vm16603_vm5, %v17531_v34, %v21825_v51  ;;  %vm17785_vm9 = vmand %vm21827_vm6, %vm21826_vm2  ;;  %v2840_v34 = vld [vmem:[#allocation4 + $0x70] sm:$0xf]  ;;  %v21831_v43 = vshrl.u32 %v17534_v30, 16  ;;  %v2864_v29 = vld [vmem:[#allocation4 + $0x74] sm:$0xf] }
 0x1a6   : > { %2690 = vst [vmem:[#allocation4 + $0x50] sm:$0x7] %v2689_v16  ;;  %v2729_v36 = vsel %vm17713_vm4, %v2724_v15, %v2728_v4  ;;  %2797 = vst [vmem:[#allocation4 + $0x64] sm:$0x7] %v2791_v61  ;;  %v2965_v0 = vld [vmem:[#allocation3 + $0x2c] sm:$0x1]  ;;  %v2753_v4 = vsel %vm17713_vm4, %v2748_v45, %v2752_v9 }
 0x1a7   : > { %v2848_v22 = vrot.slane %v21831_v43, 7  ;;  %v2636_v50 = vld [vmem:[#allocation4 + $0x34] sm:$0xe]  ;;  %2730 = vst [vmem:[#allocation4 + $0x58] sm:$0x7] %v2729_v36  ;;  %v2849_v19 = vshll.u32 %v17534_v30, 16  ;;  %v3030_v43 = vsel %vm16723_vm12, %v17706_v23, %v3029_v10 }
 0x1a8   : > { %v2807_v37 = vrot.slane %v17545_v31, 4  ;;  %v2967_v27 = vld [vmem:[#allocation4 + $0xa0] sm:$0x1]  ;;  %v2993_v52 = vld [vmem:[#allocation4 + $0xa4] sm:$0x1]  ;;  %v2637_v32 = vsel %vm17671_vm0, %v17584_v41, %v2636_v50  ;;  %v2833_v13 = vrot.slane %v2832_v14, 4 }
 0x1a9   : > { %2754 = vst [vmem:[#allocation4 + $0x5c] sm:$0x7] %v2753_v4  ;;  %2838 = vst [vmem:[#allocation4 + $0x60] sm:$0x8] %v2832_v14  ;;  %v2852_v3 = vrot.slane %v2848_v22, 4  ;;  %v21832_v38 = vshrl.u32 %v17562_v1, 16  ;;  %v2851_v49 = vor.u32 %v2849_v19, %v2848_v22 }
 0x1aa   : > { %2872 = vst [vmem:[#allocation4 + $0x78] sm:$0xf] %v2871_v11  ;;  %v3008_v9 = vld [vmem:[#allocation4 + $0xa8] sm:$0x1]  ;;  %v3035_v7 = vld [vmem:[#allocation4 + $0xac] sm:$0x1]  ;;  %v2815_v41 = vsel %vm16670_vm1, %v2807_v37, %v17586_v46 }
 0x1ab   : > { %v2884_v30 = vsel %vm16615_vm8, %v21832_v38, %v17591_v21  ;;  %2638 = vst [vmem:[#allocation4 + $0x34] sm:$0xe] %v2637_v32  ;;  %v2672_v17 = vld [vmem:[#allocation4 + $0x3c] sm:$0xe]  ;;  %v21833_v57 = vld [vmem:[#allocation14_spill] sm:$0xff]  ;;  %v21834_v21 = vld [vmem:[#allocation35_spill] sm:$0xff] }
 0x1ac   : > { %2892 = vst [vmem:[#allocation4 + $0x6c] sm:$0x8] %v2884_v30  ;;  %v2912_v1 = vsel %vm16670_vm1, %v21833_v57, %v17612_v5  ;;  %v21835_v28 = vrot.slane %v21834_v21, 7  ;;  %v21836_v18 = vld [vmem:[#allocation25_spill] sm:$0xff]  ;;  %v21838_v40 = vld [vmem:[#allocation22_spill] sm:$0xff]  ;;  %v2985_v5 = vsel %vm16615_vm8, %v17676_v58, %v17642_v26  ;;  %v21840_v16 = vld [vmem:[#allocation31_spill] sm:$0xff] }
 0x1ad   : > { %v21837_v20 = vrot.slane %v21836_v18, 7  ;;  %v2860_v33 = vsel %vm16670_vm1, %v2852_v3, %v21838_v40  ;;  %2821 = vst [vmem:[#allocation4 + $0x68] sm:$0x7] %v2815_v41  ;;  %2895 = vst [vmem:[#allocation4 + $0x7c] sm:$0xf] %v2894_v60  ;;  %v21839_v62 = vld [vmem:[#allocation29_spill] sm:$0xff] }
 0x1ae   : > { %v2673_v8 = vsel %vm17671_vm0, %v21835_v28, %v2672_v17  ;;  %2921 = vst [vmem:[#allocation4 + $0x80] sm:$0xf] %v2912_v1  ;;  %2863 = vst [vmem:[#allocation4 + $0x64] sm:$0x8] %v2851_v49  ;;  %v2865_v2 = vsel %vm17744_vm13, %v2860_v33, %v2864_v29  ;;  %v2943_v42 = vsel %vm16615_vm8, %v21840_v16, %v21839_v62  ;;  %v21841_v15 = vld [vmem:[#allocation27_spill] sm:$0xff]  ;;  %v21843_v51 = vld [vmem:[#allocation20_spill] sm:$0xff] }
 0x1af   : > { %v2835_v46 = vsel %vm16603_vm5, %v2833_v13, %v21837_v20  ;;  %2674 = vst [vmem:[#allocation4 + $0x3c] sm:$0xe] %v2673_v8  ;;  %2992 = vst [vmem:[#allocation4 + $0x94] sm:$0xf] %v2985_v5  ;;  %v21842_v24 = vrot.slane %v21841_v15, 5  ;;  %v21845_v36 = vld [vmem:[#allocation24_spill] sm:$0xff]  ;;  %v2968_v29 = vsel %vm17264_vm14, %v2965_v0, %v2967_v27 }
 0x1b0   : > { %v2841_v44 = vsel %vm17744_vm13, %v2835_v46, %v2840_v34  ;;  %v2794_v58 = vld [vmem:[#allocation4 + $0x54] sm:$0xc]  ;;  %2866 = vst [vmem:[#allocation4 + $0x74] sm:$0xf] %v2865_v2  ;;  %2949 = vst [vmem:[#allocation4 + $0x88] sm:$0xf] %v2943_v42 }
 0x1b1   : > { %v2957_v26 = vsel %vm16664_vm15, %v21843_v51, %v21842_v24  ;;  %2842 = vst [vmem:[#allocation4 + $0x70] sm:$0xf] %v2841_v44  ;;  %v21846_v39 = vrot.slane %v21845_v36, 5  ;;  %v21847_v45 = vld [vmem:[#allocation30_spill] sm:$0xff]  ;;  %v21850_v50 = vld [vmem:[#allocation19_spill] sm:$0xff]  ;;  %v21852_v37 = vld [vmem:[#allocation37_spill] sm:$0xff] }
 0x1b2   : > { %2963 = vst [vmem:[#allocation4 + $0x8c] sm:$0xf] %v2957_v26  ;;  %v21848_v14 = vrot.slane %v21847_v45, 9  ;;  %v21851_v4 = vshrl.u32 %v21850_v50, 16  ;;  %v21853_v11 = vshll.u32 %v21852_v37, 16  ;;  %v21854_v38 = vld [vmem:[#allocation36_spill] sm:$0xff] }
 0x1b3   : > { %v2822_v13 = vld [vmem:[#allocation3 + $0x1c] sm:$0xc]  ;;  %v2780_v3 = vld [vmem:[#allocation4 + $0x50] sm:$0xc]  ;;  %v21855_v6 = vrot.slane %v21854_v38, 7  ;;  %v21856_v23 = vld [vmem:[#allocation33_spill] sm:$0xff] }
 0x1b4   : > { %v3003_v34 = vsel %vm16664_vm15, %v21848_v14, %v21846_v39  ;;  %v2994_v19 = vsel %vm17264_vm14, %v21851_v4, %v2993_v52  ;;  %v2806_v32 = vor.u32 %v21853_v11, %v17545_v31  ;;  %3034 = vst [vmem:[#allocation4 + $0x9c] sm:$0xf] %v3030_v43  ;;  %2969 = vst [vmem:[#allocation4 + $0xa0] sm:$0x1] %v2968_v29  ;;  %v2818_v27 = vld [vmem:[#allocation4 + $0x58] sm:$0xc] }
 0x1b5   : > { %v2795_v30 = vsel %vm17755_vm7, %v21855_v6, %v2794_v58  ;;  %3007 = vst [vmem:[#allocation4 + $0x98] sm:$0xf] %v3003_v34  ;;  %2995 = vst [vmem:[#allocation4 + $0xa4] sm:$0x1] %v2994_v19  ;;  %v3009_v10 = vsel %vm17264_vm14, %v21856_v23, %v3008_v9  ;;  %v3036_v31 = vsel %vm17264_vm14, %v3031_v54, %v3035_v7  ;;  %v2824_v17 = vld [vmem:[#allocation4 + $0x5c] sm:$0xc] }
 0x1b6   : > { %v2781_v0 = vsel %vm17755_vm7, %v17523_v25, %v2780_v3  ;;  %2796 = vst [vmem:[#allocation4 + $0x54] sm:$0xc] %v2795_v30  ;;  %3010 = vst [vmem:[#allocation4 + $0xa8] sm:$0x1] %v3009_v10  ;;  %v2819_v52 = vsel %vm17755_vm7, %v2806_v32, %v2818_v27  ;;  %v2946_v49 = vld [vmem:[#allocation4 + $0x78] sm:$0x8]  ;;  %v2825_v35 = vsel %vm17755_vm7, %v2822_v13, %v2824_v17 }
 0x1b7   : > { %3037 = vst [vmem:[#allocation4 + $0xac] sm:$0x1] %v3036_v31  ;;  %2782 = vst [vmem:[#allocation4 + $0x50] sm:$0xc] %v2781_v0  ;;  %v15002_v9 = vld [vmem:[#allocation4 + $0x24] ss:$16 sps:$4 sm:$0xff]  }
 0x1b8   : > { %v15004_v41 = vld [vmem:[#allocation4 + $0x20] ss:$16 sps:$4 sm:$0xff]   ;;  %2820 = vst [vmem:[#allocation4 + $0x58] sm:$0xc] %v2819_v52  ;;  %v21857_v54 = vld [vmem:[#allocation28_spill] sm:$0xff]  ;;  %3477 = vmatprep.mubr.bf16.mxu0 %v15002_v9  ;;  %v21859_v8 = vld [vmem:[#allocation26_spill] sm:$0xff] }
 0x1b9   : > { %v2947_v25 = vsel %vm17785_vm9, %v21857_v54, %v2946_v49  ;;  %v2922_v7 = vld [vmem:[#allocation3 + $0x20] sm:$0x8]  ;;  %2826 = vst [vmem:[#allocation4 + $0x5c] sm:$0xc] %v2825_v35  ;;  %v2960_v60 = vld [vmem:[#allocation4 + $0x7c] sm:$0x8]  ;;  %3478 = vmatmul.mubr.bf16.gmra.mxu0 %v15004_v41 }
 0x1ba   : > { %2948 = vst [vmem:[#allocation4 + $0x78] sm:$0x8] %v2947_v25  ;;  %v21858_v57 = vld [vmem:[#allocation23_spill] sm:$0xff]  ;;  %v15007_v28 = vld [vmem:[#allocation4 + $0x28] ss:$16 sps:$4 sm:$0xff]   ;;  %v21860_v18 = vrot.slane %v21859_v8, 5 }
 0x1bb   : > { %v2899_v1 = vshll.u32 %v21858_v57, 16  ;;  %v15005_v21 = vld [vmem:[#allocation4 + $0x2c] ss:$16 sps:$4 sm:$0xff]   ;;  %v2918_v59 = vld [vmem:[#allocation4 + $0x70] sm:$0x8]  ;;  %vm21693_vm7 = vcmask 519168  }
 0x1bc   : > { %v2961_v20 = vsel %vm17785_vm9, %v21860_v18, %v2960_v60  ;;  %v2924_v46 = vld [vmem:[#allocation4 + $0x74] sm:$0x8]  ;;  %3557 = vmatprep.mubr.bf16.mxu1 %v15005_v21  ;;  %v15022_v53 = vld [vmem:[#allocation4 + $0x8c] ss:$16 sps:$4 sm:$0xff]   ;;  %v3058_v26 = vld [vmem:[#allocation4 + $0xa0] sm:$0x11] }
 0x1bd   : > { %2962 = vst [vmem:[#allocation4 + $0x7c] sm:$0x8] %v2961_v20  ;;  %v2919_v40 = vsel %vm17785_vm9, %v2899_v1, %v2918_v59  ;;  %v2925_v33 = vsel %vm17785_vm9, %v2922_v7, %v2924_v46  ;;  %3558 = vmatmul.mubr.bf16.gmra.mxu1 %v15007_v28  ;;  %v15008_v5 = vld [vmem:[#allocation4 + $0x44] ss:$16 sps:$4 sm:$0xff]   ;;  %v15024_v58 = vld [vmem:[#allocation4 + $0x80] ss:$16 sps:$4 sm:$0xff]   ;;  %v13249_v45 = vcombine.high %v3058_v26, %v3058_v26 }
 0x1be   : > { %2920 = vst [vmem:[#allocation4 + $0x70] sm:$0x8] %v2919_v40  ;;  %2926 = vst [vmem:[#allocation4 + $0x74] sm:$0x8] %v2925_v33  ;;  %v15012_v44 = vld [vmem:[#allocation4 + $0x40] ss:$16 sps:$4 sm:$0xff]   ;;  %3485 = vmatprep.mubr.bf16.mxu0 %v15008_v5  ;;  %v13248_v34 = vcombine.low %v3058_v26, %v3058_v26 }
 0x1bf   : > { %v15013_v62 = vld [vmem:[#allocation4 + $0x48] ss:$16 sps:$4 sm:$0xff]   ;;  %v15019_v51 = vld [vmem:[#allocation4 + $0x84] ss:$16 sps:$4 sm:$0xff]   ;;  %v17903_v19 = vld [vmem:[%s21638_s4] ss:$0 sm:$0xff] }
 0x1c0   : > { %v15010_v2 = vld [vmem:[#allocation4 + $0x4c] ss:$16 sps:$4 sm:$0xff]   ;;  %v15026_v39 = vld [vmem:[#allocation4 + $0x88] ss:$16 sps:$4 sm:$0xff]   ;;  %vm21861_vm13 = vsmask.f32 3328 }
 0x1c1   : > { %3565 = vmatprep.mubr.bf16.mxu1 %v15010_v2  ;;  %3486 = vmatmul.mubr.bf16.gmra.mxu0 %v15012_v44  ;;  %v15021_v24 = vld [vmem:[#allocation4 + $0x68] ss:$16 sps:$4 sm:$0xff]   ;;  %vm17917_vm14 = vmand %vm21693_vm7, %vm21861_vm13  ;;  %v3672_v57 = vld [vmem:[#allocation6] sm:$0xf]  ;;  %vm3815_vm0 = vcmask 519171   ;;  %vm3664_vm4 = vcmask 516096  }
 0x1c2   : > { %v3059_v36 = vld [vmem:[#allocation4 + $0xa8] sm:$0x11]  ;;  %vm4542_vm11 = vcmask 519169   ;;  %vm21864_vm2 = vsmask.f32 256  ;;  %vm4187_vm9 = vcmask 519170  }
 0x1c3   : > { %v13251_v14 = vcombine.high %v3059_v36, %v3059_v36  ;;  %v13250_v43 = vcombine.low %v3059_v36, %v3059_v36  ;;  %v15030_v54 = vld [vmem:[%s21639_s5 + $0x78] sm:$0xff]   ;;  %vm18019_vm6 = vmand %vm3664_vm4, %vm21864_vm2  ;;  %vm4192_vm13 = vcmask 517120   ;;  %v15065_v48 = vld [vmem:[%s21639_s5 + $0x90] sm:$0xff]   ;;  %vm21870_vm2 = vsmask.f32 1280 }
 0x1c4   : > { %v15017_v16 = vld [vmem:[#allocation4 + $0x6c] ss:$16 sps:$4 sm:$0xff]   ;;  %v15031_v25 = vld [vmem:[%s21639_s5 + $0x38] sm:$0xff]   ;;  %14670 = vmatprep.subr.bf16.mxu0 %v15030_v54 }
 0x1c5   : > { %v15014_v42 = vld [vmem:[#allocation4 + $0x64] ss:$16 sps:$4 sm:$0xff]   ;;  %3566 = vmatmul.mubr.bf16.gmra.mxu1 %v15013_v62  ;;  %v15016_v15 = vld [vmem:[#allocation4 + $0x60] ss:$16 sps:$4 sm:$0xff]   ;;  %14671 = vmatpush3.bf16.msra.mxu0 %v15031_v25 }
 0x1c6   : > { %3493 = vmatprep.mubr.bf16.mxu0 %v15014_v42  ;;  %3573 = vmatprep.mubr.bf16.mxu1 %v15017_v16 }
 0x1c9   : > { %3494 = vmatmul.mubr.bf16.gmra.mxu0 %v15016_v15 }
 0x1ca   : > { %3501 = vmatprep.mubr.bf16.mxu0 %v15019_v51 }
 0x1cd   : > { %3574 = vmatmul.mubr.bf16.gmra.mxu1 %v15021_v24 }
 0x1ce   : > { %3581 = vmatprep.mubr.bf16.mxu1 %v15022_v53 }
 0x1d1   : > { %3502 = vmatmul.mubr.bf16.gmra.mxu0 %v15024_v58 }
 0x1d2   : > { %3509 = vmatprep.mubr.bf16.mxu0 %v13249_v45 }
 0x1d5   : > { %3582 = vmatmul.mubr.bf16.gmra.mxu1 %v15026_v39 }
 0x1d6   : > { %3589 = vmatprep.mubr.bf16.mxu1 %v13251_v14 }
 0x1d9   : > { %3510 = vmatmul.mubr.bf16.gmra.mxu0 %v13248_v34 }
 0x1dd   : > { %3590 = vmatmul.mubr.bf16.gmra.mxu1 %v13250_v43 }
 0x24d   : > { %v14582_v22 = vpop.f32.mrf.mxu0 }
 0x24f   : > { %v14583_v29 = vpop.f32.mrf.mxu0 }
 0x250   : > { %v14584_v4 = vadd.f32 %v14583_v29, %v14582_v22 }
 0x251   : > { %v14585_v50 = vpop.f32.mrf.mxu0 }
 0x252   : > { %v3472_v13 = vadd.f32 %v14584_v4, %v17903_v19 }
 0x253   : > { %v14586_v37 = vpop.f32.mrf.mxu0 }
 0x254   : > { %v14587_v3 = vadd.f32 %v14586_v37, %v14585_v50 }
 0x256   : > { %v3475_v10 = vadd.f32 %v14587_v3, %v17903_v19 }
 0x262   : > { %v14634_v11 = vpop.f32.mrf.mxu1 }
 0x264   : > { %v14635_v32 = vpop.f32.mrf.mxu1 }
 0x265   : > { %v14636_v38 = vadd.f32 %v14635_v32, %v14634_v11 }
 0x266   : > { %v14637_v6 = vpop.f32.mrf.mxu1 }
 0x267   : > { %v3552_v30 = vadd.f32 %v14636_v38, %v3472_v13 }
 0x268   : > { %v14638_v23 = vpop.f32.mrf.mxu1 }
 0x269   : > { %v3597_v31 = vmax.f32 %v3552_v30, 0.0  ;;  %v14639_v0 = vadd.f32 %v14638_v23, %v14637_v6 }
 0x26b   : > { %v14281_v27 = vpack.c.bf16 %v3597_v31, %v3597_v31  ;;  %v3555_v52 = vadd.f32 %v14639_v0, %v3475_v10 }
 0x26d   : > { %3654 = vst.msk [vmem:[#allocation5] sm:$0xf] %vm21693_vm7, %v14281_v27  ;;  %v3598_v17 = vmax.f32 %v3555_v52, 0.0 }
 0x26f   : > { %v14282_v9 = vpack.c.bf16 %v3598_v17, %v3598_v17 }
 0x271   : > { %3655 = vst.msk [vmem:[#allocation5 + $0x4] sm:$0xf] %vm21693_vm7, %v14282_v9  ;;  %v3702_v9 = vld [vmem:[#allocation6 + $0x4] sm:$0xf] }
 0x274   : > { %v3675_v18 = vld [vmem:[#allocation5] sm:$0xf] }
 0x275   : > { %v3669_v20 = vld [vmem:[#allocation5] sm:$0xf]  ;;  %v3677_v40 = vshrl.u32 %v3675_v18, 16  ;;  %v3680_v33 = vshll.u32 %v3675_v18, 16 }
 0x276   : > { %v3673_v5 = vsel %vm17917_vm14, %v3669_v20, %v3672_v57  ;;  %v3693_v4 = vld [vmem:[#allocation5] sm:$0xe]  ;;  %v15032_v57 = vld [vmem:[%s21639_s5 + $0x70] sm:$0xff]  }
 0x277   : > { %3674 = vst [vmem:[#allocation6] sm:$0xf] %v3673_v5  ;;  %v3679_v42 = vrot.slane %v3677_v40, 4  ;;  %v3682_v15 = vrot.slane %v3680_v33, 5  ;;  %14672 = vmatprep.subr.bf16.mxu0 %v15032_v57 }
 0x278   : > { %v3705_v26 = vld [vmem:[#allocation5 + $0x4] sm:$0xf] }
 0x279   : > { %v14588_v49 = vpop.f32.mrf.mxu0  ;;  %v3683_v39 = vor.u32 %v3682_v15, %v3679_v42  ;;  %v3707_v45 = vshrl.u32 %v3705_v26, 16  ;;  %v3710_v14 = vshll.u32 %v3705_v26, 16  ;;  %v3822_v34 = vld [vmem:[#allocation5 + $0x4] sm:$0xe]  ;;  %v3694_v6 = vld [vmem:[#allocation5 + $0x4] sm:$0x1] }
 0x27a   : > { %v3825_v50 = vshll.u32 %v3822_v34, 16  ;;  %v3828_v38 = vshrl.u32 %v3822_v34, 16  ;;  %v17930_v25 = vld [vmem:[#allocation5 + $0x4] sm:$0xe] }
 0x27b   : > { %v14589_v41 = vpop.f32.mrf.mxu0  ;;  %v3684_v32 = vrot.slane %v3683_v39, 4  ;;  %v3709_v13 = vrot.slane %v3707_v45, 4  ;;  %v3712_v3 = vrot.slane %v3710_v14, 5 }
 0x27c   : > { %v14590_v7 = vadd.f32 %v14589_v41, %v14588_v49  ;;  %v17927_v31 = vrot.slane %v3825_v50, 6  ;;  %v3830_v17 = vrot.slane %v3828_v38, 5  ;;  %v13295_v49 = vrot.slane %v3693_v4, 9 }
 0x27d   : > { %v14640_v35 = vpop.f32.mrf.mxu1  ;;  %v14591_v1 = vpop.f32.mrf.mxu0  ;;  %3685 = vrot.lane.b32.xlu0 %v3684_v32, %s21699_s24  ;;  %v3713_v52 = vor.u32 %v3712_v3, %v3709_v13 }
 0x27e   : > { %v3480_v28 = vadd.f32 %v14590_v7, %v17903_v19  ;;  %v3699_v7 = vrot.slane %v3694_v6, 5  ;;  %v3831_v18 = vor.u32 %v3830_v17, %v17927_v31 }
 0x27f   : > { %v14641_v21 = vpop.f32.mrf.mxu1  ;;  %v14592_v59 = vpop.f32.mrf.mxu0 }
 0x280   : > { %v14642_v8 = vadd.f32 %v14641_v21, %v14640_v35  ;;  %v14593_v44 = vadd.f32 %v14592_v59, %v14591_v1  ;;  %v15033_v1 = vld [vmem:[%s21639_s5 + $0x30] sm:$0xff]   ;;  %v3700_v40 = vsel %vm16664_vm15, %v13295_v49, %v3699_v7  ;;  %v3832_v15 = vrot.slane %v3831_v18, 4 }
 0x281   : > { %v14643_v46 = vpop.f32.mrf.mxu1  ;;  %v14594_v16 = vpop.f32.mrf.mxu0  ;;  %14673 = vmatpush3.bf16.msra.mxu0 %v15033_v1 }
 0x282   : > { %v3560_v2 = vadd.f32 %v14642_v8, %v3480_v28  ;;  %v3483_v24 = vadd.f32 %v14593_v44, %v17903_v19  ;;  %v3714_v8 = vrot.slane %v3713_v52, 4  ;;  %v3736_v44 = vshrl.u32 %v17930_v25, 16 }
 0x283   : > { %v14644_v62 = vpop.f32.mrf.mxu1  ;;  %v14595_v36 = vpop.f32.mrf.mxu0 }
 0x284   : > { %v3599_v51 = vmax.f32 %v3560_v2, 0.0  ;;  %v14645_v53 = vadd.f32 %v14644_v62, %v14643_v46  ;;  %v14596_v29 = vadd.f32 %v14595_v36, %v14594_v16  ;;  %3715 = vrot.lane.b32.xlu0 %v3714_v8, %s21699_s24  ;;  %v3703_v2 = vsel %vm17917_vm14, %v3700_v40, %v3702_v9 }
 0x285   : > { %v14646_v58 = vpop.f32.mrf.mxu1  ;;  %v14597_v11 = vpop.f32.mrf.mxu0  ;;  %3704 = vst [vmem:[#allocation6 + $0x4] sm:$0xf] %v3703_v2  ;;  %v3739_v9 = vshll.u32 %v17930_v25, 16  ;;  %v17955_v1 = vrot.slane %v3736_v44, 5  ;;  %v15034_v25 = vld [vmem:[%s21639_s5 + $0x68] sm:$0xff]  }
 0x286   : > { %v14283_v43 = vpack.c.bf16 %v3599_v51, %v3599_v51  ;;  %v3563_v22 = vadd.f32 %v14645_v53, %v3483_v24  ;;  %v3488_v23 = vadd.f32 %v14596_v29, %v17903_v19  ;;  %14674 = vmatprep.subr.bf16.mxu0 %v15034_v25 }
 0x287   : > { %v14647_v37 = vpop.f32.mrf.mxu1  ;;  %v14598_v27 = vpop.f32.mrf.mxu0 }
 0x288   : > { %3656 = vst.msk [vmem:[#allocation5 + $0x8] sm:$0xf] %vm21693_vm7, %v14283_v43  ;;  %v3600_v30 = vmax.f32 %v3563_v22, 0.0  ;;  %v14648_v10 = vadd.f32 %v14647_v37, %v14646_v58  ;;  %v14599_v54 = vadd.f32 %v14598_v27, %v14597_v11 }
 0x289   : > { %v14649_v0 = vpop.f32.mrf.mxu1  ;;  %v14600_v28 = vpop.f32.mrf.mxu0 }
 0x28a   : > { %v14284_v41 = vpack.c.bf16 %v3600_v30, %v3600_v30  ;;  %v3568_v35 = vadd.f32 %v14648_v10, %v3488_v23  ;;  %v3491_v59 = vadd.f32 %v14599_v54, %v17903_v19 }
 0x28b   : > { %v14650_v21 = vpop.f32.mrf.mxu1  ;;  %v14601_v5 = vpop.f32.mrf.mxu0 }
 0x28c   : > { %3657 = vst.msk [vmem:[#allocation5 + $0xc] sm:$0xf] %vm21693_vm7, %v14284_v41  ;;  %v3601_v20 = vmax.f32 %v3568_v35, 0.0  ;;  %v14651_v46 = vadd.f32 %v14650_v21, %v14649_v0  ;;  %v14602_v42 = vadd.f32 %v14601_v5, %v14600_v28 }
 0x28d   : > { %v14652_v33 = vpop.f32.mrf.mxu1  ;;  %v14603_v51 = vpop.f32.mrf.mxu0 }
 0x28e   : > { %v14285_v62 = vpack.c.bf16 %v3601_v20, %v3601_v20  ;;  %v3571_v16 = vadd.f32 %v14651_v46, %v3491_v59  ;;  %v3496_v39 = vadd.f32 %v14602_v42, %v17903_v19 }
 0x28f   : > { %v14653_v24 = vpop.f32.mrf.mxu1  ;;  %v3823_v53 = vld [vmem:[#allocation5 + $0x8] sm:$0x1]  ;;  %v3865_v26 = vld [vmem:[#allocation5 + $0x8] sm:$0xe]  ;;  %v14604_v43 = vpop.f32.mrf.mxu0 }
 0x290   : > { %v4010_v58 = vld [vmem:[#allocation5 + $0x8] sm:$0xe]  ;;  %3658 = vst.msk [vmem:[#allocation5 + $0x10] sm:$0xf] %vm21693_vm7, %v14285_v62  ;;  %v3602_v36 = vmax.f32 %v3571_v16, 0.0  ;;  %v14654_v45 = vadd.f32 %v14653_v24, %v14652_v33  ;;  %v3834_v14 = vshll.u32 %v3823_v53, 16  ;;  %v14605_v32 = vadd.f32 %v14604_v43, %v14603_v51 }
 0x291   : > { %v14655_v34 = vpop.f32.mrf.mxu1  ;;  %v3868_v22 = vshll.u32 %v3865_v26, 16  ;;  %v3871_v29 = vshrl.u32 %v3865_v26, 16  ;;  %v4013_v50 = vshrl.u32 %v4010_v58, 16  ;;  %v4016_v4 = vshll.u32 %v4010_v58, 16  ;;  %v14606_v38 = vpop.f32.mrf.mxu0 }
 0x292   : > { %v14286_v37 = vpack.c.bf16 %v3602_v36, %v3602_v36  ;;  %v3576_v11 = vadd.f32 %v14654_v45, %v3496_v39  ;;  %v3836_v13 = vrot.slane %v3834_v14, 6  ;;  %v3499_v27 = vadd.f32 %v14605_v32, %v17903_v19 }
 0x293   : > { %v14656_v3 = vpop.f32.mrf.mxu1  ;;  %v3870_v6 = vrot.slane %v3868_v22, 6  ;;  %v4015_v30 = vrot.slane %v4013_v50, 6  ;;  %v4018_v23 = vrot.slane %v4016_v4, 7  ;;  %v3873_v10 = vrot.slane %v3871_v29, 5  ;;  %v3866_v17 = vld [vmem:[#allocation5 + $0xc] sm:$0x1]  ;;  %v14607_v54 = vpop.f32.mrf.mxu0 }
 0x294   : > { %3659 = vst.msk [vmem:[#allocation5 + $0x14] sm:$0xf] %vm21693_vm7, %v14286_v37  ;;  %v3603_v0 = vmax.f32 %v3576_v11, 0.0  ;;  %v14657_v52 = vadd.f32 %v14656_v3, %v14655_v34  ;;  %v4194_v49 = vld [vmem:[#allocation5 + $0xc] sm:$0xc]  ;;  %v3837_v35 = vsel %vm16723_vm12, %v3832_v15, %v3836_v13  ;;  %v14608_v8 = vadd.f32 %v14607_v54, %v14606_v38  ;;  %v15035_v13 = vld [vmem:[%s21639_s5 + $0x28] sm:$0xff]  }
 0x295   : > { %v14658_v41 = vpop.f32.mrf.mxu1  ;;  %v14861_v7 = vpack.i.bf16 %v3870_v6, %v17927_v31  ;;  %v3874_v57 = vor.u32 %v3873_v10, %v3870_v6  ;;  %3840 = vrot.lane.b32.xlu1 %v3837_v35, %s21699_s24  ;;  %v3877_v18 = vshll.u32 %v3866_v17, 16  ;;  %v4057_v20 = vld [vmem:[#allocation5 + $0xc] sm:$0xe]  ;;  %v4011_v59 = vld [vmem:[#allocation5 + $0xc] sm:$0x1]  ;;  %v14609_v31 = vpop.f32.mrf.mxu0  ;;  %v17962_v33 = vor.u32 %v4018_v23, %v4015_v30  ;;  %14675 = vmatpush3.bf16.msra.mxu0 %v15035_v13 }
 0x296   : > { %v14287_v21 = vpack.c.bf16 %v3603_v0, %v3603_v0  ;;  %v3579_v28 = vadd.f32 %v14657_v52, %v3499_v27  ;;  %v4197_v44 = vshrl.u32 %v4194_v49, 16  ;;  %v4200_v2 = vshll.u32 %v4194_v49, 16  ;;  %v15036_v49 = vld [vmem:[%s21639_s5 + $0x60] sm:$0xff]   ;;  %v18242_v55 = vld [vmem:[#allocation5 + $0xc] sm:$0x1] }
 0x297   : > { %v4171_v46 = vld [vmem:[#allocation5 + $0x10] sm:$0x8]  ;;  %14862 = vrot.lane.b32.xlu0 %v14861_v7, %s21699_s24  ;;  %v14659_v40 = vpop.f32.mrf.mxu1  ;;  %v3875_v5 = vrot.slane %v3874_v57, 4  ;;  %v3504_v16 = vadd.f32 %v14608_v8, %v17903_v19  ;;  %v3879_v15 = vrot.slane %v3877_v18, 6  ;;  %v14610_v51 = vpop.f32.mrf.mxu0  ;;  %v4060_v26 = vshrl.u32 %v4057_v20, 16  ;;  %v15037_v7 = vld [vmem:[%s21639_s5 + $0x20] sm:$0xff]   ;;  %14676 = vmatprep.subr.bf16.mxu0 %v15036_v49 }
 0x298   : > { %3660 = vst.msk [vmem:[#allocation5 + $0x18] sm:$0xf] %vm21693_vm7, %v14287_v21  ;;  %v3604_v62 = vmax.f32 %v3579_v28, 0.0  ;;  %v14660_v42 = vadd.f32 %v14659_v40, %v14658_v41  ;;  %v17967_v53 = vrot.slane %v4197_v44, 7  ;;  %v4063_v58 = vshll.u32 %v4057_v20, 16 }
 0x299   : > { %4173 = vst.msk [vmem:[#allocation6 + $0x24] sm:$0x8] %vm3815_vm0, %v4171_v46  ;;  %v14661_v24 = vpop.f32.mrf.mxu1  ;;  %v4022_v36 = vshrl.u32 %v4011_v59, 16  ;;  %4030 = vrot.lane.b32.xlu1 %v17962_v33, %s21699_s24  ;;  %v14611_v14 = vadd.f32 %v14610_v51, %v14609_v31  ;;  %v3880_v34 = vsel %vm16723_vm12, %v3875_v5, %v3879_v15  ;;  %v4231_v43 = vld [vmem:[#allocation5 + $0x10] sm:$0xc]  ;;  %v14612_v50 = vpop.f32.mrf.mxu0  ;;  %v4062_v37 = vrot.slane %v4060_v26, 6  ;;  %14677 = vmatpush3.bf16.msra.mxu0 %v15037_v7 }
 0x29a   : > { %v14288_v39 = vpack.c.bf16 %v3604_v62, %v3604_v62  ;;  %v3584_v45 = vadd.f32 %v14660_v42, %v3504_v16  ;;  %v17973_v22 = vld [vmem:[#allocation5 + $0x10] sm:$0x1]  ;;  %v4202_v4 = vor.u32 %v4200_v2, %v17967_v53  ;;  %v4065_v11 = vrot.slane %v4063_v58, 7  ;;  %v15038_v46 = vld [vmem:[%s21639_s5 + $0x58] sm:$0xff]  }
 0x29b   : > { %3883 = vrot.lane.b32.xlu0 %v3880_v34, %s21699_s24  ;;  %v14662_v29 = vpop.f32.mrf.mxu1  ;;  %v17977_v32 = vrot.slane %v3739_v9, 6  ;;  %v3507_v38 = vadd.f32 %v14611_v14, %v17903_v19  ;;  %v4025_v30 = vshll.u32 %v4011_v59, 16  ;;  %v14613_v10 = vpop.f32.mrf.mxu0  ;;  %v4024_v27 = vrot.slane %v4022_v36, 6  ;;  %v4232_v18 = vld [vmem:[#allocation5 + $0x14] sm:$0x3]  ;;  %14678 = vmatprep.subr.bf16.mxu0 %v15038_v46 }
 0x29c   : > { %3661 = vst.msk [vmem:[#allocation5 + $0x1c] sm:$0xf] %vm21693_vm7, %v14288_v39  ;;  %v3605_v3 = vmax.f32 %v3584_v45, 0.0  ;;  %v14663_v6 = vadd.f32 %v14662_v29, %v14661_v24  ;;  %v17984_v0 = vor.u32 %v4065_v11, %v4062_v37  ;;  %v4234_v52 = vshrl.u32 %v4231_v43, 16  ;;  %v4195_v16 = vld [vmem:[#allocation5 + $0x10] sm:$0x3] }
 0x29d   : > { %v14664_v23 = vpop.f32.mrf.mxu1  ;;  %v4069_v17 = vshrl.u32 %v17973_v22, 16  ;;  %4212 = vrot.lane.b32.xlu1 %v4202_v4, %s21699_s24  ;;  %v14614_v35 = vadd.f32 %v14613_v10, %v14612_v50  ;;  %v4027_v54 = vrot.slane %v4025_v30, 7  ;;  %v14615_v21 = vpop.f32.mrf.mxu0  ;;  %v4237_v8 = vshll.u32 %v4231_v43, 16  ;;  %v4358_v26 = vld [vmem:[#allocation5 + $0x14] sm:$0x3] }
 0x29e   : > { %v14289_v9 = vpack.c.bf16 %v3605_v3, %v3605_v3  ;;  %v3587_v41 = vadd.f32 %v14663_v6, %v3507_v38  ;;  %v4236_v28 = vrot.slane %v4234_v52, 7  ;;  %v3742_v25 = vor.u32 %v17977_v32, %v17955_v1  ;;  %v4357_v34 = vld [vmem:[#allocation5 + $0x10] sm:$0xc]  ;;  %v3666_v38 = vld [vmem:[#allocation5 + $0x28] sm:$0x1]  ;;  %v15046_v32 = vld [vmem:[%s21639_s5] sm:$0xff]  }
 0x29f   : > { %4077 = vrot.lane.b32.xlu0 %v17984_v0, %s21699_s24  ;;  %v14665_v57 = vpop.f32.mrf.mxu1  ;;  %v3512_v59 = vadd.f32 %v14614_v35, %v17903_v19  ;;  %v4020_v40 = vrot.slane %v17962_v33, 4  ;;  %v4028_v44 = vor.u32 %v4027_v54, %v4024_v27  ;;  %v14616_v2 = vpop.f32.mrf.mxu0  ;;  %v15039_v19 = vld [vmem:[%s21639_s5 + $0x18] sm:$0xff]   ;;  %v4071_v15 = vrot.slane %v4069_v17, 6  ;;  %v15040_v33 = vld [vmem:[%s21639_s5 + $0x50] sm:$0xff]   ;;  %v3771_v21 = vld [vmem:[#allocation5 + $0x8] sm:$0xe] }
 0x2a0   : > { %3662 = vst.msk [vmem:[#allocation5 + $0x20] sm:$0xf] %vm21693_vm7, %v14289_v9  ;;  %v3606_v20 = vmax.f32 %v3587_v41, 0.0  ;;  %v14666_v31 = vadd.f32 %v14665_v57, %v14664_v23  ;;  %v4239_v62 = vor.u32 %v4237_v8, %v4236_v28  ;;  %v4072_v24 = vshll.u32 %v17973_v22, 16  ;;  %14679 = vmatpush3.bf16.msra.mxu0 %v15039_v19  ;;  %v4407_v9 = vld [vmem:[#allocation5 + $0x18] sm:$0x3] }
 0x2a1   : > { %v14667_v5 = vpop.f32.mrf.mxu1  ;;  %v4242_v51 = vshrl.u32 %v4232_v18, 16  ;;  %v4067_v58 = vrot.slane %v17984_v0, 4  ;;  %v4029_v39 = vsel %vm16682_vm3, %v4020_v40, %v4028_v44  ;;  %v4240_v14 = vrot.slane %v4236_v28, 4  ;;  %v4406_v0 = vld [vmem:[#allocation5 + $0x14] sm:$0xc]  ;;  %14680 = vmatprep.subr.bf16.mxu0 %v15040_v33  ;;  %v15041_v41 = vld [vmem:[%s21639_s5 + $0x10] sm:$0xff]  }
 0x2a2   : > { %v14290_v42 = vpack.c.bf16 %v3606_v20, %v3606_v20  ;;  %v3592_v36 = vadd.f32 %v14666_v31, %v3512_v59  ;;  %4032 = vrot.lane.b32.xlu1 %v4029_v39, %s21699_s24  ;;  %v4074_v43 = vrot.slane %v4072_v24, 7  ;;  %v4245_v29 = vshll.u32 %v4232_v18, 16  ;;  %v15042_v28 = vld [vmem:[%s21639_s5 + $0x48] sm:$0xff]   ;;  %v3772_v5 = vld [vmem:[#allocation5 + $0xc] sm:$0x1] }
 0x2a3   : > { %4249 = vrot.lane.b32.xlu0 %v4239_v62, %s21699_s24  ;;  %v14668_v45 = vpop.f32.mrf.mxu1  ;;  %v4244_v22 = vrot.slane %v4242_v51, 7  ;;  %v4205_v50 = vshrl.u32 %v4195_v16, 16  ;;  %v4208_v37 = vshll.u32 %v4195_v16, 16  ;;  %v4369_v11 = vshll.u32 %v4358_v26, 16  ;;  %v15043_v44 = vld [vmem:[%s21639_s5 + $0x8] sm:$0xff]  }
 0x2a4   : > { %3663 = vst.msk [vmem:[#allocation5 + $0x24] sm:$0xf] %vm21693_vm7, %v14290_v42  ;;  %v3607_v4 = vmax.f32 %v3592_v36, 0.0  ;;  %v4373_v13 = vshrl.u32 %v4358_v26, 16  ;;  %v4075_v6 = vor.u32 %v4074_v43, %v4071_v15  ;;  %v4360_v10 = vshrl.u32 %v4357_v34, 16  ;;  %14681 = vmatpush3.bf16.msra.mxu0 %v15041_v41  ;;  %v15044_v15 = vld [vmem:[%s21639_s5 + $0x40] sm:$0xff]  }
 0x2a5   : > { %v4247_v30 = vor.u32 %v4245_v29, %v4244_v22  ;;  %v4207_v23 = vrot.slane %v4205_v50, 7  ;;  %v18023_v52 = vrot.slane %v4369_v11, 5  ;;  %v4363_v49 = vshll.u32 %v4357_v34, 16  ;;  %14682 = vmatprep.subr.bf16.mxu0 %v15042_v28  ;;  %v4598_v50 = vld [vmem:[#allocation5 + $0x18] sm:$0x8] }
 0x2a6   : > { %v14291_v27 = vpack.c.bf16 %v3607_v4, %v3607_v4  ;;  %v4375_v17 = vrot.slane %v4373_v13, 4  ;;  %v4076_v35 = vsel %vm16682_vm3, %v4067_v58, %v4075_v6  ;;  %v4203_v7 = vrot.slane %v17967_v53, 4  ;;  %v3734_v58 = vld [vmem:[#allocation5 + $0x8] sm:$0x1]  ;;  %v15045_v4 = vld [vmem:[%s21639_s5 + $0xf8] sm:$0xff]  }
 0x2a7   : > { %v4248_v54 = vsel %vm16670_vm1, %v4240_v14, %v4247_v30  ;;  %v4210_v57 = vor.u32 %v4208_v37, %v4207_v23  ;;  %4079 = vrot.lane.b32.xlu1 %v4076_v35, %s21699_s24  ;;  %v4362_v20 = vrot.slane %v4360_v10, 4  ;;  %v4365_v59 = vrot.slane %v4363_v49, 5  ;;  %v4599_v1 = vld [vmem:[#allocation5 + $0x1c] sm:$0x7]  ;;  %14710 = vmatprep.subr.bf16.mxu1 %v15045_v4 }
 0x2a8   : > { %v3667_v8 = vsel %vm18019_vm6, %v14291_v27, %v3666_v38  ;;  %4251 = vrot.lane.b32.xlu0 %v4248_v54, %s21699_s24  ;;  %v4376_v18 = vor.u32 %v4375_v17, %v18023_v52  ;;  %v4409_v46 = vshrl.u32 %v4406_v0, 16  ;;  %v4412_v40 = vshll.u32 %v4406_v0, 16  ;;  %14683 = vmatpush3.bf16.msra.mxu0 %v15043_v44  ;;  %v4549_v17 = vld [vmem:[#allocation5 + $0x14] sm:$0x8]  ;;  %v4550_v54 = vld [vmem:[#allocation5 + $0x18] sm:$0x7] }
 0x2a9   : > { %3668 = vst [vmem:[#allocation5 + $0x28] sm:$0x1] %v3667_v8  ;;  %v4211_v53 = vsel %vm16670_vm1, %v4203_v7, %v4210_v57  ;;  %v4418_v31 = vshll.u32 %v4407_v9, 16  ;;  %v4366_v16 = vor.u32 %v4365_v59, %v4362_v20  ;;  %v4422_v19 = vshrl.u32 %v4407_v9, 16  ;;  %14684 = vmatprep.subr.bf16.mxu0 %v15044_v15  ;;  %v18068_v8 = vld [vmem:[#allocation5 + $0x4] sm:$0xe] }
 0x2aa   : > { %v4377_v62 = vrot.slane %v4376_v18, 4  ;;  %v3774_v42 = vshrl.u32 %v3771_v21, 16  ;;  %v4411_v24 = vrot.slane %v4409_v46, 4  ;;  %v4414_v51 = vrot.slane %v4412_v40, 5  ;;  %v4765_v46 = vld [vmem:[#allocation5 + $0x1c] sm:$0x8] }
 0x2ab   : > { %v4850_v2 = vld [vmem:[#allocation5 + $0x24] sm:$0xe]  ;;  %v4420_v26 = vrot.slane %v4418_v31, 5  ;;  %v3777_v33 = vshll.u32 %v3771_v21, 16  ;;  %4214 = vrot.lane.b32.xlu1 %v4211_v53, %s21699_s24  ;;  %v4367_v36 = vrot.slane %v4366_v16, 4  ;;  %v4424_v39 = vrot.slane %v4422_v19, 4 }
 0x2ac   : > { %4852 = vst.msk [vmem:[#allocation6 + $0x74] sm:$0xe] %vm4542_vm11, %v4850_v2  ;;  %4380 = vrot.lane.b32.xlu0 %v4377_v62, %s21699_s24  ;;  %v3776_v45 = vrot.slane %v3774_v42, 5  ;;  %v3783_v14 = vshrl.u32 %v3772_v5, 16  ;;  %v4415_v34 = vor.u32 %v4414_v51, %v4411_v24  ;;  %v3786_v22 = vshll.u32 %v3772_v5, 16  ;;  %14685 = vmatpush3.bf16.msra.mxu0 %v15046_v32  ;;  %v15047_v62 = vld [vmem:[%s21639_s5 + $0xb8] sm:$0xff]  }
 0x2ad   : > { %v3779_v43 = vrot.slane %v3777_v33, 6  ;;  %v3743_v29 = vrot.slane %v3742_v25, 4  ;;  %v4372_v37 = vsel %vm16615_vm8, %v4367_v36, %v18023_v52  ;;  %v4425_v11 = vor.u32 %v4424_v39, %v4420_v26  ;;  %v4766_v2 = vld [vmem:[#allocation5 + $0x20] sm:$0x7]  ;;  %v4726_v24 = vld [vmem:[#allocation5 + $0x1c] sm:$0x7]  ;;  %14711 = vmatpush3.bf16.msra.mxu1 %v15047_v62 }
 0x2ae   : > { %v3785_v13 = vrot.slane %v3783_v14, 5  ;;  %v3745_v38 = vshrl.u32 %v3734_v58, 16  ;;  %v4416_v6 = vrot.slane %v4415_v34, 4  ;;  %v3788_v23 = vrot.slane %v3786_v22, 6  ;;  %v15051_v51 = vld [vmem:[%s21639_s5 + $0xf0] sm:$0xff]  }
 0x2af   : > { %v3780_v30 = vor.u32 %v3779_v43, %v3776_v45  ;;  %v3748_v10 = vshll.u32 %v3734_v58, 16  ;;  %4378 = vrot.lane.b32.xlu1 %v4372_v37, %s21699_s24  ;;  %v4426_v25 = vrot.slane %v4425_v11, 4  ;;  %v4601_v27 = vshrl.u32 %v4598_v50, 16  ;;  %v15052_v39 = vld [vmem:[%s21639_s5 + $0xb0] sm:$0xff]   ;;  %v3905_v22 = vld [vmem:[#allocation5 + $0x8] sm:$0xc]  ;;  %14712 = vmatprep.subr.bf16.mxu1 %v15051_v51 }
 0x2b0   : > { %v3747_v0 = vrot.slane %v3745_v38, 5  ;;  %v4604_v52 = vshll.u32 %v4598_v50, 16  ;;  %v4421_v49 = vsel %vm16615_vm8, %v4416_v6, %v4420_v26  ;;  %v3789_v41 = vor.u32 %v3788_v23, %v3785_v13  ;;  %v4725_v6 = vld [vmem:[#allocation5 + $0x18] sm:$0x8]  ;;  %v3906_v23 = vld [vmem:[#allocation5 + $0xc] sm:$0x3] }
 0x2b1   : > { %v3781_v9 = vrot.slane %v3780_v30, 4  ;;  %v3750_v35 = vrot.slane %v3748_v10, 6  ;;  %4427 = vrot.lane.b32.xlu0 %v4421_v49, %s21699_s24  ;;  %v4603_v7 = vrot.slane %v4601_v27, 5  ;;  %v4610_v21 = vshrl.u32 %v4599_v1, 16  ;;  %v4226_v32 = vld [vmem:[#allocation5 + $0x10] sm:$0x3]  ;;  %14713 = vmatpush3.bf16.msra.mxu1 %v15052_v39 }
 0x2b2   : > { %v4606_v57 = vrot.slane %v4604_v52, 6  ;;  %v4613_v28 = vshll.u32 %v4599_v1, 16  ;;  %v4552_v59 = vshrl.u32 %v4549_v17, 16  ;;  %v4555_v53 = vshll.u32 %v4549_v17, 16  ;;  %v18092_v1 = vld [vmem:[#allocation5 + $0x4] sm:$0xf] }
 0x2b3   : > { %v3790_v18 = vsel %vm16723_vm12, %v3781_v9, %v3789_v41  ;;  %v3751_v20 = vor.u32 %v3750_v35, %v3747_v0  ;;  %4429 = vrot.lane.b32.xlu1 %v4426_v25, %s21699_s24  ;;  %v4612_v31 = vrot.slane %v4610_v21, 5  ;;  %v4561_v44 = vshrl.u32 %v4550_v54, 16  ;;  %v3949_v52 = vld [vmem:[#allocation5 + $0xc] sm:$0xc]  ;;  %4230 = vst.msk [vmem:[#allocation6 + $0x40] sm:$0x3] %vm4192_vm13, %v4226_v32 }
 0x2b4   : > { %v4607_v40 = vor.u32 %v4606_v57, %v4603_v7  ;;  %v4615_v5 = vrot.slane %v4613_v28, 6  ;;  %v4554_v19 = vrot.slane %v4552_v59, 5  ;;  %v4557_v42 = vrot.slane %v4555_v53, 6  ;;  %v18096_v17 = vld [vmem:[#allocation5 + $0xc] sm:$0xc] }
 0x2b5   : > { %v3752_v16 = vsel %vm16723_vm12, %v3743_v29, %v3751_v20  ;;  %v4564_v15 = vshll.u32 %v4550_v54, 16  ;;  %3791 = vrot.lane.b32.xlu0 %v3790_v18, %s21699_s24  ;;  %v4563_v58 = vrot.slane %v4561_v44, 5  ;;  %v4768_v36 = vshrl.u32 %v4765_v46, 16  ;;  %v3950_v54 = vld [vmem:[#allocation5 + $0x10] sm:$0x3]  ;;  %v15053_v18 = vld [vmem:[%s21639_s5 + $0xe8] sm:$0xff]  }
 0x2b6   : > { %v4608_v26 = vrot.slane %v4607_v40, 4  ;;  %v4616_v33 = vor.u32 %v4615_v5, %v4612_v31  ;;  %v4558_v45 = vor.u32 %v4557_v42, %v4554_v19  ;;  %v4773_v34 = vshrl.u32 %v4766_v2, 16  ;;  %v15054_v40 = vld [vmem:[%s21639_s5 + $0xa8] sm:$0xff]   ;;  %v18111_v31 = vld [vmem:[#allocation5 + $0xc] sm:$0xe]  ;;  %14714 = vmatprep.subr.bf16.mxu1 %v15053_v18  ;;  %v15061_v18 = vld [vmem:[%s21639_s5 + $0xd8] sm:$0xff]  }
 0x2b7   : > { %v4566_v14 = vrot.slane %v4564_v15, 6  ;;  %v4776_v43 = vshll.u32 %v4766_v2, 16  ;;  %v21694_v29 = vrot.slane %v18068_v8, 6  ;;  %3753 = vrot.lane.b32.xlu1 %v3752_v16, %s21699_s24  ;;  %v4733_v4 = vshrl.u32 %v4726_v24, 16  ;;  %v18113_v44 = vld [vmem:[#allocation5 + $0x10] sm:$0x3]  ;;  %14715 = vmatpush3.bf16.msra.mxu1 %v15054_v40 }
 0x2b8   : > { %v4617_v50 = vsel %vm16723_vm12, %v4608_v26, %v4616_v33  ;;  %v4559_v37 = vrot.slane %v4558_v45, 4  ;;  %v18089_v13 = vrot.slane %v4773_v34, 6  ;;  %v4736_v30 = vshll.u32 %v4726_v24, 16  ;;  %v18121_v15 = vld [vmem:[#allocation5 + $0x10] sm:$0xc]  ;;  %v15055_v24 = vld [vmem:[%s21639_s5 + $0xe0] sm:$0xff]  }
 0x2b9   : > { %v4567_v11 = vor.u32 %v4566_v14, %v4563_v58  ;;  %v4778_v38 = vrot.slane %v4776_v43, 7  ;;  %4619 = vrot.lane.b32.xlu0 %v4617_v50, %s21699_s24  ;;  %v3908_v10 = vshll.u32 %v3905_v22, 16  ;;  %v4618_v0 = vrot.slane %v4616_v33, 4  ;;  %v4265_v43 = vld [vmem:[#allocation5 + $0x10] sm:$0x8]  ;;  %14716 = vmatprep.subr.bf16.mxu1 %v15055_v24  ;;  %v15062_v40 = vld [vmem:[%s21639_s5 + $0x98] sm:$0xff]  }
 0x2ba   : > { %v13311_v27 = vrot.slane %v4768_v36, 10  ;;  %v4735_v9 = vrot.slane %v4733_v4, 6  ;;  %v4728_v41 = vshrl.u32 %v4725_v6, 16  ;;  %v4738_v35 = vrot.slane %v4736_v30, 7  ;;  %v4348_v36 = vld [vmem:[#allocation5 + $0x10] sm:$0xc] }
 0x2bb   : > { %v4568_v25 = vsel %vm16723_vm12, %v4559_v37, %v4567_v11  ;;  %v4779_v49 = vor.u32 %v4778_v38, %v18089_v13  ;;  %v4569_v7 = vrot.slane %v4567_v11, 4  ;;  %v3911_v57 = vshrl.u32 %v3905_v22, 16  ;;  %4351 = vst.msk [vmem:[#allocation6 + $0x3c] sm:$0xc] %vm4187_vm9, %v4348_v36  ;;  %v15056_v22 = vld [vmem:[%s21639_s5 + $0xa0] sm:$0xff]  }
 0x2bc   : > { %4570 = vrot.lane.b32.xlu1 %v4568_v25, %s21699_s24  ;;  %v3917_v21 = vshrl.u32 %v3906_v23, 16  ;;  %v3920_v28 = vshll.u32 %v3906_v23, 16  ;;  %v18105_v20 = vrot.slane %v3908_v10, 7  ;;  %v3952_v59 = vshll.u32 %v3949_v52, 16  ;;  %14717 = vmatpush3.bf16.msra.mxu1 %v15056_v22 }
 0x2bd   : > { %4621 = vrot.lane.b32.xlu0 %v4618_v0, %s21699_s24  ;;  %v3955_v53 = vshrl.u32 %v3949_v52, 16  ;;  %v4104_v46 = vshrl.u32 %v18096_v17, 16  ;;  %v3913_v5 = vrot.slane %v3911_v57, 6  ;;  %v3811_v2 = vrot.slane %v18092_v1, 5  ;;  %v4266_v0 = vld [vmem:[#allocation5 + $0x14] sm:$0x7]  ;;  %14718 = vmatprep.subr.bf16.mxu1 %v15061_v18 }
 0x2be   : > { %v4780_v62 = vsel %vm16682_vm3, %v13311_v27, %v4779_v49  ;;  %v4739_v16 = vor.u32 %v4738_v35, %v4735_v9  ;;  %v18119_v19 = vrot.slane %v3952_v59, 7  ;;  %v3919_v51 = vrot.slane %v3917_v21, 6  ;;  %v18145_v52 = vld [vmem:[#allocation5 + $0x14] sm:$0x3]  ;;  %v4453_v35 = vld [vmem:[#allocation5 + $0x18] sm:$0x7] }
 0x2bf   : > { %v3957_v42 = vrot.slane %v3955_v53, 6  ;;  %v3922_v26 = vrot.slane %v3920_v28, 7  ;;  %v3961_v33 = vshrl.u32 %v3950_v54, 16  ;;  %v3964_v58 = vshll.u32 %v3950_v54, 16  ;;  %v18155_v28 = vld [vmem:[%s21639_s5 + $0x118] sm:$0xff]  }
 0x2c0   : > { %4572 = vrot.lane.b32.xlu1 %v4569_v7, %s21699_s24  ;;  %v4741_v39 = vrot.slane %v4735_v9, 4  ;;  %v13310_v45 = vrot.slane %v4728_v41, 10  ;;  %v3914_v14 = vor.u32 %v3913_v5, %v18105_v20  ;;  %v18128_v34 = vrot.slane %v4104_v46, 7  ;;  %v4302_v41 = vld [vmem:[#allocation5 + $0x14] sm:$0x8]  ;;  %14802 = vmatprep.subr.bf16.mxu0 %v18155_v28 }
 0x2c1   : > { %4782 = vrot.lane.b32.xlu0 %v4780_v62, %s21699_s24  ;;  %v3958_v50 = vor.u32 %v3957_v42, %v18119_v19  ;;  %v3963_v4 = vrot.slane %v3961_v33, 6  ;;  %v3966_v37 = vrot.slane %v3964_v58, 7  ;;  %v4112_v11 = vshrl.u32 %v18113_v44, 16  ;;  %14719 = vmatpush3.bf16.msra.mxu1 %v15062_v40 }
 0x2c2   : > { %v3939_v38 = vrot.slane %v18111_v31, 6  ;;  %v4781_v6 = vrot.slane %v18089_v13, 4  ;;  %v4107_v30 = vshll.u32 %v18096_v17, 16  ;;  %v4146_v23 = vshrl.u32 %v18121_v15, 16 }
 0x2c3   : > { %v4740_v10 = vsel %vm16682_vm3, %v13310_v45, %v4739_v16  ;;  %v3923_v32 = vor.u32 %v3922_v26, %v3919_v51  ;;  %v14866_v25 = vpack.i.bf16 %v18119_v19, %v18105_v20  ;;  %v4268_v27 = vshrl.u32 %v4265_v43, 16  ;;  %v4303_v16 = vld [vmem:[#allocation5 + $0x18] sm:$0x7]  ;;  %v15064_v26 = vld [vmem:[%s21639_s5 + $0xd0] sm:$0xff]  }
 0x2c4   : > { %4744 = vrot.lane.b32.xlu1 %v4741_v39, %s21699_s24  ;;  %v4109_v13 = vor.u32 %v4107_v30, %v18128_v34  ;;  %v3967_v49 = vor.u32 %v3966_v37, %v3963_v4  ;;  %v4114_v17 = vrot.slane %v4112_v11, 7  ;;  %v4271_v9 = vshll.u32 %v4265_v43, 16  ;;  %v4452_v39 = vld [vmem:[#allocation5 + $0x14] sm:$0x8]  ;;  %14720 = vmatprep.subr.bf16.mxu1 %v15064_v26  ;;  %v18183_v30 = vld [vmem:[#allocation5 + $0x18] sm:$0x3] }
 0x2c5   : > { %4784 = vrot.lane.b32.xlu0 %v4781_v6, %s21699_s24  ;;  %v3915_v54 = vrot.slane %v3914_v14, 4  ;;  %v3959_v7 = vrot.slane %v3958_v50, 4  ;;  %v4115_v57 = vshll.u32 %v18113_v44, 16  ;;  %v18150_v21 = vrot.slane %v4146_v23, 7  ;;  %v4495_v50 = vld [vmem:[#allocation5 + $0x1c] sm:$0x7]  ;;  %14721 = vmatpush3.bf16.msra.mxu1 %v15065_v48 }
 0x2c6   : > { %v4149_v20 = vshll.u32 %v18121_v15, 16  ;;  %v4270_v59 = vrot.slane %v4268_v27, 4  ;;  %v4273_v53 = vrot.slane %v4271_v9, 5  ;;  %v4154_v46 = vshrl.u32 %v18145_v52, 16  ;;  %v18185_v23 = vld [vmem:[#allocation5 + $0x18] sm:$0x7] }
 0x2c7   : > { %v3924_v5 = vsel %vm16682_vm3, %v3915_v54, %v3923_v32  ;;  %v4277_v44 = vshll.u32 %v4266_v0, 16  ;;  %v4281_v62 = vshrl.u32 %v4266_v0, 16  ;;  %v4305_v19 = vshrl.u32 %v4302_v41, 16  ;;  %v15068_v54 = vld [vmem:[%s21639_s5 + $0xc8] sm:$0xff]  }
 0x2c8   : > { %4742 = vrot.lane.b32.xlu1 %v4740_v10, %s21699_s24  ;;  %v3968_v42 = vsel %vm16682_vm3, %v3959_v7, %v3967_v49  ;;  %v4110_v15 = vrot.slane %v18128_v34, 4  ;;  %v4117_v24 = vor.u32 %v4115_v57, %v4114_v17  ;;  %v4308_v51 = vshll.u32 %v4302_v41, 16  ;;  %v18187_v10 = vld [vmem:[#allocation5 + $0x1c] sm:$0x7]  ;;  %v18195_v7 = vld [vmem:[#allocation5 + $0x20] sm:$0x7]  ;;  %14722 = vmatprep.subr.bf16.mxu1 %v15068_v54 }
 0x2c9   : > { %3927 = vrot.lane.b32.xlu0 %v3924_v5, %s21699_s24  ;;  %v4151_v33 = vor.u32 %v4149_v20, %v18150_v21  ;;  %v4157_v58 = vshll.u32 %v18145_v52, 16  ;;  %v4307_v36 = vrot.slane %v4305_v19, 4  ;;  %v4460_v45 = vshrl.u32 %v4453_v35, 16  ;;  %v4494_v52 = vld [vmem:[#allocation5 + $0x18] sm:$0x8]  ;;  %v15070_v20 = vld [vmem:[%s21639_s5 + $0x88] sm:$0xff]  }
 0x2ca   : > { %v4274_v14 = vor.u32 %v4273_v53, %v4270_v59  ;;  %v4156_v34 = vrot.slane %v4154_v46, 7  ;;  %v4310_v43 = vrot.slane %v4308_v51, 5  ;;  %v4314_v22 = vshll.u32 %v4303_v16, 16  ;;  %v4644_v49 = vld [vmem:[#allocation5 + $0x1c] sm:$0xf]  ;;  %14723 = vmatpush3.bf16.msra.mxu1 %v15070_v20 }
 0x2cb   : > { %v4279_v4 = vrot.slane %v4277_v44, 5  ;;  %v4152_v37 = vrot.slane %v18150_v21, 4  ;;  %v4283_v11 = vrot.slane %v4281_v62, 4  ;;  %v4463_v6 = vshll.u32 %v4453_v35, 16  ;;  %v18205_v5 = vld [vmem:[#allocation5 + $0x20] sm:$0xf] }
 0x2cc   : > { %14867 = vrot.lane.b32.xlu1 %v14866_v25, %s21699_s24  ;;  %v4118_v32 = vsel %vm16670_vm1, %v4110_v15, %v4117_v24  ;;  %v4311_v25 = vor.u32 %v4310_v43, %v4307_v36  ;;  %v4462_v0 = vrot.slane %v4460_v45, 5  ;;  %v4318_v27 = vshrl.u32 %v4303_v16, 16  ;;  %v4260_v15 = vld [vmem:[#allocation5 + $0x14] sm:$0x3]  ;;  %v4297_v36 = vld [vmem:[#allocation5 + $0x18] sm:$0x3] }
 0x2cd   : > { %4119 = vrot.lane.b32.xlu0 %v4109_v13, %s21699_s24  ;;  %v4455_v17 = vshrl.u32 %v4452_v39, 16  ;;  %v4465_v9 = vrot.slane %v4463_v6, 6  ;;  %v4502_v41 = vshrl.u32 %v4495_v50, 16  ;;  %v4505_v35 = vshll.u32 %v4495_v50, 16  ;;  %4264 = vst.msk [vmem:[#allocation6 + $0x44] sm:$0x3] %vm4192_vm13, %v4260_v15 }
 0x2ce   : > { %v4275_v13 = vrot.slane %v4274_v14, 4  ;;  %v4159_v57 = vor.u32 %v4157_v58, %v4156_v34  ;;  %v18198_v21 = vrot.slane %v4314_v22, 5  ;;  %v4320_v18 = vrot.slane %v4318_v27, 4  ;;  %v3798_v34 = vld [vmem:[#allocation5 + $0xc] sm:$0x3] }
 0x2cf   : > { %vm21695_vm3 = vcmask 518144   ;;  %v4284_v59 = vor.u32 %v4283_v11, %v4279_v4  ;;  %v18203_v53 = vrot.slane %v4311_v25, 4  ;;  %v4497_v46 = vshrl.u32 %v4494_v52, 16  ;;  %v18222_v43 = vld [vmem:[#allocation5 + $0xc] sm:$0xc] }
 0x2d0   : > { %3971 = vrot.lane.b32.xlu1 %v3968_v42, %s21699_s24  ;;  %v4646_v40 = vshrl.u32 %v4644_v49, 16  ;;  %v18208_v44 = vor.u32 %v4465_v9, %v4462_v0  ;;  %v4504_v62 = vrot.slane %v4502_v41, 5  ;;  %v4507_v16 = vrot.slane %v4505_v35, 6  ;;  %v3797_v42 = vld [vmem:[#allocation5 + $0x8] sm:$0xc] }
 0x2d1   : > { %4121 = vrot.lane.b32.xlu0 %v4118_v32, %s21699_s24  ;;  %v4649_v19 = vshll.u32 %v4644_v49, 16  ;;  %v4537_v24 = vrot.slane %v18183_v30, 5  ;;  %v4589_v51 = vrot.slane %v18185_v23, 6  ;;  %v4635_v26 = vrot.slane %v18187_v10, 6  ;;  %4301 = vst.msk [vmem:[#allocation6 + $0x48] sm:$0x3] %vm4192_vm13, %v4297_v36 }
 0x2d2   : > { %v4670_v58 = vrot.slane %v18195_v7, 6  ;;  %v4160_v39 = vsel %vm16670_vm1, %v4152_v37, %v4159_v57  ;;  %v18218_v45 = vrot.slane %v4455_v17, 9  ;;  %v4321_v48 = vor.u32 %v4320_v18, %v18198_v21  ;;  %v18233_v37 = vld [vmem:[#allocation5 + $0x20] sm:$0xf]  ;;  %v3806_v11 = vld [vmem:[#allocation6 + $0x10] sm:$0xf] }
 0x2d3   : > { %v4681_v14 = vshrl.u32 %v18205_v5, 16  ;;  %v4280_v22 = vsel %vm16615_vm8, %v4275_v13, %v4279_v4  ;;  %v4285_v50 = vrot.slane %v4284_v59, 4  ;;  %v4317_v63 = vsel %vm16615_vm8, %v18203_v53, %v18198_v21  ;;  %v3980_v0 = vld [vmem:[#allocation5 + $0x10] sm:$0x3]  ;;  %v3993_v27 = vld [vmem:[#allocation5 + $0x8] sm:$0xe] }
 0x2d4   : > { %4161 = vrot.lane.b32.xlu1 %v4151_v33, %s21699_s24  ;;  %v18231_v33 = vrot.slane %v4497_v46, 9  ;;  %v4467_v6 = vsel %vm16723_vm12, %v18218_v45, %v18208_v44  ;;  %v18240_v32 = vor.u32 %v4507_v16, %v4504_v62  ;;  %v4648_v4 = vrot.slane %v4646_v40, 6  ;;  %v3852_v41 = vld [vmem:[#allocation5 + $0x8] sm:$0x1]  ;;  %v4043_v35 = vld [vmem:[#allocation5 + $0x8] sm:$0xc] }
 0x2d5   : > { %4286 = vrot.lane.b32.xlu0 %v4280_v22, %s21699_s24  ;;  %v4651_v25 = vrot.slane %v4649_v19, 7  ;;  %v4468_v52 = vrot.slane %v18208_v44, 4  ;;  %v13298_v49 = vrot.slane %v3797_v42, 10  ;;  %v3803_v17 = vrot.slane %v3798_v34, 6  ;;  %v18246_v54 = vld [vmem:[#allocation5 + $0xc] sm:$0x3] }
 0x2d6   : > { %v3983_v9 = vrot.slane %v18222_v43, 7  ;;  %v4322_v13 = vrot.slane %v4321_v48, 4  ;;  %v18249_v57 = vrot.slane %v4681_v14, 6  ;;  %v4684_v21 = vshll.u32 %v18205_v5, 16  ;;  %v4172_v20 = vld [vmem:[#allocation5 + $0x14] sm:$0x7] }
 0x2d7   : > { %v4804_v18 = vshrl.u32 %v18233_v37, 16  ;;  %v4174_v59 = vld [vmem:[#allocation6 + $0x38] sm:$0x7]  ;;  %v15072_v53 = vld [vmem:[%s21639_s5 + $0xc0] sm:$0xff]   ;;  %v3804_v40 = vsel %vm16639_vm10, %v13298_v49, %v3803_v17  ;;  %v3985_v16 = vrot.slane %v3980_v0, 7  ;;  %v3812_v5 = vrot.slane %v3811_v2, 4 }
 0x2d8   : > { %4163 = vrot.lane.b32.xlu1 %v4160_v39, %s21699_s24  ;;  %v15073_v46 = vld [vmem:[%s21639_s5 + $0x80] sm:$0xff]   ;;  %v3984_v62 = vrot.slane %v3983_v9, 4  ;;  %v18265_v19 = vld [vmem:[#allocation5 + $0x18] sm:$0x7]  ;;  %v4509_v42 = vsel %vm16723_vm12, %v18231_v33, %v18240_v32  ;;  %v18272_v15 = vor.u32 %v4651_v25, %v4648_v4  ;;  %v4510_v36 = vrot.slane %v18240_v32, 4  ;;  %14724 = vmatprep.subr.bf16.mxu1 %v15072_v53 }
 0x2d9   : > { %4288 = vrot.lane.b32.xlu0 %v4285_v50, %s21699_s24  ;;  %v3807_v39 = vsel %vm17917_vm14, %v3804_v40, %v3806_v11  ;;  %v18277_v48 = vld [vmem:[#allocation5 + $0xc] sm:$0xe]  ;;  %v18279_v14 = vld [vmem:[#allocation5 + $0x10] sm:$0x1]  ;;  %v4354_v34 = vld [vmem:[#allocation6 + $0x50] sm:$0x3]  ;;  %14725 = vmatpush3.bf16.msra.mxu1 %v15073_v46 }
 0x2da   : > { %v4807_v22 = vshll.u32 %v18233_v37, 16  ;;  %3808 = vst [vmem:[#allocation6 + $0x10] sm:$0xf] %v3807_v39  ;;  %v3986_v50 = vsel %vm16603_vm5, %v3984_v62, %v3985_v16  ;;  %3821 = vst.msk [vmem:[#allocation6 + $0x14] sm:$0x7] %vm21695_vm3, %v3812_v5  ;;  %v3997_v4 = vrot.slane %v3993_v27, 6 }
 0x2db   : > { %v3999_v25 = vrot.slane %v18242_v55, 6  ;;  %vm21867_vm8 = vsmask.f32 2304  ;;  %v4007_v0 = vld [vmem:[#allocation6 + $0x28] sm:$0x7]  ;;  %v3856_v17 = vrot.slane %v21694_v29, 4 }
 0x2dc   : > { %vm18288_vm1 = vmand %vm21695_vm3, %vm21867_vm8  ;;  %v4349_v49 = vld [vmem:[#allocation5 + $0x14] sm:$0x3]  ;;  %4323 = vrot.lane.b32.xlu1 %v4317_v63, %s21699_s24  ;;  %3992 = vst.msk [vmem:[#allocation6 + $0x24] sm:$0x7] %vm21695_vm3, %v3986_v50  ;;  %v3857_v53 = vrot.slane %v3852_v41, 6  ;;  %v4047_v27 = vrot.slane %v4043_v35, 7 }
 0x2dd   : > { %v4049_v55 = vrot.slane %v18246_v54, 7  ;;  %v4054_v40 = vld [vmem:[#allocation6 + $0x2c] sm:$0x7]  ;;  %vm18299_vm8 = vmand %vm4192_vm13, %vm21870_vm2  ;;  %v4521_v16 = vld [vmem:[#allocation5 + $0x1c] sm:$0xf]  ;;  %v4686_v46 = vrot.slane %v4684_v21, 7  ;;  %v4175_v41 = vsel %vm18288_vm1, %v4172_v20, %v4174_v59  ;;  %4469 = vrot.lane.b32.xlu0 %v4467_v6, %s21699_s24 }
 0x2de   : > { %v18303_v5 = vrot.slane %v4804_v18, 7  ;;  %v18305_v63 = vld [vmem:[#allocation5 + $0x24] sm:$0xf]  ;;  %v3998_v39 = vrot.slane %v3997_v4, 4  ;;  %4004 = vst.msk [vmem:[#allocation6 + $0x14] sm:$0x8] %vm3815_vm0, %v3997_v4  ;;  %v3858_v35 = vsel %vm16639_vm10, %v3856_v17, %v3857_v53  ;;  %v4355_v6 = vsel %vm18299_vm8, %v4349_v49, %v4354_v34 }
 0x2df   : > { %v4048_v54 = vrot.slane %v4047_v27, 4  ;;  %4053 = vst.msk [vmem:[#allocation6 + $0x18] sm:$0x8] %vm3815_vm0, %v4047_v27  ;;  %4176 = vst [vmem:[#allocation6 + $0x38] sm:$0x7] %v4175_v41  ;;  %v4339_v18 = vrot.slane %v18265_v19, 5  ;;  %v18359_v44 = vor.u32 %v4686_v46, %v18249_v57 }
 0x2e0   : > { %v4333_v21 = vld [vmem:[#allocation5 + $0x14] sm:$0x8]  ;;  %v21696_v50 = vrot.slane %v18277_v48, 7  ;;  %v4528_v20 = vld [vmem:[#allocation6 + $0x60] sm:$0x3]  ;;  %v4000_v59 = vsel %vm16639_vm10, %v3998_v39, %v3999_v25  ;;  %v4183_v45 = vrot.slane %v18279_v14, 7  ;;  %4325 = vrot.lane.b32.xlu1 %v4322_v13, %s21699_s24  ;;  %v18380_v43 = vor.u32 %v4807_v22, %v18303_v5 }
 0x2e1   : > { %3864 = vst.msk [vmem:[#allocation6 + $0x18] sm:$0x7] %vm21695_vm3, %v3858_v35  ;;  %v4523_v4 = vrot.slane %v4521_v16, 6  ;;  %v4391_v17 = vld [vmem:[#allocation5 + $0x10] sm:$0x8]  ;;  %v4833_v19 = vshrl.u32 %v18305_v63, 16  ;;  %v4050_v25 = vsel %vm16603_vm5, %v4048_v54, %v4049_v55  ;;  %v4008_v14 = vsel %vm18288_vm1, %v4000_v59, %v4007_v0  ;;  %4471 = vrot.lane.b32.xlu0 %v4468_v52, %s21699_s24 }
 0x2e2   : > { %v4392_v53 = vld [vmem:[#allocation5 + $0x14] sm:$0x7]  ;;  %vm21873_vm2 = vsmask.f32 7950  ;;  %v4341_v34 = vrot.slane %v4339_v18, 4  ;;  %v4836_v13 = vshll.u32 %v18305_v63, 16  ;;  %v4055_v41 = vsel %vm18288_vm1, %v4050_v25, %v4054_v40 }
 0x2e3   : > { %vm18331_vm7 = vmand %vm3815_vm0, %vm21873_vm2  ;;  %4356 = vst [vmem:[#allocation6 + $0x50] sm:$0x3] %v4355_v6  ;;  %v3759_v49 = vld [vmem:[#allocation5 + $0x8] sm:$0xe]  ;;  %v3760_v16 = vld [vmem:[#allocation5 + $0xc] sm:$0x1] }
 0x2e4   : > { %v3721_v39 = vld [vmem:[#allocation5 + $0x4] sm:$0xe]  ;;  %4009 = vst [vmem:[#allocation6 + $0x28] sm:$0x7] %v4008_v14  ;;  %v4182_v35 = vrot.slane %v21696_v50, 4  ;;  %v4524_v29 = vrot.slane %v4523_v4, 4  ;;  %4511 = vrot.lane.b32.xlu1 %v4509_v42, %s21699_s24 }
 0x2e5   : > { %4527 = vst.msk [vmem:[#allocation6 + $0x4c] sm:$0xc] %vm4187_vm9, %v4523_v4  ;;  %v4403_v55 = vld [vmem:[#allocation6 + $0x54] sm:$0x3]  ;;  %v3722_v54 = vld [vmem:[#allocation5 + $0x8] sm:$0x1]  ;;  %4654 = vrot.lane.b32.xlu0 %v18272_v15, %s21699_s24 }
 0x2e6   : > { %v4653_v0 = vrot.slane %v18272_v15, 4  ;;  %v3989_v59 = vld [vmem:[#allocation6 + $0x10] sm:$0x8]  ;;  %4056 = vst [vmem:[#allocation6 + $0x2c] sm:$0x7] %v4055_v41  ;;  %v13299_v6 = vrot.slane %v4333_v21, 9  ;;  %v4184_v41 = vsel %vm16603_vm5, %v4182_v35, %v4183_v45  ;;  %v4529_v21 = vsel %vm18299_vm8, %v4524_v29, %v4528_v20 }
 0x2e7   : > { %vm21876_vm2 = vsmask.f32 7946  ;;  %4347 = vst.msk [vmem:[#allocation6 + $0x4c] sm:$0x3] %vm4192_vm13, %v4341_v34  ;;  %v13300_v4 = vrot.slane %v4391_v17, 9  ;;  %v4397_v25 = vrot.slane %v4392_v53, 5  ;;  %v3990_v52 = vsel %vm18331_vm7, %v3983_v9, %v3989_v59 }
 0x2e8   : > { %vm18351_vm3 = vmand %vm4187_vm9, %vm21876_vm2  ;;  %v18356_v14 = vld [vmem:[#allocation5 + $0x20] sm:$0xf]  ;;  %v3768_v50 = vld [vmem:[#allocation6 + $0xc] sm:$0xf]  ;;  %3991 = vst [vmem:[#allocation6 + $0x10] sm:$0x8] %v3990_v52  ;;  %v4340_v29 = vsel %vm16664_vm15, %v13299_v6, %v4339_v18  ;;  %4513 = vrot.lane.b32.xlu1 %v4510_v36, %s21699_s24 }
 0x2e9   : > { %v3730_v34 = vld [vmem:[#allocation6 + $0x8] sm:$0xf]  ;;  %v4755_v17 = vld [vmem:[#allocation5 + $0x1c] sm:$0xf]  ;;  %4193 = vst.msk [vmem:[#allocation6 + $0x3c] sm:$0x3] %vm4192_vm13, %v4184_v41  ;;  %v4398_v9 = vsel %vm16664_vm15, %v13300_v4, %v4397_v25  ;;  %4656 = vrot.lane.b32.xlu0 %v4653_v0, %s21699_s24 }
 0x2ea   : > { %v18369_v53 = vld [vmem:[#allocation5 + $0x1c] sm:$0x7]  ;;  %4530 = vst [vmem:[#allocation6 + $0x60] sm:$0x3] %v4529_v21  ;;  %v4399_v12 = vrot.slane %v4397_v25, 4  ;;  %v13297_v37 = vrot.slane %v3759_v49, 9 }
 0x2eb   : > { %v4709_v57 = vld [vmem:[#allocation5 + $0x18] sm:$0x8]  ;;  %v18387_v46 = vld [vmem:[#allocation5 + $0x8] sm:$0xe]  ;;  %v4344_v33 = vld [vmem:[#allocation6 + $0x38] sm:$0xc] }
 0x2ec   : > { %4402 = vst.msk [vmem:[#allocation6 + $0x40] sm:$0xc] %vm4187_vm9, %v4398_v9  ;;  %v3765_v42 = vrot.slane %v3760_v16, 5  ;;  %v3727_v22 = vrot.slane %v3722_v54, 5  ;;  %v13296_v20 = vrot.slane %v3721_v39, 9  ;;  %v18392_v18 = vrot.slane %v4833_v19, 7  ;;  %4689 = vrot.lane.b32.xlu1 %v18359_v44, %s21699_s24 }
 0x2ed   : > { %v4345_v45 = vsel %vm18351_vm3, %v4340_v29, %v4344_v33  ;;  %v4404_v35 = vsel %vm18299_vm8, %v4399_v12, %v4403_v55  ;;  %v4591_v59 = vrot.slane %v4589_v51, 4  ;;  %v3892_v6 = vld [vmem:[#allocation5 + $0xc] sm:$0x1]  ;;  %v4087_v4 = vld [vmem:[#allocation5 + $0xc] sm:$0xc]  ;;  %v4701_v16 = vrot.slane %v18356_v14, 7  ;;  %4811 = vrot.lane.b32.xlu0 %v18380_v43, %s21699_s24 }
 0x2ee   : > { %4346 = vst [vmem:[#allocation6 + $0x38] sm:$0xc] %v4345_v45  ;;  %4405 = vst [vmem:[#allocation6 + $0x54] sm:$0x3] %v4404_v35  ;;  %v3766_v49 = vsel %vm16664_vm15, %v13297_v37, %v3765_v42  ;;  %v3728_v19 = vsel %vm16664_vm15, %v13296_v20, %v3727_v22  ;;  %v4539_v39 = vrot.slane %v4537_v24, 4  ;;  %v4757_v14 = vrot.slane %v4755_v17, 7 }
 0x2ef   : > { %v4722_v54 = vld [vmem:[#allocation6 + $0x78] sm:$0x1]  ;;  %v4762_v55 = vld [vmem:[#allocation6 + $0x7c] sm:$0x1]  ;;  %v4088_v25 = vld [vmem:[#allocation5 + $0x10] sm:$0x3]  ;;  %v3769_v41 = vsel %vm17917_vm14, %v3766_v49, %v3768_v50  ;;  %v3731_v21 = vsel %vm17917_vm14, %v3728_v19, %v3730_v34 }
 0x2f0   : > { %v3936_v52 = vld [vmem:[#allocation5 + $0x10] sm:$0x1]  ;;  %4597 = vst.msk [vmem:[#allocation6 + $0x68] sm:$0x1] %vm3664_vm4, %v4591_v59  ;;  %v4715_v29 = vrot.slane %v18369_v53, 6  ;;  %v4702_v32 = vrot.slane %v4701_v16, 4 }
 0x2f1   : > { %v4129_v9 = vld [vmem:[#allocation5 + $0x10] sm:$0xc]  ;;  %v18416_v12 = vld [vmem:[#allocation5 + $0x14] sm:$0x3]  ;;  %vm21879_vm12 = vsmask.f32 7942 }
 0x2f2   : > { %vm18420_vm13 = vmand %vm4542_vm11, %vm21879_vm12  ;;  %3770 = vst [vmem:[#allocation6 + $0xc] sm:$0xf] %v3769_v41  ;;  %v13309_v60 = vrot.slane %v4709_v57, 10  ;;  %v3895_v36 = vrot.slane %v18387_v46, 6  ;;  %v3897_v50 = vrot.slane %v3892_v6, 6  ;;  %v4758_v53 = vrot.slane %v4757_v14, 4 }
 0x2f3   : > { %3732 = vst [vmem:[#allocation6 + $0x8] sm:$0xf] %v3731_v21  ;;  %4548 = vst.msk [vmem:[#allocation6 + $0x64] sm:$0x1] %vm3664_vm4, %v4539_v39  ;;  %v4437_v34 = vld [vmem:[#allocation5 + $0x14] sm:$0x8] }
 0x2f4   : > { %v4438_v17 = vld [vmem:[#allocation5 + $0x18] sm:$0x7]  ;;  %4761 = vst.msk [vmem:[#allocation6 + $0x68] sm:$0xe] %vm4542_vm11, %v4757_v14  ;;  %v4717_v37 = vrot.slane %v4715_v29, 4  ;;  %v4091_v42 = vrot.slane %v4087_v4, 7  ;;  %v4716_v57 = vsel %vm16639_vm10, %v13309_v60, %v4715_v29  ;;  %v4763_v49 = vsel %vm18019_vm6, %v4758_v53, %v4762_v55 }
 0x2f5   : > { %v4093_v22 = vrot.slane %v4088_v25, 7  ;;  %v4098_v20 = vld [vmem:[#allocation6 + $0x30] sm:$0x7]  ;;  %v4705_v45 = vld [vmem:[#allocation6 + $0x60] sm:$0xe]  ;;  %v3896_v35 = vrot.slane %v3895_v36, 4 }
 0x2f6   : > { %4708 = vst.msk [vmem:[#allocation6 + $0x74] sm:$0x1] %vm3664_vm4, %v4702_v32  ;;  %v3940_v15 = vrot.slane %v3939_v38, 4  ;;  %v3941_v0 = vrot.slane %v3936_v52, 6  ;;  %v4853_v59 = vld [vmem:[#allocation6 + $0x88] sm:$0x1]  ;;  %v4706_v6 = vsel %vm18420_vm13, %v4701_v16, %v4705_v45  ;;  %v4723_v4 = vsel %vm18019_vm6, %v4717_v37, %v4722_v54 }
 0x2f7   : > { %4721 = vst.msk [vmem:[#allocation6 + $0x64] sm:$0xe] %vm4542_vm11, %v4716_v57  ;;  %v4092_v19 = vrot.slane %v4091_v42, 4  ;;  %v4479_v39 = vld [vmem:[#allocation5 + $0x18] sm:$0x8]  ;;  %v3898_v52 = vsel %vm16639_vm10, %v3896_v35, %v3897_v50  ;;  %v4133_v54 = vrot.slane %v4129_v9, 7 }
 0x2f8   : > { %4097 = vst.msk [vmem:[#allocation6 + $0x1c] sm:$0x8] %vm3815_vm0, %v4091_v42  ;;  %v4851_v25 = vld [vmem:[#allocation5 + $0x28] sm:$0x1]  ;;  %4707 = vst [vmem:[#allocation6 + $0x60] sm:$0xe] %v4706_v6  ;;  %v3942_v16 = vsel %vm16639_vm10, %v3940_v15, %v3941_v0 }
 0x2f9   : > { %4724 = vst [vmem:[#allocation6 + $0x78] sm:$0x1] %v4723_v4  ;;  %4764 = vst [vmem:[#allocation6 + $0x7c] sm:$0x1] %v4763_v49  ;;  %v4135_v41 = vrot.slane %v18416_v12, 7  ;;  %v4688_v14 = vrot.slane %v18359_v44, 4  ;;  %v4094_v29 = vsel %vm16603_vm5, %v4092_v19, %v4093_v22  ;;  %v4838_v22 = vor.u32 %v4836_v13, %v18392_v18 }
 0x2fa   : > { %v4140_v55 = vld [vmem:[#allocation6 + $0x34] sm:$0x7]  ;;  %v4480_v21 = vld [vmem:[#allocation5 + $0x1c] sm:$0x7]  ;;  %vm21882_vm14 = vcmask 518144   ;;  %v13301_v32 = vrot.slane %v4437_v34, 9  ;;  %v4099_v12 = vsel %vm18288_vm1, %v4094_v29, %v4098_v20  ;;  %v4854_v34 = vsel %vm18019_vm6, %v4851_v25, %v4853_v59 }
 0x2fb   : > { %3904 = vst.msk [vmem:[#allocation6 + $0x1c] sm:$0x7] %vm21882_vm14, %v3898_v52  ;;  %vm21883_vm2 = vmmov %vm21882_vm14  ;;  %v4443_v60 = vrot.slane %v4438_v17, 5  ;;  %v4449_v50 = vld [vmem:[#allocation6 + $0x58] sm:$0x3]  ;;  %v4810_v9 = vrot.slane %v18303_v5, 4  ;;  %4691 = vrot.lane.b32.xlu1 %v4688_v14, %s21699_s24 }
 0x2fc   : > { %3948 = vst.msk [vmem:[#allocation6 + $0x20] sm:$0x7] %vm21883_vm2, %v3942_v16  ;;  %v4134_v53 = vrot.slane %v4133_v54, 4  ;;  %v13303_v43 = vrot.slane %v4479_v39, 9  ;;  %4100 = vst [vmem:[#allocation6 + $0x30] sm:$0x7] %v4099_v12  ;;  %v3686_v16 = vpop.permute.xlu0 %3685 }
 0x2fd   : > { %4139 = vst.msk [vmem:[#allocation6 + $0x20] sm:$0x8] %vm3815_vm0, %v4133_v54  ;;  %v4444_v44 = vsel %vm16664_vm15, %v13301_v32, %v4443_v60  ;;  %v4445_v37 = vrot.slane %v4443_v60, 4  ;;  %v4485_v42 = vrot.slane %v4480_v21, 5  ;;  %v4792_v17 = vld [vmem:[#allocation5 + $0x20] sm:$0xf]  ;;  %4813 = vrot.lane.b32.xlu0 %v4810_v9, %s21699_s24 }
 0x2fe   : > { %v4821_v5 = vld [vmem:[#allocation5 + $0x24] sm:$0xf]  ;;  %v4136_v20 = vsel %vm16603_vm5, %v4134_v53, %v4135_v41  ;;  %4448 = vst.msk [vmem:[#allocation6 + $0x44] sm:$0xc] %vm4187_vm9, %v4444_v44  ;;  %v4491_v45 = vld [vmem:[#allocation6 + $0x5c] sm:$0x3] }
 0x2ff   : > { %v4637_v57 = vrot.slane %v4635_v26, 4  ;;  %4855 = vst [vmem:[#allocation6 + $0x88] sm:$0x1] %v4854_v34  ;;  %v4141_v35 = vsel %vm18288_vm1, %v4136_v20, %v4140_v55  ;;  %v4450_v15 = vsel %vm18299_vm8, %v4445_v37, %v4449_v50  ;;  %v4486_v63 = vsel %vm16664_vm15, %v13303_v43, %v4485_v42  ;;  %4840 = vrot.lane.b32.xlu1 %v4838_v22, %s21699_s24  ;;  %v4799_v6 = vld [vmem:[#allocation6 + $0x80] sm:$0x1] }
 0x300   : > { %v4487_v56 = vrot.slane %v4485_v42, 4  ;;  %4142 = vst [vmem:[#allocation6 + $0x34] sm:$0x7] %v4141_v35  ;;  %4451 = vst [vmem:[#allocation6 + $0x58] sm:$0x3] %v4450_v15  ;;  %v4794_v13 = vrot.slane %v4792_v17, 7  ;;  %v3716_v55 = vpop.permute.xlu0 %3715 }
 0x301   : > { %4490 = vst.msk [vmem:[#allocation6 + $0x48] sm:$0xc] %vm4187_vm9, %v4486_v63  ;;  %v4672_v0 = vrot.slane %v4670_v58, 4  ;;  %v4823_v59 = vrot.slane %v4821_v5, 7  ;;  %v4828_v4 = vld [vmem:[#allocation6 + $0x84] sm:$0x1] }
 0x302   : > { %4643 = vst.msk [vmem:[#allocation6 + $0x6c] sm:$0x1] %vm3664_vm4, %v4637_v57  ;;  %v4492_v11 = vsel %vm18299_vm8, %v4487_v56, %v4491_v45  ;;  %vm3688_vm5 = vcmask 1043968   ;;  %v4795_v49 = vrot.slane %v4794_v13, 4  ;;  %v4839_v39 = vrot.slane %v18392_v18, 4 }
 0x303   : > { %4493 = vst [vmem:[#allocation6 + $0x5c] sm:$0x3] %v4492_v11  ;;  %4798 = vst.msk [vmem:[#allocation6 + $0x6c] sm:$0xe] %vm4542_vm11, %v4794_v13  ;;  %v4824_v19 = vrot.slane %v4823_v59, 4  ;;  %v21887_v50 = vrot.slane %v18068_v8, 6 }
 0x304   : > { %4678 = vst.msk [vmem:[#allocation6 + $0x70] sm:$0x1] %vm3664_vm4, %v4672_v0  ;;  %v4800_v25 = vsel %vm18019_vm6, %v4795_v49, %v4799_v6  ;;  %4842 = vrot.lane.b32.xlu1 %v4839_v39, %s21699_s24  ;;  %vm21884_vm0 = vsmask.f32 3328  ;;  %v3690_v54 = vld [vmem:[#allocation6] sm:$0xf] }
 0x305   : > { %4827 = vst.msk [vmem:[#allocation6 + $0x70] sm:$0xe] %vm4542_vm11, %v4823_v59  ;;  %v4829_v62 = vsel %vm18019_vm6, %v4824_v19, %v4828_v4  ;;  %vm18500_vm9 = vmand %vm3688_vm5, %vm21884_vm0  ;;  %v3718_v41 = vld [vmem:[#allocation6 + $0x4] sm:$0xf]  ;;  %vm3849_vm4 = vcmask 1042944   ;;  %vm3844_vm11 = vcmask 1043971  }
 0x306   : > { %4801 = vst [vmem:[#allocation6 + $0x80] sm:$0x1] %v4800_v25  ;;  %4830 = vst [vmem:[#allocation6 + $0x84] sm:$0x1] %v4829_v62  ;;  %v3691_v18 = vsel %vm18500_vm9, %v3686_v16, %v3690_v54  ;;  %v3719_v21 = vsel %vm18500_vm9, %v3716_v55, %v3718_v41  ;;  %vm21888_vm1 = vsmask.f32 7950 }
 0x307   : > { %3692 = vst [vmem:[#allocation6] sm:$0xf] %v3691_v18  ;;  %3720 = vst [vmem:[#allocation6 + $0x4] sm:$0xf] %v3719_v21  ;;  %v3841_v60 = vpop.permute.xlu1 %3840  ;;  %vm21891_vm12 = vsmask.f32 2304 }
 0x308   : > { %3850 = vst.msk [vmem:[#allocation6 + $0x14] sm:$0x7] %vm3849_vm4, %v3841_v60  ;;  %vm18519_vm8 = vmand %vm3844_vm11, %vm21888_vm1  ;;  %v4040_v45 = vld [vmem:[#allocation6 + $0x28] sm:$0x7]  ;;  %vm21698_vm2 = vcmask 1041920   ;;  %v15063_v59 = vld [vmem:[%s21639_s5 + $0x110] sm:$0xff]  }
 0x309   : > { %v14863_v12 = vpop.permute.xlu0 %14862  ;;  %vm18534_vm14 = vmand %vm3849_vm4, %vm21891_vm12  ;;  %v4084_v56 = vld [vmem:[#allocation6 + $0x2c] sm:$0x7]  ;;  %vm21894_vm5 = vsmask.f32 1280  ;;  %v4388_v19 = vld [vmem:[#allocation6 + $0x50] sm:$0x3] }
 0x30a   : > { %v14865_v37 = vunpack.i.h.bf16 %v14863_v12  ;;  %vm18550_vm0 = vmand %vm21698_vm2, %vm21894_vm5  ;;  %v15069_v25 = vld [vmem:[%s21639_s5 + $0x108] sm:$0xff]   ;;  %v21897_v62 = vrot.slane %v18277_v48, 7  ;;  %vm21697_vm1 = vcmask 1043970   ;;  %v15074_v41 = vld [vmem:[%s21639_s5 + $0x100] sm:$0xff]   ;;  %vm21898_vm12 = vsmask.f32 7946 }
 0x30b   : > { %v4031_v53 = vpop.permute.xlu1 %4030  ;;  %v4225_v48 = vld [vmem:[#allocation5 + $0xc] sm:$0xc]  ;;  %vm18573_vm5 = vmand %vm21697_vm1, %vm21898_vm12  ;;  %v4434_v60 = vld [vmem:[#allocation6 + $0x54] sm:$0x3]  ;;  %vm21901_vm12 = vsmask.f32 7942 }
 0x30c   : > { %4037 = vst.msk [vmem:[#allocation6 + $0x14] sm:$0x8] %vm3844_vm11, %v4031_v53  ;;  %v4583_v30 = vld [vmem:[#allocation5 + $0x14] sm:$0x8]  ;;  %v4629_v40 = vld [vmem:[#allocation5 + $0x18] sm:$0x8] }
 0x30d   : > { %v3884_v8 = vpop.permute.xlu0 %3883  ;;  %s12945_s24 = sshll.u32 %s378_s12, 4  ;;  %s12946_s24 = int_to_ptr.vmem [resolvable:$true] %s12945_s24 }
 0x30e   : > { %v3817_v14 = vld [vmem:[#allocation6] sm:$0x8]  ;;  %v3861_v32 = vld [vmem:[#allocation6 + $0x4] sm:$0x8]  ;;  %3890 = vst.msk [vmem:[#allocation6 + $0x18] sm:$0x7] %vm3849_vm4, %v3884_v8 }
 0x30f   : > { %v3818_v29 = vsel %vm18331_vm7, %v3811_v2, %v3817_v14  ;;  %v3862_v9 = vsel %vm18331_vm7, %v21887_v50, %v3861_v32  ;;  %v14864_v2 = vunpack.i.l.bf16 %v14863_v12  ;;  %v18527_v42 = vpop.permute.xlu1 %4212  ;;  %s16303_s25 = scalar_lea.vmem %s12946_s24, 16 }
 0x310   : > { %3819 = vst [vmem:[#allocation6] sm:$0x8] %v3818_v29  ;;  %3863 = vst [vmem:[#allocation6 + $0x4] sm:$0x8] %v3862_v9  ;;  %p16304_p11 = scmp.ne.s32.totalorder %s12946_s24, %s16303_s25 }
 0x311   : > { %v4078_v17 = vpop.permute.xlu0 %4077 }
 0x312   : > { %4083 = vst.msk [vmem:[#allocation6 + $0x18] sm:$0x8] %vm3844_vm11, %v4078_v17  ;;  %p16305_p12 = pnand %p16304_p11, %p16467_p5 }
 0x314   : > { %v4033_v57 = vpop.permute.xlu1 %4032  ;;  %p16306_p13 = pneg %p16305_p12 }
 0x315   : > { %v18538_v20 = vpop.permute.xlu0 %4249  ;;  %v4041_v35 = vsel %vm18534_vm14, %v4033_v57, %v4040_v45  ;;  %v13306_v57 = vrot.slane %v4583_v30, 10 }
 0x316   : > { %4042 = vst [vmem:[#allocation6 + $0x28] sm:$0x7] %v4041_v35  ;;  %v15093_v35 = vld [vmem:[%s21641_s7 + $0x2e0] ss:$16 sps:$4 sm:$0xff]  }
 0x317   : > { %v3846_v43 = vld [vmem:[#allocation6] sm:$0x8]  ;;  %v3887_v34 = vld [vmem:[#allocation6 + $0x4] sm:$0x8]  ;;  %v4590_v52 = vsel %vm16639_vm10, %v13306_v57, %v4589_v51 }
 0x318   : > { %v3847_v44 = vsel %vm18519_vm8, %v14864_v2, %v3846_v43  ;;  %v3888_v5 = vsel %vm18519_vm8, %v14865_v37, %v3887_v34  ;;  %v3756_v34 = vld [vmem:[#allocation6 + $0x8] sm:$0xf]  ;;  %v15075_v57 = vld [vmem:[#allocation6 + $0x10] ss:$20 sps:$4 sm:$0xff]  }
 0x319   : > { %3848 = vst [vmem:[#allocation6] sm:$0x8] %v3847_v44  ;;  %3889 = vst [vmem:[#allocation6 + $0x4] sm:$0x8] %v3888_v5  ;;  %v4080_v13 = vpop.permute.xlu1 %4079  ;;  %v3794_v44 = vld [vmem:[#allocation6 + $0xc] sm:$0xf] }
 0x31a   : > { %v4252_v0 = vpop.permute.xlu0 %4251  ;;  %v4085_v11 = vsel %vm18534_vm14, %v4080_v13, %v4084_v56 }
 0x31b   : > { %4258 = vst.msk [vmem:[#allocation6 + $0x40] sm:$0x3] %vm21698_vm2, %v4252_v0  ;;  %4086 = vst [vmem:[#allocation6 + $0x2c] sm:$0x7] %v4085_v11 }
 0x31d   : > { %v4189_v4 = vld [vmem:[#allocation6 + $0x28] sm:$0xc]  ;;  %v4215_v49 = vpop.permute.xlu1 %4214 }
 0x31e   : > { %v4381_v39 = vpop.permute.xlu0 %4380  ;;  %v4190_v16 = vsel %vm18351_vm3, %v21897_v62, %v4189_v4  ;;  %4224 = vst.msk [vmem:[#allocation6 + $0x3c] sm:$0x3] %vm21698_vm2, %v4215_v49  ;;  %vm4581_vm2 = vcmask 1040896   ;;  %v15237_v4 = vld [vmem:[%s21641_s7 + $0x5e4] ss:$16 sps:$4 sm:$0xff]  }
 0x31f   : > { %v4389_v54 = vsel %vm18550_vm0, %v4381_v39, %v4388_v19  ;;  %4191 = vst [vmem:[#allocation6 + $0x28] sm:$0xc] %v4190_v16  ;;  %v4752_v39 = vld [vmem:[#allocation6 + $0x78] sm:$0x1] }
 0x320   : > { %v15048_v15 = vld [vmem:[#allocation6] ss:$20 sps:$4 sm:$0xff]   ;;  %v15050_v63 = vld [vmem:[#allocation6 + $0x4] ss:$20 sps:$4 sm:$0xff]   ;;  %4390 = vst [vmem:[#allocation6 + $0x50] sm:$0x3] %v4389_v54 }
 0x321   : > { %5309 = vmatprep.mubr.bf16.mxu0 %v15050_v63  ;;  %v4379_v18 = vpop.permute.xlu1 %4378  ;;  %v4789_v54 = vld [vmem:[#allocation6 + $0x7c] sm:$0x1] }
 0x322   : > { %5310 = vmatmul.mubr.bf16.vlgmr.msra.gmra.mxu0 %v15048_v15  ;;  %v4227_v55 = vld [vmem:[#allocation6 + $0x2c] sm:$0xc]  ;;  %4385 = vst.msk [vmem:[#allocation6 + $0x3c] sm:$0xc] %vm21697_vm1, %v4379_v18 }
 0x323   : > { %14803 = vmatpush3.bf16.msra.mxu0 %v18155_v28  ;;  %v4531_v28 = vld [vmem:[#allocation5 + $0x14] sm:$0xc]  ;;  %v4228_v21 = vsel %vm18351_vm3, %v4225_v48, %v4227_v55  ;;  %v4428_v14 = vpop.permute.xlu0 %4427 }
 0x324   : > { %14804 = vmatprep.subr.bf16.mxu0 %v15063_v59  ;;  %4229 = vst [vmem:[#allocation6 + $0x2c] sm:$0xc] %v4228_v21  ;;  %v13305_v29 = vrot.slane %v4531_v28, 9  ;;  %4433 = vst.msk [vmem:[#allocation6 + $0x40] sm:$0xc] %vm21697_vm1, %v4428_v14 }
 0x325   : > { %v4430_v50 = vpop.permute.xlu1 %4429 }
 0x326   : > { %v4538_v9 = vsel %vm16664_vm15, %v13305_v29, %v4537_v24  ;;  %v4220_v2 = vld [vmem:[#allocation6 + $0x28] sm:$0xc]  ;;  %v4435_v53 = vsel %vm18550_vm0, %v4430_v50, %v4434_v60  ;;  %vm4576_vm15 = vcmask 1043969  }
 0x327   : > { %14805 = vmatpush3.bf16.msra.mxu0 %v15063_v59  ;;  %v4544_v12 = vld [vmem:[#allocation6 + $0x50] sm:$0xe]  ;;  %v4221_v8 = vsel %vm18573_vm5, %v18527_v42, %v4220_v2  ;;  %4436 = vst [vmem:[#allocation6 + $0x54] sm:$0x3] %v4435_v53  ;;  %v3792_v37 = vpop.permute.xlu0 %3791  ;;  %vm18598_vm1 = vmand %vm4576_vm15, %vm21901_vm12 }
 0x328   : > { %14806 = vmatprep.subr.bf16.mxu0 %v15069_v25  ;;  %v4545_v43 = vsel %vm18420_vm13, %v4538_v9, %v4544_v12  ;;  %4222 = vst [vmem:[#allocation6 + $0x28] sm:$0xc] %v4221_v8  ;;  %v3795_v61 = vsel %vm18500_vm9, %v3792_v37, %v3794_v44  ;;  %v4126_v44 = vld [vmem:[#allocation6 + $0x30] sm:$0x7] }
 0x329   : > { %4546 = vst [vmem:[#allocation6 + $0x50] sm:$0xe] %v4545_v43  ;;  %3796 = vst [vmem:[#allocation6 + $0xc] sm:$0xf] %v3795_v61  ;;  %v3754_v24 = vpop.permute.xlu1 %3753 }
 0x32a   : > { %v3757_v17 = vsel %vm18500_vm9, %v3754_v24, %v3756_v34  ;;  %vm21904_vm9 = vsmask.f32 256  ;;  %v4168_v34 = vld [vmem:[#allocation6 + $0x34] sm:$0x7] }
 0x32b   : > { %14807 = vmatpush3.bf16.msra.mxu0 %v15069_v25  ;;  %v4255_v5 = vld [vmem:[#allocation6 + $0x2c] sm:$0xc]  ;;  %3758 = vst [vmem:[#allocation6 + $0x8] sm:$0xf] %v3757_v17  ;;  %v4620_v42 = vpop.permute.xlu0 %4619  ;;  %vm18618_vm12 = vmand %vm4581_vm2, %vm21904_vm9 }
 0x32c   : > { %14808 = vmatprep.subr.bf16.mxu0 %v15074_v41  ;;  %v4256_v45 = vsel %vm18573_vm5, %v18538_v20, %v4255_v5 }
 0x32d   : > { %4257 = vst [vmem:[#allocation6 + $0x2c] sm:$0xc] %v4256_v45 }
 0x32e   : > { %v4571_v15 = vpop.permute.xlu1 %4570  ;;  %v4594_v63 = vld [vmem:[#allocation6 + $0x54] sm:$0xe] }
 0x32f   : > { %14809 = vmatpush3.bf16.msra.mxu0 %v15074_v41  ;;  %v4595_v56 = vsel %vm18420_vm13, %v4590_v52, %v4594_v63  ;;  %v4622_v13 = vpop.permute.xlu0 %4621  ;;  %v15060_v19 = vld [vmem:[#allocation6 + $0x28] ss:$20 sps:$4 sm:$0xff]  }
 0x330   : > { %v4578_v20 = vld [vmem:[#allocation6 + $0x50] sm:$0xe]  ;;  %4596 = vst [vmem:[#allocation6 + $0x54] sm:$0xe] %v4595_v56  ;;  %v3945_v0 = vld [vmem:[#allocation6 + $0xc] sm:$0x8] }
 0x331   : > { %v4579_v59 = vsel %vm18598_vm1, %v4571_v15, %v4578_v20  ;;  %4628 = vst.msk [vmem:[#allocation6 + $0x68] sm:$0x1] %vm4581_vm2, %v4622_v13  ;;  %v3946_v23 = vsel %vm18331_vm7, %v3939_v38, %v3945_v0  ;;  %v4259_v15 = vld [vmem:[#allocation5 + $0x10] sm:$0xc] }
 0x332   : > { %4580 = vst [vmem:[#allocation6 + $0x50] sm:$0xe] %v4579_v59  ;;  %v4573_v51 = vpop.permute.xlu1 %4572  ;;  %3947 = vst [vmem:[#allocation6 + $0xc] sm:$0x8] %v3946_v23  ;;  %v3901_v11 = vld [vmem:[#allocation6 + $0x8] sm:$0x8] }
 0x333   : > { %4582 = vst.msk [vmem:[#allocation6 + $0x64] sm:$0x1] %vm4581_vm2, %v4573_v51  ;;  %v4783_v49 = vpop.permute.xlu0 %4782  ;;  %v3902_v31 = vsel %vm18331_vm7, %v3895_v36, %v3901_v11  ;;  %vm5264_vm7 = vcmask 523264   ;;  %v4296_v59 = vld [vmem:[#allocation5 + $0x14] sm:$0xc] }
 0x334   : > { %4788 = vst.msk [vmem:[#allocation6 + $0x68] sm:$0xe] %vm4576_vm15, %v4783_v49  ;;  %v15058_v38 = vld [vmem:[#allocation6 + $0x2c] ss:$20 sps:$4 sm:$0xff]   ;;  %3903 = vst [vmem:[#allocation6 + $0x8] sm:$0x8] %v3902_v31 }
 0x335   : > { %5317 = vmatprep.mubr.bf16.mxu0 %v15058_v38  ;;  %v15079_v51 = vld [vmem:[#allocation6 + $0x38] ss:$20 sps:$4 sm:$0xff]   ;;  %v15080_v38 = vld [vmem:[#allocation6 + $0x60] ss:$20 sps:$4 sm:$0xff]  }
 0x336   : > { %v4745_v25 = vpop.permute.xlu1 %4744  ;;  %5318 = vmatmul.mubr.bf16.gmra.mxu0 %v15060_v19  ;;  %v4476_v49 = vld [vmem:[#allocation6 + $0x58] sm:$0x3] }
 0x337   : > { %v4753_v62 = vsel %vm18618_vm12, %v4745_v25, %v4752_v39  ;;  %v4625_v16 = vld [vmem:[#allocation6 + $0x54] sm:$0xe]  ;;  %v4785_v28 = vpop.permute.xlu0 %4784 }
 0x338   : > { %4754 = vst [vmem:[#allocation6 + $0x78] sm:$0x1] %v4753_v62  ;;  %v4626_v27 = vsel %vm18598_vm1, %v4620_v42, %v4625_v16  ;;  %v4790_v46 = vsel %vm18618_vm12, %v4785_v28, %v4789_v54  ;;  %v4518_v54 = vld [vmem:[#allocation6 + $0x5c] sm:$0x3] }
 0x339   : > { %4627 = vst [vmem:[#allocation6 + $0x54] sm:$0xe] %v4626_v27  ;;  %4791 = vst [vmem:[#allocation6 + $0x7c] sm:$0x1] %v4790_v46  ;;  %v3975_v14 = vld [vmem:[#allocation6 + $0xc] sm:$0x8] }
 0x33a   : > { %v4743_v36 = vpop.permute.xlu1 %4742  ;;  %v13307_v27 = vrot.slane %v4629_v40, 10  ;;  %v15125_v40 = vld [vmem:[%s21641_s7 + $0x244] ss:$16 sps:$4 sm:$0xff]  }
 0x33b   : > { %4749 = vst.msk [vmem:[#allocation6 + $0x64] sm:$0xe] %vm4576_vm15, %v4743_v36  ;;  %v3928_v18 = vpop.permute.xlu0 %3927  ;;  %v3931_v21 = vld [vmem:[#allocation6 + $0x8] sm:$0x8] }
 0x33c   : > { %3934 = vst.msk [vmem:[#allocation6 + $0x1c] sm:$0x7] %vm3849_vm4, %v3928_v18  ;;  %v15081_v36 = vld [vmem:[#allocation6 + $0x88] ss:$0 sps:$4 sm:$0x11]  }
 0x33e   : > { %v14868_v41 = vpop.permute.xlu1 %14867 }
 0x33f   : > { %v14870_v48 = vunpack.i.h.bf16 %v14868_v41  ;;  %v14869_v55 = vunpack.i.l.bf16 %v14868_v41  ;;  %v4120_v29 = vpop.permute.xlu0 %4119 }
 0x340   : > { %4125 = vst.msk [vmem:[#allocation6 + $0x1c] sm:$0x8] %vm3844_vm11, %v4120_v29  ;;  %v4868_v9 = vld [vmem:[#allocation6 + $0x50] sm:$0xff]  ;;  %v4874_v12 = vld [vmem:[#allocation6 + $0x78] sm:$0x11] }
 0x341   : > { %v3932_v60 = vsel %vm18519_vm8, %v14869_v55, %v3931_v21  ;;  %v3976_v50 = vsel %vm18519_vm8, %v14870_v48, %v3975_v14  ;;  %v15066_v43 = vld [vmem:[#allocation6 + $0x54] ss:$20 sps:$4 sm:$0xff]   ;;  %v13329_v61 = vcombine.high %v4874_v12, %v4874_v12  ;;  %v13328_v42 = vcombine.low %v4874_v12, %v4874_v12  ;;  %v4664_v14 = vld [vmem:[#allocation5 + $0x1c] sm:$0x8]  ;;  %v4818_v12 = vld [vmem:[#allocation6 + $0x80] sm:$0x1] }
 0x342   : > { %3933 = vst [vmem:[#allocation6 + $0x8] sm:$0x8] %v3932_v60  ;;  %3977 = vst [vmem:[#allocation6 + $0xc] sm:$0x8] %v3976_v50  ;;  %v3972_v2 = vpop.permute.xlu1 %3971  ;;  %v4871_v53 = vld [vmem:[#allocation6 + $0x64] sm:$0xff]  ;;  %5325 = vmatprep.mubr.bf16.mxu0 %v15066_v43  ;;  %v4636_v55 = vsel %vm16639_vm10, %v13307_v27, %v4635_v26  ;;  %v13308_v32 = vrot.slane %v4664_v14, 10 }
 0x343   : > { %3978 = vst.msk [vmem:[#allocation6 + $0x20] sm:$0x7] %vm3849_vm4, %v3972_v2  ;;  %v13323_v8 = vcombine.low %v4868_v9, %v4871_v53  ;;  %v4122_v37 = vpop.permute.xlu0 %4121  ;;  %vm21907_vm4 = vcmask 1041920   ;;  %v15128_v27 = vld [vmem:[%s21641_s7 + $0x24] ss:$16 sps:$4 sm:$0xff]  }
 0x344   : > { %v4127_v1 = vsel %vm18534_vm14, %v4122_v37, %v4126_v44  ;;  %vm21909_vm8 = vmmov %vm21907_vm4  ;;  %v4671_v26 = vsel %vm16639_vm10, %v13308_v32, %v4670_v58  ;;  %v4847_v58 = vld [vmem:[#allocation6 + $0x84] sm:$0x1]  ;;  %v15132_v14 = vld [vmem:[%s21641_s7] ss:$16 sps:$4 sm:$0xff]   ;;  %vm21911_vm10 = vcmask 519168  }
 0x345   : > { %5326 = vmatmul.mubr.bf16.gmra.mxu0 %v13323_v8  ;;  %4128 = vst [vmem:[#allocation6 + $0x30] sm:$0x7] %v4127_v1  ;;  %v15143_v32 = vld [vmem:[%s21641_s7 + $0x3e4] ss:$16 sps:$4 sm:$0xff]  }
 0x346   : > { %v4162_v30 = vpop.permute.xlu1 %4161  ;;  %5333 = vmatprep.mubr.bf16.mxu0 %v13329_v61 }
 0x347   : > { %4167 = vst.msk [vmem:[#allocation6 + $0x20] sm:$0x8] %vm3844_vm11, %v4162_v30  ;;  %v4287_v24 = vpop.permute.xlu0 %4286  ;;  %vm21908_vm11 = vcmask 1043970  }
 0x349   : > { %v15076_v20 = vld [vmem:[#allocation6 + $0x8] ss:$20 sps:$4 sm:$0xff]  }
 0x34a   : > { %v4164_v17 = vpop.permute.xlu1 %4163 }
 0x34b   : > { %v4169_v5 = vsel %vm18534_vm14, %v4164_v17, %v4168_v34  ;;  %v4289_v45 = vpop.permute.xlu0 %4288  ;;  %vm21910_vm14 = vmmov %vm21908_vm11 }
 0x34c   : > { %4170 = vst [vmem:[#allocation6 + $0x34] sm:$0x7] %v4169_v5  ;;  %v4261_v52 = vld [vmem:[#allocation6 + $0x30] sm:$0xc]  ;;  %4295 = vst.msk [vmem:[#allocation6 + $0x44] sm:$0x3] %vm21907_vm4, %v4289_v45 }
 0x34d   : > { %5334 = vmatmul.mubr.bf16.gmra.mxu0 %v13328_v42  ;;  %v4262_v63 = vsel %vm18351_vm3, %v4259_v15, %v4261_v52  ;;  %v15090_v42 = vld [vmem:[%s21641_s7 + $0xe0] ss:$16 sps:$4 sm:$0xff]   ;;  %v15092_v45 = vld [vmem:[%s21641_s7 + $0xe4] ss:$16 sps:$4 sm:$0xff]  }
 0x34e   : > { %v4324_v56 = vpop.permute.xlu1 %4323  ;;  %14810 = vmatprep.mubr.msk.bf16.mxu0 %vm5264_vm7, %v15075_v57  ;;  %v15078_v13 = vld [vmem:[#allocation6 + $0xc] ss:$20 sps:$4 sm:$0xff]   ;;  %4263 = vst [vmem:[#allocation6 + $0x30] sm:$0xc] %v4262_v63  ;;  %v15095_v57 = vld [vmem:[%s21641_s7 + $0x2e4] ss:$16 sps:$4 sm:$0xff]   ;;  %11520 = vmatprep.subr.bf16.mxu1 %v15092_v45 }
 0x34f   : > { %v4470_v22 = vpop.permute.xlu0 %4469  ;;  %5373 = vmatprep.mubr.bf16.mxu1 %v15078_v13  ;;  %v15098_v15 = vld [vmem:[%s21641_s7 + $0xc4] ss:$16 sps:$4 sm:$0xff]   ;;  %11561 = vmatprep.subr.bf16.mxu0 %v15095_v57  ;;  %v15096_v63 = vld [vmem:[%s21641_s7 + $0xc0] ss:$16 sps:$4 sm:$0xff]  }
 0x350   : > { %4475 = vst.msk [vmem:[#allocation6 + $0x44] sm:$0xc] %vm21908_vm11, %v4470_v22  ;;  %5374 = vmatmul.mubr.bf16.vlgmr.msra.gmra.mxu1 %v15076_v20  ;;  %v15101_v52 = vld [vmem:[%s21641_s7 + $0x2c4] ss:$16 sps:$4 sm:$0xff]   ;;  %v15102_v22 = vld [vmem:[%s21641_s7 + $0xa0] ss:$16 sps:$4 sm:$0xff]  }
 0x351   : > { %11521 = vmatpush1.bf16.msra.mxu1 %v15090_v42  ;;  %v15104_v20 = vld [vmem:[%s21641_s7 + $0xa4] ss:$16 sps:$4 sm:$0xff]  }
 0x352   : > { %v4326_v0 = vpop.permute.xlu1 %4325  ;;  %11522 = vmatprep.subr.bf16.mxu1 %v15098_v15  ;;  %v15107_v13 = vld [vmem:[%s21641_s7 + $0x2a4] ss:$16 sps:$4 sm:$0xff]  }
 0x353   : > { %v4298_v23 = vld [vmem:[#allocation6 + $0x34] sm:$0xc]  ;;  %4332 = vst.msk [vmem:[#allocation6 + $0x48] sm:$0x3] %vm21909_vm8, %v4326_v0  ;;  %v4472_v31 = vpop.permute.xlu0 %4471  ;;  %v15105_v0 = vld [vmem:[%s21641_s7 + $0x2a0] ss:$16 sps:$4 sm:$0xff]  }
 0x354   : > { %v4299_v11 = vsel %vm18351_vm3, %v4296_v59, %v4298_v23  ;;  %v4477_v19 = vsel %vm18550_vm0, %v4472_v31, %v4476_v49  ;;  %v15110_v59 = vld [vmem:[%s21641_s7 + $0x84] ss:$16 sps:$4 sm:$0xff]   ;;  %v15111_v49 = vld [vmem:[%s21641_s7 + $0x280] ss:$16 sps:$4 sm:$0xff]   ;;  %vm21912_vm3 = vmmov %vm21911_vm10 }
 0x355   : > { %4300 = vst [vmem:[#allocation6 + $0x34] sm:$0xc] %v4299_v11  ;;  %14811 = vmatmul.mubr.msk.bf16.vlgmr.msra.gmra.mxu0 %vm5264_vm7, %v15079_v51  ;;  %v4292_v39 = vld [vmem:[#allocation6 + $0x30] sm:$0xc]  ;;  %4478 = vst [vmem:[#allocation6 + $0x58] sm:$0x3] %v4477_v19  ;;  %11523 = vmatpush1.bf16.msra.mxu1 %v15096_v63 }
 0x356   : > { %v4512_v25 = vpop.permute.xlu1 %4511  ;;  %14814 = vmatprep.mubr.msk.bf16.mxu0 %vm5264_vm7, %v15080_v38  ;;  %v4293_v62 = vsel %vm18573_vm5, %v4287_v24, %v4292_v39  ;;  %11562 = vmatpush1.bf16.msra.mxu0 %v15093_v35  ;;  %v15113_v23 = vld [vmem:[%s21641_s7 + $0x284] ss:$16 sps:$4 sm:$0xff]   ;;  %v15108_v11 = vld [vmem:[%s21641_s7 + $0x80] ss:$16 sps:$4 sm:$0xff]  }
 0x357   : > { %4517 = vst.msk [vmem:[#allocation6 + $0x48] sm:$0xc] %vm21910_vm14, %v4512_v25  ;;  %4294 = vst [vmem:[#allocation6 + $0x30] sm:$0xc] %v4293_v62  ;;  %v4655_v16 = vpop.permute.xlu0 %4654  ;;  %11563 = vmatprep.subr.bf16.mxu0 %v15101_v52  ;;  %11524 = vmatprep.subr.bf16.mxu1 %v15104_v20  ;;  %v15116_v31 = vld [vmem:[%s21641_s7 + $0x64] ss:$16 sps:$4 sm:$0xff]  }
 0x358   : > { %v15119_v38 = vld [vmem:[%s21641_s7 + $0x264] ss:$16 sps:$4 sm:$0xff]   ;;  %v15114_v39 = vld [vmem:[%s21641_s7 + $0x60] ss:$16 sps:$4 sm:$0xff]   ;;  %v16366_v20 = vmov 1966171168  }
 0x359   : > { %11525 = vmatpush1.bf16.msra.mxu1 %v15102_v22  ;;  %v15117_v25 = vld [vmem:[%s21641_s7 + $0x260] ss:$16 sps:$4 sm:$0xff]   ;;  %v15122_v62 = vld [vmem:[%s21641_s7 + $0x44] ss:$16 sps:$4 sm:$0xff]   ;;  %v5530_v22 = vlaneseq }
 0x35a   : > { %v4514_v28 = vpop.permute.xlu1 %4513  ;;  %11526 = vmatprep.subr.bf16.mxu1 %v15110_v59 }
 0x35b   : > { %v4519_v46 = vsel %vm18550_vm0, %v4514_v28, %v4518_v54  ;;  %v4657_v41 = vpop.permute.xlu0 %4656  ;;  %v15120_v54 = vld [vmem:[%s21641_s7 + $0x40] ss:$16 sps:$4 sm:$0xff]  }
 0x35c   : > { %v4329_v18 = vld [vmem:[#allocation6 + $0x34] sm:$0xc]  ;;  %4520 = vst [vmem:[#allocation6 + $0x5c] sm:$0x3] %v4519_v46  ;;  %v4640_v21 = vld [vmem:[#allocation6 + $0x58] sm:$0xe] }
 0x35d   : > { %v4330_v48 = vsel %vm18573_vm5, %v4324_v56, %v4329_v18  ;;  %4663 = vst.msk [vmem:[#allocation6 + $0x6c] sm:$0x1] %vm4581_vm2, %v4657_v41  ;;  %14815 = vmatmul.mubr.msk.bf16.gmra.mxu0 %vm5264_vm7, %v15081_v36  ;;  %v4641_v6 = vsel %vm18420_vm13, %v4636_v55, %v4640_v21  ;;  %v15099_v56 = vld [vmem:[%s21641_s7 + $0x2c0] ss:$16 sps:$4 sm:$0xff]   ;;  %11527 = vmatpush1.bf16.msra.mxu1 %v15108_v11  ;;  %v15131_v46 = vld [vmem:[%s21641_s7 + $0x224] ss:$16 sps:$4 sm:$0xff]  }
 0x35e   : > { %4331 = vst [vmem:[#allocation6 + $0x34] sm:$0xc] %v4330_v48  ;;  %v4690_v29 = vpop.permute.xlu1 %4689  ;;  %4642 = vst [vmem:[#allocation6 + $0x58] sm:$0xe] %v4641_v6  ;;  %v15084_v8 = vld [vmem:[#allocation6 + $0x30] ss:$20 sps:$4 sm:$0xff]   ;;  %11564 = vmatpush1.bf16.msra.mxu0 %v15099_v56  ;;  %11528 = vmatprep.subr.bf16.mxu1 %v15116_v31 }
 0x35f   : > { %v4812_v60 = vpop.permute.xlu0 %4811  ;;  %11565 = vmatprep.subr.bf16.mxu0 %v15107_v13  ;;  %v15123_v28 = vld [vmem:[%s21641_s7 + $0x240] ss:$16 sps:$4 sm:$0xff]   ;;  %v15134_v55 = vld [vmem:[%s21641_s7 + $0x4] ss:$16 sps:$4 sm:$0xff]   ;;  %v5528_v13 = vunpack.c.l.s4 %v16366_v20  ;;  %v18832_v31 = vshrl.u32 %v5530_v22, 7 }
 0x360   : > { %4817 = vst.msk [vmem:[#allocation6 + $0x6c] sm:$0xe] %vm4576_vm15, %v4812_v60  ;;  %v15126_v18 = vld [vmem:[%s21641_s7 + $0x20] ss:$16 sps:$4 sm:$0xff]   ;;  %v15137_v21 = vld [vmem:[%s21641_s7 + $0x204] ss:$16 sps:$4 sm:$0xff]  }
 0x361   : > { %11529 = vmatpush1.bf16.msra.mxu1 %v15114_v39  ;;  %v15129_v48 = vld [vmem:[%s21641_s7 + $0x220] ss:$16 sps:$4 sm:$0xff]   ;;  %v15140_v60 = vld [vmem:[%s21641_s7 + $0x1e4] ss:$16 sps:$4 sm:$0xff]  }
 0x362   : > { %11566 = vmatpush1.bf16.msra.mxu0 %v15105_v0  ;;  %11530 = vmatprep.subr.bf16.mxu1 %v15122_v62 }
 0x363   : > { %v4675_v50 = vld [vmem:[#allocation6 + $0x5c] sm:$0xe]  ;;  %11567 = vmatprep.subr.bf16.mxu0 %v15113_v23 }
 0x364   : > { %v4676_v9 = vsel %vm18420_vm13, %v4671_v26, %v4675_v50  ;;  %v15138_v26 = vld [vmem:[%s21641_s7 + $0x1e0] ss:$16 sps:$4 sm:$0xff]   ;;  %vm21914_vm13 = vmmov %vm21912_vm3 }
 0x365   : > { %4677 = vst [vmem:[#allocation6 + $0x5c] sm:$0xe] %v4676_v9  ;;  %v15082_v43 = vld [vmem:[#allocation6 + $0x34] ss:$20 sps:$4 sm:$0xff]   ;;  %v4660_v44 = vld [vmem:[#allocation6 + $0x58] sm:$0xe]  ;;  %11531 = vmatpush1.bf16.msra.mxu1 %v15120_v54 }
 0x366   : > { %v4661_v47 = vsel %vm18598_vm1, %v4655_v16, %v4660_v44  ;;  %5381 = vmatprep.mubr.bf16.mxu1 %v15082_v43  ;;  %11568 = vmatpush1.bf16.msra.mxu0 %v15111_v49  ;;  %v15141_v50 = vld [vmem:[%s21641_s7 + $0x3e0] ss:$16 sps:$4 sm:$0xff]   ;;  %v5529_v49 = vunpack.c.0.s8 %v5528_v13 }
 0x367   : > { %4662 = vst [vmem:[#allocation6 + $0x58] sm:$0xe] %v4661_v47  ;;  %5382 = vmatmul.mubr.bf16.gmra.mxu1 %v15084_v8  ;;  %11569 = vmatprep.subr.bf16.mxu0 %v15119_v38  ;;  %v18821_v47 = vld [vmem:[%s21640_s6] ss:$0 sm:$0xff] }
 0x368   : > { %11532 = vmatprep.subr.bf16.mxu1 %v15128_v27  ;;  %v15144_v38 = vld [vmem:[%s21641_s7 + $0x1c0] ss:$16 sps:$4 sm:$0xff]   ;;  %v18850_v54 = vsub.s32 %v5529_v49, %v18832_v31  ;;  %v15152_v27 = vld [vmem:[%s21641_s7 + $0x1a4] ss:$16 sps:$4 sm:$0xff]  }
 0x369   : > { %11533 = vmatpush1.bf16.msra.mxu1 %v15126_v18 }
 0x36a   : > { %11570 = vmatpush1.bf16.msra.mxu0 %v15117_v25  ;;  %11534 = vmatprep.subr.bf16.mxu1 %v15134_v55  ;;  %v5695_v55 = vld [vmem:[#allocation8 + $0x4] sm:$0x1] }
 0x36b   : > { %11571 = vmatprep.subr.bf16.mxu0 %v15125_v40  ;;  %v15147_v40 = vld [vmem:[%s21641_s7 + $0x3c0] ss:$16 sps:$4 sm:$0xff]  }
 0x36c   : > { %v4695_v61 = vld [vmem:[#allocation6 + $0x5c] sm:$0xe] }
 0x36d   : > { %v4692_v10 = vpop.permute.xlu1 %4691  ;;  %v4696_v1 = vsel %vm18598_vm1, %v4690_v29, %v4695_v61  ;;  %v15135_v29 = vld [vmem:[%s21641_s7 + $0x200] ss:$16 sps:$4 sm:$0xff]   ;;  %11535 = vmatpush1.bf16.msra.mxu1 %v15132_v14 }
 0x36e   : > { %4698 = vst.msk [vmem:[#allocation6 + $0x70] sm:$0x1] %vm4581_vm2, %v4692_v10  ;;  %4697 = vst [vmem:[#allocation6 + $0x5c] sm:$0xe] %v4696_v1  ;;  %v15087_v34 = vld [vmem:[#allocation6 + $0x58] ss:$20 sps:$4 sm:$0xff]   ;;  %11572 = vmatpush1.bf16.msra.mxu0 %v15123_v28  ;;  %11536 = vmatprep.subr.bf16.mxu1 %v15140_v60 }
 0x36f   : > { %v4814_v2 = vpop.permute.xlu0 %4813  ;;  %11573 = vmatprep.subr.bf16.mxu0 %v15131_v46  ;;  %v15150_v28 = vld [vmem:[%s21641_s7 + $0x1a0] ss:$16 sps:$4 sm:$0xff]   ;;  %v5515_v46 = vld [vmem:[#allocation8] sm:$0x1]  ;;  %vm21915_vm2 = vmmov %vm21912_vm3 }
 0x370   : > { %v4819_v53 = vsel %vm18618_vm12, %v4814_v2, %v4818_v12  ;;  %v15153_v60 = vld [vmem:[%s21641_s7 + $0x3a0] ss:$16 sps:$4 sm:$0xff]   ;;  %vm21916_vm0 = vmmov %vm21915_vm2 }
 0x371   : > { %4820 = vst [vmem:[#allocation6 + $0x80] sm:$0x1] %v4819_v53  ;;  %v4841_v7 = vpop.permute.xlu1 %4840  ;;  %11537 = vmatpush2.bf16.msra.mxu1 %v15138_v26  ;;  %vm21917_vm1 = vmmov %vm21916_vm0 }
 0x372   : > { %4846 = vst.msk [vmem:[#allocation6 + $0x70] sm:$0xe] %vm4576_vm15, %v4841_v7  ;;  %11574 = vmatpush1.bf16.msra.mxu0 %v15129_v48 }
 0x373   : > { %11575 = vmatprep.subr.bf16.mxu0 %v15137_v21 }
 0x376   : > { %v4843_v33 = vpop.permute.xlu1 %4842  ;;  %11576 = vmatpush1.bf16.msra.mxu0 %v15135_v29 }
 0x377   : > { %v4848_v37 = vsel %vm18618_vm12, %v4843_v33, %v4847_v58  ;;  %11577 = vmatprep.subr.bf16.mxu0 %v15143_v32 }
 0x378   : > { %4849 = vst [vmem:[#allocation6 + $0x84] sm:$0x1] %v4848_v37 }
 0x379   : > { %v15085_v24 = vld [vmem:[#allocation6 + $0x5c] ss:$20 sps:$4 sm:$0xff]  }
 0x37a   : > { %5389 = vmatprep.mubr.bf16.mxu1 %v15085_v24  ;;  %11578 = vmatpush2.bf16.msra.mxu0 %v15141_v50  ;;  %v5563_v50 = vld [vmem:[#allocation8 + $0x1] sm:$0x1] }
 0x37b   : > { %5390 = vmatmul.mubr.bf16.gmra.mxu1 %v15087_v34 }
 0x37f   : > { %v4875_v30 = vld [vmem:[#allocation6 + $0x80] sm:$0x11] }
 0x380   : > { %v13331_v17 = vcombine.high %v4875_v30, %v4875_v30  ;;  %v13330_v5 = vcombine.low %v4875_v30, %v4875_v30 }
 0x382   : > { %5397 = vmatprep.mubr.bf16.mxu1 %v13331_v17 }
 0x383   : > { %5398 = vmatmul.mubr.bf16.gmra.mxu1 %v13330_v5 }
 0x3e2   : > { %v14686_v51 = vpop.f32.mrf.mxu0 }
 0x3e4   : > { %v14687_v19 = vpop.f32.mrf.mxu0 }
 0x3e5   : > { %v14688_v7 = vadd.f32 %v14687_v19, %v14686_v51  ;;  %v15146_v19 = vld [vmem:[%s21641_s7 + $0x1c4] ss:$16 sps:$4 sm:$0xff]  }
 0x3e6   : > { %v14689_v16 = vpop.f32.mrf.mxu0  ;;  %11538 = vmatprep.subr.bf16.mxu1 %v15146_v19 }
 0x3e7   : > { %v5312_v1 = vadd.f32 %v14688_v7, %v18821_v47  ;;  %11539 = vmatpush2.bf16.msra.mxu1 %v15144_v38 }
 0x3e8   : > { %v14690_v36 = vpop.f32.mrf.mxu0  ;;  %11540 = vmatprep.subr.bf16.mxu1 %v15152_v27  ;;  %v15161_v27 = vld [vmem:[%s21641_s7 + $0x384] ss:$16 sps:$4 sm:$0xff]  }
 0x3e9   : > { %v14691_v30 = vadd.f32 %v14690_v36, %v14689_v16  ;;  %v15149_v16 = vld [vmem:[%s21641_s7 + $0x3c4] ss:$16 sps:$4 sm:$0xff]  }
 0x3ea   : > { %11579 = vmatprep.subr.bf16.mxu0 %v15149_v16  ;;  %v15158_v16 = vld [vmem:[%s21641_s7 + $0x184] ss:$16 sps:$4 sm:$0xff]  }
 0x3eb   : > { %v5315_v35 = vadd.f32 %v14691_v30, %v18821_v47  ;;  %11580 = vmatpush2.bf16.msra.mxu0 %v15147_v40  ;;  %11541 = vmatpush2.bf16.msra.mxu1 %v15150_v28  ;;  %v15159_v28 = vld [vmem:[%s21641_s7 + $0x380] ss:$16 sps:$4 sm:$0xff]  }
 0x3ec   : > { %11542 = vmatprep.subr.bf16.mxu1 %v15158_v16 }
 0x3f6   : > { %v18771_v41 = vpop.f32.mrf.mxu0 }
 0x3f8   : > { %v18782_v6 = vpop.f32.mrf.mxu0 }
 0x3f9   : > { %v14694_v36 = vadd.f32 %v18782_v6, %v18771_v41  ;;  %v15155_v41 = vld [vmem:[%s21641_s7 + $0x3a4] ss:$16 sps:$4 sm:$0xff]  }
 0x3fa   : > { %v18796_v10 = vpop.f32.mrf.mxu0  ;;  %11581 = vmatprep.subr.bf16.mxu0 %v15155_v41 }
 0x3fb   : > { %11582 = vmatpush2.bf16.msra.mxu0 %v15153_v60 }
 0x3fc   : > { %v18804_v9 = vpop.f32.mrf.mxu0  ;;  %11583 = vmatprep.subr.bf16.mxu0 %v15161_v27 }
 0x3ff   : > { %11584 = vmatpush2.bf16.msra.mxu0 %v15159_v28 }
 0x405   : > { %v18806_v12 = vpop.f32.mrf.mxu0 }
 0x407   : > { %v18808_v2 = vpop.f32.mrf.mxu0 }
 0x409   : > { %v18810_v53 = vpop.f32.mrf.mxu0 }
 0x40b   : > { %v18812_v43 = vpop.f32.mrf.mxu0 }
 0x40d   : > { %v18814_v8 = vpop.f32.mrf.mxu0 }
 0x40f   : > { %v18816_v44 = vpop.f32.mrf.mxu0 }
 0x410   : > { %v14726_v33 = vpop.f32.mrf.mxu1 }
 0x411   : > { %v14707_v58 = vpop.f32.mrf.mxu0 }
 0x412   : > { %v14727_v61 = vpop.f32.mrf.mxu1 }
 0x413   : > { %v14708_v37 = vpop.f32.mrf.mxu0  ;;  %v14728_v24 = vadd.f32 %v14727_v61, %v14726_v33 }
 0x414   : > { %v14729_v34 = vpop.f32.mrf.mxu1  ;;  %v5320_v37 = vadd.f32 %v14694_v36, %v18821_v47 }
 0x415   : > { %v18824_v17 = vpop.f32.mrf.mxu0  ;;  %v5376_v5 = vadd.f32 %v14728_v24, %v5312_v1  ;;  %v5612_v24 = vld [vmem:[#allocation8 + $0x2] sm:$0x1] }
 0x416   : > { %v14730_v42 = vpop.f32.mrf.mxu1 }
 0x417   : > { %v5439_v45 = vpop.f32.mrf.mxu0  ;;  %v14731_v57 = vadd.f32 %v14730_v42, %v14729_v34 }
 0x418   : > { %v5440_v15 = vadd.f32 %v5439_v45, %v5376_v5  ;;  %v14697_v5 = vadd.f32 %v18804_v9, %v18796_v10  ;;  %v5662_v10 = vld [vmem:[#allocation8 + $0x3] sm:$0x1]  ;;  %v5743_v9 = vld [vmem:[#allocation8 + $0x5] sm:$0x1] }
 0x419   : > { %v18827_v52 = vpop.f32.mrf.mxu0  ;;  %v5379_v56 = vadd.f32 %v14731_v57, %v5315_v35 }
 0x41a   : > { %v5469_v63 = vmax.f32 %v5440_v15, 0.0  ;;  %v15156_v15 = vld [vmem:[%s21641_s7 + $0x180] ss:$16 sps:$4 sm:$0xff]  }
 0x41b   : > { %v5442_v0 = vpop.f32.mrf.mxu0  ;;  %11543 = vmatpush2.bf16.msra.mxu1 %v15156_v15  ;;  %v15171_v15 = vld [vmem:[%s21641_s7 + $0x340] ss:$16 sps:$4 sm:$0xff]  }
 0x41c   : > { %v14292_v59 = vpack.c.bf16 %v5469_v63, %v5469_v63  ;;  %v5443_v23 = vadd.f32 %v5442_v0, %v5379_v56 }
 0x41d   : > { %v18829_v51 = vpop.f32.mrf.mxu0 }
 0x41e   : > { %5505 = vst.msk [vmem:[#allocation7] sm:$0xf] %vm21911_vm10, %v14292_v59  ;;  %v5470_v11 = vmax.f32 %v5443_v23, 0.0 }
 0x41f   : > { %v18840_v39 = vpop.f32.mrf.mxu0 }
 0x420   : > { %v14293_v25 = vpack.c.bf16 %v5470_v11, %v5470_v11 }
 0x421   : > { %v14817_v62 = vpop.f32.mrf.mxu0 }
 0x422   : > { %5506 = vst.msk [vmem:[#allocation7 + $0x4] sm:$0xf] %vm21912_vm3, %v14293_v25 }
 0x425   : > { %v13380_v18 = vld.sshfl [vmem:[#allocation7] sm:$0x1 pattern:$0x75316420] }
 0x426   : > { %v5514_v48 = vld [vmem:[#allocation7] sm:$0x1]  ;;  %v5533_v21 = vrot.slane %v13380_v18, %v18850_v54  ;;  %v13383_v14 = vld.sshfl [vmem:[#allocation7] sm:$0x10 pattern:$0x75316420] }
 0x427   : > { %v5516_v29 = vsel %vm18019_vm6, %v5514_v48, %v5515_v46  ;;  %v5575_v32 = vcombine.high %v13383_v14, %v13383_v14  ;;  %v13386_v26 = vld.sshfl [vmem:[#allocation7] sm:$0x2 pattern:$0x75316420]  ;;  %v14732_v6 = vpop.f32.mrf.mxu1 }
 0x428   : > { %5517 = vst [vmem:[#allocation8] sm:$0x1] %v5516_v29  ;;  %v5535_v7 = vshrl.u32 %v5533_v21, 16  ;;  %v5630_v58 = vrot.slane %v13386_v26, %v18850_v54  ;;  %v5792_v48 = vld [vmem:[#allocation8 + $0x6] sm:$0x1]  ;;  %v5323_v21 = vadd.f32 %v14697_v5, %v18821_v47 }
 0x429   : > { %v13389_v33 = vld.sshfl [vmem:[#allocation7] sm:$0x20 pattern:$0x75316420]  ;;  %v5582_v61 = vrot.slane %v5575_v32, %v18850_v54  ;;  %v5694_v34 = vld [vmem:[#allocation7 + $0x4] sm:$0x1]  ;;  %v14733_v42 = vpop.f32.mrf.mxu1 }
 0x42a   : > { %v5674_v1 = vcombine.high %v13389_v33, %v13389_v33  ;;  %v13391_v30 = vld.sshfl [vmem:[#allocation7 + $0x4] sm:$0x1 pattern:$0x75316420]  ;;  %5539 = vrot.lane.b32.xlu0 %v5535_v7, %s21913_s15  ;;  %v5631_v45 = vcombine.high %v5630_v58, %v5630_v58  ;;  %v5696_v57 = vsel %vm18019_vm6, %v5694_v34, %v5695_v55  ;;  %v14734_v63 = vadd.f32 %v14733_v42, %v14732_v6  ;;  %v15164_v55 = vld [vmem:[%s21641_s7 + $0x164] ss:$16 sps:$4 sm:$0xff]  }
 0x42b   : > { %v13394_v35 = vld.sshfl [vmem:[#allocation7 + $0x4] sm:$0x10 pattern:$0x75316420]  ;;  %v5584_v56 = vshrl.u32 %v5582_v61, 16  ;;  %v14735_v0 = vpop.f32.mrf.mxu1  ;;  %v5713_v23 = vrot.slane %v13391_v30, %v18850_v54  ;;  %v5564_v38 = vsel %vm18019_vm6, %v5582_v61, %v5563_v50  ;;  %11544 = vmatprep.subr.bf16.mxu1 %v15164_v55 }
 0x42c   : > { %v5681_v20 = vrot.slane %v5674_v1, %v18850_v54  ;;  %v5755_v13 = vcombine.high %v13394_v35, %v13394_v35  ;;  %v13397_v22 = vld.sshfl [vmem:[#allocation7 + $0x4] sm:$0x2 pattern:$0x75316420]  ;;  %5697 = vst [vmem:[#allocation8 + $0x4] sm:$0x1] %v5696_v57  ;;  %v5384_v19 = vadd.f32 %v14734_v63, %v5320_v37  ;;  %v5613_v18 = vsel %vm18019_vm6, %v5631_v45, %v5612_v24 }
 0x42d   : > { %v5633_v59 = vshrl.u32 %v5631_v45, 16  ;;  %v5810_v11 = vrot.slane %v13397_v22, %v18850_v54  ;;  %v13400_v49 = vld.sshfl [vmem:[#allocation7 + $0x4] sm:$0x20 pattern:$0x75316420]  ;;  %5588 = vrot.lane.b32.xlu1 %v5584_v56, %s21913_s15  ;;  %v14736_v46 = vpop.f32.mrf.mxu1  ;;  %v5715_v26 = vshrl.u32 %v5713_v23, 16 }
 0x42e   : > { %v5682_v25 = vcombine.high %v5681_v20, %v5681_v20  ;;  %v5762_v62 = vrot.slane %v5755_v13, %v18850_v54  ;;  %v5854_v40 = vcombine.high %v13400_v49, %v13400_v49  ;;  %5565 = vst [vmem:[#allocation8 + $0x1] sm:$0x1] %v5564_v38  ;;  %v5448_v14 = vadd.f32 %v18824_v17, %v5384_v19  ;;  %v15167_v32 = vld [vmem:[%s21641_s7 + $0x364] ss:$16 sps:$4 sm:$0xff]   ;;  %v15162_v17 = vld [vmem:[%s21641_s7 + $0x160] ss:$16 sps:$4 sm:$0xff]  }
 0x42f   : > { %5637 = vrot.lane.b32.xlu0 %v5633_v59, %s21913_s15  ;;  %v5811_v36 = vcombine.high %v5810_v11, %v5810_v11  ;;  %v14737_v29 = vadd.f32 %v14736_v46, %v14735_v0  ;;  %5614 = vst [vmem:[#allocation8 + $0x2] sm:$0x1] %v5613_v18  ;;  %v15165_v7 = vld [vmem:[%s21641_s7 + $0x360] ss:$16 sps:$4 sm:$0xff]   ;;  %v5842_v61 = vld [vmem:[#allocation8 + $0x7] sm:$0x1]  ;;  %11585 = vmatprep.subr.bf16.mxu0 %v15167_v32 }
 0x430   : > { %v5684_v60 = vshrl.u32 %v5682_v25, 16  ;;  %v5861_v50 = vrot.slane %v5854_v40, %v18850_v54  ;;  %v5663_v41 = vsel %vm18019_vm6, %v5682_v25, %v5662_v10  ;;  %v5744_v6 = vsel %vm18019_vm6, %v5762_v62, %v5743_v9  ;;  %v15170_v1 = vld [vmem:[%s21641_s7 + $0x144] ss:$16 sps:$4 sm:$0xff]   ;;  %11545 = vmatpush2.bf16.msra.mxu1 %v15162_v17  ;;  %11586 = vmatpush2.bf16.msra.mxu0 %v15165_v7  ;;  %v15168_v57 = vld [vmem:[%s21641_s7 + $0x140] ss:$16 sps:$4 sm:$0xff]  }
 0x431   : > { %v5471_v58 = vmax.f32 %v5448_v14, 0.0  ;;  %v5387_v33 = vadd.f32 %v14737_v29, %v5323_v21  ;;  %5664 = vst [vmem:[#allocation8 + $0x3] sm:$0x1] %v5663_v41  ;;  %5745 = vst [vmem:[#allocation8 + $0x5] sm:$0x1] %v5744_v6  ;;  %v5793_v37 = vsel %vm18019_vm6, %v5811_v36, %v5792_v48  ;;  %v5764_v42 = vshrl.u32 %v5762_v62, 16  ;;  %11546 = vmatprep.subr.bf16.mxu1 %v15170_v1  ;;  %v5458_v1 = vpop.f32.mrf.mxu0 }
 0x432   : > { %5688 = vrot.lane.b32.xlu1 %v5684_v60, %s21913_s15  ;;  %v5862_v30 = vcombine.high %v5861_v50, %v5861_v50  ;;  %5794 = vst [vmem:[#allocation8 + $0x6] sm:$0x1] %v5793_v37  ;;  %v15173_v24 = vld [vmem:[%s21641_s7 + $0x344] ss:$16 sps:$4 sm:$0xff]   ;;  %v5813_v45 = vshrl.u32 %v5811_v36, 16  ;;  %v14700_v20 = vadd.f32 %v18808_v2, %v18806_v12  ;;  %v14703_v2 = vadd.f32 %v18812_v43, %v18810_v53 }
 0x433   : > { %5719 = vrot.lane.b32.xlu0 %v5715_v26, %s21913_s15  ;;  %v14294_v34 = vpack.c.bf16 %v5471_v58, %v5471_v58  ;;  %v5451_v5 = vadd.f32 %v18827_v52, %v5387_v33  ;;  %v15176_v52 = vld [vmem:[%s21641_s7 + $0x124] ss:$16 sps:$4 sm:$0xff]   ;;  %11587 = vmatprep.subr.bf16.mxu0 %v15173_v24  ;;  %v15174_v9 = vld [vmem:[%s21641_s7 + $0x120] ss:$16 sps:$4 sm:$0xff]   ;;  %v14706_v25 = vadd.f32 %v18816_v44, %v18814_v8 }
 0x434   : > { %v5843_v35 = vsel %vm18019_vm6, %v5862_v30, %v5842_v61  ;;  %v15179_v56 = vld [vmem:[%s21641_s7 + $0x324] ss:$16 sps:$4 sm:$0xff]   ;;  %v5864_v22 = vshrl.u32 %v5862_v30, 16  ;;  %11547 = vmatpush2.bf16.msra.mxu1 %v15168_v57  ;;  %11588 = vmatpush2.bf16.msra.mxu0 %v15171_v15  ;;  %v15177_v0 = vld [vmem:[%s21641_s7 + $0x320] ss:$16 sps:$4 sm:$0xff]   ;;  %v5328_v11 = vadd.f32 %v14700_v20, %v18821_v47  ;;  %v5331_v46 = vadd.f32 %v14703_v2, %v18821_v47 }
 0x435   : > { %5507 = vst.msk [vmem:[#allocation7 + $0x8] sm:$0xf] %vm21914_vm13, %v14294_v34  ;;  %v5472_v63 = vmax.f32 %v5451_v5, 0.0  ;;  %5844 = vst [vmem:[#allocation8 + $0x7] sm:$0x1] %v5843_v35  ;;  %11548 = vmatprep.subr.bf16.mxu1 %v15176_v52  ;;  %11589 = vmatprep.subr.bf16.mxu0 %v15179_v56  ;;  %v5336_v32 = vadd.f32 %v14706_v25, %v18821_v47 }
 0x436   : > { %5768 = vrot.lane.b32.xlu1 %v5764_v42, %s21913_s15  ;;  %v15182_v12 = vld [vmem:[%s21641_s7 + $0x104] ss:$16 sps:$4 sm:$0xff]   ;;  %v5875_v38 = vld [vmem:[#allocation8 + $0x8] sm:$0x1]  ;;  %v5923_v48 = vld [vmem:[#allocation8 + $0x9] sm:$0x1] }
 0x437   : > { %5817 = vrot.lane.b32.xlu0 %v5813_v45, %s21913_s15  ;;  %v14295_v13 = vpack.c.bf16 %v5472_v63, %v5472_v63  ;;  %v15185_v23 = vld [vmem:[%s21641_s7 + $0x304] ss:$16 sps:$4 sm:$0xff]   ;;  %v15180_v19 = vld [vmem:[%s21641_s7 + $0x100] ss:$16 sps:$4 sm:$0xff]  }
 0x438   : > { %11549 = vmatpush2.bf16.msra.mxu1 %v15174_v9  ;;  %11590 = vmatpush2.bf16.msra.mxu0 %v15177_v0  ;;  %v15183_v53 = vld [vmem:[%s21641_s7 + $0x300] ss:$16 sps:$4 sm:$0xff]   ;;  %v6055_v9 = vld [vmem:[#allocation8 + $0xc] sm:$0x1]  ;;  %v6103_v0 = vld [vmem:[#allocation8 + $0xd] sm:$0x1] }
 0x439   : > { %5508 = vst.msk [vmem:[#allocation7 + $0xc] sm:$0xf] %vm21915_vm2, %v14295_v13  ;;  %11550 = vmatprep.subr.bf16.mxu1 %v15182_v12  ;;  %11591 = vmatprep.subr.bf16.mxu0 %v15185_v23  ;;  %v5972_v17 = vld [vmem:[#allocation8 + $0xa] sm:$0x1]  ;;  %v6022_v61 = vld [vmem:[#allocation8 + $0xb] sm:$0x1] }
 0x43a   : > { %5868 = vrot.lane.b32.xlu1 %v5864_v22, %s21913_s15 }
 0x43b   : > { %v14738_v10 = vpop.f32.mrf.mxu1 }
 0x43c   : > { %v13402_v40 = vld.sshfl [vmem:[#allocation7 + $0x8] sm:$0x1 pattern:$0x75316420]  ;;  %11551 = vmatpush2.bf16.msra.mxu1 %v15180_v19  ;;  %11592 = vmatpush2.bf16.msra.mxu0 %v15183_v53 }
 0x43d   : > { %v14739_v59 = vpop.f32.mrf.mxu1  ;;  %v5893_v16 = vrot.slane %v13402_v40, %v18850_v54  ;;  %v13405_v28 = vld.sshfl [vmem:[#allocation7 + $0x8] sm:$0x10 pattern:$0x75316420]  ;;  %v5874_v27 = vld [vmem:[#allocation7 + $0x8] sm:$0x1] }
 0x43e   : > { %v14740_v49 = vadd.f32 %v14739_v59, %v14738_v10  ;;  %v5935_v18 = vcombine.high %v13405_v28, %v13405_v28  ;;  %v13408_v8 = vld.sshfl [vmem:[#allocation7 + $0x8] sm:$0x2 pattern:$0x75316420]  ;;  %v5876_v44 = vsel %vm18019_vm6, %v5874_v27, %v5875_v38 }
 0x43f   : > { %v14741_v62 = vpop.f32.mrf.mxu1  ;;  %v5895_v14 = vshrl.u32 %v5893_v16, 16  ;;  %v5990_v29 = vrot.slane %v13408_v8, %v18850_v54  ;;  %v13411_v60 = vld.sshfl [vmem:[#allocation7 + $0x8] sm:$0x20 pattern:$0x75316420] }
 0x440   : > { %v5392_v43 = vadd.f32 %v14740_v49, %v5328_v11  ;;  %5877 = vst [vmem:[#allocation8 + $0x8] sm:$0x1] %v5876_v44  ;;  %v5942_v50 = vrot.slane %v5935_v18, %v18850_v54  ;;  %v6034_v41 = vcombine.high %v13411_v60, %v13411_v60  ;;  %v13413_v6 = vld.sshfl [vmem:[#allocation7 + $0xc] sm:$0x1 pattern:$0x75316420] }
 0x441   : > { %v14742_v36 = vpop.f32.mrf.mxu1  ;;  %5899 = vrot.lane.b32.xlu0 %v5895_v14, %s21913_s15  ;;  %v5991_v33 = vcombine.high %v5990_v29, %v5990_v29  ;;  %v6073_v37 = vrot.slane %v13413_v6, %v18850_v54  ;;  %v13416_v47 = vld.sshfl [vmem:[#allocation7 + $0xc] sm:$0x10 pattern:$0x75316420]  ;;  %v6054_v10 = vld [vmem:[#allocation7 + $0xc] sm:$0x1] }
 0x442   : > { %v5456_v55 = vadd.f32 %v18840_v39, %v5392_v43  ;;  %v14743_v21 = vadd.f32 %v14742_v36, %v14741_v62  ;;  %v15188_v39 = vld [vmem:[%s21641_s7 + $0x4e4] ss:$16 sps:$4 sm:$0xff]   ;;  %v5944_v24 = vshrl.u32 %v5942_v50, 16  ;;  %v6041_v34 = vrot.slane %v6034_v41, %v18850_v54  ;;  %v6283_v6 = vld [vmem:[#allocation8 + $0x11] sm:$0x1] }
 0x443   : > { %v14744_v26 = vpop.f32.mrf.mxu1  ;;  %v6115_v5 = vcombine.high %v13416_v47, %v13416_v47  ;;  %v13419_v42 = vld.sshfl [vmem:[#allocation7 + $0xc] sm:$0x2 pattern:$0x75316420]  ;;  %v5924_v45 = vsel %vm18019_vm6, %v5942_v50, %v5923_v48  ;;  %11602 = vmatprep.subr.bf16.mxu1 %v15188_v39  ;;  %v5993_v63 = vshrl.u32 %v5991_v33, 16  ;;  %v5973_v23 = vsel %vm18019_vm6, %v5991_v33, %v5972_v17 }
 0x444   : > { %v5473_v7 = vmax.f32 %v5456_v55, 0.0  ;;  %v5395_v58 = vadd.f32 %v14743_v21, %v5331_v46  ;;  %v13422_v52 = vld.sshfl [vmem:[#allocation7 + $0xc] sm:$0x20 pattern:$0x75316420]  ;;  %5948 = vrot.lane.b32.xlu1 %v5944_v24, %s21913_s15  ;;  %v6042_v20 = vcombine.high %v6041_v34, %v6041_v34  ;;  %v6170_v22 = vrot.slane %v13419_v42, %v18850_v54 }
 0x445   : > { %v14745_v30 = vpop.f32.mrf.mxu1  ;;  %5925 = vst [vmem:[#allocation8 + $0x9] sm:$0x1] %v5924_v45  ;;  %v6122_v13 = vrot.slane %v6115_v5, %v18850_v54  ;;  %5997 = vrot.lane.b32.xlu0 %v5993_v63, %s21913_s15  ;;  %v6214_v59 = vcombine.high %v13422_v52, %v13422_v52  ;;  %v15192_v11 = vld [vmem:[%s21641_s7 + $0x6e4] ss:$16 sps:$4 sm:$0xff]   ;;  %v6075_v25 = vshrl.u32 %v6073_v37, 16  ;;  %v6056_v28 = vsel %vm18019_vm6, %v6054_v10, %v6055_v9 }
 0x446   : > { %v14296_v35 = vpack.c.bf16 %v5473_v7, %v5473_v7  ;;  %v5459_v57 = vadd.f32 %v5458_v1, %v5395_v58  ;;  %v14746_v15 = vadd.f32 %v14745_v30, %v14744_v26  ;;  %v6152_v49 = vld [vmem:[#allocation8 + $0xe] sm:$0x1]  ;;  %v6044_v19 = vshrl.u32 %v6042_v20, 16  ;;  %5974 = vst [vmem:[#allocation8 + $0xa] sm:$0x1] %v5973_v23  ;;  %11643 = vmatprep.subr.bf16.mxu0 %v15192_v11 }
 0x447   : > { %v14747_v56 = vpop.f32.mrf.mxu1  ;;  %v6171_v62 = vcombine.high %v6170_v22, %v6170_v22  ;;  %v6023_v40 = vsel %vm18019_vm6, %v6042_v20, %v6022_v61  ;;  %v6221_v16 = vrot.slane %v6214_v59, %v18850_v54  ;;  %6057 = vst [vmem:[#allocation8 + $0xc] sm:$0x1] %v6056_v28  ;;  %v6104_v27 = vsel %vm18019_vm6, %v6122_v13, %v6103_v0  ;;  %v6202_v36 = vld [vmem:[#allocation8 + $0xf] sm:$0x1]  ;;  %v5511_v8 = vld [vmem:[#allocation7 + $0x18] sm:$0x1] }
 0x448   : > { %5509 = vst.msk [vmem:[#allocation7 + $0x10] sm:$0xf] %vm21916_vm0, %v14296_v35  ;;  %v5474_v12 = vmax.f32 %v5459_v57, 0.0  ;;  %v5400_v2 = vadd.f32 %v14746_v15, %v5336_v32  ;;  %6024 = vst [vmem:[#allocation8 + $0xb] sm:$0x1] %v6023_v40  ;;  %6048 = vrot.lane.b32.xlu1 %v6044_v19, %s21913_s15  ;;  %v6124_v44 = vshrl.u32 %v6122_v13, 16 }
 0x449   : > { %v14748_v38 = vpop.f32.mrf.mxu1  ;;  %v6153_v46 = vsel %vm18019_vm6, %v6171_v62, %v6152_v49  ;;  %6079 = vrot.lane.b32.xlu0 %v6075_v25, %s21913_s15  ;;  %v6222_v18 = vcombine.high %v6221_v16, %v6221_v16  ;;  %6105 = vst [vmem:[#allocation8 + $0xd] sm:$0x1] %v6104_v27  ;;  %v6235_v48 = vld [vmem:[#allocation8 + $0x10] sm:$0x1]  ;;  %v6173_v21 = vshrl.u32 %v6171_v62, 16 }
 0x44a   : > { %v14297_v53 = vpack.c.bf16 %v5474_v12, %v5474_v12  ;;  %v5464_v43 = vadd.f32 %v18829_v51, %v5400_v2  ;;  %6154 = vst [vmem:[#allocation8 + $0xe] sm:$0x1] %v6153_v46  ;;  %v6332_v30 = vld [vmem:[#allocation8 + $0x12] sm:$0x1]  ;;  %v6595_v24 = vld [vmem:[#allocation8 + $0x18] sm:$0x1] }
 0x44b   : > { %v6203_v14 = vsel %vm18019_vm6, %v6222_v18, %v6202_v36  ;;  %v6224_v17 = vshrl.u32 %v6222_v18, 16  ;;  %v6382_v0 = vld [vmem:[#allocation8 + $0x13] sm:$0x1]  ;;  %v6415_v12 = vld [vmem:[#allocation8 + $0x14] sm:$0x1] }
 0x44c   : > { %5510 = vst.msk [vmem:[#allocation7 + $0x14] sm:$0xf] %vm21917_vm1, %v14297_v53  ;;  %v5475_v51 = vmax.f32 %v5464_v43, 0.0  ;;  %6128 = vrot.lane.b32.xlu1 %v6124_v44, %s21913_s15  ;;  %6204 = vst [vmem:[#allocation8 + $0xf] sm:$0x1] %v6203_v14 }
 0x44d   : > { %6177 = vrot.lane.b32.xlu0 %v6173_v21, %s21913_s15  ;;  %v6463_v2 = vld [vmem:[#allocation8 + $0x15] sm:$0x1]  ;;  %v6512_v11 = vld [vmem:[#allocation8 + $0x16] sm:$0x1]  ;;  %v6562_v16 = vld [vmem:[#allocation8 + $0x17] sm:$0x1] }
 0x44e   : > { %v14298_v55 = vpack.c.bf16 %v5475_v51, %v5475_v51  ;;  %v5542_v44 = vld [vmem:[#allocation8] sm:$0x1]  ;;  %v5591_v21 = vld [vmem:[#allocation8 + $0x1] sm:$0x1]  ;;  %v5640_v14 = vld [vmem:[#allocation8 + $0x2] sm:$0x1] }
 0x44f   : > { %v13424_v29 = vld.sshfl [vmem:[#allocation7 + $0x10] sm:$0x1 pattern:$0x75316420] }
 0x450   : > { %v6234_v60 = vld [vmem:[#allocation7 + $0x10] sm:$0x1]  ;;  %v5512_v32 = vsel %vm18019_vm6, %v14298_v55, %v5511_v8  ;;  %v6253_v26 = vrot.slane %v13424_v29, %v18850_v54  ;;  %v13427_v50 = vld.sshfl [vmem:[#allocation7 + $0x10] sm:$0x10 pattern:$0x75316420]  ;;  %6228 = vrot.lane.b32.xlu1 %v6224_v17, %s21913_s15 }
 0x451   : > { %v6236_v41 = vsel %vm18019_vm6, %v6234_v60, %v6235_v48  ;;  %5513 = vst [vmem:[#allocation7 + $0x18] sm:$0x1] %v5512_v32  ;;  %v6295_v39 = vcombine.high %v13427_v50, %v13427_v50  ;;  %v13430_v7 = vld.sshfl [vmem:[#allocation7 + $0x10] sm:$0x2 pattern:$0x75316420] }
 0x452   : > { %6237 = vst [vmem:[#allocation8 + $0x10] sm:$0x1] %v6236_v41  ;;  %v6255_v58 = vshrl.u32 %v6253_v26, 16  ;;  %v6350_v33 = vrot.slane %v13430_v7, %v18850_v54  ;;  %v5691_v32 = vld [vmem:[#allocation8 + $0x3] sm:$0x1] }
 0x453   : > { %v13433_v37 = vld.sshfl [vmem:[#allocation7 + $0x10] sm:$0x20 pattern:$0x75316420]  ;;  %v6302_v47 = vrot.slane %v6295_v39, %v18850_v54  ;;  %v6414_v25 = vld [vmem:[#allocation7 + $0x14] sm:$0x1] }
 0x454   : > { %v6394_v61 = vcombine.high %v13433_v37, %v13433_v37  ;;  %v13435_v1 = vld.sshfl [vmem:[#allocation7 + $0x14] sm:$0x1 pattern:$0x75316420]  ;;  %6259 = vrot.lane.b32.xlu0 %v6255_v58, %s21913_s15  ;;  %v6351_v34 = vcombine.high %v6350_v33, %v6350_v33  ;;  %v6416_v53 = vsel %vm18019_vm6, %v6414_v25, %v6415_v12  ;;  %v5722_v41 = vld [vmem:[#allocation8 + $0x4] sm:$0x1] }
 0x455   : > { %v13438_v5 = vld.sshfl [vmem:[#allocation7 + $0x14] sm:$0x10 pattern:$0x75316420]  ;;  %v6304_v42 = vshrl.u32 %v6302_v47, 16  ;;  %v6284_v15 = vsel %vm18019_vm6, %v6302_v47, %v6283_v6  ;;  %v6433_v52 = vrot.slane %v13435_v1, %v18850_v54 }
 0x456   : > { %v6401_v45 = vrot.slane %v6394_v61, %v18850_v54  ;;  %v6475_v35 = vcombine.high %v13438_v5, %v13438_v5  ;;  %v13441_v57 = vld.sshfl [vmem:[#allocation7 + $0x14] sm:$0x2 pattern:$0x75316420]  ;;  %v6353_v63 = vshrl.u32 %v6351_v34, 16  ;;  %v6333_v13 = vsel %vm18019_vm6, %v6351_v34, %v6332_v30 }
 0x457   : > { %v6530_v56 = vrot.slane %v13441_v57, %v18850_v54  ;;  %v13444_v20 = vld.sshfl [vmem:[#allocation7 + $0x14] sm:$0x20 pattern:$0x75316420]  ;;  %6285 = vst [vmem:[#allocation8 + $0x11] sm:$0x1] %v6284_v15  ;;  %6308 = vrot.lane.b32.xlu1 %v6304_v42, %s21913_s15 }
 0x458   : > { %v6402_v22 = vcombine.high %v6401_v45, %v6401_v45  ;;  %v6482_v10 = vrot.slane %v6475_v35, %v18850_v54  ;;  %v6574_v9 = vcombine.high %v13444_v20, %v13444_v20  ;;  %6334 = vst [vmem:[#allocation8 + $0x12] sm:$0x1] %v6333_v13  ;;  %v6594_v59 = vld [vmem:[#allocation7 + $0x18] sm:$0x1]  ;;  %6357 = vrot.lane.b32.xlu0 %v6353_v63, %s21913_s15  ;;  %v6435_v62 = vshrl.u32 %v6433_v52, 16 }
 0x459   : > { %v6531_v23 = vcombine.high %v6530_v56, %v6530_v56  ;;  %v6596_v49 = vsel %vm18019_vm6, %v6594_v59, %v6595_v24  ;;  %6417 = vst [vmem:[#allocation8 + $0x14] sm:$0x1] %v6416_v53  ;;  %v5771_v39 = vld [vmem:[#allocation8 + $0x5] sm:$0x1]  ;;  %v5820_v33 = vld [vmem:[#allocation8 + $0x6] sm:$0x1] }
 0x45a   : > { %v6404_v38 = vshrl.u32 %v6402_v22, 16  ;;  %v6581_v19 = vrot.slane %v6574_v9, %v18850_v54  ;;  %6597 = vst [vmem:[#allocation8 + $0x18] sm:$0x1] %v6596_v49  ;;  %v6383_v40 = vsel %vm18019_vm6, %v6402_v22, %v6382_v0  ;;  %v6464_v43 = vsel %vm18019_vm6, %v6482_v10, %v6463_v2  ;;  %v5871_v61 = vld [vmem:[#allocation8 + $0x7] sm:$0x1] }
 0x45b   : > { %6384 = vst [vmem:[#allocation8 + $0x13] sm:$0x1] %v6383_v40  ;;  %6465 = vst [vmem:[#allocation8 + $0x15] sm:$0x1] %v6464_v43  ;;  %v6513_v27 = vsel %vm18019_vm6, %v6531_v23, %v6512_v11  ;;  %v6484_v46 = vshrl.u32 %v6482_v10, 16  ;;  %v6533_v51 = vshrl.u32 %v6531_v23, 16 }
 0x45c   : > { %6408 = vrot.lane.b32.xlu1 %v6404_v38, %s21913_s15  ;;  %v6582_v28 = vcombine.high %v6581_v19, %v6581_v19  ;;  %6439 = vrot.lane.b32.xlu0 %v6435_v62, %s21913_s15  ;;  %6514 = vst [vmem:[#allocation8 + $0x16] sm:$0x1] %v6513_v27  ;;  %v5902_v24 = vld [vmem:[#allocation8 + $0x8] sm:$0x1]  ;;  %v5951_v57 = vld [vmem:[#allocation8 + $0x9] sm:$0x1] }
 0x45d   : > { %v6000_v52 = vld [vmem:[#allocation8 + $0xa] sm:$0x1]  ;;  %v6051_v2 = vld [vmem:[#allocation8 + $0xb] sm:$0x1]  ;;  %v6082_v11 = vld [vmem:[#allocation8 + $0xc] sm:$0x1] }
 0x45e   : > { %v6563_v36 = vsel %vm18019_vm6, %v6582_v28, %v6562_v16  ;;  %v6584_v18 = vshrl.u32 %v6582_v28, 16  ;;  %v15186_v0 = vld [vmem:[%s21641_s7 + $0x4e0] ss:$16 sps:$4 sm:$0xff]   ;;  %v15195_v62 = vld [vmem:[%s21641_s7 + $0x4c4] ss:$16 sps:$4 sm:$0xff]  }
 0x45f   : > { %6564 = vst [vmem:[#allocation8 + $0x17] sm:$0x1] %v6563_v36  ;;  %v15190_v25 = vld [vmem:[%s21641_s7 + $0x6e0] ss:$16 sps:$4 sm:$0xff]   ;;  %v15198_v43 = vld [vmem:[%s21641_s7 + $0x6c4] ss:$16 sps:$4 sm:$0xff]  }
 0x460   : > { %6488 = vrot.lane.b32.xlu1 %v6484_v46, %s21913_s15  ;;  %6537 = vrot.lane.b32.xlu0 %v6533_v51, %s21913_s15  ;;  %v15193_v16 = vld [vmem:[%s21641_s7 + $0x4c0] ss:$16 sps:$4 sm:$0xff]   ;;  %v6131_v27 = vld [vmem:[#allocation8 + $0xd] sm:$0x1] }
 0x461   : > { %v15201_v36 = vld [vmem:[%s21641_s7 + $0x4a4] ss:$16 sps:$4 sm:$0xff]  }
 0x464   : > { %6588 = vrot.lane.b32.xlu1 %v6584_v18, %s21913_s15  ;;  %v6180_v18 = vld [vmem:[#allocation8 + $0xe] sm:$0x1]  ;;  %s14265_s15 = sshll.u32 %s16450_s21, 4  ;;  %s16368_s21 = smov [#allocation9]  }
 0x465   : > { %s21599_s14 = scalar_lea.hbm %s21645_s11, %s14265_s15  ;;  %s16307_s30 = sshll.u32 %s16368_s21, 4  ;;  %s16308_s30 = int_to_ptr.vmem [resolvable:$false] %s16307_s30 }
 0x466   : > { %s16309_s26 = scalar_lea.vmem %s16308_s30, 32  ;;  %p16310_p0 = scmp.lt.s32.totalorder %s12946_s24, %s16308_s30 }
 0x467   : > { %p16311_p1 = scmp.lt.s32.totalorder %s16309_s26, %s16303_s25 }
 0x469   : > { %p16312_p2 = por %p16311_p1, %p16310_p0 }
 0x46b   : > { %p16313_p3 = pnand %p16312_p2, %p16306_p13 }
 0x49c   : > { %v5540_v8 = vpop.permute.xlu0 %5539 }
 0x49d   : > { %v5543_v48 = vsel %vm18618_vm12, %v5540_v8, %v5542_v44  ;;  %v15196_v44 = vld [vmem:[%s21641_s7 + $0x6c0] ss:$16 sps:$4 sm:$0xff]  }
 0x49e   : > { %5544 = vst [vmem:[#allocation8] sm:$0x1] %v5543_v48 }
 0x49f   : > { %v5589_v55 = vpop.permute.xlu1 %5588 }
 0x4a0   : > { %v5592_v3 = vsel %vm18618_vm12, %v5589_v55, %v5591_v21  ;;  %v15204_v55 = vld [vmem:[%s21641_s7 + $0x6a4] ss:$16 sps:$4 sm:$0xff]   ;;  %v15199_v21 = vld [vmem:[%s21641_s7 + $0x4a0] ss:$16 sps:$4 sm:$0xff]  }
 0x4a1   : > { %v5638_v29 = vpop.permute.xlu0 %5637  ;;  %5593 = vst [vmem:[#allocation8 + $0x1] sm:$0x1] %v5592_v3  ;;  %v6231_v3 = vld [vmem:[#allocation8 + $0xf] sm:$0x1] }
 0x4a2   : > { %v5641_v60 = vsel %vm18618_vm12, %v5638_v29, %v5640_v14  ;;  %v15207_v29 = vld [vmem:[%s21641_s7 + $0x484] ss:$16 sps:$4 sm:$0xff]  }
 0x4a3   : > { %5642 = vst [vmem:[#allocation8 + $0x2] sm:$0x1] %v5641_v60 }
 0x4a4   : > { %v5689_v26 = vpop.permute.xlu1 %5688 }
 0x4a5   : > { %v5692_v50 = vsel %vm18618_vm12, %v5689_v26, %v5691_v32  ;;  %v5720_v6 = vpop.permute.xlu0 %5719  ;;  %v6262_v32 = vld [vmem:[#allocation8 + $0x10] sm:$0x1] }
 0x4a6   : > { %5693 = vst [vmem:[#allocation8 + $0x3] sm:$0x1] %v5692_v50  ;;  %v5723_v17 = vsel %vm18618_vm12, %v5720_v6, %v5722_v41  ;;  %v15202_v50 = vld [vmem:[%s21641_s7 + $0x6a0] ss:$16 sps:$4 sm:$0xff]   ;;  %v15210_v6 = vld [vmem:[%s21641_s7 + $0x684] ss:$16 sps:$4 sm:$0xff]  }
 0x4a7   : > { %5724 = vst [vmem:[#allocation8 + $0x4] sm:$0x1] %v5723_v17  ;;  %v15205_v17 = vld [vmem:[%s21641_s7 + $0x480] ss:$16 sps:$4 sm:$0xff]  }
 0x4a8   : > { %v5769_v7 = vpop.permute.xlu1 %5768 }
 0x4a9   : > { %v5772_v58 = vsel %vm18618_vm12, %v5769_v7, %v5771_v39  ;;  %v5818_v37 = vpop.permute.xlu0 %5817  ;;  %v6311_v39 = vld [vmem:[#allocation8 + $0x11] sm:$0x1] }
 0x4aa   : > { %5773 = vst [vmem:[#allocation8 + $0x5] sm:$0x1] %v5772_v58  ;;  %v5821_v47 = vsel %vm18618_vm12, %v5818_v37, %v5820_v33  ;;  %v15213_v58 = vld [vmem:[%s21641_s7 + $0x464] ss:$16 sps:$4 sm:$0xff]   ;;  %v6360_v37 = vld [vmem:[#allocation8 + $0x12] sm:$0x1] }
 0x4ab   : > { %5822 = vst [vmem:[#allocation8 + $0x6] sm:$0x1] %v5821_v47 }
 0x4ac   : > { %v5869_v1 = vpop.permute.xlu1 %5868 }
 0x4ad   : > { %v5872_v30 = vsel %vm18618_vm12, %v5869_v1, %v5871_v61  ;;  %v15208_v61 = vld [vmem:[%s21641_s7 + $0x680] ss:$16 sps:$4 sm:$0xff]  }
 0x4ae   : > { %5873 = vst [vmem:[#allocation8 + $0x7] sm:$0x1] %v5872_v30  ;;  %v15216_v30 = vld [vmem:[%s21641_s7 + $0x664] ss:$16 sps:$4 sm:$0xff]  }
 0x4b3   : > { %v5900_v34 = vpop.permute.xlu0 %5899 }
 0x4b4   : > { %v5903_v5 = vsel %vm18618_vm12, %v5900_v34, %v5902_v24  ;;  %v15211_v24 = vld [vmem:[%s21641_s7 + $0x460] ss:$16 sps:$4 sm:$0xff]   ;;  %v6411_v34 = vld [vmem:[#allocation8 + $0x13] sm:$0x1] }
 0x4b5   : > { %v6598_v42 = vld [vmem:[#allocation8] sm:$0xff]  ;;  %5904 = vst [vmem:[#allocation8 + $0x8] sm:$0x1] %v5903_v5 }
 0x4b6   : > { %v7398_v45 = vrot.slane %v6598_v42, %v18850_v54  ;;  %v7391_v35 = vcombine.high %v6598_v42, %v6598_v42  ;;  %v5949_v15 = vpop.permute.xlu1 %5948  ;;  %v15219_v42 = vld [vmem:[%s21641_s7 + $0x444] ss:$16 sps:$4 sm:$0xff]  }
 0x4b7   : > { %v5952_v63 = vsel %vm18618_vm12, %v5949_v15, %v5951_v57  ;;  %v5998_v56 = vpop.permute.xlu0 %5997  ;;  %v15214_v15 = vld [vmem:[%s21641_s7 + $0x660] ss:$16 sps:$4 sm:$0xff]  }
 0x4b8   : > { %v7406_v20 = vcombine.high %v7398_v45, %v7398_v45  ;;  %v19075_v13 = vrot.slane %v7391_v35, %v18850_v54  ;;  %5953 = vst [vmem:[#allocation8 + $0x9] sm:$0x1] %v5952_v63  ;;  %v6001_v22 = vsel %vm18618_vm12, %v5998_v56, %v6000_v52  ;;  %v19080_v10 = vrot.slane %v7398_v45, %v18850_v54  ;;  %v6442_v35 = vld [vmem:[#allocation8 + $0x14] sm:$0x1]  ;;  %v15222_v52 = vld [vmem:[%s21641_s7 + $0x644] ss:$16 sps:$4 sm:$0xff]  }
 0x4b9   : > { %6002 = vst [vmem:[#allocation8 + $0xa] sm:$0x1] %v6001_v22  ;;  %v15217_v56 = vld [vmem:[%s21641_s7 + $0x440] ss:$16 sps:$4 sm:$0xff]  }
 0x4ba   : > { %v19083_v9 = vrot.slane %v7406_v20, %v18850_v54  ;;  %v7407_v12 = vcombine.high %v19075_v13, %v19075_v13  ;;  %v6049_v59 = vpop.permute.xlu1 %6048  ;;  %v19111_v53 = vcombine.high %v19080_v10, %v19080_v10  ;;  %v6491_v20 = vld [vmem:[#allocation8 + $0x15] sm:$0x1] }
 0x4bb   : > { %v6052_v23 = vsel %vm18618_vm12, %v6049_v59, %v6051_v2  ;;  %v6080_v49 = vpop.permute.xlu0 %6079  ;;  %v6540_v2 = vld [vmem:[#allocation8 + $0x16] sm:$0x1] }
 0x4bc   : > { %11552 = vmatprep.mubr.bf16.mxu1 %v19083_v9  ;;  %v19095_v38 = vcombine.high %v19083_v9, %v19083_v9  ;;  %v19098_v19 = vrot.slane %v7407_v12, %v18850_v54  ;;  %6053 = vst [vmem:[#allocation8 + $0xb] sm:$0x1] %v6052_v23  ;;  %v6083_v40 = vsel %vm18618_vm12, %v6080_v49, %v6082_v11  ;;  %v15220_v23 = vld [vmem:[%s21641_s7 + $0x640] ss:$16 sps:$4 sm:$0xff]   ;;  %v15228_v49 = vld [vmem:[%s21641_s7 + $0x624] ss:$16 sps:$4 sm:$0xff]  }
 0x4bd   : > { %11553 = vmatmul.mubr.bf16.vlgmr.msra.gmra.mxu1 %v19080_v10  ;;  %6084 = vst [vmem:[#allocation8 + $0xc] sm:$0x1] %v6083_v40 }
 0x4be   : > { %11603 = vmatpush1.bf16.msra.mxu1 %v15186_v0  ;;  %11593 = vmatprep.mubr.bf16.mxu0 %v19095_v38  ;;  %v19122_v28 = vcombine.high %v19098_v19, %v19098_v19  ;;  %v6129_v46 = vpop.permute.xlu1 %6128  ;;  %v15225_v0 = vld [vmem:[%s21641_s7 + $0x424] ss:$16 sps:$4 sm:$0xff]  }
 0x4bf   : > { %11634 = vmatprep.mubr.bf16.mxu1 %v19098_v19  ;;  %11594 = vmatmul.mubr.bf16.vlgmr.msra.gmra.mxu0 %v19111_v53  ;;  %v6132_v51 = vsel %vm18618_vm12, %v6129_v46, %v6131_v27  ;;  %v6178_v8 = vpop.permute.xlu0 %6177  ;;  %v15226_v27 = vld [vmem:[%s21641_s7 + $0x620] ss:$16 sps:$4 sm:$0xff]   ;;  %v15234_v46 = vld [vmem:[%s21641_s7 + $0x604] ss:$16 sps:$4 sm:$0xff]  }
 0x4c0   : > { %11644 = vmatpush1.bf16.msra.mxu0 %v15190_v25  ;;  %11604 = vmatprep.subr.bf16.mxu1 %v15195_v62  ;;  %6133 = vst [vmem:[#allocation8 + $0xd] sm:$0x1] %v6132_v51  ;;  %v6181_v48 = vsel %vm18618_vm12, %v6178_v8, %v6180_v18  ;;  %v15223_v25 = vld [vmem:[%s21641_s7 + $0x420] ss:$16 sps:$4 sm:$0xff]   ;;  %v6591_v62 = vld [vmem:[#allocation8 + $0x17] sm:$0x1] }
 0x4c1   : > { %11675 = vmatprep.mubr.bf16.mxu0 %v19122_v28  ;;  %11645 = vmatprep.subr.bf16.mxu0 %v15198_v43  ;;  %6182 = vst [vmem:[#allocation8 + $0xe] sm:$0x1] %v6181_v48  ;;  %v15231_v43 = vld [vmem:[%s21641_s7 + $0x404] ss:$16 sps:$4 sm:$0xff]   ;;  %v15232_v51 = vld [vmem:[%s21641_s7 + $0x600] ss:$16 sps:$4 sm:$0xff]  }
 0x4c2   : > { %11605 = vmatpush1.bf16.msra.mxu1 %v15193_v16  ;;  %v6229_v14 = vpop.permute.xlu1 %6228  ;;  %v15240_v18 = vld [vmem:[%s21641_s7 + $0x7e4] ss:$16 sps:$4 sm:$0xff]   ;;  %v15235_v8 = vld [vmem:[%s21641_s7 + $0x5e0] ss:$16 sps:$4 sm:$0xff]  }
 0x4c3   : > { %11606 = vmatprep.subr.bf16.mxu1 %v15201_v36  ;;  %v6232_v60 = vsel %vm18618_vm12, %v6229_v14, %v6231_v3  ;;  %v15229_v36 = vld [vmem:[%s21641_s7 + $0x400] ss:$16 sps:$4 sm:$0xff]   ;;  %v15249_v3 = vld [vmem:[%s21641_s7 + $0x5a4] ss:$16 sps:$4 sm:$0xff]  }
 0x4c4   : > { %11646 = vmatpush1.bf16.msra.mxu0 %v15196_v44  ;;  %6233 = vst [vmem:[#allocation8 + $0xf] sm:$0x1] %v6232_v60  ;;  %v15243_v44 = vld [vmem:[%s21641_s7 + $0x5c4] ss:$16 sps:$4 sm:$0xff]   ;;  %v15238_v48 = vld [vmem:[%s21641_s7 + $0x7e0] ss:$16 sps:$4 sm:$0xff]  }
 0x4c5   : > { %11647 = vmatprep.subr.bf16.mxu0 %v15204_v55  ;;  %v15246_v55 = vld [vmem:[%s21641_s7 + $0x7c4] ss:$16 sps:$4 sm:$0xff]   ;;  %v15244_v14 = vld [vmem:[%s21641_s7 + $0x7c0] ss:$16 sps:$4 sm:$0xff]  }
 0x4c6   : > { %v6260_v26 = vpop.permute.xlu0 %6259  ;;  %11607 = vmatpush1.bf16.msra.mxu1 %v15199_v21  ;;  %v15241_v21 = vld [vmem:[%s21641_s7 + $0x5c0] ss:$16 sps:$4 sm:$0xff]  }
 0x4c7   : > { %v6263_v41 = vsel %vm18618_vm12, %v6260_v26, %v6262_v32  ;;  %11608 = vmatprep.subr.bf16.mxu1 %v15207_v29  ;;  %v15252_v29 = vld [vmem:[%s21641_s7 + $0x7a4] ss:$16 sps:$4 sm:$0xff]   ;;  %v15247_v60 = vld [vmem:[%s21641_s7 + $0x5a0] ss:$16 sps:$4 sm:$0xff]  }
 0x4c8   : > { %6264 = vst [vmem:[#allocation8 + $0x10] sm:$0x1] %v6263_v41  ;;  %11648 = vmatpush1.bf16.msra.mxu0 %v15202_v50  ;;  %v15255_v32 = vld [vmem:[%s21641_s7 + $0x584] ss:$16 sps:$4 sm:$0xff]   ;;  %v15250_v26 = vld [vmem:[%s21641_s7 + $0x7a0] ss:$16 sps:$4 sm:$0xff]  }
 0x4c9   : > { %v6309_v7 = vpop.permute.xlu1 %6308  ;;  %11649 = vmatprep.subr.bf16.mxu0 %v15210_v6  ;;  %v15258_v50 = vld [vmem:[%s21641_s7 + $0x784] ss:$16 sps:$4 sm:$0xff]   ;;  %v15253_v41 = vld [vmem:[%s21641_s7 + $0x580] ss:$16 sps:$4 sm:$0xff]  }
 0x4ca   : > { %v6312_v33 = vsel %vm18618_vm12, %v6309_v7, %v6311_v39  ;;  %v6358_v47 = vpop.permute.xlu0 %6357  ;;  %11609 = vmatpush1.bf16.msra.mxu1 %v15205_v17  ;;  %v15261_v6 = vld [vmem:[%s21641_s7 + $0x564] ss:$16 sps:$4 sm:$0xff]   ;;  %v15256_v17 = vld [vmem:[%s21641_s7 + $0x780] ss:$16 sps:$4 sm:$0xff]  }
 0x4cb   : > { %6313 = vst [vmem:[#allocation8 + $0x11] sm:$0x1] %v6312_v33  ;;  %v6361_v1 = vsel %vm18618_vm12, %v6358_v47, %v6360_v37  ;;  %11610 = vmatprep.subr.bf16.mxu1 %v15213_v58  ;;  %v15264_v39 = vld [vmem:[%s21641_s7 + $0x764] ss:$16 sps:$4 sm:$0xff]   ;;  %v15259_v7 = vld [vmem:[%s21641_s7 + $0x560] ss:$16 sps:$4 sm:$0xff]  }
 0x4cc   : > { %6362 = vst [vmem:[#allocation8 + $0x12] sm:$0x1] %v6361_v1  ;;  %11650 = vmatpush1.bf16.msra.mxu0 %v15208_v61  ;;  %v15267_v58 = vld [vmem:[%s21641_s7 + $0x544] ss:$16 sps:$4 sm:$0xff]   ;;  %v15262_v33 = vld [vmem:[%s21641_s7 + $0x760] ss:$16 sps:$4 sm:$0xff]  }
 0x4cd   : > { %11651 = vmatprep.subr.bf16.mxu0 %v15216_v30  ;;  %v15270_v37 = vld [vmem:[%s21641_s7 + $0x744] ss:$16 sps:$4 sm:$0xff]   ;;  %v15265_v47 = vld [vmem:[%s21641_s7 + $0x540] ss:$16 sps:$4 sm:$0xff]  }
 0x4ce   : > { %v6409_v5 = vpop.permute.xlu1 %6408  ;;  %v6440_v57 = vpop.permute.xlu0 %6439  ;;  %11611 = vmatpush1.bf16.msra.mxu1 %v15211_v24  ;;  %v15273_v61 = vld [vmem:[%s21641_s7 + $0x524] ss:$16 sps:$4 sm:$0xff]   ;;  %v15268_v30 = vld [vmem:[%s21641_s7 + $0x740] ss:$16 sps:$4 sm:$0xff]  }
 0x4cf   : > { %v6412_v45 = vsel %vm18618_vm12, %v6409_v5, %v6411_v34  ;;  %v6443_v63 = vsel %vm18618_vm12, %v6440_v57, %v6442_v35  ;;  %11612 = vmatprep.subr.bf16.mxu1 %v15219_v42  ;;  %v19296_v1 = vld [vmem:[#allocation8 + $0x8] sm:$0xff] }
 0x4d0   : > { %6413 = vst [vmem:[#allocation8 + $0x13] sm:$0x1] %v6412_v45  ;;  %6444 = vst [vmem:[#allocation8 + $0x14] sm:$0x1] %v6443_v63  ;;  %11652 = vmatpush1.bf16.msra.mxu0 %v15214_v15  ;;  %v15276_v24 = vld [vmem:[%s21641_s7 + $0x724] ss:$16 sps:$4 sm:$0xff]   ;;  %v19309_v5 = vrot.slane %v19296_v1, %v18850_v54 }
 0x4d1   : > { %11653 = vmatprep.subr.bf16.mxu0 %v15222_v52  ;;  %v15271_v34 = vld [vmem:[%s21641_s7 + $0x520] ss:$16 sps:$4 sm:$0xff]   ;;  %v15279_v42 = vld [vmem:[%s21641_s7 + $0x504] ss:$16 sps:$4 sm:$0xff]  }
 0x4d2   : > { %v6489_v22 = vpop.permute.xlu1 %6488  ;;  %v6538_v59 = vpop.permute.xlu0 %6537  ;;  %11613 = vmatpush1.bf16.msra.mxu1 %v15217_v56  ;;  %v15274_v45 = vld [vmem:[%s21641_s7 + $0x720] ss:$16 sps:$4 sm:$0xff]   ;;  %v15282_v35 = vld [vmem:[%s21641_s7 + $0x704] ss:$16 sps:$4 sm:$0xff]   ;;  %v7455_v15 = vcombine.high %v19309_v5, %v19309_v5  ;;  %v19333_v56 = vrot.slane %v19075_v13, %v18850_v54 }
 0x4d3   : > { %v6492_v12 = vsel %vm18618_vm12, %v6489_v22, %v6491_v20  ;;  %v6541_v11 = vsel %vm18618_vm12, %v6538_v59, %v6540_v2  ;;  %11614 = vmatprep.subr.bf16.mxu1 %v15225_v0  ;;  %v15277_v57 = vld [vmem:[%s21641_s7 + $0x500] ss:$16 sps:$4 sm:$0xff]   ;;  %v15285_v63 = vld [vmem:[%s21641_s7 + $0x8e4] ss:$16 sps:$4 sm:$0xff]  }
 0x4d4   : > { %6493 = vst [vmem:[#allocation8 + $0x15] sm:$0x1] %v6492_v12  ;;  %6542 = vst [vmem:[#allocation8 + $0x16] sm:$0x1] %v6541_v11  ;;  %11654 = vmatpush1.bf16.msra.mxu0 %v15220_v23  ;;  %v15280_v52 = vld [vmem:[%s21641_s7 + $0x700] ss:$16 sps:$4 sm:$0xff]   ;;  %v19342_v0 = vrot.slane %v7455_v15, %v18850_v54  ;;  %v19353_v2 = vcombine.high %v19333_v56, %v19333_v56 }
 0x4d5   : > { %11655 = vmatprep.subr.bf16.mxu0 %v15228_v49  ;;  %v15288_v20 = vld [vmem:[%s21641_s7 + $0xae4] ss:$16 sps:$4 sm:$0xff]   ;;  %v15283_v22 = vld [vmem:[%s21641_s7 + $0x8e0] ss:$16 sps:$4 sm:$0xff]  }
 0x4d6   : > { %v6589_v40 = vpop.permute.xlu1 %6588  ;;  %11615 = vmatpush1.bf16.msra.mxu1 %v15223_v25  ;;  %v15291_v12 = vld [vmem:[%s21641_s7 + $0x8c4] ss:$16 sps:$4 sm:$0xff]   ;;  %v15286_v13 = vld [vmem:[%s21641_s7 + $0xae0] ss:$16 sps:$4 sm:$0xff]   ;;  %v19361_v23 = vcombine.high %v19342_v0, %v19342_v0 }
 0x4d7   : > { %v6592_v16 = vsel %vm18618_vm12, %v6589_v40, %v6591_v62  ;;  %11616 = vmatprep.subr.bf16.mxu1 %v15231_v43  ;;  %v15294_v59 = vld [vmem:[%s21641_s7 + $0xac4] ss:$16 sps:$4 sm:$0xff]   ;;  %v15289_v11 = vld [vmem:[%s21641_s7 + $0x8c0] ss:$16 sps:$4 sm:$0xff]  }
 0x4d8   : > { %6593 = vst [vmem:[#allocation8 + $0x17] sm:$0x1] %v6592_v16  ;;  %11656 = vmatpush1.bf16.msra.mxu0 %v15226_v27  ;;  %v15297_v49 = vld [vmem:[%s21641_s7 + $0x8a4] ss:$16 sps:$4 sm:$0xff]   ;;  %v15292_v25 = vld [vmem:[%s21641_s7 + $0xac0] ss:$16 sps:$4 sm:$0xff]  }
 0x4d9   : > { %11657 = vmatprep.subr.bf16.mxu0 %v15234_v46  ;;  %v15300_v62 = vld [vmem:[%s21641_s7 + $0xaa4] ss:$16 sps:$4 sm:$0xff]   ;;  %v15295_v40 = vld [vmem:[%s21641_s7 + $0x8a0] ss:$16 sps:$4 sm:$0xff]  }
 0x4da   : > { %11617 = vmatpush1.bf16.msra.mxu1 %v15229_v36  ;;  %v15303_v43 = vld [vmem:[%s21641_s7 + $0x884] ss:$16 sps:$4 sm:$0xff]   ;;  %v15298_v16 = vld [vmem:[%s21641_s7 + $0xaa0] ss:$16 sps:$4 sm:$0xff]  }
 0x4db   : > { %11618 = vmatprep.subr.bf16.mxu1 %v15237_v4  ;;  %v15306_v27 = vld [vmem:[%s21641_s7 + $0xa84] ss:$16 sps:$4 sm:$0xff]   ;;  %v15301_v46 = vld [vmem:[%s21641_s7 + $0x880] ss:$16 sps:$4 sm:$0xff]  }
 0x4dc   : > { %11658 = vmatpush1.bf16.msra.mxu0 %v15232_v51  ;;  %v15309_v36 = vld [vmem:[%s21641_s7 + $0x864] ss:$16 sps:$4 sm:$0xff]   ;;  %v15304_v4 = vld [vmem:[%s21641_s7 + $0xa80] ss:$16 sps:$4 sm:$0xff]  }
 0x4dd   : > { %11659 = vmatprep.subr.bf16.mxu0 %v15240_v18  ;;  %v15312_v51 = vld [vmem:[%s21641_s7 + $0xa64] ss:$16 sps:$4 sm:$0xff]   ;;  %v15307_v18 = vld [vmem:[%s21641_s7 + $0x860] ss:$16 sps:$4 sm:$0xff]  }
 0x4de   : > { %11619 = vmatpush2.bf16.msra.mxu1 %v15235_v8  ;;  %v15315_v8 = vld [vmem:[%s21641_s7 + $0x844] ss:$16 sps:$4 sm:$0xff]   ;;  %v15352_v15 = vld [vmem:[%s21641_s7 + $0xb80] ss:$16 sps:$4 sm:$0xff]  }
 0x4df   : > { %11620 = vmatprep.subr.bf16.mxu1 %v15243_v44  ;;  %v15310_v44 = vld [vmem:[%s21641_s7 + $0xa60] ss:$16 sps:$4 sm:$0xff]  }
 0x4e0   : > { %11660 = vmatpush2.bf16.msra.mxu0 %v15238_v48  ;;  %v15318_v48 = vld [vmem:[%s21641_s7 + $0xa44] ss:$16 sps:$4 sm:$0xff]  }
 0x4e1   : > { %11661 = vmatprep.subr.bf16.mxu0 %v15246_v55  ;;  %v15313_v55 = vld [vmem:[%s21641_s7 + $0x840] ss:$16 sps:$4 sm:$0xff]  }
 0x4e2   : > { %11621 = vmatpush2.bf16.msra.mxu1 %v15241_v21  ;;  %v15321_v21 = vld [vmem:[%s21641_s7 + $0x824] ss:$16 sps:$4 sm:$0xff]  }
 0x4e3   : > { %11622 = vmatprep.subr.bf16.mxu1 %v15249_v3  ;;  %v15316_v3 = vld [vmem:[%s21641_s7 + $0xa40] ss:$16 sps:$4 sm:$0xff]  }
 0x4e4   : > { %11662 = vmatpush2.bf16.msra.mxu0 %v15244_v14  ;;  %v15324_v14 = vld [vmem:[%s21641_s7 + $0xa24] ss:$16 sps:$4 sm:$0xff]  }
 0x4e5   : > { %11663 = vmatprep.subr.bf16.mxu0 %v15252_v29  ;;  %v15319_v29 = vld [vmem:[%s21641_s7 + $0x820] ss:$16 sps:$4 sm:$0xff]  }
 0x4e6   : > { %11623 = vmatpush2.bf16.msra.mxu1 %v15247_v60  ;;  %v15327_v60 = vld [vmem:[%s21641_s7 + $0x804] ss:$16 sps:$4 sm:$0xff]  }
 0x4e7   : > { %11624 = vmatprep.subr.bf16.mxu1 %v15255_v32  ;;  %v15322_v32 = vld [vmem:[%s21641_s7 + $0xa20] ss:$16 sps:$4 sm:$0xff]  }
 0x4e8   : > { %11664 = vmatpush2.bf16.msra.mxu0 %v15250_v26  ;;  %v15330_v26 = vld [vmem:[%s21641_s7 + $0xa04] ss:$16 sps:$4 sm:$0xff]  }
 0x4e9   : > { %11665 = vmatprep.subr.bf16.mxu0 %v15258_v50  ;;  %v15325_v50 = vld [vmem:[%s21641_s7 + $0x800] ss:$16 sps:$4 sm:$0xff]  }
 0x4ea   : > { %11625 = vmatpush2.bf16.msra.mxu1 %v15253_v41  ;;  %v15333_v41 = vld [vmem:[%s21641_s7 + $0x9e4] ss:$16 sps:$4 sm:$0xff]  }
 0x4eb   : > { %11626 = vmatprep.subr.bf16.mxu1 %v15261_v6  ;;  %v15328_v6 = vld [vmem:[%s21641_s7 + $0xa00] ss:$16 sps:$4 sm:$0xff]  }
 0x4ec   : > { %11666 = vmatpush2.bf16.msra.mxu0 %v15256_v17  ;;  %v15336_v17 = vld [vmem:[%s21641_s7 + $0xbe4] ss:$16 sps:$4 sm:$0xff]  }
 0x4ed   : > { %11667 = vmatprep.subr.bf16.mxu0 %v15264_v39  ;;  %v15331_v39 = vld [vmem:[%s21641_s7 + $0x9e0] ss:$16 sps:$4 sm:$0xff]  }
 0x4ee   : > { %11627 = vmatpush2.bf16.msra.mxu1 %v15259_v7  ;;  %v15339_v7 = vld [vmem:[%s21641_s7 + $0x9c4] ss:$16 sps:$4 sm:$0xff]  }
 0x4ef   : > { %11628 = vmatprep.subr.bf16.mxu1 %v15267_v58  ;;  %v15334_v58 = vld [vmem:[%s21641_s7 + $0xbe0] ss:$16 sps:$4 sm:$0xff]  }
 0x4f0   : > { %11668 = vmatpush2.bf16.msra.mxu0 %v15262_v33  ;;  %v15342_v33 = vld [vmem:[%s21641_s7 + $0xbc4] ss:$16 sps:$4 sm:$0xff]  }
 0x4f1   : > { %11669 = vmatprep.subr.bf16.mxu0 %v15270_v37  ;;  %v15337_v37 = vld [vmem:[%s21641_s7 + $0x9c0] ss:$16 sps:$4 sm:$0xff]  }
 0x4f2   : > { %11629 = vmatpush2.bf16.msra.mxu1 %v15265_v47  ;;  %v15345_v47 = vld [vmem:[%s21641_s7 + $0x9a4] ss:$16 sps:$4 sm:$0xff]  }
 0x4f3   : > { %11630 = vmatprep.subr.bf16.mxu1 %v15273_v61  ;;  %v15340_v61 = vld [vmem:[%s21641_s7 + $0xbc0] ss:$16 sps:$4 sm:$0xff]  }
 0x4f4   : > { %11670 = vmatpush2.bf16.msra.mxu0 %v15268_v30  ;;  %v15348_v30 = vld [vmem:[%s21641_s7 + $0xba4] ss:$16 sps:$4 sm:$0xff]  }
 0x4f5   : > { %11671 = vmatprep.subr.bf16.mxu0 %v15276_v24  ;;  %v15343_v24 = vld [vmem:[%s21641_s7 + $0x9a0] ss:$16 sps:$4 sm:$0xff]  }
 0x4f6   : > { %11631 = vmatpush2.bf16.msra.mxu1 %v15271_v34  ;;  %v15351_v34 = vld [vmem:[%s21641_s7 + $0x984] ss:$16 sps:$4 sm:$0xff]  }
 0x4f7   : > { %11632 = vmatprep.subr.bf16.mxu1 %v15279_v42  ;;  %v15346_v42 = vld [vmem:[%s21641_s7 + $0xba0] ss:$16 sps:$4 sm:$0xff]  }
 0x4f8   : > { %11672 = vmatpush2.bf16.msra.mxu0 %v15274_v45  ;;  %v15354_v45 = vld [vmem:[%s21641_s7 + $0xb84] ss:$16 sps:$4 sm:$0xff]  }
 0x4f9   : > { %11673 = vmatprep.subr.bf16.mxu0 %v15282_v35  ;;  %v15349_v35 = vld [vmem:[%s21641_s7 + $0x980] ss:$16 sps:$4 sm:$0xff]  }
 0x4fa   : > { %11633 = vmatpush2.bf16.msra.mxu1 %v15277_v57  ;;  %v15357_v57 = vld [vmem:[%s21641_s7 + $0x964] ss:$16 sps:$4 sm:$0xff]  }
 0x4fb   : > { %11684 = vmatprep.subr.bf16.mxu1 %v15285_v63  ;;  %v15360_v63 = vld [vmem:[%s21641_s7 + $0xb64] ss:$16 sps:$4 sm:$0xff]  }
 0x4fc   : > { %11674 = vmatpush2.bf16.msra.mxu0 %v15280_v52  ;;  %v15355_v52 = vld [vmem:[%s21641_s7 + $0x960] ss:$16 sps:$4 sm:$0xff]  }
 0x4fd   : > { %11635 = vmatmul.mubr.bf16.vlgmr.msra.gmra.mxu1 %v19333_v56  ;;  %11725 = vmatprep.subr.bf16.mxu0 %v15288_v20  ;;  %v15363_v20 = vld [vmem:[%s21641_s7 + $0x944] ss:$16 sps:$4 sm:$0xff]  }
 0x4fe   : > { %11685 = vmatpush1.bf16.msra.mxu1 %v15283_v22  ;;  %11716 = vmatprep.mubr.bf16.mxu1 %v19342_v0  ;;  %v15358_v22 = vld [vmem:[%s21641_s7 + $0xb60] ss:$16 sps:$4 sm:$0xff]  }
 0x4ff   : > { %11676 = vmatmul.mubr.bf16.vlgmr.msra.gmra.mxu0 %v19353_v2  ;;  %11686 = vmatprep.subr.bf16.mxu1 %v15291_v12  ;;  %v15366_v12 = vld [vmem:[%s21641_s7 + $0xb44] ss:$16 sps:$4 sm:$0xff]  }
 0x500   : > { %11726 = vmatpush1.bf16.msra.mxu0 %v15286_v13  ;;  %11757 = vmatprep.mubr.bf16.mxu0 %v19361_v23  ;;  %v15361_v13 = vld [vmem:[%s21641_s7 + $0x940] ss:$16 sps:$4 sm:$0xff]  }
 0x501   : > { %11727 = vmatprep.subr.bf16.mxu0 %v15294_v59  ;;  %v7440_v59 = vcombine.high %v19296_v1, %v19296_v1  ;;  %v15367_v1 = vld [vmem:[%s21641_s7 + $0x920] ss:$16 sps:$4 sm:$0xff]  }
 0x502   : > { %11687 = vmatpush1.bf16.msra.mxu1 %v15289_v11  ;;  %v15369_v11 = vld [vmem:[%s21641_s7 + $0x924] ss:$16 sps:$4 sm:$0xff]  }
 0x503   : > { %11688 = vmatprep.subr.bf16.mxu1 %v15297_v49  ;;  %v15364_v49 = vld [vmem:[%s21641_s7 + $0xb40] ss:$16 sps:$4 sm:$0xff]  }
 0x504   : > { %11728 = vmatpush1.bf16.msra.mxu0 %v15292_v25  ;;  %v15372_v25 = vld [vmem:[%s21641_s7 + $0xb24] ss:$16 sps:$4 sm:$0xff]  }
 0x505   : > { %11729 = vmatprep.subr.bf16.mxu0 %v15300_v62  ;;  %v19527_v62 = vrot.slane %v7440_v59, %v18850_v54  ;;  %v15431_v59 = vld [vmem:[%s21641_s7 + $0xfe0] ss:$16 sps:$4 sm:$0xff]  }
 0x506   : > { %11689 = vmatpush1.bf16.msra.mxu1 %v15295_v40  ;;  %v15375_v40 = vld [vmem:[%s21641_s7 + $0x904] ss:$16 sps:$4 sm:$0xff]  }
 0x507   : > { %11690 = vmatprep.subr.bf16.mxu1 %v15303_v43  ;;  %v15370_v43 = vld [vmem:[%s21641_s7 + $0xb20] ss:$16 sps:$4 sm:$0xff]  }
 0x508   : > { %11730 = vmatpush1.bf16.msra.mxu0 %v15298_v16  ;;  %v15378_v16 = vld [vmem:[%s21641_s7 + $0xb04] ss:$16 sps:$4 sm:$0xff]  }
 0x509   : > { %11731 = vmatprep.subr.bf16.mxu0 %v15306_v27  ;;  %v15373_v27 = vld [vmem:[%s21641_s7 + $0x900] ss:$16 sps:$4 sm:$0xff]  }
 0x50a   : > { %11691 = vmatpush1.bf16.msra.mxu1 %v15301_v46  ;;  %v7456_v46 = vcombine.high %v19527_v62, %v19527_v62 }
 0x50b   : > { %11692 = vmatprep.subr.bf16.mxu1 %v15309_v36  ;;  %v15381_v36 = vld [vmem:[%s21641_s7 + $0xce4] ss:$16 sps:$4 sm:$0xff]  }
 0x50c   : > { %11732 = vmatpush1.bf16.msra.mxu0 %v15304_v4  ;;  %v15376_v4 = vld [vmem:[%s21641_s7 + $0xb00] ss:$16 sps:$4 sm:$0xff]  }
 0x50d   : > { %11733 = vmatprep.subr.bf16.mxu0 %v15312_v51  ;;  %v19551_v51 = vrot.slane %v19309_v5, %v18850_v54  ;;  %v15383_v5 = vld [vmem:[%s21641_s7 + $0xee0] ss:$16 sps:$4 sm:$0xff]  }
 0x50e   : > { %11693 = vmatpush1.bf16.msra.mxu1 %v15307_v18  ;;  %v15385_v18 = vld [vmem:[%s21641_s7 + $0xee4] ss:$16 sps:$4 sm:$0xff]  }
 0x50f   : > { %11694 = vmatprep.subr.bf16.mxu1 %v15315_v8  ;;  %v15379_v8 = vld [vmem:[%s21641_s7 + $0xce0] ss:$16 sps:$4 sm:$0xff]  }
 0x510   : > { %11734 = vmatpush1.bf16.msra.mxu0 %v15310_v44  ;;  %v19560_v44 = vrot.slane %v7456_v46, %v18850_v54  ;;  %v15451_v46 = vld [vmem:[%s21641_s7 + $0xf84] ss:$16 sps:$4 sm:$0xff]  }
 0x511   : > { %11735 = vmatprep.subr.bf16.mxu0 %v15318_v48  ;;  %v15388_v48 = vld [vmem:[%s21641_s7 + $0xcc4] ss:$16 sps:$4 sm:$0xff]  }
 0x512   : > { %11695 = vmatpush1.bf16.msra.mxu1 %v15313_v55  ;;  %v19571_v55 = vcombine.high %v19551_v51, %v19551_v51 }
 0x513   : > { %11696 = vmatprep.subr.bf16.mxu1 %v15321_v21  ;;  %v15391_v21 = vld [vmem:[%s21641_s7 + $0xec4] ss:$16 sps:$4 sm:$0xff]  }
 0x514   : > { %11736 = vmatpush1.bf16.msra.mxu0 %v15316_v3  ;;  %v19579_v3 = vcombine.high %v19560_v44, %v19560_v44 }
 0x515   : > { %11737 = vmatprep.subr.bf16.mxu0 %v15324_v14  ;;  %v15386_v14 = vld [vmem:[%s21641_s7 + $0xcc0] ss:$16 sps:$4 sm:$0xff]  }
 0x516   : > { %11697 = vmatpush1.bf16.msra.mxu1 %v15319_v29  ;;  %v15394_v29 = vld [vmem:[%s21641_s7 + $0xca4] ss:$16 sps:$4 sm:$0xff]  }
 0x517   : > { %11698 = vmatprep.subr.bf16.mxu1 %v15327_v60  ;;  %v15389_v60 = vld [vmem:[%s21641_s7 + $0xec0] ss:$16 sps:$4 sm:$0xff]  }
 0x518   : > { %11738 = vmatpush1.bf16.msra.mxu0 %v15322_v32  ;;  %v15397_v32 = vld [vmem:[%s21641_s7 + $0xea4] ss:$16 sps:$4 sm:$0xff]  }
 0x519   : > { %11739 = vmatprep.subr.bf16.mxu0 %v15330_v26  ;;  %v15392_v26 = vld [vmem:[%s21641_s7 + $0xca0] ss:$16 sps:$4 sm:$0xff]  }
 0x51a   : > { %11699 = vmatpush1.bf16.msra.mxu1 %v15325_v50  ;;  %v15400_v50 = vld [vmem:[%s21641_s7 + $0xc84] ss:$16 sps:$4 sm:$0xff]  }
 0x51b   : > { %11700 = vmatprep.subr.bf16.mxu1 %v15333_v41  ;;  %v15395_v41 = vld [vmem:[%s21641_s7 + $0xea0] ss:$16 sps:$4 sm:$0xff]  }
 0x51c   : > { %11740 = vmatpush1.bf16.msra.mxu0 %v15328_v6  ;;  %v15403_v6 = vld [vmem:[%s21641_s7 + $0xe84] ss:$16 sps:$4 sm:$0xff]  }
 0x51d   : > { %11741 = vmatprep.subr.bf16.mxu0 %v15336_v17  ;;  %v15398_v17 = vld [vmem:[%s21641_s7 + $0xc80] ss:$16 sps:$4 sm:$0xff]  }
 0x51e   : > { %11701 = vmatpush2.bf16.msra.mxu1 %v15331_v39  ;;  %v15406_v39 = vld [vmem:[%s21641_s7 + $0xc64] ss:$16 sps:$4 sm:$0xff]  }
 0x51f   : > { %11702 = vmatprep.subr.bf16.mxu1 %v15339_v7  ;;  %v15401_v7 = vld [vmem:[%s21641_s7 + $0xe80] ss:$16 sps:$4 sm:$0xff]  }
 0x520   : > { %11742 = vmatpush2.bf16.msra.mxu0 %v15334_v58  ;;  %v15409_v58 = vld [vmem:[%s21641_s7 + $0xe64] ss:$16 sps:$4 sm:$0xff]  }
 0x521   : > { %11743 = vmatprep.subr.bf16.mxu0 %v15342_v33  ;;  %v15404_v33 = vld [vmem:[%s21641_s7 + $0xc60] ss:$16 sps:$4 sm:$0xff]  }
 0x522   : > { %11703 = vmatpush2.bf16.msra.mxu1 %v15337_v37  ;;  %v15412_v37 = vld [vmem:[%s21641_s7 + $0xc44] ss:$16 sps:$4 sm:$0xff]  }
 0x523   : > { %11704 = vmatprep.subr.bf16.mxu1 %v15345_v47  ;;  %v15407_v47 = vld [vmem:[%s21641_s7 + $0xe60] ss:$16 sps:$4 sm:$0xff]  }
 0x524   : > { %11744 = vmatpush2.bf16.msra.mxu0 %v15340_v61  ;;  %v15415_v61 = vld [vmem:[%s21641_s7 + $0xe44] ss:$16 sps:$4 sm:$0xff]  }
 0x525   : > { %11745 = vmatprep.subr.bf16.mxu0 %v15348_v30  ;;  %v15410_v30 = vld [vmem:[%s21641_s7 + $0xc40] ss:$16 sps:$4 sm:$0xff]  }
 0x526   : > { %11705 = vmatpush2.bf16.msra.mxu1 %v15343_v24  ;;  %v15418_v24 = vld [vmem:[%s21641_s7 + $0xc24] ss:$16 sps:$4 sm:$0xff]  }
 0x527   : > { %11706 = vmatprep.subr.bf16.mxu1 %v15351_v34  ;;  %v15413_v34 = vld [vmem:[%s21641_s7 + $0xe40] ss:$16 sps:$4 sm:$0xff]  }
 0x528   : > { %11746 = vmatpush2.bf16.msra.mxu0 %v15346_v42  ;;  %v15421_v42 = vld [vmem:[%s21641_s7 + $0xe24] ss:$16 sps:$4 sm:$0xff]  }
 0x529   : > { %11747 = vmatprep.subr.bf16.mxu0 %v15354_v45  ;;  %v15416_v45 = vld [vmem:[%s21641_s7 + $0xc20] ss:$16 sps:$4 sm:$0xff]  }
 0x52a   : > { %11707 = vmatpush2.bf16.msra.mxu1 %v15349_v35  ;;  %v15424_v35 = vld [vmem:[%s21641_s7 + $0xc04] ss:$16 sps:$4 sm:$0xff]  }
 0x52b   : > { %11708 = vmatprep.subr.bf16.mxu1 %v15357_v57  ;;  %v15419_v57 = vld [vmem:[%s21641_s7 + $0xe20] ss:$16 sps:$4 sm:$0xff]  }
 0x52c   : > { %11748 = vmatpush2.bf16.msra.mxu0 %v15352_v15  ;;  %v15427_v15 = vld [vmem:[%s21641_s7 + $0xe04] ss:$16 sps:$4 sm:$0xff]  }
 0x52d   : > { %11749 = vmatprep.subr.bf16.mxu0 %v15360_v63  ;;  %v15422_v63 = vld [vmem:[%s21641_s7 + $0xc00] ss:$16 sps:$4 sm:$0xff]  }
 0x52e   : > { %11709 = vmatpush2.bf16.msra.mxu1 %v15355_v52  ;;  %v15430_v52 = vld [vmem:[%s21641_s7 + $0xde4] ss:$16 sps:$4 sm:$0xff]  }
 0x52f   : > { %11710 = vmatprep.subr.bf16.mxu1 %v15363_v20  ;;  %v15425_v20 = vld [vmem:[%s21641_s7 + $0xe00] ss:$16 sps:$4 sm:$0xff]  }
 0x530   : > { %11750 = vmatpush2.bf16.msra.mxu0 %v15358_v22  ;;  %v15433_v22 = vld [vmem:[%s21641_s7 + $0xfe4] ss:$16 sps:$4 sm:$0xff]  }
 0x531   : > { %11751 = vmatprep.subr.bf16.mxu0 %v15366_v12  ;;  %v15428_v12 = vld [vmem:[%s21641_s7 + $0xde0] ss:$16 sps:$4 sm:$0xff]  }
 0x532   : > { %11711 = vmatpush2.bf16.msra.mxu1 %v15361_v13  ;;  %v15436_v13 = vld [vmem:[%s21641_s7 + $0xdc4] ss:$16 sps:$4 sm:$0xff]  }
 0x533   : > { %11712 = vmatprep.subr.bf16.mxu1 %v15369_v11  ;;  %v15439_v11 = vld [vmem:[%s21641_s7 + $0xfc4] ss:$16 sps:$4 sm:$0xff]  }
 0x534   : > { %11752 = vmatpush2.bf16.msra.mxu0 %v15364_v49  ;;  %v15434_v49 = vld [vmem:[%s21641_s7 + $0xdc0] ss:$16 sps:$4 sm:$0xff]  }
 0x535   : > { %11753 = vmatprep.subr.bf16.mxu0 %v15372_v25  ;;  %v15442_v25 = vld [vmem:[%s21641_s7 + $0xda4] ss:$16 sps:$4 sm:$0xff]  }
 0x536   : > { %11713 = vmatpush2.bf16.msra.mxu1 %v15367_v1  ;;  %v15437_v1 = vld [vmem:[%s21641_s7 + $0xfc0] ss:$16 sps:$4 sm:$0xff]  }
 0x537   : > { %11714 = vmatprep.subr.bf16.mxu1 %v15375_v40  ;;  %v15445_v40 = vld [vmem:[%s21641_s7 + $0xfa4] ss:$16 sps:$4 sm:$0xff]  }
 0x538   : > { %11754 = vmatpush2.bf16.msra.mxu0 %v15370_v43  ;;  %v15440_v43 = vld [vmem:[%s21641_s7 + $0xda0] ss:$16 sps:$4 sm:$0xff]  }
 0x539   : > { %11755 = vmatprep.subr.bf16.mxu0 %v15378_v16  ;;  %v15448_v16 = vld [vmem:[%s21641_s7 + $0xd84] ss:$16 sps:$4 sm:$0xff]  }
 0x53a   : > { %11715 = vmatpush2.bf16.msra.mxu1 %v15373_v27  ;;  %v15443_v27 = vld [vmem:[%s21641_s7 + $0xfa0] ss:$16 sps:$4 sm:$0xff]  }
 0x53b   : > { %11766 = vmatprep.subr.bf16.mxu1 %v15381_v36  ;;  %v15446_v36 = vld [vmem:[%s21641_s7 + $0xd80] ss:$16 sps:$4 sm:$0xff]  }
 0x53c   : > { %11756 = vmatpush2.bf16.msra.mxu0 %v15376_v4  ;;  %v15454_v4 = vld [vmem:[%s21641_s7 + $0xd64] ss:$16 sps:$4 sm:$0xff]  }
 0x53d   : > { %11717 = vmatmul.mubr.bf16.vlgmr.msra.gmra.mxu1 %v19551_v51  ;;  %11807 = vmatprep.subr.bf16.mxu0 %v15385_v18  ;;  %v15449_v18 = vld [vmem:[%s21641_s7 + $0xf80] ss:$16 sps:$4 sm:$0xff]  }
 0x53e   : > { %11767 = vmatpush1.bf16.msra.mxu1 %v15379_v8  ;;  %11798 = vmatprep.mubr.bf16.mxu1 %v19560_v44  ;;  %v15457_v8 = vld [vmem:[%s21641_s7 + $0xf64] ss:$16 sps:$4 sm:$0xff]  }
 0x53f   : > { %11758 = vmatmul.mubr.bf16.vlgmr.msra.gmra.mxu0 %v19571_v55  ;;  %11768 = vmatprep.subr.bf16.mxu1 %v15388_v48  ;;  %v15452_v48 = vld [vmem:[%s21641_s7 + $0xd60] ss:$16 sps:$4 sm:$0xff]  }
 0x540   : > { %11808 = vmatpush1.bf16.msra.mxu0 %v15383_v5  ;;  %11839 = vmatprep.mubr.bf16.mxu0 %v19579_v3  ;;  %v15460_v5 = vld [vmem:[%s21641_s7 + $0xd44] ss:$16 sps:$4 sm:$0xff]  }
 0x541   : > { %11809 = vmatprep.subr.bf16.mxu0 %v15391_v21  ;;  %v15455_v21 = vld [vmem:[%s21641_s7 + $0xf60] ss:$16 sps:$4 sm:$0xff]  }
 0x542   : > { %11769 = vmatpush1.bf16.msra.mxu1 %v15386_v14  ;;  %v15463_v14 = vld [vmem:[%s21641_s7 + $0xf44] ss:$16 sps:$4 sm:$0xff]  }
 0x543   : > { %11770 = vmatprep.subr.bf16.mxu1 %v15394_v29  ;;  %v15458_v29 = vld [vmem:[%s21641_s7 + $0xd40] ss:$16 sps:$4 sm:$0xff]  }
 0x544   : > { %11810 = vmatpush1.bf16.msra.mxu0 %v15389_v60  ;;  %v15466_v60 = vld [vmem:[%s21641_s7 + $0xd24] ss:$16 sps:$4 sm:$0xff]  }
 0x545   : > { %11811 = vmatprep.subr.bf16.mxu0 %v15397_v32  ;;  %v19733_v32 = vld [vmem:[#allocation8 + $0x10] sm:$0xff] }
 0x546   : > { %11771 = vmatpush1.bf16.msra.mxu1 %v15392_v26  ;;  %v15461_v26 = vld [vmem:[%s21641_s7 + $0xf40] ss:$16 sps:$4 sm:$0xff]  }
 0x547   : > { %11772 = vmatprep.subr.bf16.mxu1 %v15400_v50  ;;  %v15469_v50 = vld [vmem:[%s21641_s7 + $0xf24] ss:$16 sps:$4 sm:$0xff]  }
 0x548   : > { %11812 = vmatpush1.bf16.msra.mxu0 %v15395_v41  ;;  %v15464_v41 = vld [vmem:[%s21641_s7 + $0xd20] ss:$16 sps:$4 sm:$0xff]  }
 0x549   : > { %11813 = vmatprep.subr.bf16.mxu0 %v15403_v6  ;;  %v19746_v6 = vrot.slane %v19733_v32, %v18850_v54 }
 0x54a   : > { %11773 = vmatpush1.bf16.msra.mxu1 %v15398_v17  ;;  %v15472_v17 = vld [vmem:[%s21641_s7 + $0xd04] ss:$16 sps:$4 sm:$0xff]  }
 0x54b   : > { %11774 = vmatprep.subr.bf16.mxu1 %v15406_v39  ;;  %v15467_v39 = vld [vmem:[%s21641_s7 + $0xf20] ss:$16 sps:$4 sm:$0xff]  }
 0x54c   : > { %11814 = vmatpush1.bf16.msra.mxu0 %v15401_v7  ;;  %v15475_v7 = vld [vmem:[%s21641_s7 + $0xf04] ss:$16 sps:$4 sm:$0xff]  }
 0x54d   : > { %11815 = vmatprep.subr.bf16.mxu0 %v15409_v58  ;;  %v15470_v58 = vld [vmem:[%s21641_s7 + $0xd00] ss:$16 sps:$4 sm:$0xff]  }
 0x54e   : > { %11775 = vmatpush1.bf16.msra.mxu1 %v15404_v33  ;;  %v11499_v33 = vsub.s32 0, %v18832_v31 }
 0x54f   : > { %11776 = vmatprep.subr.bf16.mxu1 %v15412_v37  ;;  %v7504_v37 = vcombine.high %v19746_v6, %v19746_v6 }
 0x550   : > { %11816 = vmatpush1.bf16.msra.mxu0 %v15407_v47  ;;  %v15478_v47 = vld [vmem:[%s21641_s7 + $0x10e4] ss:$16 sps:$4 sm:$0xff]  }
 0x551   : > { %11817 = vmatprep.subr.bf16.mxu0 %v15415_v61  ;;  %v7386_v61 = vld [vmem:[%s21642_s8] sm:$0xf] }
 0x552   : > { %11777 = vmatpush1.bf16.msra.mxu1 %v15410_v30  ;;  %v15473_v30 = vld [vmem:[%s21641_s7 + $0xf00] ss:$16 sps:$4 sm:$0xff]  }
 0x553   : > { %11778 = vmatprep.subr.bf16.mxu1 %v15418_v24  ;;  %v11503_v24 = vsub.s32 1, %v18832_v31 }
 0x554   : > { %11818 = vmatpush1.bf16.msra.mxu0 %v15413_v34  ;;  %v19775_v34 = vrot.slane %v19527_v62, %v18850_v54  ;;  %v15479_v62 = vld [vmem:[%s21641_s7 + $0x12e0] ss:$16 sps:$4 sm:$0xff]  }
 0x555   : > { %11819 = vmatprep.subr.bf16.mxu0 %v15421_v42  ;;  %v15481_v42 = vld [vmem:[%s21641_s7 + $0x12e4] ss:$16 sps:$4 sm:$0xff]  }
 0x556   : > { %11779 = vmatpush1.bf16.msra.mxu1 %v15416_v45  ;;  %v15476_v45 = vld [vmem:[%s21641_s7 + $0x10e0] ss:$16 sps:$4 sm:$0xff]  }
 0x557   : > { %11780 = vmatprep.subr.bf16.mxu1 %v15424_v35  ;;  %v11500_v35 = vrot.slane %v7386_v61, %v11499_v33  ;;  %v15514_v33 = vld [vmem:[%s21641_s7 + $0x1024] ss:$16 sps:$4 sm:$0xff]  }
 0x558   : > { %11820 = vmatpush1.bf16.msra.mxu0 %v15419_v57  ;;  %v19784_v57 = vrot.slane %v7504_v37, %v18850_v54  ;;  %v15509_v37 = vld [vmem:[%s21641_s7 + $0x1240] ss:$16 sps:$4 sm:$0xff]  }
 0x559   : > { %11821 = vmatprep.subr.bf16.mxu0 %v15427_v15  ;;  %v15484_v15 = vld [vmem:[%s21641_s7 + $0x10c4] ss:$16 sps:$4 sm:$0xff]  }
 0x55a   : > { %11781 = vmatpush1.bf16.msra.mxu1 %v15422_v63  ;;  %v11504_v63 = vrot.slane %v7386_v61, %v11503_v24  ;;  %v15512_v61 = vld [vmem:[%s21641_s7 + $0x1020] ss:$16 sps:$4 sm:$0xff]  }
 0x55b   : > { %11782 = vmatprep.subr.bf16.mxu1 %v15430_v52  ;;  %v15515_v24 = vld [vmem:[%s21641_s7 + $0x1220] ss:$16 sps:$4 sm:$0xff]  }
 0x55c   : > { %11822 = vmatpush1.bf16.msra.mxu0 %v15425_v20  ;;  %v19795_v20 = vcombine.high %v19775_v34, %v19775_v34 }
 0x55d   : > { %11823 = vmatprep.subr.bf16.mxu0 %v15433_v22  ;;  %v15487_v22 = vld [vmem:[%s21641_s7 + $0x12c4] ss:$16 sps:$4 sm:$0xff]  }
 0x55e   : > { %11783 = vmatpush2.bf16.msra.mxu1 %v15428_v12 }
 0x55f   : > { %11784 = vmatprep.subr.bf16.mxu1 %v15436_v13  ;;  %v19803_v13 = vcombine.high %v19784_v57, %v19784_v57 }
 0x560   : > { %11824 = vmatpush2.bf16.msra.mxu0 %v15431_v59  ;;  %v15482_v59 = vld [vmem:[%s21641_s7 + $0x10c0] ss:$16 sps:$4 sm:$0xff]  }
 0x561   : > { %11825 = vmatprep.subr.bf16.mxu0 %v15439_v11 }
 0x562   : > { %11785 = vmatpush2.bf16.msra.mxu1 %v15434_v49 }
 0x563   : > { %11786 = vmatprep.subr.bf16.mxu1 %v15442_v25  ;;  %v15490_v25 = vld [vmem:[%s21641_s7 + $0x10a4] ss:$16 sps:$4 sm:$0xff]  }
 0x564   : > { %11826 = vmatpush2.bf16.msra.mxu0 %v15437_v1 }
 0x565   : > { %11827 = vmatprep.subr.bf16.mxu0 %v15445_v40 }
 0x566   : > { %11787 = vmatpush2.bf16.msra.mxu1 %v15440_v43  ;;  %v15485_v43 = vld [vmem:[%s21641_s7 + $0x12c0] ss:$16 sps:$4 sm:$0xff]  }
 0x567   : > { %11788 = vmatprep.subr.bf16.mxu1 %v15448_v16 }
 0x568   : > { %11828 = vmatpush2.bf16.msra.mxu0 %v15443_v27 }
 0x569   : > { %11829 = vmatprep.subr.bf16.mxu0 %v15451_v46  ;;  %v15493_v46 = vld [vmem:[%s21641_s7 + $0x12a4] ss:$16 sps:$4 sm:$0xff]  }
 0x56a   : > { %11789 = vmatpush2.bf16.msra.mxu1 %v15446_v36 }
 0x56b   : > { %11790 = vmatprep.subr.bf16.mxu1 %v15454_v4  ;;  %v15488_v4 = vld [vmem:[%s21641_s7 + $0x10a0] ss:$16 sps:$4 sm:$0xff]  }
 0x56c   : > { %11830 = vmatpush2.bf16.msra.mxu0 %v15449_v18 }
 0x56d   : > { %11831 = vmatprep.subr.bf16.mxu0 %v15457_v8 }
 0x56e   : > { %11791 = vmatpush2.bf16.msra.mxu1 %v15452_v48  ;;  %v15496_v48 = vld [vmem:[%s21641_s7 + $0x1084] ss:$16 sps:$4 sm:$0xff]  }
 0x56f   : > { %11792 = vmatprep.subr.bf16.mxu1 %v15460_v5  ;;  %v15491_v5 = vld [vmem:[%s21641_s7 + $0x12a0] ss:$16 sps:$4 sm:$0xff]  }
 0x570   : > { %11832 = vmatpush2.bf16.msra.mxu0 %v15455_v21 }
 0x571   : > { %11833 = vmatprep.subr.bf16.mxu0 %v15463_v14  ;;  %v15499_v14 = vld [vmem:[%s21641_s7 + $0x1284] ss:$16 sps:$4 sm:$0xff]  }
 0x572   : > { %11793 = vmatpush2.bf16.msra.mxu1 %v15458_v29  ;;  %v15494_v29 = vld [vmem:[%s21641_s7 + $0x1080] ss:$16 sps:$4 sm:$0xff]  }
 0x573   : > { %11794 = vmatprep.subr.bf16.mxu1 %v15466_v60  ;;  %v15502_v60 = vld [vmem:[%s21641_s7 + $0x1064] ss:$16 sps:$4 sm:$0xff]  }
 0x574   : > { %11834 = vmatpush2.bf16.msra.mxu0 %v15461_v26  ;;  %v15497_v26 = vld [vmem:[%s21641_s7 + $0x1280] ss:$16 sps:$4 sm:$0xff]  }
 0x575   : > { %11835 = vmatprep.subr.bf16.mxu0 %v15469_v50  ;;  %v15505_v50 = vld [vmem:[%s21641_s7 + $0x1264] ss:$16 sps:$4 sm:$0xff]  }
 0x576   : > { %11795 = vmatpush2.bf16.msra.mxu1 %v15464_v41  ;;  %v15500_v41 = vld [vmem:[%s21641_s7 + $0x1060] ss:$16 sps:$4 sm:$0xff]  }
 0x577   : > { %11796 = vmatprep.subr.bf16.mxu1 %v15472_v17  ;;  %v15508_v17 = vld [vmem:[%s21641_s7 + $0x1044] ss:$16 sps:$4 sm:$0xff]  }
 0x578   : > { %11836 = vmatpush2.bf16.msra.mxu0 %v15467_v39  ;;  %v15503_v39 = vld [vmem:[%s21641_s7 + $0x1260] ss:$16 sps:$4 sm:$0xff]  }
 0x579   : > { %11837 = vmatprep.subr.bf16.mxu0 %v15475_v7  ;;  %v15511_v7 = vld [vmem:[%s21641_s7 + $0x1244] ss:$16 sps:$4 sm:$0xff]  }
 0x57a   : > { %11797 = vmatpush2.bf16.msra.mxu1 %v15470_v58  ;;  %v15506_v58 = vld [vmem:[%s21641_s7 + $0x1040] ss:$16 sps:$4 sm:$0xff]  }
 0x57b   : > { %11848 = vmatprep.subr.bf16.mxu1 %v15478_v47  ;;  %v15517_v47 = vld [vmem:[%s21641_s7 + $0x1224] ss:$16 sps:$4 sm:$0xff]  }
 0x57c   : > { %11838 = vmatpush2.bf16.msra.mxu0 %v15473_v30  ;;  %v15520_v30 = vld [vmem:[%s21641_s7 + $0x1004] ss:$16 sps:$4 sm:$0xff]  }
 0x57d   : > { %11799 = vmatmul.mubr.bf16.vlgmr.msra.gmra.mxu1 %v19775_v34  ;;  %v11554_v52 = vpop.f32.mrf.mxu1  ;;  %11889 = vmatprep.subr.bf16.mxu0 %v15481_v42  ;;  %v15523_v42 = vld [vmem:[%s21641_s7 + $0x1204] ss:$16 sps:$4 sm:$0xff]  }
 0x57e   : > { %v11555_v12 = vadd.f32 %v11554_v52, %v11500_v35  ;;  %11849 = vmatpush1.bf16.msra.mxu1 %v15476_v45  ;;  %11880 = vmatprep.mubr.bf16.mxu1 %v19784_v57  ;;  %v15518_v45 = vld [vmem:[%s21641_s7 + $0x1000] ss:$16 sps:$4 sm:$0xff]   ;;  %v15526_v35 = vld [vmem:[%s21641_s7 + $0x11e4] ss:$16 sps:$4 sm:$0xff]  }
 0x57f   : > { %11840 = vmatmul.mubr.bf16.vlgmr.msra.gmra.mxu0 %v19795_v20  ;;  %v11556_v11 = vpop.f32.mrf.mxu1  ;;  %v11595_v49 = vpop.f32.mrf.mxu0  ;;  %11850 = vmatprep.subr.bf16.mxu1 %v15484_v15  ;;  %v15521_v15 = vld [vmem:[%s21641_s7 + $0x1200] ss:$16 sps:$4 sm:$0xff]   ;;  %v15532_v52 = vld [vmem:[%s21641_s7 + $0x11c4] ss:$16 sps:$4 sm:$0xff]  }
 0x580   : > { %v11557_v1 = vadd.f32 %v11556_v11, %v11504_v63  ;;  %v19812_v40 = vadd.f32 %v11595_v49, %v11555_v12  ;;  %11890 = vmatpush1.bf16.msra.mxu0 %v15479_v62  ;;  %11921 = vmatprep.mubr.bf16.mxu0 %v19803_v13  ;;  %v15529_v62 = vld [vmem:[%s21641_s7 + $0x13e4] ss:$16 sps:$4 sm:$0xff]   ;;  %v15524_v63 = vld [vmem:[%s21641_s7 + $0x11e0] ss:$16 sps:$4 sm:$0xff]  }
 0x581   : > { %v11558_v16 = vpop.f32.mrf.mxu1  ;;  %v11597_v27 = vpop.f32.mrf.mxu0  ;;  %11891 = vmatprep.subr.bf16.mxu0 %v15487_v22  ;;  %v15527_v22 = vld [vmem:[%s21641_s7 + $0x13e0] ss:$16 sps:$4 sm:$0xff]   ;;  %v15535_v12 = vld [vmem:[%s21641_s7 + $0x13c4] ss:$16 sps:$4 sm:$0xff]  }
 0x582   : > { %v19821_v36 = vadd.f32 %v11597_v27, %v11557_v1  ;;  %11851 = vmatpush1.bf16.msra.mxu1 %v15482_v59  ;;  %v15530_v59 = vld [vmem:[%s21641_s7 + $0x11c0] ss:$16 sps:$4 sm:$0xff]   ;;  %v15538_v11 = vld [vmem:[%s21641_s7 + $0x11a4] ss:$16 sps:$4 sm:$0xff]  }
 0x583   : > { %v11559_v18 = vpop.f32.mrf.mxu1  ;;  %v11599_v8 = vpop.f32.mrf.mxu0  ;;  %11852 = vmatprep.subr.bf16.mxu1 %v15490_v25  ;;  %v15533_v49 = vld [vmem:[%s21641_s7 + $0x13c0] ss:$16 sps:$4 sm:$0xff]   ;;  %v15541_v25 = vld [vmem:[%s21641_s7 + $0x13a4] ss:$16 sps:$4 sm:$0xff]  }
 0x584   : > { %11892 = vmatpush1.bf16.msra.mxu0 %v15485_v43  ;;  %v15536_v1 = vld [vmem:[%s21641_s7 + $0x11a0] ss:$16 sps:$4 sm:$0xff]   ;;  %v15544_v43 = vld [vmem:[%s21641_s7 + $0x1184] ss:$16 sps:$4 sm:$0xff]  }
 0x585   : > { %v11600_v21 = vpop.f32.mrf.mxu0  ;;  %11893 = vmatprep.subr.bf16.mxu0 %v15493_v46  ;;  %v15539_v16 = vld [vmem:[%s21641_s7 + $0x13a0] ss:$16 sps:$4 sm:$0xff]   ;;  %v15547_v27 = vld [vmem:[%s21641_s7 + $0x1384] ss:$16 sps:$4 sm:$0xff]  }
 0x586   : > { %11853 = vmatpush1.bf16.msra.mxu1 %v15488_v4  ;;  %v15542_v46 = vld [vmem:[%s21641_s7 + $0x1180] ss:$16 sps:$4 sm:$0xff]   ;;  %v15550_v4 = vld [vmem:[%s21641_s7 + $0x1164] ss:$16 sps:$4 sm:$0xff]  }
 0x587   : > { %11854 = vmatprep.subr.bf16.mxu1 %v15496_v48  ;;  %v15545_v18 = vld [vmem:[%s21641_s7 + $0x1380] ss:$16 sps:$4 sm:$0xff]   ;;  %v15553_v8 = vld [vmem:[%s21641_s7 + $0x1364] ss:$16 sps:$4 sm:$0xff]  }
 0x588   : > { %11894 = vmatpush1.bf16.msra.mxu0 %v15491_v5  ;;  %v15548_v48 = vld [vmem:[%s21641_s7 + $0x1160] ss:$16 sps:$4 sm:$0xff]   ;;  %v15556_v5 = vld [vmem:[%s21641_s7 + $0x1144] ss:$16 sps:$4 sm:$0xff]  }
 0x589   : > { %11895 = vmatprep.subr.bf16.mxu0 %v15499_v14  ;;  %v15551_v21 = vld [vmem:[%s21641_s7 + $0x1360] ss:$16 sps:$4 sm:$0xff]   ;;  %v15559_v14 = vld [vmem:[%s21641_s7 + $0x1344] ss:$16 sps:$4 sm:$0xff]  }
 0x58a   : > { %11855 = vmatpush1.bf16.msra.mxu1 %v15494_v29  ;;  %v15554_v29 = vld [vmem:[%s21641_s7 + $0x1140] ss:$16 sps:$4 sm:$0xff]  }
 0x58b   : > { %11856 = vmatprep.subr.bf16.mxu1 %v15502_v60  ;;  %v7489_v60 = vcombine.high %v19733_v32, %v19733_v32  ;;  %v15560_v32 = vld [vmem:[%s21641_s7 + $0x1120] ss:$16 sps:$4 sm:$0xff]  }
 0x58c   : > { %11896 = vmatpush1.bf16.msra.mxu0 %v15497_v26  ;;  %v15562_v26 = vld [vmem:[%s21641_s7 + $0x1124] ss:$16 sps:$4 sm:$0xff]  }
 0x58d   : > { %11897 = vmatprep.subr.bf16.mxu0 %v15505_v50  ;;  %v15557_v50 = vld [vmem:[%s21641_s7 + $0x1340] ss:$16 sps:$4 sm:$0xff]  }
 0x58e   : > { %11857 = vmatpush1.bf16.msra.mxu1 %v15500_v41  ;;  %v15565_v41 = vld [vmem:[%s21641_s7 + $0x1324] ss:$16 sps:$4 sm:$0xff]  }
 0x58f   : > { %11858 = vmatprep.subr.bf16.mxu1 %v15508_v17  ;;  %v19973_v17 = vrot.slane %v7489_v60, %v18850_v54  ;;  %v15594_v60 = vld [vmem:[%s21641_s7 + $0x1680] ss:$16 sps:$4 sm:$0xff]  }
 0x590   : > { %11898 = vmatpush1.bf16.msra.mxu0 %v15503_v39  ;;  %v15568_v39 = vld [vmem:[%s21641_s7 + $0x1104] ss:$16 sps:$4 sm:$0xff]  }
 0x591   : > { %11899 = vmatprep.subr.bf16.mxu0 %v15511_v7  ;;  %v15563_v7 = vld [vmem:[%s21641_s7 + $0x1320] ss:$16 sps:$4 sm:$0xff]  }
 0x592   : > { %11859 = vmatpush1.bf16.msra.mxu1 %v15506_v58  ;;  %v15571_v58 = vld [vmem:[%s21641_s7 + $0x1304] ss:$16 sps:$4 sm:$0xff]  }
 0x593   : > { %11860 = vmatprep.subr.bf16.mxu1 %v15514_v33  ;;  %v15566_v33 = vld [vmem:[%s21641_s7 + $0x1100] ss:$16 sps:$4 sm:$0xff]  }
 0x594   : > { %11900 = vmatpush1.bf16.msra.mxu0 %v15509_v37  ;;  %v7505_v37 = vcombine.high %v19973_v17, %v19973_v17 }
 0x595   : > { %11901 = vmatprep.subr.bf16.mxu0 %v15517_v47  ;;  %v15574_v47 = vld [vmem:[%s21641_s7 + $0x14e4] ss:$16 sps:$4 sm:$0xff]  }
 0x596   : > { %11861 = vmatpush1.bf16.msra.mxu1 %v15512_v61  ;;  %v15569_v61 = vld [vmem:[%s21641_s7 + $0x1300] ss:$16 sps:$4 sm:$0xff]  }
 0x597   : > { %11862 = vmatprep.subr.bf16.mxu1 %v15520_v30  ;;  %v19997_v30 = vrot.slane %v19746_v6, %v18850_v54  ;;  %v15576_v6 = vld [vmem:[%s21641_s7 + $0x16e0] ss:$16 sps:$4 sm:$0xff]  }
 0x598   : > { %11902 = vmatpush1.bf16.msra.mxu0 %v15515_v24  ;;  %v15578_v24 = vld [vmem:[%s21641_s7 + $0x16e4] ss:$16 sps:$4 sm:$0xff]  }
 0x599   : > { %11903 = vmatprep.subr.bf16.mxu0 %v15523_v42  ;;  %v15572_v42 = vld [vmem:[%s21641_s7 + $0x14e0] ss:$16 sps:$4 sm:$0xff]  }
 0x59a   : > { %11863 = vmatpush1.bf16.msra.mxu1 %v15518_v45  ;;  %v20006_v45 = vrot.slane %v7505_v37, %v18850_v54  ;;  %v15614_v37 = vld [vmem:[%s21641_s7 + $0x1624] ss:$16 sps:$4 sm:$0xff]  }
 0x59b   : > { %11864 = vmatprep.subr.bf16.mxu1 %v15526_v35  ;;  %v15581_v35 = vld [vmem:[%s21641_s7 + $0x14c4] ss:$16 sps:$4 sm:$0xff]  }
 0x59c   : > { %11904 = vmatpush1.bf16.msra.mxu0 %v15521_v15 }
 0x59d   : > { %11905 = vmatprep.subr.bf16.mxu0 %v15529_v62  ;;  %v20017_v62 = vcombine.high %v19997_v30, %v19997_v30 }
 0x59e   : > { %11865 = vmatpush2.bf16.msra.mxu1 %v15524_v63  ;;  %v15584_v63 = vld [vmem:[%s21641_s7 + $0x16c4] ss:$16 sps:$4 sm:$0xff]  }
 0x59f   : > { %11866 = vmatprep.subr.bf16.mxu1 %v15532_v52 }
 0x5a0   : > { %11906 = vmatpush2.bf16.msra.mxu0 %v15527_v22  ;;  %v20026_v22 = vcombine.high %v20006_v45, %v20006_v45 }
 0x5a1   : > { %11907 = vmatprep.subr.bf16.mxu0 %v15535_v12  ;;  %v15579_v12 = vld [vmem:[%s21641_s7 + $0x14c0] ss:$16 sps:$4 sm:$0xff]  }
 0x5a2   : > { %11867 = vmatpush2.bf16.msra.mxu1 %v15530_v59 }
 0x5a3   : > { %11868 = vmatprep.subr.bf16.mxu1 %v15538_v11 }
 0x5a4   : > { %11908 = vmatpush2.bf16.msra.mxu0 %v15533_v49 }
 0x5a5   : > { %11909 = vmatprep.subr.bf16.mxu0 %v15541_v25 }
 0x5a6   : > { %11869 = vmatpush2.bf16.msra.mxu1 %v15536_v1  ;;  %v15582_v1 = vld [vmem:[%s21641_s7 + $0x16c0] ss:$16 sps:$4 sm:$0xff]  }
 0x5a7   : > { %11870 = vmatprep.subr.bf16.mxu1 %v15544_v43 }
 0x5a8   : > { %11910 = vmatpush2.bf16.msra.mxu0 %v15539_v16 }
 0x5a9   : > { %11911 = vmatprep.subr.bf16.mxu0 %v15547_v27  ;;  %v15590_v27 = vld [vmem:[%s21641_s7 + $0x16a4] ss:$16 sps:$4 sm:$0xff]  }
 0x5aa   : > { %11871 = vmatpush2.bf16.msra.mxu1 %v15542_v46 }
 0x5ab   : > { %11872 = vmatprep.subr.bf16.mxu1 %v15550_v4 }
 0x5ac   : > { %11912 = vmatpush2.bf16.msra.mxu0 %v15545_v18 }
 0x5ad   : > { %11913 = vmatprep.subr.bf16.mxu0 %v15553_v8  ;;  %v15593_v8 = vld [vmem:[%s21641_s7 + $0x1484] ss:$16 sps:$4 sm:$0xff]  }
 0x5ae   : > { %11873 = vmatpush2.bf16.msra.mxu1 %v15548_v48  ;;  %v15588_v48 = vld [vmem:[%s21641_s7 + $0x16a0] ss:$16 sps:$4 sm:$0xff]  }
 0x5af   : > { %11874 = vmatprep.subr.bf16.mxu1 %v15556_v5 }
 0x5b0   : > { %11914 = vmatpush2.bf16.msra.mxu0 %v15551_v21  ;;  %v15596_v21 = vld [vmem:[%s21641_s7 + $0x1684] ss:$16 sps:$4 sm:$0xff]  }
 0x5b1   : > { %11915 = vmatprep.subr.bf16.mxu0 %v15559_v14  ;;  %v15591_v14 = vld [vmem:[%s21641_s7 + $0x1480] ss:$16 sps:$4 sm:$0xff]  }
 0x5b2   : > { %11875 = vmatpush2.bf16.msra.mxu1 %v15554_v29  ;;  %v15599_v29 = vld [vmem:[%s21641_s7 + $0x1464] ss:$16 sps:$4 sm:$0xff]  }
 0x5b3   : > { %11876 = vmatprep.subr.bf16.mxu1 %v15562_v26  ;;  %v15602_v26 = vld [vmem:[%s21641_s7 + $0x1664] ss:$16 sps:$4 sm:$0xff]  }
 0x5b4   : > { %11916 = vmatpush2.bf16.msra.mxu0 %v15557_v50  ;;  %v15597_v50 = vld [vmem:[%s21641_s7 + $0x1460] ss:$16 sps:$4 sm:$0xff]  }
 0x5b5   : > { %11917 = vmatprep.subr.bf16.mxu0 %v15565_v41  ;;  %v15605_v41 = vld [vmem:[%s21641_s7 + $0x1444] ss:$16 sps:$4 sm:$0xff]  }
 0x5b6   : > { %11877 = vmatpush2.bf16.msra.mxu1 %v15560_v32  ;;  %v15600_v32 = vld [vmem:[%s21641_s7 + $0x1660] ss:$16 sps:$4 sm:$0xff]  }
 0x5b7   : > { %11878 = vmatprep.subr.bf16.mxu1 %v15568_v39  ;;  %v15608_v39 = vld [vmem:[%s21641_s7 + $0x1644] ss:$16 sps:$4 sm:$0xff]  }
 0x5b8   : > { %11918 = vmatpush2.bf16.msra.mxu0 %v15563_v7  ;;  %v15603_v7 = vld [vmem:[%s21641_s7 + $0x1440] ss:$16 sps:$4 sm:$0xff]  }
 0x5b9   : > { %11919 = vmatprep.subr.bf16.mxu0 %v15571_v58  ;;  %v15611_v58 = vld [vmem:[%s21641_s7 + $0x1424] ss:$16 sps:$4 sm:$0xff]  }
 0x5ba   : > { %11879 = vmatpush2.bf16.msra.mxu1 %v15566_v33  ;;  %v15606_v33 = vld [vmem:[%s21641_s7 + $0x1640] ss:$16 sps:$4 sm:$0xff]  }
 0x5bb   : > { %11930 = vmatprep.subr.bf16.mxu1 %v15574_v47  ;;  %v15609_v47 = vld [vmem:[%s21641_s7 + $0x1420] ss:$16 sps:$4 sm:$0xff]  }
 0x5bc   : > { %11920 = vmatpush2.bf16.msra.mxu0 %v15569_v61  ;;  %v15617_v61 = vld [vmem:[%s21641_s7 + $0x1404] ss:$16 sps:$4 sm:$0xff]  }
 0x5bd   : > { %v11636_v15 = vpop.f32.mrf.mxu1  ;;  %11881 = vmatmul.mubr.bf16.vlgmr.msra.gmra.mxu1 %v19997_v30  ;;  %11971 = vmatprep.subr.bf16.mxu0 %v15578_v24  ;;  %v15612_v24 = vld [vmem:[%s21641_s7 + $0x1620] ss:$16 sps:$4 sm:$0xff]  }
 0x5be   : > { %v11637_v52 = vadd.f32 %v11636_v15, %v19812_v40  ;;  %11931 = vmatpush1.bf16.msra.mxu1 %v15572_v42  ;;  %11962 = vmatprep.mubr.bf16.mxu1 %v20006_v45  ;;  %v15587_v40 = vld [vmem:[%s21641_s7 + $0x14a4] ss:$16 sps:$4 sm:$0xff]   ;;  %v15618_v15 = vld [vmem:[%s21641_s7 + $0x1600] ss:$16 sps:$4 sm:$0xff]  }
 0x5bf   : > { %v11638_v59 = vpop.f32.mrf.mxu1  ;;  %v11677_v11 = vpop.f32.mrf.mxu0  ;;  %11922 = vmatmul.mubr.bf16.vlgmr.msra.gmra.mxu0 %v20017_v62  ;;  %11932 = vmatprep.subr.bf16.mxu1 %v15581_v35  ;;  %v15620_v42 = vld [vmem:[%s21641_s7 + $0x1604] ss:$16 sps:$4 sm:$0xff]   ;;  %v15615_v35 = vld [vmem:[%s21641_s7 + $0x1400] ss:$16 sps:$4 sm:$0xff]  }
 0x5c0   : > { %v11639_v49 = vadd.f32 %v11638_v59, %v19821_v36  ;;  %v20036_v25 = vadd.f32 %v11677_v11, %v11637_v52  ;;  %11972 = vmatpush1.bf16.msra.mxu0 %v15576_v6  ;;  %12003 = vmatprep.mubr.bf16.mxu0 %v20026_v22  ;;  %v15585_v36 = vld [vmem:[%s21641_s7 + $0x14a0] ss:$16 sps:$4 sm:$0xff]   ;;  %v15623_v6 = vld [vmem:[%s21641_s7 + $0x15e4] ss:$16 sps:$4 sm:$0xff]  }
 0x5c1   : > { %v11640_v43 = vpop.f32.mrf.mxu1  ;;  %v11679_v16 = vpop.f32.mrf.mxu0  ;;  %11973 = vmatprep.subr.bf16.mxu0 %v15584_v63  ;;  %v15626_v63 = vld [vmem:[%s21641_s7 + $0x17e4] ss:$16 sps:$4 sm:$0xff]   ;;  %v15621_v52 = vld [vmem:[%s21641_s7 + $0x15e0] ss:$16 sps:$4 sm:$0xff]  }
 0x5c2   : > { %v20045_v46 = vadd.f32 %v11679_v16, %v11639_v49  ;;  %11933 = vmatpush1.bf16.msra.mxu1 %v15579_v12  ;;  %v15629_v12 = vld [vmem:[%s21641_s7 + $0x15c4] ss:$16 sps:$4 sm:$0xff]   ;;  %v15624_v59 = vld [vmem:[%s21641_s7 + $0x17e0] ss:$16 sps:$4 sm:$0xff]  }
 0x5c3   : > { %v11641_v4 = vpop.f32.mrf.mxu1  ;;  %v11681_v18 = vpop.f32.mrf.mxu0  ;;  %11934 = vmatprep.subr.bf16.mxu1 %v15587_v40  ;;  %v15632_v11 = vld [vmem:[%s21641_s7 + $0x17c4] ss:$16 sps:$4 sm:$0xff]   ;;  %v15627_v40 = vld [vmem:[%s21641_s7 + $0x15c0] ss:$16 sps:$4 sm:$0xff]  }
 0x5c4   : > { %11974 = vmatpush1.bf16.msra.mxu0 %v15582_v1  ;;  %v15635_v49 = vld [vmem:[%s21641_s7 + $0x15a4] ss:$16 sps:$4 sm:$0xff]   ;;  %v15630_v1 = vld [vmem:[%s21641_s7 + $0x17c0] ss:$16 sps:$4 sm:$0xff]  }
 0x5c5   : > { %v11682_v5 = vpop.f32.mrf.mxu0  ;;  %11975 = vmatprep.subr.bf16.mxu0 %v15590_v27  ;;  %v15638_v43 = vld [vmem:[%s21641_s7 + $0x17a4] ss:$16 sps:$4 sm:$0xff]   ;;  %v15633_v16 = vld [vmem:[%s21641_s7 + $0x15a0] ss:$16 sps:$4 sm:$0xff]  }
 0x5c6   : > { %11935 = vmatpush1.bf16.msra.mxu1 %v15585_v36  ;;  %v15641_v27 = vld [vmem:[%s21641_s7 + $0x1584] ss:$16 sps:$4 sm:$0xff]   ;;  %v15636_v36 = vld [vmem:[%s21641_s7 + $0x17a0] ss:$16 sps:$4 sm:$0xff]  }
 0x5c7   : > { %11936 = vmatprep.subr.bf16.mxu1 %v15593_v8  ;;  %v15644_v4 = vld [vmem:[%s21641_s7 + $0x1784] ss:$16 sps:$4 sm:$0xff]   ;;  %v15639_v18 = vld [vmem:[%s21641_s7 + $0x1580] ss:$16 sps:$4 sm:$0xff]  }
 0x5c8   : > { %11976 = vmatpush1.bf16.msra.mxu0 %v15588_v48  ;;  %v15647_v8 = vld [vmem:[%s21641_s7 + $0x1564] ss:$16 sps:$4 sm:$0xff]   ;;  %v15642_v48 = vld [vmem:[%s21641_s7 + $0x1780] ss:$16 sps:$4 sm:$0xff]  }
 0x5c9   : > { %11977 = vmatprep.subr.bf16.mxu0 %v15596_v21  ;;  %v15650_v5 = vld [vmem:[%s21641_s7 + $0x1764] ss:$16 sps:$4 sm:$0xff]   ;;  %v15645_v21 = vld [vmem:[%s21641_s7 + $0x1560] ss:$16 sps:$4 sm:$0xff]  }
 0x5ca   : > { %11937 = vmatpush1.bf16.msra.mxu1 %v15591_v14  ;;  %v15653_v14 = vld [vmem:[%s21641_s7 + $0x1544] ss:$16 sps:$4 sm:$0xff]  }
 0x5cb   : > { %11938 = vmatprep.subr.bf16.mxu1 %v15599_v29  ;;  %v15648_v29 = vld [vmem:[%s21641_s7 + $0x1760] ss:$16 sps:$4 sm:$0xff]  }
 0x5cc   : > { %11978 = vmatpush1.bf16.msra.mxu0 %v15594_v60  ;;  %v15656_v60 = vld [vmem:[%s21641_s7 + $0x1744] ss:$16 sps:$4 sm:$0xff]  }
 0x5cd   : > { %11979 = vmatprep.subr.bf16.mxu0 %v15602_v26  ;;  %v15651_v26 = vld [vmem:[%s21641_s7 + $0x1540] ss:$16 sps:$4 sm:$0xff]  }
 0x5ce   : > { %11939 = vmatpush1.bf16.msra.mxu1 %v15597_v50  ;;  %v15659_v50 = vld [vmem:[%s21641_s7 + $0x1524] ss:$16 sps:$4 sm:$0xff]  }
 0x5cf   : > { %11940 = vmatprep.subr.bf16.mxu1 %v15605_v41  ;;  %v15654_v41 = vld [vmem:[%s21641_s7 + $0x1740] ss:$16 sps:$4 sm:$0xff]  }
 0x5d0   : > { %11980 = vmatpush1.bf16.msra.mxu0 %v15600_v32  ;;  %v15662_v32 = vld [vmem:[%s21641_s7 + $0x1724] ss:$16 sps:$4 sm:$0xff]  }
 0x5d1   : > { %11981 = vmatprep.subr.bf16.mxu0 %v15608_v39  ;;  %v15657_v39 = vld [vmem:[%s21641_s7 + $0x1520] ss:$16 sps:$4 sm:$0xff]  }
 0x5d2   : > { %11941 = vmatpush1.bf16.msra.mxu1 %v15603_v7  ;;  %v15665_v7 = vld [vmem:[%s21641_s7 + $0x1504] ss:$16 sps:$4 sm:$0xff]  }
 0x5d3   : > { %11942 = vmatprep.subr.bf16.mxu1 %v15611_v58  ;;  %v15660_v58 = vld [vmem:[%s21641_s7 + $0x1720] ss:$16 sps:$4 sm:$0xff]  }
 0x5d4   : > { %11982 = vmatpush1.bf16.msra.mxu0 %v15606_v33  ;;  %v15668_v33 = vld [vmem:[%s21641_s7 + $0x1704] ss:$16 sps:$4 sm:$0xff]  }
 0x5d5   : > { %11983 = vmatprep.subr.bf16.mxu0 %v15614_v37  ;;  %v15663_v37 = vld [vmem:[%s21641_s7 + $0x1500] ss:$16 sps:$4 sm:$0xff]  }
 0x5d6   : > { %11943 = vmatpush1.bf16.msra.mxu1 %v15609_v47  ;;  %v15671_v47 = vld [vmem:[%s21641_s7 + $0x1864] ss:$16 sps:$4 sm:$0xff]  }
 0x5d7   : > { %11944 = vmatprep.subr.bf16.mxu1 %v15617_v61  ;;  %v15666_v61 = vld [vmem:[%s21641_s7 + $0x1700] ss:$16 sps:$4 sm:$0xff]  }
 0x5d8   : > { %11984 = vmatpush1.bf16.msra.mxu0 %v15612_v24  ;;  %v20214_v24 = vrot.slane %v19973_v17, %v18850_v54  ;;  %v15672_v17 = vld [vmem:[%s21641_s7 + $0x2e8] ss:$16 sps:$4 sm:$0xff]  }
 0x5d9   : > { %11985 = vmatprep.subr.bf16.mxu0 %v15620_v42  ;;  %v15674_v42 = vld [vmem:[%s21641_s7 + $0x2ec] ss:$16 sps:$4 sm:$0xff]  }
 0x5da   : > { %11945 = vmatpush1.bf16.msra.mxu1 %v15615_v35  ;;  %v15669_v35 = vld [vmem:[%s21641_s7 + $0x1860] ss:$16 sps:$4 sm:$0xff]  }
 0x5db   : > { %11946 = vmatprep.subr.bf16.mxu1 %v15623_v6  ;;  %v15677_v6 = vld [vmem:[%s21641_s7 + $0x1844] ss:$16 sps:$4 sm:$0xff]  }
 0x5dc   : > { %11986 = vmatpush1.bf16.msra.mxu0 %v15618_v15 }
 0x5dd   : > { %11987 = vmatprep.subr.bf16.mxu0 %v15626_v63  ;;  %v20231_v63 = vcombine.high %v20214_v24, %v20214_v24 }
 0x5de   : > { %11947 = vmatpush2.bf16.msra.mxu1 %v15621_v52  ;;  %v15680_v52 = vld [vmem:[%s21641_s7 + $0x2cc] ss:$16 sps:$4 sm:$0xff]  }
 0x5df   : > { %11948 = vmatprep.subr.bf16.mxu1 %v15629_v12 }
 0x5e0   : > { %11988 = vmatpush2.bf16.msra.mxu0 %v15624_v59  ;;  %v15675_v59 = vld [vmem:[%s21641_s7 + $0x1840] ss:$16 sps:$4 sm:$0xff]  }
 0x5e1   : > { %11989 = vmatprep.subr.bf16.mxu0 %v15632_v11  ;;  %v16367_v11 = vmov 0  }
 0x5e2   : > { %11949 = vmatpush2.bf16.msra.mxu1 %v15627_v40 }
 0x5e3   : > { %11950 = vmatprep.subr.bf16.mxu1 %v15635_v49 }
 0x5e4   : > { %11990 = vmatpush2.bf16.msra.mxu0 %v15630_v1  ;;  %v15683_v1 = vld [vmem:[%s21641_s7 + $0x1824] ss:$16 sps:$4 sm:$0xff]  }
 0x5e5   : > { %11991 = vmatprep.subr.bf16.mxu0 %v15638_v43 }
 0x5e6   : > { %11951 = vmatpush2.bf16.msra.mxu1 %v15633_v16  ;;  %v15678_v16 = vld [vmem:[%s21641_s7 + $0x2c8] ss:$16 sps:$4 sm:$0xff]  }
 0x5e7   : > { %11952 = vmatprep.subr.bf16.mxu1 %v15641_v27 }
 0x5e8   : > { %11992 = vmatpush2.bf16.msra.mxu0 %v15636_v36 }
 0x5e9   : > { %11993 = vmatprep.subr.bf16.mxu0 %v15644_v4  ;;  %v15686_v4 = vld [vmem:[%s21641_s7 + $0x2ac] ss:$16 sps:$4 sm:$0xff]  }
 0x5ea   : > { %11953 = vmatpush2.bf16.msra.mxu1 %v15639_v18 }
 0x5eb   : > { %11954 = vmatprep.subr.bf16.mxu1 %v15647_v8 }
 0x5ec   : > { %11994 = vmatpush2.bf16.msra.mxu0 %v15642_v48  ;;  %v15689_v48 = vld [vmem:[%s21641_s7 + $0x1804] ss:$16 sps:$4 sm:$0xff]  }
 0x5ed   : > { %11995 = vmatprep.subr.bf16.mxu0 %v15650_v5  ;;  %v15684_v5 = vld [vmem:[%s21641_s7 + $0x2a8] ss:$16 sps:$4 sm:$0xff]  }
 0x5ee   : > { %11955 = vmatpush2.bf16.msra.mxu1 %v15645_v21 }
 0x5ef   : > { %11956 = vmatprep.subr.bf16.mxu1 %v15653_v14  ;;  %v15692_v14 = vld [vmem:[%s21641_s7 + $0x28c] ss:$16 sps:$4 sm:$0xff]  }
 0x5f0   : > { %11996 = vmatpush2.bf16.msra.mxu0 %v15648_v29  ;;  %v15687_v29 = vld [vmem:[%s21641_s7 + $0x1800] ss:$16 sps:$4 sm:$0xff]  }
 0x5f1   : > { %11997 = vmatprep.subr.bf16.mxu0 %v15656_v60  ;;  %v15695_v60 = vld [vmem:[%s21641_s7 + $0xec] ss:$16 sps:$4 sm:$0xff]  }
 0x5f2   : > { %11957 = vmatpush2.bf16.msra.mxu1 %v15651_v26  ;;  %v15690_v26 = vld [vmem:[%s21641_s7 + $0x288] ss:$16 sps:$4 sm:$0xff]  }
 0x5f3   : > { %11958 = vmatprep.subr.bf16.mxu1 %v15659_v50  ;;  %v13446_v50 = vld.sshfl [vmem:[#allocation8 + $0x18] sm:$0x1 pattern:$0x75316420] }
 0x5f4   : > { %11998 = vmatpush2.bf16.msra.mxu0 %v15654_v41  ;;  %v15698_v41 = vld [vmem:[%s21641_s7 + $0x26c] ss:$16 sps:$4 sm:$0xff]  }
 0x5f5   : > { %11999 = vmatprep.subr.bf16.mxu0 %v15662_v32  ;;  %v15693_v32 = vld [vmem:[%s21641_s7 + $0xe8] ss:$16 sps:$4 sm:$0xff]  }
 0x5f6   : > { %11959 = vmatpush2.bf16.msra.mxu1 %v15657_v39  ;;  %v20285_v39 = vrot.slane %v13446_v50, %v18850_v54  ;;  %v15699_v54 = vld [vmem:[%s21641_s7 + $0xc8] ss:$16 sps:$4 sm:$0xff]   ;;  %v15752_v50 = vld [vmem:[%s21641_s7 + $0x34c] ss:$16 sps:$4 sm:$0xff]  }
 0x5f7   : > { %11960 = vmatprep.subr.bf16.mxu1 %v15665_v7  ;;  %v15701_v7 = vld [vmem:[%s21641_s7 + $0xcc] ss:$16 sps:$4 sm:$0xff]  }
 0x5f8   : > { %12000 = vmatpush2.bf16.msra.mxu0 %v15660_v58  ;;  %v15696_v58 = vld [vmem:[%s21641_s7 + $0x268] ss:$16 sps:$4 sm:$0xff]  }
 0x5f9   : > { %12001 = vmatprep.subr.bf16.mxu0 %v15668_v33  ;;  %v15704_v33 = vld [vmem:[%s21641_s7 + $0x24c] ss:$16 sps:$4 sm:$0xff]  }
 0x5fa   : > { %11961 = vmatpush2.bf16.msra.mxu1 %v15663_v37  ;;  %v15707_v37 = vld [vmem:[%s21641_s7 + $0xac] ss:$16 sps:$4 sm:$0xff]  }
 0x5fb   : > { %12020 = vmatprep.subr.bf16.mxu1 %v15671_v47  ;;  %v15702_v47 = vld [vmem:[%s21641_s7 + $0x248] ss:$16 sps:$4 sm:$0xff]  }
 0x5fc   : > { %12002 = vmatpush2.bf16.msra.mxu0 %v15666_v61  ;;  %v15710_v61 = vld [vmem:[%s21641_s7 + $0x22c] ss:$16 sps:$4 sm:$0xff]  }
 0x5fd   : > { %v11718_v15 = vpop.f32.mrf.mxu1  ;;  %11963 = vmatmul.mubr.bf16.vlgmr.msra.gmra.mxu1 %v20214_v24  ;;  %12094 = vmatprep.subr.bf16.mxu0 %v15674_v42  ;;  %v15713_v42 = vld [vmem:[%s21641_s7 + $0x8c] ss:$16 sps:$4 sm:$0xff]  }
 0x5fe   : > { %v11719_v12 = vadd.f32 %v11718_v15, %v20036_v25  ;;  %12021 = vmatpush1.bf16.msra.mxu1 %v15669_v35  ;;  %12044 = vmatprep.mubr.bf16.mxu1 %v16367_v11  ;;  %v15708_v35 = vld [vmem:[%s21641_s7 + $0x228] ss:$16 sps:$4 sm:$0xff]   ;;  %v15719_v15 = vld [vmem:[%s21641_s7 + $0x6c] ss:$16 sps:$4 sm:$0xff]  }
 0x5ff   : > { %v11720_v40 = vpop.f32.mrf.mxu1  ;;  %v11759_v49 = vpop.f32.mrf.mxu0  ;;  %12004 = vmatmul.mubr.bf16.vlgmr.msra.gmra.mxu0 %v20231_v63  ;;  %12022 = vmatprep.subr.bf16.mxu1 %v15677_v6  ;;  %v15716_v6 = vld [vmem:[%s21641_s7 + $0x20c] ss:$16 sps:$4 sm:$0xff]  }
 0x600   : > { %v11721_v43 = vadd.f32 %v11720_v40, %v20045_v46  ;;  %v20246_v25 = vadd.f32 %v11759_v49, %v11719_v12  ;;  %12095 = vmatpush1.bf16.msra.mxu0 %v15672_v17  ;;  %12126 = vmatprep.mubr.bf16.mxu0 %v19095_v38  ;;  %v15681_v46 = vld [vmem:[%s21641_s7 + $0x1820] ss:$16 sps:$4 sm:$0xff]   ;;  %v15711_v17 = vld [vmem:[%s21641_s7 + $0x88] ss:$16 sps:$4 sm:$0xff]   ;;  %v15722_v12 = vld [vmem:[%s21641_s7 + $0x3ec] ss:$16 sps:$4 sm:$0xff]  }
 0x601   : > { %v11722_v27 = vpop.f32.mrf.mxu1  ;;  %v11761_v36 = vpop.f32.mrf.mxu0  ;;  %12096 = vmatprep.subr.bf16.mxu0 %v15680_v52  ;;  %v15714_v52 = vld [vmem:[%s21641_s7 + $0x208] ss:$16 sps:$4 sm:$0xff]   ;;  %v15725_v40 = vld [vmem:[%s21641_s7 + $0x4c] ss:$16 sps:$4 sm:$0xff]  }
 0x602   : > { %v20255_v18 = vadd.f32 %v11761_v36, %v11721_v43  ;;  %12023 = vmatpush1.bf16.msra.mxu1 %v15675_v59  ;;  %v15717_v59 = vld [vmem:[%s21641_s7 + $0x68] ss:$16 sps:$4 sm:$0xff]   ;;  %v15734_v36 = vld [vmem:[%s21641_s7 + $0x3ac] ss:$16 sps:$4 sm:$0xff]  }
 0x603   : > { %v11723_v8 = vpop.f32.mrf.mxu1  ;;  %v11763_v38 = vpop.f32.mrf.mxu0  ;;  %12024 = vmatprep.subr.bf16.mxu1 %v15683_v1  ;;  %v15720_v49 = vld [vmem:[%s21641_s7 + $0x3e8] ss:$16 sps:$4 sm:$0xff]   ;;  %v15728_v1 = vld [vmem:[%s21641_s7 + $0x3cc] ss:$16 sps:$4 sm:$0xff]  }
 0x604   : > { %12097 = vmatpush1.bf16.msra.mxu0 %v15678_v16  ;;  %v15723_v43 = vld [vmem:[%s21641_s7 + $0x48] ss:$16 sps:$4 sm:$0xff]   ;;  %v15731_v16 = vld [vmem:[%s21641_s7 + $0x2c] ss:$16 sps:$4 sm:$0xff]  }
 0x605   : > { %v11764_v21 = vpop.f32.mrf.mxu0  ;;  %12098 = vmatprep.subr.bf16.mxu0 %v15686_v4  ;;  %v15726_v27 = vld [vmem:[%s21641_s7 + $0x3c8] ss:$16 sps:$4 sm:$0xff]   ;;  %v15740_v38 = vld [vmem:[%s21641_s7 + $0x38c] ss:$16 sps:$4 sm:$0xff]  }
 0x606   : > { %12025 = vmatpush1.bf16.msra.mxu1 %v15681_v46  ;;  %v15729_v4 = vld [vmem:[%s21641_s7 + $0x28] ss:$16 sps:$4 sm:$0xff]   ;;  %v15737_v46 = vld [vmem:[%s21641_s7 + $0xc] ss:$16 sps:$4 sm:$0xff]  }
 0x607   : > { %12026 = vmatprep.subr.bf16.mxu1 %v15689_v48  ;;  %v15732_v8 = vld [vmem:[%s21641_s7 + $0x3a8] ss:$16 sps:$4 sm:$0xff]  }
 0x608   : > { %12099 = vmatpush1.bf16.msra.mxu0 %v15684_v5  ;;  %v15735_v48 = vld [vmem:[%s21641_s7 + $0x8] ss:$16 sps:$4 sm:$0xff]   ;;  %v15743_v5 = vld [vmem:[%s21641_s7 + $0x1ec] ss:$16 sps:$4 sm:$0xff]  }
 0x609   : > { %12100 = vmatprep.subr.bf16.mxu0 %v15692_v14  ;;  %v15738_v21 = vld [vmem:[%s21641_s7 + $0x388] ss:$16 sps:$4 sm:$0xff]   ;;  %v15746_v14 = vld [vmem:[%s21641_s7 + $0x36c] ss:$16 sps:$4 sm:$0xff]  }
 0x60a   : > { %12027 = vmatpush1.bf16.msra.mxu1 %v15687_v29  ;;  %v15741_v29 = vld [vmem:[%s21641_s7 + $0x1e8] ss:$16 sps:$4 sm:$0xff]  }
 0x60b   : > { %12053 = vmatprep.subr.bf16.mxu1 %v15695_v60  ;;  %v15749_v60 = vld [vmem:[%s21641_s7 + $0x1cc] ss:$16 sps:$4 sm:$0xff]  }
 0x60c   : > { %12101 = vmatpush1.bf16.msra.mxu0 %v15690_v26  ;;  %v15744_v26 = vld [vmem:[%s21641_s7 + $0x368] ss:$16 sps:$4 sm:$0xff]  }
 0x60d   : > { %14231 = vmatmul.mubr.msk.bf16.vlgmr.msra.gmra.mxu1 %vm5264_vm7, %v20285_v39  ;;  %12102 = vmatprep.subr.bf16.mxu0 %v15698_v41  ;;  %v15747_v41 = vld [vmem:[%s21641_s7 + $0x1c8] ss:$16 sps:$4 sm:$0xff]  }
 0x60e   : > { %12054 = vmatpush1.bf16.msra.mxu1 %v15693_v32  ;;  %12085 = vmatprep.mubr.bf16.mxu1 %v19083_v9  ;;  %v15705_v9 = vld [vmem:[%s21641_s7 + $0xa8] ss:$16 sps:$4 sm:$0xff]   ;;  %v15755_v32 = vld [vmem:[%s21641_s7 + $0x1ac] ss:$16 sps:$4 sm:$0xff]  }
 0x60f   : > { %12055 = vmatprep.subr.bf16.mxu1 %v15701_v7  ;;  %v15750_v7 = vld [vmem:[%s21641_s7 + $0x348] ss:$16 sps:$4 sm:$0xff]  }
 0x610   : > { %12103 = vmatpush1.bf16.msra.mxu0 %v15696_v58  ;;  %v15758_v58 = vld [vmem:[%s21641_s7 + $0x32c] ss:$16 sps:$4 sm:$0xff]  }
 0x611   : > { %12104 = vmatprep.subr.bf16.mxu0 %v15704_v33  ;;  %v15753_v33 = vld [vmem:[%s21641_s7 + $0x1a8] ss:$16 sps:$4 sm:$0xff]  }
 0x612   : > { %12056 = vmatpush1.bf16.msra.mxu1 %v15699_v54  ;;  %v15761_v54 = vld [vmem:[%s21641_s7 + $0x18c] ss:$16 sps:$4 sm:$0xff]  }
 0x613   : > { %12057 = vmatprep.subr.bf16.mxu1 %v15707_v37  ;;  %v15756_v37 = vld [vmem:[%s21641_s7 + $0x328] ss:$16 sps:$4 sm:$0xff]  }
 0x614   : > { %12105 = vmatpush1.bf16.msra.mxu0 %v15702_v47  ;;  %v15764_v47 = vld [vmem:[%s21641_s7 + $0x30c] ss:$16 sps:$4 sm:$0xff]  }
 0x615   : > { %12106 = vmatprep.subr.bf16.mxu0 %v15710_v61  ;;  %v15759_v61 = vld [vmem:[%s21641_s7 + $0x188] ss:$16 sps:$4 sm:$0xff]  }
 0x616   : > { %12058 = vmatpush1.bf16.msra.mxu1 %v15705_v9  ;;  %v15767_v9 = vld [vmem:[%s21641_s7 + $0x16c] ss:$16 sps:$4 sm:$0xff]  }
 0x617   : > { %12059 = vmatprep.subr.bf16.mxu1 %v15713_v42  ;;  %v15762_v42 = vld [vmem:[%s21641_s7 + $0x308] ss:$16 sps:$4 sm:$0xff]  }
 0x618   : > { %12107 = vmatpush1.bf16.msra.mxu0 %v15708_v35  ;;  %v15770_v35 = vld [vmem:[%s21641_s7 + $0x6ec] ss:$16 sps:$4 sm:$0xff]  }
 0x619   : > { %12108 = vmatprep.subr.bf16.mxu0 %v15716_v6  ;;  %v15765_v6 = vld [vmem:[%s21641_s7 + $0x168] ss:$16 sps:$4 sm:$0xff]  }
 0x61a   : > { %12060 = vmatpush1.bf16.msra.mxu1 %v15711_v17  ;;  %v15773_v17 = vld [vmem:[%s21641_s7 + $0x14c] ss:$16 sps:$4 sm:$0xff]  }
 0x61b   : > { %12061 = vmatprep.subr.bf16.mxu1 %v15719_v15  ;;  %v15768_v15 = vld [vmem:[%s21641_s7 + $0x6e8] ss:$16 sps:$4 sm:$0xff]  }
 0x61c   : > { %12109 = vmatpush1.bf16.msra.mxu0 %v15714_v52 }
 0x61d   : > { %12110 = vmatprep.subr.bf16.mxu0 %v15722_v12  ;;  %v15776_v12 = vld [vmem:[%s21641_s7 + $0x6cc] ss:$16 sps:$4 sm:$0xff]  }
 0x61e   : > { %12062 = vmatpush1.bf16.msra.mxu1 %v15717_v59 }
 0x61f   : > { %12063 = vmatprep.subr.bf16.mxu1 %v15725_v40  ;;  %v15771_v40 = vld [vmem:[%s21641_s7 + $0x148] ss:$16 sps:$4 sm:$0xff]  }
 0x620   : > { %12111 = vmatpush2.bf16.msra.mxu0 %v15720_v49 }
 0x621   : > { %12112 = vmatprep.subr.bf16.mxu0 %v15728_v1 }
 0x622   : > { %12064 = vmatpush1.bf16.msra.mxu1 %v15723_v43  ;;  %v15779_v43 = vld [vmem:[%s21641_s7 + $0x12c] ss:$16 sps:$4 sm:$0xff]  }
 0x623   : > { %12065 = vmatprep.subr.bf16.mxu1 %v15731_v16 }
 0x624   : > { %12113 = vmatpush2.bf16.msra.mxu0 %v15726_v27 }
 0x625   : > { %12114 = vmatprep.subr.bf16.mxu0 %v15734_v36 }
 0x626   : > { %12066 = vmatpush1.bf16.msra.mxu1 %v15729_v4 }
 0x627   : > { %12067 = vmatprep.subr.bf16.mxu1 %v15737_v46 }
 0x628   : > { %12115 = vmatpush2.bf16.msra.mxu0 %v15732_v8 }
 0x629   : > { %12116 = vmatprep.subr.bf16.mxu0 %v15740_v38  ;;  %v15785_v38 = vld [vmem:[%s21641_s7 + $0x10c] ss:$16 sps:$4 sm:$0xff]  }
 0x62a   : > { %12068 = vmatpush1.bf16.msra.mxu1 %v15735_v48  ;;  %v15780_v48 = vld [vmem:[%s21641_s7 + $0x6a8] ss:$16 sps:$4 sm:$0xff]  }
 0x62b   : > { %12069 = vmatprep.subr.bf16.mxu1 %v15743_v5 }
 0x62c   : > { %12117 = vmatpush2.bf16.msra.mxu0 %v15738_v21  ;;  %v15788_v21 = vld [vmem:[%s21641_s7 + $0x68c] ss:$16 sps:$4 sm:$0xff]  }
 0x62d   : > { %12118 = vmatprep.subr.bf16.mxu0 %v15746_v14  ;;  %v15783_v14 = vld [vmem:[%s21641_s7 + $0x108] ss:$16 sps:$4 sm:$0xff]  }
 0x62e   : > { %12070 = vmatpush2.bf16.msra.mxu1 %v15741_v29  ;;  %v15791_v29 = vld [vmem:[%s21641_s7 + $0x4ec] ss:$16 sps:$4 sm:$0xff]  }
 0x62f   : > { %12071 = vmatprep.subr.bf16.mxu1 %v15749_v60  ;;  %v15786_v60 = vld [vmem:[%s21641_s7 + $0x688] ss:$16 sps:$4 sm:$0xff]  }
 0x630   : > { %12119 = vmatpush2.bf16.msra.mxu0 %v15744_v26  ;;  %v15794_v26 = vld [vmem:[%s21641_s7 + $0x66c] ss:$16 sps:$4 sm:$0xff]  }
 0x631   : > { %12120 = vmatprep.subr.bf16.mxu0 %v15752_v50  ;;  %v15789_v50 = vld [vmem:[%s21641_s7 + $0x4e8] ss:$16 sps:$4 sm:$0xff]  }
 0x632   : > { %12072 = vmatpush2.bf16.msra.mxu1 %v15747_v41  ;;  %v15797_v41 = vld [vmem:[%s21641_s7 + $0x4cc] ss:$16 sps:$4 sm:$0xff]  }
 0x633   : > { %12073 = vmatprep.subr.bf16.mxu1 %v15755_v32  ;;  %v15792_v32 = vld [vmem:[%s21641_s7 + $0x668] ss:$16 sps:$4 sm:$0xff]  }
 0x634   : > { %12121 = vmatpush2.bf16.msra.mxu0 %v15750_v7  ;;  %v15800_v7 = vld [vmem:[%s21641_s7 + $0x64c] ss:$16 sps:$4 sm:$0xff]  }
 0x635   : > { %12122 = vmatprep.subr.bf16.mxu0 %v15758_v58  ;;  %v15795_v58 = vld [vmem:[%s21641_s7 + $0x4c8] ss:$16 sps:$4 sm:$0xff]  }
 0x636   : > { %12074 = vmatpush2.bf16.msra.mxu1 %v15753_v33  ;;  %v15803_v33 = vld [vmem:[%s21641_s7 + $0x4ac] ss:$16 sps:$4 sm:$0xff]  }
 0x637   : > { %12075 = vmatprep.subr.bf16.mxu1 %v15761_v54  ;;  %v15806_v54 = vld [vmem:[%s21641_s7 + $0x62c] ss:$16 sps:$4 sm:$0xff]  }
 0x638   : > { %12123 = vmatpush2.bf16.msra.mxu0 %v15756_v37  ;;  %v15809_v37 = vld [vmem:[%s21641_s7 + $0x48c] ss:$16 sps:$4 sm:$0xff]  }
 0x639   : > { %12124 = vmatprep.subr.bf16.mxu0 %v15764_v47  ;;  %v15804_v47 = vld [vmem:[%s21641_s7 + $0x628] ss:$16 sps:$4 sm:$0xff]  }
 0x63a   : > { %12076 = vmatpush2.bf16.msra.mxu1 %v15759_v61  ;;  %v15812_v61 = vld [vmem:[%s21641_s7 + $0x60c] ss:$16 sps:$4 sm:$0xff]  }
 0x63b   : > { %12077 = vmatprep.subr.bf16.mxu1 %v15767_v9  ;;  %v15807_v9 = vld [vmem:[%s21641_s7 + $0x488] ss:$16 sps:$4 sm:$0xff]  }
 0x63c   : > { %12125 = vmatpush2.bf16.msra.mxu0 %v15762_v42  ;;  %v15815_v42 = vld [vmem:[%s21641_s7 + $0x46c] ss:$16 sps:$4 sm:$0xff]  }
 0x63d   : > { %v11800_v52 = vpop.f32.mrf.mxu1  ;;  %12176 = vmatprep.subr.bf16.mxu0 %v15770_v35  ;;  %v15810_v35 = vld [vmem:[%s21641_s7 + $0x608] ss:$16 sps:$4 sm:$0xff]  }
 0x63e   : > { %v11801_v59 = vadd.f32 %v11800_v52, %v20246_v25  ;;  %12078 = vmatpush2.bf16.msra.mxu1 %v15765_v6  ;;  %v15774_v25 = vld [vmem:[%s21641_s7 + $0x6c8] ss:$16 sps:$4 sm:$0xff]   ;;  %v15818_v6 = vld [vmem:[%s21641_s7 + $0x7ec] ss:$16 sps:$4 sm:$0xff]  }
 0x63f   : > { %v11802_v49 = vpop.f32.mrf.mxu1  ;;  %v11841_v1 = vpop.f32.mrf.mxu0  ;;  %12127 = vmatmul.mubr.bf16.vlgmr.msra.gmra.mxu0 %v19111_v53  ;;  %12079 = vmatprep.subr.bf16.mxu1 %v15773_v17  ;;  %v15782_v53 = vld [vmem:[%s21641_s7 + $0x6ac] ss:$16 sps:$4 sm:$0xff]   ;;  %v15813_v17 = vld [vmem:[%s21641_s7 + $0x468] ss:$16 sps:$4 sm:$0xff]  }
 0x640   : > { %v11803_v16 = vadd.f32 %v11802_v49, %v20255_v18  ;;  %v20452_v27 = vadd.f32 %v11841_v1, %v11801_v59  ;;  %12177 = vmatpush1.bf16.msra.mxu0 %v15768_v15  ;;  %12208 = vmatprep.mubr.bf16.mxu0 %v19122_v28  ;;  %v15777_v18 = vld [vmem:[%s21641_s7 + $0x128] ss:$16 sps:$4 sm:$0xff]   ;;  %v15821_v15 = vld [vmem:[%s21641_s7 + $0x44c] ss:$16 sps:$4 sm:$0xff]  }
 0x641   : > { %v11804_v36 = vpop.f32.mrf.mxu1  ;;  %v11843_v4 = vpop.f32.mrf.mxu0  ;;  %12178 = vmatprep.subr.bf16.mxu0 %v15776_v12  ;;  %v15816_v52 = vld [vmem:[%s21641_s7 + $0x7e8] ss:$16 sps:$4 sm:$0xff]   ;;  %v15824_v12 = vld [vmem:[%s21641_s7 + $0x7cc] ss:$16 sps:$4 sm:$0xff]  }
 0x642   : > { %v20461_v46 = vadd.f32 %v11843_v4, %v11803_v16  ;;  %12080 = vmatpush2.bf16.msra.mxu1 %v15771_v40  ;;  %v15819_v59 = vld [vmem:[%s21641_s7 + $0x448] ss:$16 sps:$4 sm:$0xff]   ;;  %v15827_v40 = vld [vmem:[%s21641_s7 + $0x42c] ss:$16 sps:$4 sm:$0xff]  }
 0x643   : > { %v11805_v8 = vpop.f32.mrf.mxu1  ;;  %v11845_v28 = vpop.f32.mrf.mxu0  ;;  %12081 = vmatprep.subr.bf16.mxu1 %v15779_v43  ;;  %v15822_v49 = vld [vmem:[%s21641_s7 + $0x7c8] ss:$16 sps:$4 sm:$0xff]   ;;  %v15830_v1 = vld [vmem:[%s21641_s7 + $0x7ac] ss:$16 sps:$4 sm:$0xff]  }
 0x644   : > { %12179 = vmatpush1.bf16.msra.mxu0 %v15774_v25  ;;  %v15825_v43 = vld [vmem:[%s21641_s7 + $0x428] ss:$16 sps:$4 sm:$0xff]   ;;  %v15833_v16 = vld [vmem:[%s21641_s7 + $0x40c] ss:$16 sps:$4 sm:$0xff]  }
 0x645   : > { %v11846_v5 = vpop.f32.mrf.mxu0  ;;  %12180 = vmatprep.subr.bf16.mxu0 %v15782_v53  ;;  %v15828_v25 = vld [vmem:[%s21641_s7 + $0x7a8] ss:$16 sps:$4 sm:$0xff]   ;;  %v15836_v36 = vld [vmem:[%s21641_s7 + $0x78c] ss:$16 sps:$4 sm:$0xff]  }
 0x646   : > { %12082 = vmatpush2.bf16.msra.mxu1 %v15777_v18  ;;  %v15831_v4 = vld [vmem:[%s21641_s7 + $0x408] ss:$16 sps:$4 sm:$0xff]   ;;  %v15839_v53 = vld [vmem:[%s21641_s7 + $0x5ec] ss:$16 sps:$4 sm:$0xff]  }
 0x647   : > { %12083 = vmatprep.subr.bf16.mxu1 %v15785_v38  ;;  %v15834_v18 = vld [vmem:[%s21641_s7 + $0x788] ss:$16 sps:$4 sm:$0xff]   ;;  %v15842_v8 = vld [vmem:[%s21641_s7 + $0x76c] ss:$16 sps:$4 sm:$0xff]  }
 0x648   : > { %12181 = vmatpush1.bf16.msra.mxu0 %v15780_v48  ;;  %v15837_v28 = vld [vmem:[%s21641_s7 + $0x5e8] ss:$16 sps:$4 sm:$0xff]   ;;  %v15845_v38 = vld [vmem:[%s21641_s7 + $0x5cc] ss:$16 sps:$4 sm:$0xff]  }
 0x649   : > { %12182 = vmatprep.subr.bf16.mxu0 %v15788_v21  ;;  %v15840_v48 = vld [vmem:[%s21641_s7 + $0x768] ss:$16 sps:$4 sm:$0xff]   ;;  %v15848_v5 = vld [vmem:[%s21641_s7 + $0x74c] ss:$16 sps:$4 sm:$0xff]  }
 0x64a   : > { %12084 = vmatpush2.bf16.msra.mxu1 %v15783_v14  ;;  %v15843_v21 = vld [vmem:[%s21641_s7 + $0x5c8] ss:$16 sps:$4 sm:$0xff]   ;;  %v15851_v14 = vld [vmem:[%s21641_s7 + $0x5ac] ss:$16 sps:$4 sm:$0xff]  }
 0x64b   : > { %12135 = vmatprep.subr.bf16.mxu1 %v15791_v29  ;;  %v15846_v29 = vld [vmem:[%s21641_s7 + $0x748] ss:$16 sps:$4 sm:$0xff]  }
 0x64c   : > { %12183 = vmatpush1.bf16.msra.mxu0 %v15786_v60  ;;  %v15854_v60 = vld [vmem:[%s21641_s7 + $0x72c] ss:$16 sps:$4 sm:$0xff]  }
 0x64d   : > { %12086 = vmatmul.mubr.bf16.vlgmr.msra.gmra.mxu1 %v19080_v10  ;;  %12184 = vmatprep.subr.bf16.mxu0 %v15794_v26  ;;  %v15798_v10 = vld [vmem:[%s21641_s7 + $0x648] ss:$16 sps:$4 sm:$0xff]  }
 0x64e   : > { %12136 = vmatpush1.bf16.msra.mxu1 %v15789_v50  ;;  %12167 = vmatprep.mubr.bf16.mxu1 %v19098_v19  ;;  %v15801_v19 = vld [vmem:[%s21641_s7 + $0x4a8] ss:$16 sps:$4 sm:$0xff]   ;;  %v15857_v50 = vld [vmem:[%s21641_s7 + $0x58c] ss:$16 sps:$4 sm:$0xff]  }
 0x64f   : > { %12137 = vmatprep.subr.bf16.mxu1 %v15797_v41  ;;  %v15849_v26 = vld [vmem:[%s21641_s7 + $0x5a8] ss:$16 sps:$4 sm:$0xff]  }
 0x650   : > { %12185 = vmatpush1.bf16.msra.mxu0 %v15792_v32  ;;  %v15852_v41 = vld [vmem:[%s21641_s7 + $0x728] ss:$16 sps:$4 sm:$0xff]   ;;  %v15860_v32 = vld [vmem:[%s21641_s7 + $0x70c] ss:$16 sps:$4 sm:$0xff]  }
 0x651   : > { %12186 = vmatprep.subr.bf16.mxu0 %v15800_v7  ;;  %v15855_v7 = vld [vmem:[%s21641_s7 + $0x588] ss:$16 sps:$4 sm:$0xff]  }
 0x652   : > { %12138 = vmatpush1.bf16.msra.mxu1 %v15795_v58  ;;  %v15863_v58 = vld [vmem:[%s21641_s7 + $0x56c] ss:$16 sps:$4 sm:$0xff]  }
 0x653   : > { %12139 = vmatprep.subr.bf16.mxu1 %v15803_v33  ;;  %v15858_v33 = vld [vmem:[%s21641_s7 + $0x708] ss:$16 sps:$4 sm:$0xff]  }
 0x654   : > { %12187 = vmatpush1.bf16.msra.mxu0 %v15798_v10  ;;  %v15866_v10 = vld [vmem:[%s21641_s7 + $0xaec] ss:$16 sps:$4 sm:$0xff]  }
 0x655   : > { %12188 = vmatprep.subr.bf16.mxu0 %v15806_v54  ;;  %v15861_v54 = vld [vmem:[%s21641_s7 + $0x568] ss:$16 sps:$4 sm:$0xff]  }
 0x656   : > { %12140 = vmatpush1.bf16.msra.mxu1 %v15801_v19  ;;  %v15869_v19 = vld [vmem:[%s21641_s7 + $0x54c] ss:$16 sps:$4 sm:$0xff]  }
 0x657   : > { %12141 = vmatprep.subr.bf16.mxu1 %v15809_v37  ;;  %v15864_v37 = vld [vmem:[%s21641_s7 + $0xae8] ss:$16 sps:$4 sm:$0xff]  }
 0x658   : > { %12189 = vmatpush1.bf16.msra.mxu0 %v15804_v47 }
 0x659   : > { %12190 = vmatprep.subr.bf16.mxu0 %v15812_v61  ;;  %v15872_v61 = vld [vmem:[%s21641_s7 + $0xacc] ss:$16 sps:$4 sm:$0xff]  }
 0x65a   : > { %12142 = vmatpush1.bf16.msra.mxu1 %v15807_v9 }
 0x65b   : > { %12143 = vmatprep.subr.bf16.mxu1 %v15815_v42  ;;  %v15867_v42 = vld [vmem:[%s21641_s7 + $0x548] ss:$16 sps:$4 sm:$0xff]  }
 0x65c   : > { %12191 = vmatpush1.bf16.msra.mxu0 %v15810_v35 }
 0x65d   : > { %12192 = vmatprep.subr.bf16.mxu0 %v15818_v6 }
 0x65e   : > { %12144 = vmatpush1.bf16.msra.mxu1 %v15813_v17  ;;  %v15875_v17 = vld [vmem:[%s21641_s7 + $0x52c] ss:$16 sps:$4 sm:$0xff]  }
 0x65f   : > { %12145 = vmatprep.subr.bf16.mxu1 %v15821_v15 }
 0x660   : > { %12193 = vmatpush2.bf16.msra.mxu0 %v15816_v52 }
 0x661   : > { %12194 = vmatprep.subr.bf16.mxu0 %v15824_v12 }
 0x662   : > { %12146 = vmatpush1.bf16.msra.mxu1 %v15819_v59 }
 0x663   : > { %12147 = vmatprep.subr.bf16.mxu1 %v15827_v40 }
 0x664   : > { %12195 = vmatpush2.bf16.msra.mxu0 %v15822_v49 }
 0x665   : > { %12196 = vmatprep.subr.bf16.mxu0 %v15830_v1  ;;  %v15881_v1 = vld [vmem:[%s21641_s7 + $0x50c] ss:$16 sps:$4 sm:$0xff]  }
 0x666   : > { %12148 = vmatpush1.bf16.msra.mxu1 %v15825_v43  ;;  %v15876_v43 = vld [vmem:[%s21641_s7 + $0xaa8] ss:$16 sps:$4 sm:$0xff]  }
 0x667   : > { %12149 = vmatprep.subr.bf16.mxu1 %v15833_v16 }
 0x668   : > { %12197 = vmatpush2.bf16.msra.mxu0 %v15828_v25  ;;  %v15884_v25 = vld [vmem:[%s21641_s7 + $0xa8c] ss:$16 sps:$4 sm:$0xff]  }
 0x669   : > { %12198 = vmatprep.subr.bf16.mxu0 %v15836_v36  ;;  %v15879_v36 = vld [vmem:[%s21641_s7 + $0x508] ss:$16 sps:$4 sm:$0xff]  }
 0x66a   : > { %12150 = vmatpush1.bf16.msra.mxu1 %v15831_v4  ;;  %v15887_v4 = vld [vmem:[%s21641_s7 + $0x8ec] ss:$16 sps:$4 sm:$0xff]  }
 0x66b   : > { %12151 = vmatprep.subr.bf16.mxu1 %v15839_v53  ;;  %v15882_v53 = vld [vmem:[%s21641_s7 + $0xa88] ss:$16 sps:$4 sm:$0xff]  }
 0x66c   : > { %12199 = vmatpush2.bf16.msra.mxu0 %v15834_v18  ;;  %v15890_v18 = vld [vmem:[%s21641_s7 + $0xa6c] ss:$16 sps:$4 sm:$0xff]  }
 0x66d   : > { %12200 = vmatprep.subr.bf16.mxu0 %v15842_v8  ;;  %v15885_v8 = vld [vmem:[%s21641_s7 + $0x8e8] ss:$16 sps:$4 sm:$0xff]  }
 0x66e   : > { %12152 = vmatpush2.bf16.msra.mxu1 %v15837_v28  ;;  %v15893_v28 = vld [vmem:[%s21641_s7 + $0x8cc] ss:$16 sps:$4 sm:$0xff]  }
 0x66f   : > { %12153 = vmatprep.subr.bf16.mxu1 %v15845_v38  ;;  %v15888_v38 = vld [vmem:[%s21641_s7 + $0xa68] ss:$16 sps:$4 sm:$0xff]  }
 0x670   : > { %12201 = vmatpush2.bf16.msra.mxu0 %v15840_v48  ;;  %v15896_v48 = vld [vmem:[%s21641_s7 + $0xa4c] ss:$16 sps:$4 sm:$0xff]  }
 0x671   : > { %12202 = vmatprep.subr.bf16.mxu0 %v15848_v5  ;;  %v15891_v5 = vld [vmem:[%s21641_s7 + $0x8c8] ss:$16 sps:$4 sm:$0xff]  }
 0x672   : > { %12154 = vmatpush2.bf16.msra.mxu1 %v15843_v21  ;;  %v15899_v21 = vld [vmem:[%s21641_s7 + $0x8ac] ss:$16 sps:$4 sm:$0xff]  }
 0x673   : > { %12155 = vmatprep.subr.bf16.mxu1 %v15851_v14  ;;  %v15902_v14 = vld [vmem:[%s21641_s7 + $0xa2c] ss:$16 sps:$4 sm:$0xff]  }
 0x674   : > { %12203 = vmatpush2.bf16.msra.mxu0 %v15846_v29  ;;  %v15905_v29 = vld [vmem:[%s21641_s7 + $0x88c] ss:$16 sps:$4 sm:$0xff]  }
 0x675   : > { %12204 = vmatprep.subr.bf16.mxu0 %v15854_v60  ;;  %v15900_v60 = vld [vmem:[%s21641_s7 + $0xa28] ss:$16 sps:$4 sm:$0xff]  }
 0x676   : > { %12156 = vmatpush2.bf16.msra.mxu1 %v15849_v26  ;;  %v15908_v26 = vld [vmem:[%s21641_s7 + $0xa0c] ss:$16 sps:$4 sm:$0xff]  }
 0x677   : > { %12157 = vmatprep.subr.bf16.mxu1 %v15857_v50  ;;  %v15903_v50 = vld [vmem:[%s21641_s7 + $0x888] ss:$16 sps:$4 sm:$0xff]  }
 0x678   : > { %12205 = vmatpush2.bf16.msra.mxu0 %v15852_v41  ;;  %v15911_v41 = vld [vmem:[%s21641_s7 + $0x86c] ss:$16 sps:$4 sm:$0xff]  }
 0x679   : > { %12206 = vmatprep.subr.bf16.mxu0 %v15860_v32  ;;  %v15906_v32 = vld [vmem:[%s21641_s7 + $0xa08] ss:$16 sps:$4 sm:$0xff]  }
 0x67a   : > { %12158 = vmatpush2.bf16.msra.mxu1 %v15855_v7  ;;  %v15914_v7 = vld [vmem:[%s21641_s7 + $0xbec] ss:$16 sps:$4 sm:$0xff]  }
 0x67b   : > { %12159 = vmatprep.subr.bf16.mxu1 %v15863_v58  ;;  %v15909_v58 = vld [vmem:[%s21641_s7 + $0x868] ss:$16 sps:$4 sm:$0xff]  }
 0x67c   : > { %12207 = vmatpush2.bf16.msra.mxu0 %v15858_v33  ;;  %v15917_v33 = vld [vmem:[%s21641_s7 + $0x84c] ss:$16 sps:$4 sm:$0xff]  }
 0x67d   : > { %v11882_v47 = vpop.f32.mrf.mxu1  ;;  %12258 = vmatprep.subr.bf16.mxu0 %v15866_v10  ;;  %v15912_v10 = vld [vmem:[%s21641_s7 + $0xbe8] ss:$16 sps:$4 sm:$0xff]  }
 0x67e   : > { %v11883_v9 = vadd.f32 %v11882_v47, %v20452_v27  ;;  %12160 = vmatpush2.bf16.msra.mxu1 %v15861_v54  ;;  %v15870_v27 = vld [vmem:[%s21641_s7 + $0xac8] ss:$16 sps:$4 sm:$0xff]   ;;  %v15920_v54 = vld [vmem:[%s21641_s7 + $0xbcc] ss:$16 sps:$4 sm:$0xff]  }
 0x67f   : > { %v11884_v35 = vpop.f32.mrf.mxu1  ;;  %v11923_v6 = vpop.f32.mrf.mxu0  ;;  %12209 = vmatmul.mubr.bf16.vlgmr.msra.gmra.mxu0 %v19353_v2  ;;  %12161 = vmatprep.subr.bf16.mxu1 %v15869_v19  ;;  %v15878_v2 = vld [vmem:[%s21641_s7 + $0xaac] ss:$16 sps:$4 sm:$0xff]   ;;  %v15915_v19 = vld [vmem:[%s21641_s7 + $0x848] ss:$16 sps:$4 sm:$0xff]  }
 0x680   : > { %v11885_v15 = vadd.f32 %v11884_v35, %v20461_v46  ;;  %v20654_v52 = vadd.f32 %v11923_v6, %v11883_v9  ;;  %12259 = vmatpush1.bf16.msra.mxu0 %v15864_v37  ;;  %12290 = vmatprep.mubr.bf16.mxu0 %v19361_v23  ;;  %v15873_v46 = vld [vmem:[%s21641_s7 + $0x528] ss:$16 sps:$4 sm:$0xff]   ;;  %v15923_v37 = vld [vmem:[%s21641_s7 + $0x82c] ss:$16 sps:$4 sm:$0xff]  }
 0x681   : > { %v11886_v12 = vpop.f32.mrf.mxu1  ;;  %v11925_v59 = vpop.f32.mrf.mxu0  ;;  %12260 = vmatprep.subr.bf16.mxu0 %v15872_v61  ;;  %v15918_v47 = vld [vmem:[%s21641_s7 + $0xbc8] ss:$16 sps:$4 sm:$0xff]   ;;  %v15926_v61 = vld [vmem:[%s21641_s7 + $0xbac] ss:$16 sps:$4 sm:$0xff]  }
 0x682   : > { %v20663_v40 = vadd.f32 %v11925_v59, %v11885_v15  ;;  %12162 = vmatpush2.bf16.msra.mxu1 %v15867_v42  ;;  %v15921_v9 = vld [vmem:[%s21641_s7 + $0x828] ss:$16 sps:$4 sm:$0xff]   ;;  %v15929_v42 = vld [vmem:[%s21641_s7 + $0x80c] ss:$16 sps:$4 sm:$0xff]  }
 0x683   : > { %v11887_v49 = vpop.f32.mrf.mxu1  ;;  %v11927_v23 = vpop.f32.mrf.mxu0  ;;  %12163 = vmatprep.subr.bf16.mxu1 %v15875_v17  ;;  %v15924_v35 = vld [vmem:[%s21641_s7 + $0xba8] ss:$16 sps:$4 sm:$0xff]   ;;  %v15932_v6 = vld [vmem:[%s21641_s7 + $0xb8c] ss:$16 sps:$4 sm:$0xff]  }
 0x684   : > { %12261 = vmatpush1.bf16.msra.mxu0 %v15870_v27  ;;  %v15927_v17 = vld [vmem:[%s21641_s7 + $0x808] ss:$16 sps:$4 sm:$0xff]   ;;  %v15935_v15 = vld [vmem:[%s21641_s7 + $0x9ec] ss:$16 sps:$4 sm:$0xff]  }
 0x685   : > { %v11928_v16 = vpop.f32.mrf.mxu0  ;;  %12262 = vmatprep.subr.bf16.mxu0 %v15878_v2  ;;  %v15930_v27 = vld [vmem:[%s21641_s7 + $0xb88] ss:$16 sps:$4 sm:$0xff]   ;;  %v15938_v12 = vld [vmem:[%s21641_s7 + $0xb6c] ss:$16 sps:$4 sm:$0xff]  }
 0x686   : > { %12164 = vmatpush2.bf16.msra.mxu1 %v15873_v46  ;;  %v15933_v59 = vld [vmem:[%s21641_s7 + $0x9e8] ss:$16 sps:$4 sm:$0xff]   ;;  %v15941_v2 = vld [vmem:[%s21641_s7 + $0x9cc] ss:$16 sps:$4 sm:$0xff]  }
 0x687   : > { %12165 = vmatprep.subr.bf16.mxu1 %v15881_v1  ;;  %v15936_v46 = vld [vmem:[%s21641_s7 + $0xb68] ss:$16 sps:$4 sm:$0xff]   ;;  %v15944_v49 = vld [vmem:[%s21641_s7 + $0xb4c] ss:$16 sps:$4 sm:$0xff]  }
 0x688   : > { %12263 = vmatpush1.bf16.msra.mxu0 %v15876_v43  ;;  %v15939_v23 = vld [vmem:[%s21641_s7 + $0x9c8] ss:$16 sps:$4 sm:$0xff]   ;;  %v15947_v1 = vld [vmem:[%s21641_s7 + $0x9ac] ss:$16 sps:$4 sm:$0xff]  }
 0x689   : > { %12264 = vmatprep.subr.bf16.mxu0 %v15884_v25  ;;  %v15942_v43 = vld [vmem:[%s21641_s7 + $0xb48] ss:$16 sps:$4 sm:$0xff]   ;;  %v15950_v16 = vld [vmem:[%s21641_s7 + $0xb2c] ss:$16 sps:$4 sm:$0xff]  }
 0x68a   : > { %12166 = vmatpush2.bf16.msra.mxu1 %v15879_v36  ;;  %v15945_v25 = vld [vmem:[%s21641_s7 + $0x9a8] ss:$16 sps:$4 sm:$0xff]   ;;  %v15953_v36 = vld [vmem:[%s21641_s7 + $0x98c] ss:$16 sps:$4 sm:$0xff]  }
 0x68b   : > { %12217 = vmatprep.subr.bf16.mxu1 %v15887_v4  ;;  %v15948_v4 = vld [vmem:[%s21641_s7 + $0xb28] ss:$16 sps:$4 sm:$0xff]  }
 0x68c   : > { %12265 = vmatpush1.bf16.msra.mxu0 %v15882_v53  ;;  %v15956_v53 = vld [vmem:[%s21641_s7 + $0xb0c] ss:$16 sps:$4 sm:$0xff]  }
 0x68d   : > { %12168 = vmatmul.mubr.bf16.vlgmr.msra.gmra.mxu1 %v19333_v56  ;;  %12266 = vmatprep.subr.bf16.mxu0 %v15890_v18  ;;  %v15894_v56 = vld [vmem:[%s21641_s7 + $0xa48] ss:$16 sps:$4 sm:$0xff]  }
 0x68e   : > { %12218 = vmatpush1.bf16.msra.mxu1 %v15885_v8  ;;  %12249 = vmatprep.mubr.bf16.mxu1 %v19342_v0  ;;  %v15897_v0 = vld [vmem:[%s21641_s7 + $0x8a8] ss:$16 sps:$4 sm:$0xff]   ;;  %v15959_v8 = vld [vmem:[%s21641_s7 + $0x96c] ss:$16 sps:$4 sm:$0xff]  }
 0x68f   : > { %12219 = vmatprep.subr.bf16.mxu1 %v15893_v28  ;;  %v15951_v18 = vld [vmem:[%s21641_s7 + $0x988] ss:$16 sps:$4 sm:$0xff]  }
 0x690   : > { %12267 = vmatpush1.bf16.msra.mxu0 %v15888_v38  ;;  %v15954_v28 = vld [vmem:[%s21641_s7 + $0xb08] ss:$16 sps:$4 sm:$0xff]   ;;  %v15962_v38 = vld [vmem:[%s21641_s7 + $0xeec] ss:$16 sps:$4 sm:$0xff]  }
 0x691   : > { %12268 = vmatprep.subr.bf16.mxu0 %v15896_v48  ;;  %v15957_v48 = vld [vmem:[%s21641_s7 + $0x968] ss:$16 sps:$4 sm:$0xff]  }
 0x692   : > { %12220 = vmatpush1.bf16.msra.mxu1 %v15891_v5  ;;  %v15965_v5 = vld [vmem:[%s21641_s7 + $0x94c] ss:$16 sps:$4 sm:$0xff]  }
 0x693   : > { %12221 = vmatprep.subr.bf16.mxu1 %v15899_v21  ;;  %v15960_v21 = vld [vmem:[%s21641_s7 + $0xee8] ss:$16 sps:$4 sm:$0xff]  }
 0x694   : > { %12269 = vmatpush1.bf16.msra.mxu0 %v15894_v56 }
 0x695   : > { %12270 = vmatprep.subr.bf16.mxu0 %v15902_v14  ;;  %v15968_v14 = vld [vmem:[%s21641_s7 + $0xecc] ss:$16 sps:$4 sm:$0xff]  }
 0x696   : > { %12222 = vmatpush1.bf16.msra.mxu1 %v15897_v0 }
 0x697   : > { %12223 = vmatprep.subr.bf16.mxu1 %v15905_v29  ;;  %v15963_v29 = vld [vmem:[%s21641_s7 + $0x948] ss:$16 sps:$4 sm:$0xff]  }
 0x698   : > { %12271 = vmatpush1.bf16.msra.mxu0 %v15900_v60 }
 0x699   : > { %12272 = vmatprep.subr.bf16.mxu0 %v15908_v26 }
 0x69a   : > { %12224 = vmatpush1.bf16.msra.mxu1 %v15903_v50  ;;  %v15971_v50 = vld [vmem:[%s21641_s7 + $0x92c] ss:$16 sps:$4 sm:$0xff]  }
 0x69b   : > { %12225 = vmatprep.subr.bf16.mxu1 %v15911_v41 }
 0x69c   : > { %12273 = vmatpush1.bf16.msra.mxu0 %v15906_v32 }
 0x69d   : > { %12274 = vmatprep.subr.bf16.mxu0 %v15914_v7 }
 0x69e   : > { %12226 = vmatpush1.bf16.msra.mxu1 %v15909_v58 }
 0x69f   : > { %12227 = vmatprep.subr.bf16.mxu1 %v15917_v33 }
 0x6a0   : > { %12275 = vmatpush2.bf16.msra.mxu0 %v15912_v10 }
 0x6a1   : > { %12276 = vmatprep.subr.bf16.mxu0 %v15920_v54 }
 0x6a2   : > { %12228 = vmatpush1.bf16.msra.mxu1 %v15915_v19  ;;  %v15972_v19 = vld [vmem:[%s21641_s7 + $0xea8] ss:$16 sps:$4 sm:$0xff]  }
 0x6a3   : > { %12229 = vmatprep.subr.bf16.mxu1 %v15923_v37 }
 0x6a4   : > { %12277 = vmatpush2.bf16.msra.mxu0 %v15918_v47  ;;  %v15980_v47 = vld [vmem:[%s21641_s7 + $0xe8c] ss:$16 sps:$4 sm:$0xff]  }
 0x6a5   : > { %12278 = vmatprep.subr.bf16.mxu0 %v15926_v61  ;;  %v15975_v61 = vld [vmem:[%s21641_s7 + $0x908] ss:$16 sps:$4 sm:$0xff]  }
 0x6a6   : > { %12230 = vmatpush1.bf16.msra.mxu1 %v15921_v9  ;;  %v15983_v9 = vld [vmem:[%s21641_s7 + $0xcec] ss:$16 sps:$4 sm:$0xff]  }
 0x6a7   : > { %12231 = vmatprep.subr.bf16.mxu1 %v15929_v42  ;;  %v15978_v42 = vld [vmem:[%s21641_s7 + $0xe88] ss:$16 sps:$4 sm:$0xff]  }
 0x6a8   : > { %12279 = vmatpush2.bf16.msra.mxu0 %v15924_v35  ;;  %v15986_v35 = vld [vmem:[%s21641_s7 + $0xe6c] ss:$16 sps:$4 sm:$0xff]  }
 0x6a9   : > { %12280 = vmatprep.subr.bf16.mxu0 %v15932_v6  ;;  %v15981_v6 = vld [vmem:[%s21641_s7 + $0xce8] ss:$16 sps:$4 sm:$0xff]  }
 0x6aa   : > { %12232 = vmatpush1.bf16.msra.mxu1 %v15927_v17  ;;  %v15989_v17 = vld [vmem:[%s21641_s7 + $0xccc] ss:$16 sps:$4 sm:$0xff]  }
 0x6ab   : > { %12233 = vmatprep.subr.bf16.mxu1 %v15935_v15  ;;  %v15984_v15 = vld [vmem:[%s21641_s7 + $0xe68] ss:$16 sps:$4 sm:$0xff]  }
 0x6ac   : > { %12281 = vmatpush2.bf16.msra.mxu0 %v15930_v27 }
 0x6ad   : > { %12282 = vmatprep.subr.bf16.mxu0 %v15938_v12  ;;  %v15992_v12 = vld [vmem:[%s21641_s7 + $0xe4c] ss:$16 sps:$4 sm:$0xff]  }
 0x6ae   : > { %12234 = vmatpush2.bf16.msra.mxu1 %v15933_v59 }
 0x6af   : > { %12235 = vmatprep.subr.bf16.mxu1 %v15941_v2  ;;  %v15987_v2 = vld [vmem:[%s21641_s7 + $0xcc8] ss:$16 sps:$4 sm:$0xff]  }
 0x6b0   : > { %12283 = vmatpush2.bf16.msra.mxu0 %v15936_v46 }
 0x6b1   : > { %12284 = vmatprep.subr.bf16.mxu0 %v15944_v49 }
 0x6b2   : > { %12236 = vmatpush2.bf16.msra.mxu1 %v15939_v23  ;;  %v15990_v23 = vld [vmem:[%s21641_s7 + $0xe48] ss:$16 sps:$4 sm:$0xff]  }
 0x6b3   : > { %12237 = vmatprep.subr.bf16.mxu1 %v15947_v1 }
 0x6b4   : > { %12285 = vmatpush2.bf16.msra.mxu0 %v15942_v43  ;;  %v15993_v43 = vld [vmem:[%s21641_s7 + $0xca8] ss:$16 sps:$4 sm:$0xff]  }
 0x6b5   : > { %12286 = vmatprep.subr.bf16.mxu0 %v15950_v16 }
 0x6b6   : > { %12238 = vmatpush2.bf16.msra.mxu1 %v15945_v25  ;;  %v16001_v25 = vld [vmem:[%s21641_s7 + $0xc8c] ss:$16 sps:$4 sm:$0xff]  }
 0x6b7   : > { %12239 = vmatprep.subr.bf16.mxu1 %v15953_v36  ;;  %v15996_v36 = vld [vmem:[%s21641_s7 + $0xe28] ss:$16 sps:$4 sm:$0xff]  }
 0x6b8   : > { %12287 = vmatpush2.bf16.msra.mxu0 %v15948_v4  ;;  %v16004_v4 = vld [vmem:[%s21641_s7 + $0xe0c] ss:$16 sps:$4 sm:$0xff]  }
 0x6b9   : > { %12288 = vmatprep.subr.bf16.mxu0 %v15956_v53  ;;  %v15999_v53 = vld [vmem:[%s21641_s7 + $0xc88] ss:$16 sps:$4 sm:$0xff]  }
 0x6ba   : > { %12240 = vmatpush2.bf16.msra.mxu1 %v15951_v18  ;;  %v16007_v18 = vld [vmem:[%s21641_s7 + $0xc6c] ss:$16 sps:$4 sm:$0xff]  }
 0x6bb   : > { %12241 = vmatprep.subr.bf16.mxu1 %v15959_v8  ;;  %v16002_v8 = vld [vmem:[%s21641_s7 + $0xe08] ss:$16 sps:$4 sm:$0xff]  }
 0x6bc   : > { %12289 = vmatpush2.bf16.msra.mxu0 %v15954_v28  ;;  %v16010_v28 = vld [vmem:[%s21641_s7 + $0xfec] ss:$16 sps:$4 sm:$0xff]  }
 0x6bd   : > { %v11964_v56 = vpop.f32.mrf.mxu1  ;;  %12340 = vmatprep.subr.bf16.mxu0 %v15962_v38  ;;  %v16005_v38 = vld [vmem:[%s21641_s7 + $0xc68] ss:$16 sps:$4 sm:$0xff]  }
 0x6be   : > { %v11965_v0 = vadd.f32 %v11964_v56, %v20654_v52  ;;  %12242 = vmatpush2.bf16.msra.mxu1 %v15957_v48  ;;  %v15966_v52 = vld [vmem:[%s21641_s7 + $0xec8] ss:$16 sps:$4 sm:$0xff]   ;;  %v16013_v48 = vld [vmem:[%s21641_s7 + $0xc4c] ss:$16 sps:$4 sm:$0xff]  }
 0x6bf   : > { %v11966_v60 = vpop.f32.mrf.mxu1  ;;  %v12005_v26 = vpop.f32.mrf.mxu0  ;;  %12291 = vmatmul.mubr.bf16.vlgmr.msra.gmra.mxu0 %v19571_v55  ;;  %12243 = vmatprep.subr.bf16.mxu1 %v15965_v5  ;;  %v15974_v55 = vld [vmem:[%s21641_s7 + $0xeac] ss:$16 sps:$4 sm:$0xff]   ;;  %v16008_v5 = vld [vmem:[%s21641_s7 + $0xfe8] ss:$16 sps:$4 sm:$0xff]  }
 0x6c0   : > { %v11967_v41 = vadd.f32 %v11966_v60, %v20663_v40  ;;  %v12006_v32 = vadd.f32 %v12005_v26, %v11965_v0  ;;  %12341 = vmatpush1.bf16.msra.mxu0 %v15960_v21  ;;  %12372 = vmatprep.mubr.bf16.mxu0 %v19579_v3  ;;  %v15969_v40 = vld [vmem:[%s21641_s7 + $0x928] ss:$16 sps:$4 sm:$0xff]   ;;  %v15977_v3 = vld [vmem:[%s21641_s7 + $0x90c] ss:$16 sps:$4 sm:$0xff]  }
 0x6c1   : > { %v11968_v7 = vpop.f32.mrf.mxu1  ;;  %v12007_v58 = vpop.f32.mrf.mxu0  ;;  %12342 = vmatprep.subr.bf16.mxu0 %v15968_v14  ;;  %v16016_v21 = vld [vmem:[%s21641_s7 + $0xfcc] ss:$16 sps:$4 sm:$0xff]   ;;  %v16011_v56 = vld [vmem:[%s21641_s7 + $0xc48] ss:$16 sps:$4 sm:$0xff]  }
 0x6c2   : > { %v12008_v33 = vadd.f32 %v12007_v58, %v11967_v41  ;;  %12244 = vmatpush2.bf16.msra.mxu1 %v15963_v29  ;;  %v16019_v14 = vld [vmem:[%s21641_s7 + $0xc2c] ss:$16 sps:$4 sm:$0xff]   ;;  %v16014_v0 = vld [vmem:[%s21641_s7 + $0xfc8] ss:$16 sps:$4 sm:$0xff]  }
 0x6c3   : > { %v11969_v10 = vpop.f32.mrf.mxu1  ;;  %v12009_v54 = vpop.f32.mrf.mxu0  ;;  %12245 = vmatprep.subr.bf16.mxu1 %v15971_v50  ;;  %v16022_v29 = vld [vmem:[%s21641_s7 + $0xfac] ss:$16 sps:$4 sm:$0xff]   ;;  %v16017_v60 = vld [vmem:[%s21641_s7 + $0xc28] ss:$16 sps:$4 sm:$0xff]  }
 0x6c4   : > { %12343 = vmatpush1.bf16.msra.mxu0 %v15966_v52  ;;  %v16025_v26 = vld [vmem:[%s21641_s7 + $0xc0c] ss:$16 sps:$4 sm:$0xff]   ;;  %v16020_v50 = vld [vmem:[%s21641_s7 + $0xfa8] ss:$16 sps:$4 sm:$0xff]  }
 0x6c5   : > { %v12010_v37 = vpop.f32.mrf.mxu0  ;;  %12344 = vmatprep.subr.bf16.mxu0 %v15974_v55  ;;  %v16028_v41 = vld [vmem:[%s21641_s7 + $0xf8c] ss:$16 sps:$4 sm:$0xff]   ;;  %v16026_v7 = vld [vmem:[%s21641_s7 + $0xf88] ss:$16 sps:$4 sm:$0xff]  }
 0x6c6   : > { %12246 = vmatpush2.bf16.msra.mxu1 %v15969_v40  ;;  %v16031_v52 = vld [vmem:[%s21641_s7 + $0xdec] ss:$16 sps:$4 sm:$0xff]   ;;  %v16029_v55 = vld [vmem:[%s21641_s7 + $0xde8] ss:$16 sps:$4 sm:$0xff]  }
 0x6c7   : > { %12247 = vmatprep.subr.bf16.mxu1 %v15977_v3  ;;  %v16034_v58 = vld [vmem:[%s21641_s7 + $0xf6c] ss:$16 sps:$4 sm:$0xff]   ;;  %v16032_v40 = vld [vmem:[%s21641_s7 + $0xf68] ss:$16 sps:$4 sm:$0xff]  }
 0x6c8   : > { %12345 = vmatpush1.bf16.msra.mxu0 %v15972_v19  ;;  %v16040_v10 = vld [vmem:[%s21641_s7 + $0xf4c] ss:$16 sps:$4 sm:$0xff]   ;;  %v16035_v54 = vld [vmem:[%s21641_s7 + $0xdc8] ss:$16 sps:$4 sm:$0xff]  }
 0x6c9   : > { %12346 = vmatprep.subr.bf16.mxu0 %v15980_v47  ;;  %v16043_v3 = vld [vmem:[%s21641_s7 + $0xdac] ss:$16 sps:$4 sm:$0xff]   ;;  %v16038_v19 = vld [vmem:[%s21641_s7 + $0xf48] ss:$16 sps:$4 sm:$0xff]  }
 0x6ca   : > { %12248 = vmatpush2.bf16.msra.mxu1 %v15975_v61  ;;  %v16046_v37 = vld [vmem:[%s21641_s7 + $0xf2c] ss:$16 sps:$4 sm:$0xff]   ;;  %v16041_v47 = vld [vmem:[%s21641_s7 + $0xda8] ss:$16 sps:$4 sm:$0xff]  }
 0x6cb   : > { %12299 = vmatprep.subr.bf16.mxu1 %v15983_v9  ;;  %v16049_v61 = vld [vmem:[%s21641_s7 + $0xd8c] ss:$16 sps:$4 sm:$0xff]   ;;  %v16044_v9 = vld [vmem:[%s21641_s7 + $0xf28] ss:$16 sps:$4 sm:$0xff]  }
 0x6cc   : > { %12347 = vmatpush1.bf16.msra.mxu0 %v15978_v42  ;;  %v16052_v42 = vld [vmem:[%s21641_s7 + $0xf0c] ss:$16 sps:$4 sm:$0xff]  }
 0x6cd   : > { %v12046_v27 = vpop.f32.mrf.mxu1  ;;  %12250 = vmatmul.mubr.bf16.vlgmr.msra.gmra.mxu1 %v19551_v51  ;;  %12348 = vmatprep.subr.bf16.mxu0 %v15986_v35  ;;  %v15995_v51 = vld [vmem:[%s21641_s7 + $0xcac] ss:$16 sps:$4 sm:$0xff]   ;;  %v16047_v35 = vld [vmem:[%s21641_s7 + $0xd88] ss:$16 sps:$4 sm:$0xff]  }
 0x6ce   : > { %v20900_v59 = vadd.f32 %v12046_v27, %v12006_v32  ;;  %12300 = vmatpush1.bf16.msra.mxu1 %v15981_v6  ;;  %12331 = vmatprep.mubr.bf16.mxu1 %v19560_v44  ;;  %v15998_v44 = vld [vmem:[%s21641_s7 + $0xe2c] ss:$16 sps:$4 sm:$0xff]   ;;  %v16023_v32 = vld [vmem:[%s21641_s7 + $0xc08] ss:$16 sps:$4 sm:$0xff]  }
 0x6cf   : > { %v12048_v46 = vpop.f32.mrf.mxu1  ;;  %12301 = vmatprep.subr.bf16.mxu1 %v15989_v17  ;;  %v16055_v6 = vld [vmem:[%s21641_s7 + $0xd6c] ss:$16 sps:$4 sm:$0xff]   ;;  %v16050_v17 = vld [vmem:[%s21641_s7 + $0xf08] ss:$16 sps:$4 sm:$0xff]  }
 0x6d0   : > { %v20909_v49 = vadd.f32 %v12048_v46, %v12008_v33  ;;  %12349 = vmatpush1.bf16.msra.mxu0 %v15984_v15  ;;  %v16037_v33 = vld [vmem:[%s21641_s7 + $0xdcc] ss:$16 sps:$4 sm:$0xff]   ;;  %v16053_v27 = vld [vmem:[%s21641_s7 + $0xd68] ss:$16 sps:$4 sm:$0xff]  }
 0x6d1   : > { %v12050_v1 = vpop.f32.mrf.mxu1  ;;  %12350 = vmatprep.subr.bf16.mxu0 %v15992_v12  ;;  %v16058_v15 = vld [vmem:[%s21641_s7 + $0x12ec] ss:$16 sps:$4 sm:$0xff]  }
 0x6d2   : > { %12302 = vmatpush1.bf16.msra.mxu1 %v15987_v2  ;;  %v16061_v12 = vld [vmem:[%s21641_s7 + $0xd4c] ss:$16 sps:$4 sm:$0xff]   ;;  %v16056_v2 = vld [vmem:[%s21641_s7 + $0x12e8] ss:$16 sps:$4 sm:$0xff]  }
 0x6d3   : > { %v12051_v16 = vpop.f32.mrf.mxu1  ;;  %12303 = vmatprep.subr.bf16.mxu1 %v15995_v51  ;;  %v16064_v46 = vld [vmem:[%s21641_s7 + $0x12cc] ss:$16 sps:$4 sm:$0xff]   ;;  %v16059_v51 = vld [vmem:[%s21641_s7 + $0xd48] ss:$16 sps:$4 sm:$0xff]  }
 0x6d4   : > { %12351 = vmatpush1.bf16.msra.mxu0 %v15990_v23  ;;  %v16067_v1 = vld [vmem:[%s21641_s7 + $0xd2c] ss:$16 sps:$4 sm:$0xff]  }
 0x6d5   : > { %12352 = vmatprep.subr.bf16.mxu0 %v15998_v44  ;;  %v16062_v44 = vld [vmem:[%s21641_s7 + $0x12c8] ss:$16 sps:$4 sm:$0xff]   ;;  %v16070_v16 = vld [vmem:[%s21641_s7 + $0x12ac] ss:$16 sps:$4 sm:$0xff]  }
 0x6d6   : > { %12304 = vmatpush1.bf16.msra.mxu1 %v15993_v43 }
 0x6d7   : > { %12305 = vmatprep.subr.bf16.mxu1 %v16001_v25 }
 0x6d8   : > { %12353 = vmatpush1.bf16.msra.mxu0 %v15996_v36  ;;  %v16068_v36 = vld [vmem:[%s21641_s7 + $0x12a8] ss:$16 sps:$4 sm:$0xff]  }
 0x6d9   : > { %12354 = vmatprep.subr.bf16.mxu0 %v16004_v4 }
 0x6da   : > { %12306 = vmatpush1.bf16.msra.mxu1 %v15999_v53  ;;  %v16076_v53 = vld [vmem:[%s21641_s7 + $0x128c] ss:$16 sps:$4 sm:$0xff]  }
 0x6db   : > { %12307 = vmatprep.subr.bf16.mxu1 %v16007_v18  ;;  %v16071_v18 = vld [vmem:[%s21641_s7 + $0xd08] ss:$16 sps:$4 sm:$0xff]  }
 0x6dc   : > { %12355 = vmatpush1.bf16.msra.mxu0 %v16002_v8  ;;  %v11507_v8 = vsub.s32 2, %v18832_v31 }
 0x6dd   : > { %12356 = vmatprep.subr.bf16.mxu0 %v16010_v28  ;;  %v16079_v28 = vld [vmem:[%s21641_s7 + $0x10ec] ss:$16 sps:$4 sm:$0xff]  }
 0x6de   : > { %12308 = vmatpush1.bf16.msra.mxu1 %v16005_v38  ;;  %v16074_v38 = vld [vmem:[%s21641_s7 + $0x1288] ss:$16 sps:$4 sm:$0xff]  }
 0x6df   : > { %12309 = vmatprep.subr.bf16.mxu1 %v16013_v48  ;;  %v11511_v48 = vsub.s32 3, %v18832_v31  ;;  %v16085_v31 = vld [vmem:[%s21641_s7 + $0x10cc] ss:$16 sps:$4 sm:$0xff]  }
 0x6e0   : > { %12357 = vmatpush2.bf16.msra.mxu0 %v16008_v5  ;;  %v16082_v5 = vld [vmem:[%s21641_s7 + $0x126c] ss:$16 sps:$4 sm:$0xff]  }
 0x6e1   : > { %12358 = vmatprep.subr.bf16.mxu0 %v16016_v21  ;;  %v16302_v21 = vld [vmem:[%s21642_s8] sm:$0xf] }
 0x6e2   : > { %12310 = vmatpush1.bf16.msra.mxu1 %v16011_v56  ;;  %v11508_v56 = vrot.slane %v16302_v21, %v11507_v8  ;;  %v16134_v8 = vld [vmem:[%s21641_s7 + $0x1348] ss:$16 sps:$4 sm:$0xff]  }
 0x6e3   : > { %12311 = vmatprep.subr.bf16.mxu1 %v16019_v14  ;;  %v16077_v14 = vld [vmem:[%s21641_s7 + $0x10e8] ss:$16 sps:$4 sm:$0xff]  }
 0x6e4   : > { %12359 = vmatpush2.bf16.msra.mxu0 %v16014_v0  ;;  %v11512_v0 = vrot.slane %v16302_v21, %v11511_v48  ;;  %v16145_v48 = vld [vmem:[%s21641_s7 + $0x118c] ss:$16 sps:$4 sm:$0xff]  }
 0x6e5   : > { %12360 = vmatprep.subr.bf16.mxu0 %v16022_v29  ;;  %v16080_v29 = vld [vmem:[%s21641_s7 + $0x1268] ss:$16 sps:$4 sm:$0xff]   ;;  %v16148_v21 = vld [vmem:[%s21641_s7 + $0x130c] ss:$16 sps:$4 sm:$0xff]  }
 0x6e6   : > { %12312 = vmatpush1.bf16.msra.mxu1 %v16017_v60 }
 0x6e7   : > { %12313 = vmatprep.subr.bf16.mxu1 %v16025_v26  ;;  %v16088_v26 = vld [vmem:[%s21641_s7 + $0x124c] ss:$16 sps:$4 sm:$0xff]  }
 0x6e8   : > { %12361 = vmatpush2.bf16.msra.mxu0 %v16020_v50 }
 0x6e9   : > { %12362 = vmatprep.subr.bf16.mxu0 %v16028_v41  ;;  %v16083_v41 = vld [vmem:[%s21641_s7 + $0x10c8] ss:$16 sps:$4 sm:$0xff]  }
 0x6ea   : > { %12314 = vmatpush1.bf16.msra.mxu1 %v16023_v32 }
 0x6eb   : > { %12315 = vmatprep.subr.bf16.mxu1 %v16031_v52  ;;  %v16091_v52 = vld [vmem:[%s21641_s7 + $0x10ac] ss:$16 sps:$4 sm:$0xff]  }
 0x6ec   : > { %12363 = vmatpush2.bf16.msra.mxu0 %v16026_v7  ;;  %v16086_v7 = vld [vmem:[%s21641_s7 + $0x1248] ss:$16 sps:$4 sm:$0xff]  }
 0x6ed   : > { %12364 = vmatprep.subr.bf16.mxu0 %v16034_v58 }
 0x6ee   : > { %12316 = vmatpush2.bf16.msra.mxu1 %v16029_v55 }
 0x6ef   : > { %12317 = vmatprep.subr.bf16.mxu1 %v16037_v33  ;;  %v16089_v33 = vld [vmem:[%s21641_s7 + $0x10a8] ss:$16 sps:$4 sm:$0xff]  }
 0x6f0   : > { %12365 = vmatpush2.bf16.msra.mxu0 %v16032_v40 }
 0x6f1   : > { %12366 = vmatprep.subr.bf16.mxu0 %v16040_v10 }
 0x6f2   : > { %12318 = vmatpush2.bf16.msra.mxu1 %v16035_v54  ;;  %v16097_v54 = vld [vmem:[%s21641_s7 + $0x108c] ss:$16 sps:$4 sm:$0xff]  }
 0x6f3   : > { %12319 = vmatprep.subr.bf16.mxu1 %v16043_v3  ;;  %v16092_v3 = vld [vmem:[%s21641_s7 + $0x1228] ss:$16 sps:$4 sm:$0xff]  }
 0x6f4   : > { %12367 = vmatpush2.bf16.msra.mxu0 %v16038_v19  ;;  %v16100_v19 = vld [vmem:[%s21641_s7 + $0x120c] ss:$16 sps:$4 sm:$0xff]  }
 0x6f5   : > { %12368 = vmatprep.subr.bf16.mxu0 %v16046_v37  ;;  %v16095_v37 = vld [vmem:[%s21641_s7 + $0x1088] ss:$16 sps:$4 sm:$0xff]  }
 0x6f6   : > { %12320 = vmatpush2.bf16.msra.mxu1 %v16041_v47  ;;  %v16103_v47 = vld [vmem:[%s21641_s7 + $0x106c] ss:$16 sps:$4 sm:$0xff]  }
 0x6f7   : > { %12321 = vmatprep.subr.bf16.mxu1 %v16049_v61  ;;  %v16098_v61 = vld [vmem:[%s21641_s7 + $0x1208] ss:$16 sps:$4 sm:$0xff]  }
 0x6f8   : > { %12369 = vmatpush2.bf16.msra.mxu0 %v16044_v9  ;;  %v16106_v9 = vld [vmem:[%s21641_s7 + $0x13ec] ss:$16 sps:$4 sm:$0xff]  }
 0x6f9   : > { %12370 = vmatprep.subr.bf16.mxu0 %v16052_v42  ;;  %v16101_v42 = vld [vmem:[%s21641_s7 + $0x1068] ss:$16 sps:$4 sm:$0xff]  }
 0x6fa   : > { %12322 = vmatpush2.bf16.msra.mxu1 %v16047_v35  ;;  %v16109_v35 = vld [vmem:[%s21641_s7 + $0x104c] ss:$16 sps:$4 sm:$0xff]  }
 0x6fb   : > { %12323 = vmatprep.subr.bf16.mxu1 %v16055_v6  ;;  %v16104_v6 = vld [vmem:[%s21641_s7 + $0x13e8] ss:$16 sps:$4 sm:$0xff]  }
 0x6fc   : > { %12371 = vmatpush2.bf16.msra.mxu0 %v16050_v17  ;;  %v16112_v17 = vld [vmem:[%s21641_s7 + $0x13cc] ss:$16 sps:$4 sm:$0xff]  }
 0x6fd   : > { %12422 = vmatprep.subr.bf16.mxu0 %v16058_v15  ;;  %v16107_v15 = vld [vmem:[%s21641_s7 + $0x1048] ss:$16 sps:$4 sm:$0xff]  }
 0x6fe   : > { %12324 = vmatpush2.bf16.msra.mxu1 %v16053_v27  ;;  %v16115_v27 = vld [vmem:[%s21641_s7 + $0x102c] ss:$16 sps:$4 sm:$0xff]  }
 0x6ff   : > { %v12128_v23 = vpop.f32.mrf.mxu0  ;;  %12373 = vmatmul.mubr.bf16.vlgmr.msra.gmra.mxu0 %v19795_v20  ;;  %12325 = vmatprep.subr.bf16.mxu1 %v16061_v12  ;;  %v16065_v20 = vld [vmem:[%s21641_s7 + $0xd28] ss:$16 sps:$4 sm:$0xff]  }
 0x700   : > { %12423 = vmatpush1.bf16.msra.mxu0 %v16056_v2  ;;  %12454 = vmatprep.mubr.bf16.mxu0 %v19803_v13  ;;  %v16073_v13 = vld [vmem:[%s21641_s7 + $0xd0c] ss:$16 sps:$4 sm:$0xff]   ;;  %v16110_v12 = vld [vmem:[%s21641_s7 + $0x13c8] ss:$16 sps:$4 sm:$0xff]  }
 0x701   : > { %v12130_v43 = vpop.f32.mrf.mxu0  ;;  %12424 = vmatprep.subr.bf16.mxu0 %v16064_v46  ;;  %v16118_v2 = vld [vmem:[%s21641_s7 + $0x13ac] ss:$16 sps:$4 sm:$0xff]   ;;  %v16113_v46 = vld [vmem:[%s21641_s7 + $0x1028] ss:$16 sps:$4 sm:$0xff]  }
 0x702   : > { %12326 = vmatpush2.bf16.msra.mxu1 %v16059_v51  ;;  %v16121_v51 = vld [vmem:[%s21641_s7 + $0x100c] ss:$16 sps:$4 sm:$0xff]  }
 0x703   : > { %v12132_v25 = vpop.f32.mrf.mxu0  ;;  %12327 = vmatprep.subr.bf16.mxu1 %v16067_v1  ;;  %v16124_v1 = vld [vmem:[%s21641_s7 + $0x138c] ss:$16 sps:$4 sm:$0xff]  }
 0x704   : > { %12425 = vmatpush1.bf16.msra.mxu0 %v16062_v44  ;;  %v16119_v44 = vld [vmem:[%s21641_s7 + $0x1008] ss:$16 sps:$4 sm:$0xff]  }
 0x705   : > { %v12133_v4 = vpop.f32.mrf.mxu0  ;;  %12426 = vmatprep.subr.bf16.mxu0 %v16070_v16  ;;  %v16122_v16 = vld [vmem:[%s21641_s7 + $0x1388] ss:$16 sps:$4 sm:$0xff]  }
 0x706   : > { %12328 = vmatpush2.bf16.msra.mxu1 %v16065_v20  ;;  %v16130_v20 = vld [vmem:[%s21641_s7 + $0x136c] ss:$16 sps:$4 sm:$0xff]   ;;  %v16125_v25 = vld [vmem:[%s21641_s7 + $0x11e8] ss:$16 sps:$4 sm:$0xff]  }
 0x707   : > { %12329 = vmatprep.subr.bf16.mxu1 %v16073_v13  ;;  %v16133_v13 = vld [vmem:[%s21641_s7 + $0x11cc] ss:$16 sps:$4 sm:$0xff]  }
 0x708   : > { %12427 = vmatpush1.bf16.msra.mxu0 %v16068_v36  ;;  %v16128_v36 = vld [vmem:[%s21641_s7 + $0x1368] ss:$16 sps:$4 sm:$0xff]   ;;  %v16136_v4 = vld [vmem:[%s21641_s7 + $0x134c] ss:$16 sps:$4 sm:$0xff]  }
 0x709   : > { %12428 = vmatprep.subr.bf16.mxu0 %v16076_v53  ;;  %v16131_v53 = vld [vmem:[%s21641_s7 + $0x11c8] ss:$16 sps:$4 sm:$0xff]  }
 0x70a   : > { %12330 = vmatpush2.bf16.msra.mxu1 %v16071_v18  ;;  %v16139_v18 = vld [vmem:[%s21641_s7 + $0x11ac] ss:$16 sps:$4 sm:$0xff]  }
 0x70b   : > { %12381 = vmatprep.subr.bf16.mxu1 %v16079_v28  ;;  %v16142_v28 = vld [vmem:[%s21641_s7 + $0x132c] ss:$16 sps:$4 sm:$0xff]  }
 0x70c   : > { %12429 = vmatpush1.bf16.msra.mxu0 %v16074_v38  ;;  %v16137_v38 = vld [vmem:[%s21641_s7 + $0x11a8] ss:$16 sps:$4 sm:$0xff]  }
 0x70d   : > { %v12087_v60 = vpop.f32.mrf.mxu1  ;;  %12332 = vmatmul.mubr.bf16.vlgmr.msra.gmra.mxu1 %v19775_v34  ;;  %12430 = vmatprep.subr.bf16.mxu0 %v16082_v5  ;;  %v16140_v5 = vld [vmem:[%s21641_s7 + $0x1328] ss:$16 sps:$4 sm:$0xff]  }
 0x70e   : > { %v12088_v50 = vadd.f32 %v12087_v60, %v11508_v56  ;;  %12382 = vmatpush1.bf16.msra.mxu1 %v16077_v14  ;;  %12413 = vmatprep.mubr.bf16.mxu1 %v19784_v57  ;;  %v16094_v57 = vld [vmem:[%s21641_s7 + $0x122c] ss:$16 sps:$4 sm:$0xff]   ;;  %v16143_v56 = vld [vmem:[%s21641_s7 + $0x1188] ss:$16 sps:$4 sm:$0xff]  }
 0x70f   : > { %v12089_v32 = vpop.f32.mrf.mxu1  ;;  %12383 = vmatprep.subr.bf16.mxu1 %v16085_v31  ;;  %v16151_v14 = vld [vmem:[%s21641_s7 + $0x116c] ss:$16 sps:$4 sm:$0xff]   ;;  %v16146_v31 = vld [vmem:[%s21641_s7 + $0x1308] ss:$16 sps:$4 sm:$0xff]  }
 0x710   : > { %v12090_v34 = vadd.f32 %v12089_v32, %v11512_v0  ;;  %12431 = vmatpush1.bf16.msra.mxu0 %v16080_v29  ;;  %v21115_v58 = vadd.f32 %v12128_v23, %v12088_v50  ;;  %v16116_v23 = vld [vmem:[%s21641_s7 + $0x13a8] ss:$16 sps:$4 sm:$0xff]   ;;  %v16154_v0 = vld [vmem:[%s21641_s7 + $0x16ec] ss:$16 sps:$4 sm:$0xff]  }
 0x711   : > { %v12091_v55 = vpop.f32.mrf.mxu1  ;;  %12432 = vmatprep.subr.bf16.mxu0 %v16088_v26  ;;  %v16149_v29 = vld [vmem:[%s21641_s7 + $0x1168] ss:$16 sps:$4 sm:$0xff]   ;;  %v16157_v60 = vld [vmem:[%s21641_s7 + $0x114c] ss:$16 sps:$4 sm:$0xff]  }
 0x712   : > { %12384 = vmatpush1.bf16.msra.mxu1 %v16083_v41  ;;  %v21123_v40 = vadd.f32 %v12130_v43, %v12090_v34  ;;  %v16127_v43 = vld [vmem:[%s21641_s7 + $0x11ec] ss:$16 sps:$4 sm:$0xff]   ;;  %v16152_v26 = vld [vmem:[%s21641_s7 + $0x16e8] ss:$16 sps:$4 sm:$0xff]  }
 0x713   : > { %v12092_v10 = vpop.f32.mrf.mxu1  ;;  %12385 = vmatprep.subr.bf16.mxu1 %v16091_v52  ;;  %v16160_v50 = vld [vmem:[%s21641_s7 + $0x16cc] ss:$16 sps:$4 sm:$0xff]   ;;  %v16155_v41 = vld [vmem:[%s21641_s7 + $0x1148] ss:$16 sps:$4 sm:$0xff]  }
 0x714   : > { %12433 = vmatpush1.bf16.msra.mxu0 %v16086_v7  ;;  %v16163_v52 = vld [vmem:[%s21641_s7 + $0x112c] ss:$16 sps:$4 sm:$0xff]   ;;  %v16158_v34 = vld [vmem:[%s21641_s7 + $0x16c8] ss:$16 sps:$4 sm:$0xff]  }
 0x715   : > { %12434 = vmatprep.subr.bf16.mxu0 %v16094_v57  ;;  %v16166_v55 = vld [vmem:[%s21641_s7 + $0x16ac] ss:$16 sps:$4 sm:$0xff]  }
 0x716   : > { %12386 = vmatpush1.bf16.msra.mxu1 %v16089_v33  ;;  %v16164_v33 = vld [vmem:[%s21641_s7 + $0x16a8] ss:$16 sps:$4 sm:$0xff]  }
 0x717   : > { %12387 = vmatprep.subr.bf16.mxu1 %v16097_v54  ;;  %v16172_v54 = vld [vmem:[%s21641_s7 + $0x168c] ss:$16 sps:$4 sm:$0xff]  }
 0x718   : > { %12435 = vmatpush1.bf16.msra.mxu0 %v16092_v3  ;;  %v16167_v3 = vld [vmem:[%s21641_s7 + $0x1108] ss:$16 sps:$4 sm:$0xff]  }
 0x719   : > { %12436 = vmatprep.subr.bf16.mxu0 %v16100_v19  ;;  %v16175_v19 = vld [vmem:[%s21641_s7 + $0x14ec] ss:$16 sps:$4 sm:$0xff]  }
 0x71a   : > { %12388 = vmatpush1.bf16.msra.mxu1 %v16095_v37  ;;  %v16170_v37 = vld [vmem:[%s21641_s7 + $0x1688] ss:$16 sps:$4 sm:$0xff]  }
 0x71b   : > { %12389 = vmatprep.subr.bf16.mxu1 %v16103_v47  ;;  %v16178_v47 = vld [vmem:[%s21641_s7 + $0x166c] ss:$16 sps:$4 sm:$0xff]  }
 0x71c   : > { %12437 = vmatpush1.bf16.msra.mxu0 %v16098_v61  ;;  %v16173_v61 = vld [vmem:[%s21641_s7 + $0x14e8] ss:$16 sps:$4 sm:$0xff]  }
 0x71d   : > { %12438 = vmatprep.subr.bf16.mxu0 %v16106_v9  ;;  %v16181_v9 = vld [vmem:[%s21641_s7 + $0x14cc] ss:$16 sps:$4 sm:$0xff]  }
 0x71e   : > { %12390 = vmatpush1.bf16.msra.mxu1 %v16101_v42  ;;  %v16176_v42 = vld [vmem:[%s21641_s7 + $0x1668] ss:$16 sps:$4 sm:$0xff]  }
 0x71f   : > { %12391 = vmatprep.subr.bf16.mxu1 %v16109_v35 }
 0x720   : > { %12439 = vmatpush2.bf16.msra.mxu0 %v16104_v6  ;;  %v16184_v6 = vld [vmem:[%s21641_s7 + $0x164c] ss:$16 sps:$4 sm:$0xff]  }
 0x721   : > { %12440 = vmatprep.subr.bf16.mxu0 %v16112_v17 }
 0x722   : > { %12392 = vmatpush1.bf16.msra.mxu1 %v16107_v15  ;;  %v16179_v15 = vld [vmem:[%s21641_s7 + $0x14c8] ss:$16 sps:$4 sm:$0xff]  }
 0x723   : > { %12393 = vmatprep.subr.bf16.mxu1 %v16115_v27 }
 0x724   : > { %12441 = vmatpush2.bf16.msra.mxu0 %v16110_v12 }
 0x725   : > { %12442 = vmatprep.subr.bf16.mxu0 %v16118_v2 }
 0x726   : > { %12394 = vmatpush1.bf16.msra.mxu1 %v16113_v46  ;;  %v16190_v46 = vld [vmem:[%s21641_s7 + $0x162c] ss:$16 sps:$4 sm:$0xff]  }
 0x727   : > { %12395 = vmatprep.subr.bf16.mxu1 %v16121_v51  ;;  %v16185_v51 = vld [vmem:[%s21641_s7 + $0x14a8] ss:$16 sps:$4 sm:$0xff]  }
 0x728   : > { %12443 = vmatpush2.bf16.msra.mxu0 %v16116_v23 }
 0x729   : > { %12444 = vmatprep.subr.bf16.mxu0 %v16124_v1  ;;  %v16193_v1 = vld [vmem:[%s21641_s7 + $0x148c] ss:$16 sps:$4 sm:$0xff]  }
 0x72a   : > { %12396 = vmatpush1.bf16.msra.mxu1 %v16119_v44  ;;  %v16188_v44 = vld [vmem:[%s21641_s7 + $0x1628] ss:$16 sps:$4 sm:$0xff]  }
 0x72b   : > { %12397 = vmatprep.subr.bf16.mxu1 %v16127_v43  ;;  %v16196_v43 = vld [vmem:[%s21641_s7 + $0x160c] ss:$16 sps:$4 sm:$0xff]  }
 0x72c   : > { %12445 = vmatpush2.bf16.msra.mxu0 %v16122_v16  ;;  %v16191_v16 = vld [vmem:[%s21641_s7 + $0x1488] ss:$16 sps:$4 sm:$0xff]  }
 0x72d   : > { %12446 = vmatprep.subr.bf16.mxu0 %v16130_v20  ;;  %v16199_v20 = vld [vmem:[%s21641_s7 + $0x146c] ss:$16 sps:$4 sm:$0xff]  }
 0x72e   : > { %12398 = vmatpush2.bf16.msra.mxu1 %v16125_v25  ;;  %v16194_v25 = vld [vmem:[%s21641_s7 + $0x1608] ss:$16 sps:$4 sm:$0xff]  }
 0x72f   : > { %12399 = vmatprep.subr.bf16.mxu1 %v16133_v13  ;;  %v16202_v13 = vld [vmem:[%s21641_s7 + $0x17ec] ss:$16 sps:$4 sm:$0xff]  }
 0x730   : > { %12447 = vmatpush2.bf16.msra.mxu0 %v16128_v36  ;;  %v16197_v36 = vld [vmem:[%s21641_s7 + $0x1468] ss:$16 sps:$4 sm:$0xff]  }
 0x731   : > { %12448 = vmatprep.subr.bf16.mxu0 %v16136_v4  ;;  %v16205_v4 = vld [vmem:[%s21641_s7 + $0x144c] ss:$16 sps:$4 sm:$0xff]  }
 0x732   : > { %12400 = vmatpush2.bf16.msra.mxu1 %v16131_v53  ;;  %v16200_v53 = vld [vmem:[%s21641_s7 + $0x17e8] ss:$16 sps:$4 sm:$0xff]  }
 0x733   : > { %12401 = vmatprep.subr.bf16.mxu1 %v16139_v18  ;;  %v16208_v18 = vld [vmem:[%s21641_s7 + $0x17cc] ss:$16 sps:$4 sm:$0xff]  }
 0x734   : > { %12449 = vmatpush2.bf16.msra.mxu0 %v16134_v8  ;;  %v16203_v8 = vld [vmem:[%s21641_s7 + $0x1448] ss:$16 sps:$4 sm:$0xff]  }
 0x735   : > { %12450 = vmatprep.subr.bf16.mxu0 %v16142_v28  ;;  %v16211_v28 = vld [vmem:[%s21641_s7 + $0x142c] ss:$16 sps:$4 sm:$0xff]  }
 0x736   : > { %12402 = vmatpush2.bf16.msra.mxu1 %v16137_v38  ;;  %v16206_v38 = vld [vmem:[%s21641_s7 + $0x17c8] ss:$16 sps:$4 sm:$0xff]  }
 0x737   : > { %12403 = vmatprep.subr.bf16.mxu1 %v16145_v48  ;;  %v16214_v48 = vld [vmem:[%s21641_s7 + $0x17ac] ss:$16 sps:$4 sm:$0xff]  }
 0x738   : > { %12451 = vmatpush2.bf16.msra.mxu0 %v16140_v5  ;;  %v16209_v5 = vld [vmem:[%s21641_s7 + $0x1428] ss:$16 sps:$4 sm:$0xff]  }
 0x739   : > { %12452 = vmatprep.subr.bf16.mxu0 %v16148_v21  ;;  %v16217_v21 = vld [vmem:[%s21641_s7 + $0x140c] ss:$16 sps:$4 sm:$0xff]  }
 0x73a   : > { %12404 = vmatpush2.bf16.msra.mxu1 %v16143_v56  ;;  %v16212_v56 = vld [vmem:[%s21641_s7 + $0x17a8] ss:$16 sps:$4 sm:$0xff]  }
 0x73b   : > { %12405 = vmatprep.subr.bf16.mxu1 %v16151_v14  ;;  %v16220_v14 = vld [vmem:[%s21641_s7 + $0x178c] ss:$16 sps:$4 sm:$0xff]  }
 0x73c   : > { %12453 = vmatpush2.bf16.msra.mxu0 %v16146_v31  ;;  %v16215_v31 = vld [vmem:[%s21641_s7 + $0x1408] ss:$16 sps:$4 sm:$0xff]  }
 0x73d   : > { %12504 = vmatprep.subr.bf16.mxu0 %v16154_v0  ;;  %v16223_v0 = vld [vmem:[%s21641_s7 + $0x15ec] ss:$16 sps:$4 sm:$0xff]  }
 0x73e   : > { %12406 = vmatpush2.bf16.msra.mxu1 %v16149_v29  ;;  %v16218_v29 = vld [vmem:[%s21641_s7 + $0x1788] ss:$16 sps:$4 sm:$0xff]  }
 0x73f   : > { %v12210_v32 = vpop.f32.mrf.mxu0  ;;  %12455 = vmatmul.mubr.bf16.vlgmr.msra.gmra.mxu0 %v20017_v62  ;;  %12407 = vmatprep.subr.bf16.mxu1 %v16157_v60  ;;  %v16161_v62 = vld [vmem:[%s21641_s7 + $0x1128] ss:$16 sps:$4 sm:$0xff]   ;;  %v16226_v60 = vld [vmem:[%s21641_s7 + $0x176c] ss:$16 sps:$4 sm:$0xff]  }
 0x740   : > { %12505 = vmatpush1.bf16.msra.mxu0 %v16152_v26  ;;  %12536 = vmatprep.mubr.bf16.mxu0 %v20026_v22  ;;  %v16169_v22 = vld [vmem:[%s21641_s7 + $0x110c] ss:$16 sps:$4 sm:$0xff]   ;;  %v16221_v26 = vld [vmem:[%s21641_s7 + $0x15e8] ss:$16 sps:$4 sm:$0xff]  }
 0x741   : > { %v12212_v7 = vpop.f32.mrf.mxu0  ;;  %12506 = vmatprep.subr.bf16.mxu0 %v16160_v50  ;;  %v16229_v50 = vld [vmem:[%s21641_s7 + $0x15cc] ss:$16 sps:$4 sm:$0xff]  }
 0x742   : > { %12408 = vmatpush2.bf16.msra.mxu1 %v16155_v41  ;;  %v16224_v41 = vld [vmem:[%s21641_s7 + $0x1768] ss:$16 sps:$4 sm:$0xff]  }
 0x743   : > { %v12214_v57 = vpop.f32.mrf.mxu0  ;;  %12409 = vmatprep.subr.bf16.mxu1 %v16163_v52  ;;  %v16227_v52 = vld [vmem:[%s21641_s7 + $0x15c8] ss:$16 sps:$4 sm:$0xff]  }
 0x744   : > { %12507 = vmatpush1.bf16.msra.mxu0 %v16158_v34  ;;  %v16235_v34 = vld [vmem:[%s21641_s7 + $0x15ac] ss:$16 sps:$4 sm:$0xff]  }
 0x745   : > { %v12215_v10 = vpop.f32.mrf.mxu0  ;;  %12508 = vmatprep.subr.bf16.mxu0 %v16166_v55  ;;  %v16238_v55 = vld [vmem:[%s21641_s7 + $0x172c] ss:$16 sps:$4 sm:$0xff]  }
 0x746   : > { %12410 = vmatpush2.bf16.msra.mxu1 %v16161_v62  ;;  %v16233_v62 = vld [vmem:[%s21641_s7 + $0x15a8] ss:$16 sps:$4 sm:$0xff]   ;;  %v16241_v57 = vld [vmem:[%s21641_s7 + $0x158c] ss:$16 sps:$4 sm:$0xff]  }
 0x747   : > { %12411 = vmatprep.subr.bf16.mxu1 %v16169_v22  ;;  %v16236_v22 = vld [vmem:[%s21641_s7 + $0x1728] ss:$16 sps:$4 sm:$0xff]  }
 0x748   : > { %12509 = vmatpush1.bf16.msra.mxu0 %v16164_v33  ;;  %v16244_v33 = vld [vmem:[%s21641_s7 + $0x170c] ss:$16 sps:$4 sm:$0xff]   ;;  %v16239_v10 = vld [vmem:[%s21641_s7 + $0x1588] ss:$16 sps:$4 sm:$0xff]  }
 0x749   : > { %12510 = vmatprep.subr.bf16.mxu0 %v16172_v54  ;;  %v16247_v54 = vld [vmem:[%s21641_s7 + $0x156c] ss:$16 sps:$4 sm:$0xff]  }
 0x74a   : > { %12412 = vmatpush2.bf16.msra.mxu1 %v16167_v3  ;;  %v16242_v3 = vld [vmem:[%s21641_s7 + $0x1708] ss:$16 sps:$4 sm:$0xff]  }
 0x74b   : > { %12463 = vmatprep.subr.bf16.mxu1 %v16175_v19  ;;  %v16248_v19 = vld [vmem:[%s21643_s9 + $0x78] sm:$0xff]  }
 0x74c   : > { %12511 = vmatpush1.bf16.msra.mxu0 %v16170_v37  ;;  %v12587_v37 = vmax.f32 %v20909_v49, 0.0  ;;  %v16253_v49 = vld [vmem:[%s21643_s9 + $0x70] sm:$0xff]  }
 0x74d   : > { %v12169_v35 = vpop.f32.mrf.mxu1  ;;  %12414 = vmatmul.mubr.bf16.vlgmr.msra.gmra.mxu1 %v19997_v30  ;;  %12512 = vmatprep.subr.bf16.mxu0 %v16178_v47  ;;  %v16187_v30 = vld [vmem:[%s21641_s7 + $0x14ac] ss:$16 sps:$4 sm:$0xff]   ;;  %v16245_v47 = vld [vmem:[%s21641_s7 + $0x1568] ss:$16 sps:$4 sm:$0xff]  }
 0x74e   : > { %v12170_v17 = vadd.f32 %v12169_v35, %v21115_v58  ;;  %12464 = vmatpush1.bf16.msra.mxu1 %v16173_v61  ;;  %12495 = vmatprep.mubr.bf16.mxu1 %v20006_v45  ;;  %v16182_v58 = vld [vmem:[%s21641_s7 + $0x1648] ss:$16 sps:$4 sm:$0xff]   ;;  %v16252_v61 = vld [vmem:[%s21641_s7 + $0x154c] ss:$16 sps:$4 sm:$0xff]  }
 0x74f   : > { %v12171_v27 = vpop.f32.mrf.mxu1  ;;  %12465 = vmatprep.subr.bf16.mxu1 %v16181_v9  ;;  %v16249_v9 = vld [vmem:[%s21643_s9 + $0x38] sm:$0xff]  }
 0x750   : > { %v12172_v12 = vadd.f32 %v12171_v27, %v21123_v40  ;;  %12513 = vmatpush1.bf16.msra.mxu0 %v16176_v42  ;;  %v21317_v2 = vadd.f32 %v12210_v32, %v12170_v17  ;;  %v16232_v32 = vld [vmem:[%s21641_s7 + $0x174c] ss:$16 sps:$4 sm:$0xff]   ;;  %v12591_v42 = vpack.c.bf16 %v12587_v37, %v12587_v37  ;;  %v16250_v35 = vld [vmem:[%s21641_s7 + $0x1548] ss:$16 sps:$4 sm:$0xff]   ;;  %v16291_v37 = vld [vmem:[%s21643_s9 + $0xe0] sm:$0xff]  }
 0x751   : > { %v12173_v45 = vpop.f32.mrf.mxu1  ;;  %12514 = vmatprep.subr.bf16.mxu0 %v16184_v6  ;;  %v16257_v17 = vld [vmem:[%s21641_s7 + $0x152c] ss:$16 sps:$4 sm:$0xff]  }
 0x752   : > { %12466 = vmatpush1.bf16.msra.mxu1 %v16179_v15  ;;  %v21325_v23 = vadd.f32 %v12212_v7, %v12172_v12  ;;  %v16230_v7 = vld [vmem:[%s21641_s7 + $0x1748] ss:$16 sps:$4 sm:$0xff]   ;;  %v16254_v15 = vld [vmem:[%s21643_s9 + $0x30] sm:$0xff]  }
 0x753   : > { %v12174_v40 = vpop.f32.mrf.mxu1  ;;  %12467 = vmatprep.subr.bf16.mxu1 %v16187_v30  ;;  %v16258_v30 = vld [vmem:[%s21643_s9 + $0x68] sm:$0xff]  }
 0x754   : > { %12515 = vmatpush1.bf16.msra.mxu0 %v16182_v58  ;;  %v16262_v58 = vld [vmem:[%s21641_s7 + $0x150c] ss:$16 sps:$4 sm:$0xff]   ;;  %v16260_v40 = vld [vmem:[%s21641_s7 + $0x1508] ss:$16 sps:$4 sm:$0xff]  }
 0x755   : > { %12516 = vmatprep.subr.bf16.mxu0 %v16190_v46  ;;  %v16259_v45 = vld [vmem:[%s21643_s9 + $0x28] sm:$0xff]  }
 0x756   : > { %12468 = vmatpush1.bf16.msra.mxu1 %v16185_v51  ;;  %v16263_v51 = vld [vmem:[%s21643_s9 + $0x60] sm:$0xff]  }
 0x757   : > { %12469 = vmatprep.subr.bf16.mxu1 %v16193_v1  ;;  %v16267_v1 = vld [vmem:[%s21641_s7 + $0x186c] ss:$16 sps:$4 sm:$0xff]  }
 0x758   : > { %12517 = vmatpush1.bf16.msra.mxu0 %v16188_v44  ;;  %v16264_v44 = vld [vmem:[%s21643_s9 + $0x20] sm:$0xff]  }
 0x759   : > { %12518 = vmatprep.subr.bf16.mxu0 %v16196_v43  ;;  %v16268_v43 = vld [vmem:[%s21643_s9 + $0x58] sm:$0xff]  }
 0x75a   : > { %12470 = vmatpush1.bf16.msra.mxu1 %v16191_v16  ;;  %v16265_v16 = vld [vmem:[%s21641_s7 + $0x1868] ss:$16 sps:$4 sm:$0xff]  }
 0x75b   : > { %12471 = vmatprep.subr.bf16.mxu1 %v16199_v20  ;;  %v16272_v20 = vld [vmem:[%s21641_s7 + $0x184c] ss:$16 sps:$4 sm:$0xff]  }
 0x75c   : > { %12519 = vmatpush1.bf16.msra.mxu0 %v16194_v25  ;;  %v16269_v25 = vld [vmem:[%s21643_s9 + $0x18] sm:$0xff]  }
 0x75d   : > { %12520 = vmatprep.subr.bf16.mxu0 %v16202_v13 }
 0x75e   : > { %12472 = vmatpush1.bf16.msra.mxu1 %v16197_v36  ;;  %v16273_v36 = vld [vmem:[%s21643_s9 + $0x50] sm:$0xff]  }
 0x75f   : > { %12473 = vmatprep.subr.bf16.mxu1 %v16205_v4 }
 0x760   : > { %12521 = vmatpush2.bf16.msra.mxu0 %v16200_v53  ;;  %v16270_v53 = vld [vmem:[%s21641_s7 + $0x1848] ss:$16 sps:$4 sm:$0xff]  }
 0x761   : > { %12522 = vmatprep.subr.bf16.mxu0 %v16208_v18 }
 0x762   : > { %12474 = vmatpush1.bf16.msra.mxu1 %v16203_v8 }
 0x763   : > { %12475 = vmatprep.subr.bf16.mxu1 %v16211_v28 }
 0x764   : > { %12523 = vmatpush2.bf16.msra.mxu0 %v16206_v38 }
 0x765   : > { %12524 = vmatprep.subr.bf16.mxu0 %v16214_v48  ;;  %v16275_v48 = vld [vmem:[%s21641_s7 + $0x1828] ss:$16 sps:$4 sm:$0xff]  }
 0x766   : > { %12476 = vmatpush1.bf16.msra.mxu1 %v16209_v5 }
 0x767   : > { %12477 = vmatprep.subr.bf16.mxu1 %v16217_v21 }
 0x768   : > { %12525 = vmatpush2.bf16.msra.mxu0 %v16212_v56  ;;  %v16279_v56 = vld [vmem:[%s21643_s9 + $0x8] sm:$0xff]  }
 0x769   : > { %12526 = vmatprep.subr.bf16.mxu0 %v16220_v14  ;;  %v16283_v14 = vld [vmem:[%s21643_s9 + $0x40] sm:$0xff]  }
 0x76a   : > { %12478 = vmatpush1.bf16.msra.mxu1 %v16215_v31  ;;  %v16280_v31 = vld [vmem:[%s21641_s7 + $0x1808] ss:$16 sps:$4 sm:$0xff]  }
 0x76b   : > { %12479 = vmatprep.subr.bf16.mxu1 %v16223_v0  ;;  %v16284_v0 = vld [vmem:[%s21643_s9] sm:$0xff]  }
 0x76c   : > { %12527 = vmatpush2.bf16.msra.mxu0 %v16218_v29  ;;  %v12586_v29 = vmax.f32 %v20900_v59, 0.0  ;;  %v16286_v59 = vld [vmem:[%s21643_s9 + $0xb8] sm:$0xff]  }
 0x76d   : > { %12528 = vmatprep.subr.bf16.mxu0 %v16226_v60 }
 0x76e   : > { %12480 = vmatpush2.bf16.msra.mxu1 %v16221_v26  ;;  %v12590_v60 = vpack.c.bf16 %v12586_v29, %v12586_v29 }
 0x76f   : > { %12481 = vmatprep.subr.bf16.mxu1 %v16229_v50 }
 0x770   : > { %12529 = vmatpush2.bf16.msra.mxu0 %v16224_v41 }
 0x771   : > { %12530 = vmatprep.subr.bf16.mxu0 %v16232_v32 }
 0x772   : > { %12482 = vmatpush2.bf16.msra.mxu1 %v16227_v52  ;;  %v16285_v52 = vld [vmem:[%s21643_s9 + $0xf8] sm:$0xff]  }
 0x773   : > { %12483 = vmatprep.subr.bf16.mxu1 %v16235_v34  ;;  %v16287_v34 = vld [vmem:[%s21643_s9 + $0xf0] sm:$0xff]  }
 0x774   : > { %12531 = vmatpush2.bf16.msra.mxu0 %v16230_v7 }
 0x775   : > { %12532 = vmatprep.subr.bf16.mxu0 %v16238_v55 }
 0x776   : > { %12484 = vmatpush2.bf16.msra.mxu1 %v16233_v62 }
 0x777   : > { %12485 = vmatprep.subr.bf16.mxu1 %v16241_v57 }
 0x778   : > { %12533 = vmatpush2.bf16.msra.mxu0 %v16236_v22 }
 0x779   : > { %12534 = vmatprep.subr.bf16.mxu0 %v16244_v33  ;;  %v16289_v33 = vld [vmem:[%s21643_s9 + $0xe8] sm:$0xff]  }
 0x77a   : > { %12486 = vmatpush2.bf16.msra.mxu1 %v16239_v10  ;;  %v16290_v10 = vld [vmem:[%s21643_s9 + $0xa8] sm:$0xff]  }
 0x77b   : > { %12487 = vmatprep.subr.bf16.mxu1 %v16247_v54 }
 0x77c   : > { %12535 = vmatpush2.bf16.msra.mxu0 %v16242_v3 }
 0x77d   : > { %14758 = vmatprep.subr.bf16.mxu0 %v16248_v19 }
 0x77e   : > { %12488 = vmatpush2.bf16.msra.mxu1 %v16245_v47  ;;  %v16292_v47 = vld [vmem:[%s21643_s9 + $0xa0] sm:$0xff]  }
 0x77f   : > { %v12292_v6 = vpop.f32.mrf.mxu0  ;;  %12537 = vmatmul.mubr.bf16.vlgmr.msra.gmra.mxu0 %v20231_v63  ;;  %12489 = vmatprep.subr.bf16.mxu1 %v16252_v61  ;;  %v16255_v63 = vld [vmem:[%s21641_s7 + $0x1528] ss:$16 sps:$4 sm:$0xff]  }
 0x780   : > { %14759 = vmatpush3.bf16.msra.mxu0 %v16249_v9  ;;  %12883 = vmatprep.mubr.bf16.mxu0 %v12591_v42  ;;  %v16293_v61 = vld [vmem:[%s21643_s9 + $0xd8] sm:$0xff]   ;;  %v16296_v42 = vld [vmem:[%s21643_s9 + $0x90] sm:$0xff]  }
 0x781   : > { %v12294_v27 = vpop.f32.mrf.mxu0  ;;  %14760 = vmatprep.subr.bf16.mxu0 %v16253_v49  ;;  %v16294_v9 = vld [vmem:[%s21643_s9 + $0x98] sm:$0xff]   ;;  %v16295_v49 = vld [vmem:[%s21643_s9 + $0xd0] sm:$0xff]  }
 0x782   : > { %12490 = vmatpush2.bf16.msra.mxu1 %v16250_v35  ;;  %v16297_v35 = vld [vmem:[%s21643_s9 + $0xc8] sm:$0xff]  }
 0x783   : > { %v12296_v12 = vpop.f32.mrf.mxu0  ;;  %12491 = vmatprep.subr.bf16.mxu1 %v16257_v17  ;;  %v16299_v17 = vld [vmem:[%s21643_s9 + $0xc0] sm:$0xff]  }
 0x784   : > { %14761 = vmatpush3.bf16.msra.mxu0 %v16254_v15  ;;  %v16300_v15 = vld [vmem:[%s21643_s9 + $0x80] sm:$0xff]  }
 0x785   : > { %v12297_v46 = vpop.f32.mrf.mxu0  ;;  %14762 = vmatprep.subr.bf16.mxu0 %v16258_v30 }
 0x786   : > { %12492 = vmatpush2.bf16.msra.mxu1 %v16255_v63 }
 0x787   : > { %12493 = vmatprep.subr.bf16.mxu1 %v16262_v58 }
 0x788   : > { %14763 = vmatpush3.bf16.msra.mxu0 %v16259_v45 }
 0x789   : > { %14764 = vmatprep.subr.bf16.mxu0 %v16263_v51 }
 0x78a   : > { %12494 = vmatpush2.bf16.msra.mxu1 %v16260_v40 }
 0x78b   : > { %12553 = vmatprep.subr.bf16.mxu1 %v16267_v1 }
 0x78c   : > { %14765 = vmatpush3.bf16.msra.mxu0 %v16264_v44 }
 0x78d   : > { %v12251_v13 = vpop.f32.mrf.mxu1  ;;  %12496 = vmatmul.mubr.bf16.vlgmr.msra.gmra.mxu1 %v20214_v24  ;;  %14766 = vmatprep.subr.bf16.mxu0 %v16268_v43  ;;  %v16277_v24 = vld [vmem:[%s21641_s7 + $0x182c] ss:$16 sps:$4 sm:$0xff]  }
 0x78e   : > { %v12252_v4 = vadd.f32 %v12251_v13, %v21317_v2  ;;  %12554 = vmatpush1.bf16.msra.mxu1 %v16265_v16  ;;  %12577 = vmatprep.mubr.bf16.mxu1 %v16367_v11  ;;  %v16274_v2 = vld [vmem:[%s21643_s9 + $0x10] sm:$0xff]   ;;  %v16278_v11 = vld [vmem:[%s21643_s9 + $0x48] sm:$0xff]  }
 0x78f   : > { %v12253_v18 = vpop.f32.mrf.mxu1  ;;  %12555 = vmatprep.subr.bf16.mxu1 %v16272_v20 }
 0x790   : > { %v12254_v8 = vadd.f32 %v12253_v18, %v21325_v23  ;;  %14767 = vmatpush3.bf16.msra.mxu0 %v16269_v25  ;;  %v12293_v28 = vadd.f32 %v12292_v6, %v12252_v4  ;;  %v16282_v23 = vld [vmem:[%s21641_s7 + $0x180c] ss:$16 sps:$4 sm:$0xff]  }
 0x791   : > { %v12255_v38 = vpop.f32.mrf.mxu1  ;;  %14768 = vmatprep.subr.bf16.mxu0 %v16273_v36  ;;  %v16298_v6 = vld [vmem:[%s21643_s9 + $0x88] sm:$0xff]  }
 0x792   : > { %12556 = vmatpush1.bf16.msra.mxu1 %v16270_v53  ;;  %v12295_v5 = vadd.f32 %v12294_v27, %v12254_v8 }
 0x793   : > { %v12256_v21 = vpop.f32.mrf.mxu1  ;;  %12557 = vmatprep.subr.bf16.mxu1 %v16277_v24 }
 0x794   : > { %14769 = vmatpush3.bf16.msra.mxu0 %v16274_v2 }
 0x795   : > { %14770 = vmatprep.subr.bf16.mxu0 %v16278_v11 }
 0x796   : > { %12558 = vmatpush1.bf16.msra.mxu1 %v16275_v48 }
 0x797   : > { %12559 = vmatprep.subr.bf16.mxu1 %v16282_v23 }
 0x798   : > { %14771 = vmatpush3.bf16.msra.mxu0 %v16279_v56 }
 0x799   : > { %14772 = vmatprep.subr.bf16.mxu0 %v16283_v14 }
 0x79a   : > { %12560 = vmatpush1.bf16.msra.mxu1 %v16280_v31 }
 0x79b   : > { %14780 = vmatprep.subr.bf16.mxu1 %v16285_v52 }
 0x79c   : > { %14773 = vmatpush3.bf16.msra.mxu0 %v16284_v0 }
 0x79d   : > { %14232 = vmatmul.mubr.msk.bf16.vlgmr.msra.gmra.mxu1 %vm5264_vm7, %v20285_v39  ;;  %v16288_v39 = vld [vmem:[%s21643_s9 + $0xb0] sm:$0xff]  }
 0x79e   : > { %14781 = vmatpush3.bf16.msra.mxu1 %v16286_v59 }
 0x79f   : > { %12884 = vmatmul.mubr.bf16.vlgmr.msra.gmra.mxu0 %v12590_v60  ;;  %14782 = vmatprep.subr.bf16.mxu1 %v16287_v34 }
 0x7a2   : > { %14783 = vmatpush3.bf16.msra.mxu1 %v16288_v39 }
 0x7a3   : > { %14784 = vmatprep.subr.bf16.mxu1 %v16289_v33 }
 0x7a6   : > { %14785 = vmatpush3.bf16.msra.mxu1 %v16290_v10 }
 0x7a7   : > { %14786 = vmatprep.subr.bf16.mxu1 %v16291_v37 }
 0x7aa   : > { %14787 = vmatpush3.bf16.msra.mxu1 %v16292_v47 }
 0x7ab   : > { %14788 = vmatprep.subr.bf16.mxu1 %v16293_v61 }
 0x7ae   : > { %14789 = vmatpush3.bf16.msra.mxu1 %v16294_v9 }
 0x7af   : > { %14790 = vmatprep.subr.bf16.mxu1 %v16295_v49 }
 0x7b2   : > { %14791 = vmatpush3.bf16.msra.mxu1 %v16296_v42 }
 0x7b3   : > { %14792 = vmatprep.subr.bf16.mxu1 %v16297_v35 }
 0x7b6   : > { %14793 = vmatpush3.bf16.msra.mxu1 %v16298_v6 }
 0x7b7   : > { %14794 = vmatprep.subr.bf16.mxu1 %v16299_v17 }
 0x7ba   : > { %14795 = vmatpush3.bf16.msra.mxu1 %v16300_v15 }
 0x7bf   : > { %v12374_v26 = vpop.f32.mrf.mxu0 }
 0x7c1   : > { %v12376_v50 = vpop.f32.mrf.mxu0 }
 0x7c3   : > { %v12378_v41 = vpop.f32.mrf.mxu0 }
 0x7c5   : > { %v12379_v32 = vpop.f32.mrf.mxu0 }
 0x7c6   : > { %v12658_v32 = vld [vmem:[%s21644_s10] sm:$0x1] }
 0x7cd   : > { %v12333_v7 = vpop.f32.mrf.mxu1 }
 0x7ce   : > { %v12334_v55 = vadd.f32 %v12333_v7, %v12293_v28 }
 0x7cf   : > { %v12335_v62 = vpop.f32.mrf.mxu1 }
 0x7d0   : > { %v12336_v57 = vadd.f32 %v12335_v62, %v12295_v5  ;;  %v12375_v22 = vadd.f32 %v12374_v26, %v12334_v55 }
 0x7d1   : > { %v12337_v54 = vpop.f32.mrf.mxu1 }
 0x7d2   : > { %v12377_v3 = vadd.f32 %v12376_v50, %v12336_v57 }
 0x7d3   : > { %v12338_v19 = vpop.f32.mrf.mxu1 }
 0x7ff   : > { %v12456_v27 = vpop.f32.mrf.mxu0 }
 0x801   : > { %v12458_v30 = vpop.f32.mrf.mxu0 }
 0x803   : > { %v12460_v63 = vpop.f32.mrf.mxu0 }
 0x805   : > { %v12461_v12 = vpop.f32.mrf.mxu0 }
 0x80d   : > { %v12415_v58 = vpop.f32.mrf.mxu1 }
 0x80e   : > { %v12416_v45 = vadd.f32 %v12415_v58, %v12375_v22 }
 0x80f   : > { %v12417_v46 = vpop.f32.mrf.mxu1 }
 0x810   : > { %v12418_v51 = vadd.f32 %v12417_v46, %v12377_v3  ;;  %v12457_v40 = vadd.f32 %v12456_v27, %v12416_v45 }
 0x811   : > { %v12419_v1 = vpop.f32.mrf.mxu1 }
 0x812   : > { %v12459_v44 = vadd.f32 %v12458_v30, %v12418_v51 }
 0x813   : > { %v12420_v43 = vpop.f32.mrf.mxu1 }
 0x83f   : > { %v12538_v16 = vpop.f32.mrf.mxu0 }
 0x841   : > { %v12540_v20 = vpop.f32.mrf.mxu0 }
 0x843   : > { %v12542_v25 = vpop.f32.mrf.mxu0 }
 0x845   : > { %v12543_v13 = vpop.f32.mrf.mxu0 }
 0x84d   : > { %v12497_v36 = vpop.f32.mrf.mxu1 }
 0x84e   : > { %v12498_v24 = vadd.f32 %v12497_v36, %v12457_v40 }
 0x84f   : > { %v12499_v4 = vpop.f32.mrf.mxu1 }
 0x850   : > { %v12500_v8 = vadd.f32 %v12499_v4, %v12459_v44  ;;  %v12539_v2 = vadd.f32 %v12538_v16, %v12498_v24 }
 0x851   : > { %v12501_v53 = vpop.f32.mrf.mxu1 }
 0x852   : > { %v12541_v11 = vadd.f32 %v12540_v20, %v12500_v8 }
 0x853   : > { %v12502_v18 = vpop.f32.mrf.mxu1 }
 0x85d   : > { %v12579_v28 = vpop.f32.mrf.mxu1 }
 0x85e   : > { %v12580_v38 = vadd.f32 %v12579_v28, %v12539_v2 }
 0x85f   : > { %v12581_v48 = vpop.f32.mrf.mxu1  ;;  %v14774_v5 = vpop.f32.mrf.mxu0 }
 0x860   : > { %v12582_v21 = vadd.f32 %v12581_v48, %v12541_v11  ;;  %v12588_v23 = vmax.f32 %v12580_v38, 0.0 }
 0x861   : > { %v12583_v56 = vpop.f32.mrf.mxu1  ;;  %v14775_v14 = vpop.f32.mrf.mxu0 }
 0x862   : > { %v12589_v31 = vmax.f32 %v12582_v21, 0.0  ;;  %v14776_v0 = vadd.f32 %v14775_v14, %v14774_v5  ;;  %v12592_v50 = vpack.c.bf16 %v12588_v23, %v12588_v23 }
 0x863   : > { %v12584_v29 = vpop.f32.mrf.mxu1  ;;  %v14777_v60 = vpop.f32.mrf.mxu0 }
 0x864   : > { %v12593_v26 = vpack.c.bf16 %v12589_v31, %v12589_v31  ;;  %v12886_v34 = vadd.f32 %v14776_v0, %v12658_v32 }
 0x865   : > { %v14778_v41 = vpop.f32.mrf.mxu0 }
 0x866   : > { %12923 = vmatprep.mubr.bf16.mxu1 %v12593_v26 }
 0x867   : > { %12924 = vmatmul.mubr.bf16.vlgmr.msra.gmra.mxu1 %v12592_v50 }
 0x927   : > { %v14796_v52 = vpop.f32.mrf.mxu1 }
 0x929   : > { %v14797_v59 = vpop.f32.mrf.mxu1 }
 0x92a   : > { %v14798_v39 = vadd.f32 %v14797_v59, %v14796_v52 }
 0x92b   : > { %v14799_v7 = vpop.f32.mrf.mxu1 }
 0x92c   : > { %v12926_v55 = vadd.f32 %v14798_v39, %v12886_v34 }
 0x92d   : > { %v14800_v62 = vpop.f32.mrf.mxu1 }
 0x92e   : > { %12931 = vst [vmem:[%s378_s12] sm:$0x1] %v12926_v55 }
 0x92f   : > { %16316 = shalt.err (!%p16313_p3)
}
 0x930   : > { %s16317_s15 = scalar_lea.hbm %s21599_s14, 16  ;;  %s16321_s13 = scalar_lea.hbm %s21645_s11, 32 }
 0x931   : > { %p16318_p4 = scmp.ne.s32.totalorder %s21599_s14, %s16317_s15  ;;  %p16322_p9 = scmp.lt.s32.totalorder %s21599_s14, %s21645_s11 }
 0x932   : > { %p16323_p10 = scmp.lt.s32.totalorder %s16321_s13, %s16317_s15 }
 0x933   : > { %p16319_p7 = pnand %p16318_p4, %p16467_p5 }
 0x934   : > { %p16324_p11 = por %p16323_p10, %p16322_p9 }
 0x935   : > { %p16320_p8 = pneg %p16319_p7 }
 0x937   : > { %p16325_p12 = pnand %p16324_p11, %p16320_p8 }
 0x939   : > { %16328 = shalt.err (!%p16325_p12)
}
 0x93a   : > { %14819 = dma.vmem_to_hbm [thread:$0]  (%p16467_p5), %s12946_s24, 16, %s21599_s14, %s12933_s22  }
 0x93b PF: > { %p14825_p13 = scmp.ge.s32.totalorder %s16363_s20, 2  ;;  %s12957_s25 = sand.u32 1, %s16351_s17  }
 0x93c   : > { %s12958_s30 = scalar_lea.sflag [#allocation10], %s12957_s25 }
 0x93d   : > { %p14822_p0 = pnand %p14825_p13, %p16471_p6 }
 0x93f   : > { %p14823_p1 = pneg %p14822_p0 }
 0x941   : > { %16346 = dma.done.wait (%p14823_p1), %s12958_s30, 16  }
 0x942   : > { %16348 = vsyncadd (%p14823_p1), %s12958_s30, 4294967280  ;;  %s21918_s26 = sld [smem:[#allocation12_spill]]  ;;  %p21_p2 = scmp.ge.s32.totalorder %s16454_s23, 4  }
 0x943   : > { %s21919_s17 = smov %s16355_s18  ;;  %s21920_s18 = smov %s16359_s19 }
 0x944   : > { %s21922_s20 = smov %s16454_s23  ;;  %23 = sbr.rel (!%p21_p2) target bundleno = 3 (0x3), region = 109 }
 0x948   : > { %s21921_s19 = smov %s21918_s26 }
 0x949   :  { %12962 = vsyncpa [#allocation10], 1 }
 0x94a   :  { %12964 = vsyncpa [#allocation10 + $0x1], 1 }

</bundles_post_ra>
